<compile_context>
chip_gen: v7x
topology: tpu7x:2x2x1
jax: 0.10.0
libtpu: 0.0.40
codegen_flags: <defaults>
</compile_context>

<pallas_src>
import functools

import jax
import jax.numpy as jnp
from jax.experimental import pallas as pl
from jax.experimental.pallas import tpu as pltpu


# ----------------------------------------------------------------------------
# In-kernel helpers
# ----------------------------------------------------------------------------
def _conv_bn_relu_pool_hwc(a, w_ref, scale, shift, *, H, W, C, pool):
    """3x3 conv (replicate pad) + BN + ReLU + MaxPool(1, pool) on an HWC tile.

    a:      (H, W, C) activation value (channels on the 128-lane axis)
    w_ref:  (9*C, Cout) reshaped HWIO weights, rows ordered (dy, dx, ci)
    scale:  (1, Cout) folded BN scale;  shift: (1, Cout) folded BN shift
    returns (H, W // pool, Cout)
    """
    Cout = w_ref.shape[1]
    # Width-shifted copies implement replicate padding along W.
    a_m = jnp.concatenate([a[:, :1], a[:, :W - 1]], axis=1)     # column w-1
    a_p = jnp.concatenate([a[:, 1:], a[:, W - 1:]], axis=1)     # column w+1
    taps = []
    for s in (a_m, a, a_p):
        sp = jnp.concatenate([s[:1], s, s[H - 1:]], axis=0)     # replicate pad H
        taps.append([sp[dy:dy + H].reshape(H * W, C) for dy in range(3)])
    # (dy, dx) row-major tap order, matching the (3,3,C,Cout)->(9C,Cout) reshape.
    tap_list = [taps[dx][dy] for dy in range(3) for dx in range(3)]

    # Pair taps -> fat-K (K = 2*C = 128) matmuls; accumulation happens on the
    # MXU, the running accumulator is only (H*W, Cout) <= 32 KB.
    acc = jnp.dot(jnp.concatenate([tap_list[0], tap_list[1]], axis=-1),
                  w_ref[0:2 * C, :], preferred_element_type=jnp.float32)
    for j in range(1, 4):
        pair = jnp.concatenate([tap_list[2 * j], tap_list[2 * j + 1]], axis=-1)
        acc = acc + jnp.dot(pair, w_ref[2 * j * C:(2 * j + 2) * C, :],
                            preferred_element_type=jnp.float32)
    acc = acc + jnp.dot(tap_list[8], w_ref[8 * C:, :],
                        preferred_element_type=jnp.float32)

    y = jnp.maximum(acc * scale + shift, 0.0)                   # BN + ReLU
    # Width max-pool: rows are (h, w) row-major and W % pool == 0, so disjoint
    # groups of `pool` consecutive rows are exactly one pooling window.
    y = y.reshape(H * W // pool, pool, Cout).max(axis=1)
    return y.reshape(H, W // pool, Cout)


def _feature_extraction_kernel(x_ref, w1_ref, s1_ref, t1_ref,
                               w2_ref, s2_ref, t2_ref,
                               w3_ref, s3_ref, t3_ref,
                               g_ref, b_ref, o_ref, *, H, W, Cin, C, eps):
    """One batch element: conv1 -> conv2 -> conv3 -> flatten -> LayerNorm."""
    # ---------------- conv block 1 (input layout (H, Cin, W)) ---------------
    # The FFT-bin axis W=128 is on the lanes; Cin=8 only occupies sublanes, so
    # there is no 16x lane-padding waste, and the matmul output (C, W) is
    # fully lane dense.
    x = x_ref[0]                                                # (H, Cin, W)
    x_m = jnp.concatenate([x[:, :, :1], x[:, :, :W - 1]], axis=2)   # col w-1
    x_p = jnp.concatenate([x[:, :, 1:], x[:, :, W - 1:]], axis=2)   # col w+1
    shifted = (x_m, x, x_p)
    w1 = w1_ref[...]                                            # (C, 9*Cin)
    s1 = s1_ref[...]                                            # (C, 1)
    t1 = t1_ref[...]
    pool1 = 8
    rows = []
    for h in range(H):      # per-row fat-K matmul keeps live values <= ~36 KB
        blocks = []
        for dy in range(3):
            r = min(max(h - 1 + dy, 0), H - 1)                  # replicate pad H
            for dx in range(3):
                blocks.append(shifted[dx][r])                   # (Cin, W)
        patches = jnp.concatenate(blocks, axis=0)               # (9*Cin, W)
        o = jnp.dot(w1, patches, preferred_element_type=jnp.float32)  # (C, W)
        o = jnp.maximum(o * s1 + t1, 0.0)                       # BN + ReLU
        # -> (W, C) then width max-pool over disjoint groups of 8 columns.
        p = o.T.reshape(W // pool1, pool1, C).max(axis=1)       # (W//8, C)
        rows.append(p)
    a = jnp.stack(rows, axis=0)                                 # (H, W//8, C)

    # ---------------- conv blocks 2 & 3 (HWC, C=64 on lanes) ----------------
    a = _conv_bn_relu_pool_hwc(a, w2_ref, s2_ref[...], t2_ref[...],
                               H=H, W=W // 8, C=C, pool=8)      # (H, W//64, C)
    a = _conv_bn_relu_pool_hwc(a, w3_ref, s3_ref[...], t3_ref[...],
                               H=H, W=W // 64, C=C, pool=2)     # (H, W//128, C)

    # ---------------- permute(0,2,1,3) + view + LayerNorm --------------------
    # NCHW output is (C, H, W3); PyTorch flattens to (H, C*W3) with C major.
    W3 = W // 128
    feat = jnp.swapaxes(a, 1, 2).reshape(H, C * W3)             # (T, F)
    mean = jnp.mean(feat)
    var = jnp.mean(jnp.square(feat - mean))
    inv = jax.lax.rsqrt(var + eps)
    o_ref[0] = (feat - mean) * inv * g_ref[...] + b_ref[...]


# ----------------------------------------------------------------------------
# Wrapper
# ----------------------------------------------------------------------------
def feature_extraction_forward(x_nchw, kp):
    """Full FeatureExtraction forward. x_nchw: [N, 8, T, B] -> [N, T, 64*B/128]."""
    N, Cin, T, B = x_nchw.shape
    assert Cin == 8
    # TODO(synk): MaxPool ceil_mode tails only arise if B is not a multiple of
    # 128; that ragged case would need masked tail windows.
    assert B % 128 == 0, "ceil_mode pooling is a no-op only for B % 128 == 0"
    C = 64
    F = C * (B // 128)

    # [N, C, H, W] -> [N, H, C, W]: keep the wide FFT-bin axis on the lanes.
    x = jnp.transpose(x_nchw, (0, 2, 1, 3))

    kernel = functools.partial(_feature_extraction_kernel,
                               H=T, W=B, Cin=Cin, C=C, eps=1e-5)

    def full(shape):
        return pl.BlockSpec(shape, lambda n, _s=shape: (0,) * len(_s))

    return pl.pallas_call(
        kernel,
        out_shape=jax.ShapeDtypeStruct((N, T, F), jnp.float32),
        grid=(N,),
        in_specs=[
            pl.BlockSpec((1, T, Cin, B), lambda n: (n, 0, 0, 0)),   # x
            full((C, 9 * Cin)),                                     # w1 (64,72)
            full((C, 1)), full((C, 1)),                             # scale1/shift1
            full((9 * C, C)),                                       # w2 (576,64)
            full((1, C)), full((1, C)),                             # scale2/shift2
            full((9 * C, C)),                                       # w3 (576,64)
            full((1, C)), full((1, C)),                             # scale3/shift3
            full((T, F)), full((T, F)),                             # LN gamma/beta
        ],
        out_specs=pl.BlockSpec((1, T, F), lambda n: (n, 0, 0)),
        compiler_params=pltpu.CompilerParams(
            dimension_semantics=("parallel",)),
    )(x, kp["w1"], kp["s1"], kp["t1"], kp["w2"], kp["s2"], kp["t2"],
      kp["w3"], kp["s3"], kp["t3"], kp["ln_g"], kp["ln_b"])


# ----------------------------------------------------------------------------
# Deterministic parameters (eval-mode BN folded) + pure-JAX reference
# ----------------------------------------------------------------------------
def make_params(key, T, F_norm):
    raw, kp = {}, {}
    cins = (8, 64, 64)
    for i, cin in enumerate(cins, start=1):
        key, k1, k2, k3, k4, k5, k6 = jax.random.split(key, 7)
        w = 0.05 * jax.random.normal(k1, (3, 3, cin, 64), jnp.float32)  # HWIO
        b = 0.05 * jax.random.normal(k2, (64,), jnp.float32)
        gamma = 1.0 + 0.1 * jax.random.normal(k3, (64,), jnp.float32)
        beta = 0.1 * jax.random.normal(k4, (64,), jnp.float32)
        rmean = 0.1 * jax.random.normal(k5, (64,), jnp.float32)
        rvar = jax.random.uniform(k6, (64,), jnp.float32, 0.5, 1.5)
        raw[f"c{i}"] = dict(w=w, b=b, gamma=gamma, beta=beta,
                            rmean=rmean, rvar=rvar)
        scale = gamma / jnp.sqrt(rvar + 1e-5)
        shift = (b - rmean) * scale + beta
        if i == 1:
            kp["w1"] = w.reshape(9 * cin, 64).T      # (64, 72), cols (dy,dx,ci)
            kp["s1"] = scale.reshape(64, 1)
            kp["t1"] = shift.reshape(64, 1)
        else:
            kp[f"w{i}"] = w.reshape(9 * cin, 64)     # (576, 64), rows (dy,dx,ci)
            kp[f"s{i}"] = scale.reshape(1, 64)
            kp[f"t{i}"] = shift.reshape(1, 64)
    key, k1, k2 = jax.random.split(key, 3)
    ln_g = 1.0 + 0.1 * jax.random.normal(k1, (T, F_norm), jnp.float32)
    ln_b = 0.1 * jax.random.normal(k2, (T, F_norm), jnp.float32)
    raw["ln_g"], raw["ln_b"] = ln_g, ln_b
    kp["ln_g"], kp["ln_b"] = ln_g, ln_b
    return raw, kp


def reference_forward(x_nchw, raw):
    """Pure-JAX/XLA reference mirroring the PyTorch forward (eval-mode BN)."""
    x = x_nchw
    for i, pool in enumerate((8, 8, 2), start=1):
        p = raw[f"c{i}"]
        xp = jnp.pad(x, ((0, 0), (0, 0), (1, 1), (1, 1)), mode="edge")
        y = jax.lax.conv_general_dilated(
            xp, p["w"], (1, 1), "VALID",
            dimension_numbers=("NCHW", "HWIO", "NCHW"))
        y = y + p["b"][None, :, None, None]
        scale = p["gamma"] / jnp.sqrt(p["rvar"] + 1e-5)
        y = (y - p["rmean"][None, :, None, None]) * scale[None, :, None, None] \
            + p["beta"][None, :, None, None]
        y = jnp.maximum(y, 0.0)
        N, C, H, W = y.shape
        x = y.reshape(N, C, H, W // pool, pool).max(axis=-1)
    x = jnp.transpose(x, (0, 2, 1, 3))
    N, T = x.shape[0], x.shape[1]
    x = x.reshape(N, T, -1)
    mean = x.mean(axis=(1, 2), keepdims=True)
    var = jnp.mean(jnp.square(x - mean), axis=(1, 2), keepdims=True)
    return (x - mean) / jnp.sqrt(var + 1e-5) * raw["ln_g"] + raw["ln_b"]


# ----------------------------------------------------------------------------
if __name__ == "__main__":
    # num_steps_per_chunk T = 8, spectrogram width B = 128 (-> /8/8/2 = 1),
    # so the LayerNorm feature dim is 64*1 = 64 (i.e. num_fft_bins = 256).
    N, CIN, T, B = 2, 8, 8, 128
    F_NORM = 64

    key = jax.random.PRNGKey(0)
    key, kx = jax.random.split(key)
    audio_features = jax.random.normal(kx, (N, CIN, T, B), jnp.float32)

    raw_params, kernel_params = make_params(key, T, F_NORM)

    out = feature_extraction_forward(audio_features, kernel_params)
    out = jax.block_until_ready(out)
    assert out.shape == (N, T, F_NORM), out.shape

    ref = jax.block_until_ready(reference_forward(audio_features, raw_params))
    assert jnp.allclose(out, ref, rtol=2e-3, atol=2e-3), \
        float(jnp.max(jnp.abs(out - ref)))

    print("KERNEL_OK")
</pallas_src>

<mosaic_0001>
module attributes {stable_mosaic.version = 11 : i64} {
  func.func @_feature_extraction_kernel(%arg0: i32, %arg1: memref<1x8x8x128xf32, #tpu.memory_space<vmem>>, %arg2: memref<64x72xf32, #tpu.memory_space<vmem>>, %arg3: memref<64x1xf32, #tpu.memory_space<vmem>>, %arg4: memref<64x1xf32, #tpu.memory_space<vmem>>, %arg5: memref<576x64xf32, #tpu.memory_space<vmem>>, %arg6: memref<1x64xf32, #tpu.memory_space<vmem>>, %arg7: memref<1x64xf32, #tpu.memory_space<vmem>>, %arg8: memref<576x64xf32, #tpu.memory_space<vmem>>, %arg9: memref<1x64xf32, #tpu.memory_space<vmem>>, %arg10: memref<1x64xf32, #tpu.memory_space<vmem>>, %arg11: memref<8x64xf32, #tpu.memory_space<vmem>>, %arg12: memref<8x64xf32, #tpu.memory_space<vmem>>, %arg13: memref<1x8x64xf32, #tpu.memory_space<vmem>>) attributes {dimension_semantics = [#tpu.dimension_semantics<parallel>], iteration_bounds = array<i64: 2>, scalar_prefetch = 0 : i64, scratch_operands = 0 : i64, tpu.core_type = #tpu.core_type<tc>, window_params = [{transform_indices = @transform_0, window_bounds = array<i64: 1, 8, 8, 128>}, {pipeline_mode = #tpu.pipeline_mode<synchronous>, transform_indices = @transform_1, window_bounds = array<i64: 64, 72>}, {pipeline_mode = #tpu.pipeline_mode<synchronous>, transform_indices = @transform_2, window_bounds = array<i64: 64, 1>}, {pipeline_mode = #tpu.pipeline_mode<synchronous>, transform_indices = @transform_3, window_bounds = array<i64: 64, 1>}, {pipeline_mode = #tpu.pipeline_mode<synchronous>, transform_indices = @transform_4, window_bounds = array<i64: 576, 64>}, {pipeline_mode = #tpu.pipeline_mode<synchronous>, transform_indices = @transform_5, window_bounds = array<i64: 1, 64>}, {pipeline_mode = #tpu.pipeline_mode<synchronous>, transform_indices = @transform_6, window_bounds = array<i64: 1, 64>}, {pipeline_mode = #tpu.pipeline_mode<synchronous>, transform_indices = @transform_7, window_bounds = array<i64: 576, 64>}, {pipeline_mode = #tpu.pipeline_mode<synchronous>, transform_indices = @transform_8, window_bounds = array<i64: 1, 64>}, {pipeline_mode = #tpu.pipeline_mode<synchronous>, transform_indices = @transform_9, window_bounds = array<i64: 1, 64>}, {pipeline_mode = #tpu.pipeline_mode<synchronous>, transform_indices = @transform_10, window_bounds = array<i64: 8, 64>}, {pipeline_mode = #tpu.pipeline_mode<synchronous>, transform_indices = @transform_11, window_bounds = array<i64: 8, 64>}, {transform_indices = @transform_12, window_bounds = array<i64: 1, 8, 64>}]} {
    %c0 = arith.constant 0 : index
    %c0_0 = arith.constant 0 : index
    %c0_1 = arith.constant 0 : index
    %c0_2 = arith.constant 0 : index
    %0 = vector.load %arg1[%c0, %c0_0, %c0_1, %c0_2] : memref<1x8x8x128xf32, #tpu.memory_space<vmem>>, vector<1x8x8x128xf32>
    %1 = vector.shape_cast %0 : vector<1x8x8x128xf32> to vector<8x8x128xf32>
    %2 = vector.extract_strided_slice %1 {offsets = [0, 0, 0], sizes = [8, 8, 1], strides = [1, 1, 1]} : vector<8x8x128xf32> to vector<8x8x1xf32>
    %3 = vector.extract_strided_slice %1 {offsets = [0, 0, 0], sizes = [8, 8, 127], strides = [1, 1, 1]} : vector<8x8x128xf32> to vector<8x8x127xf32>
    %4 = tpu.concatenate %2, %3 in 2 : vector<8x8x1xf32>, vector<8x8x127xf32> -> vector<8x8x128xf32>
    %5 = vector.extract_strided_slice %1 {offsets = [0, 0, 1], sizes = [8, 8, 127], strides = [1, 1, 1]} : vector<8x8x128xf32> to vector<8x8x127xf32>
    %6 = vector.extract_strided_slice %1 {offsets = [0, 0, 127], sizes = [8, 8, 1], strides = [1, 1, 1]} : vector<8x8x128xf32> to vector<8x8x1xf32>
    %7 = tpu.concatenate %5, %6 in 2 : vector<8x8x127xf32>, vector<8x8x1xf32> -> vector<8x8x128xf32>
    %c0_3 = arith.constant 0 : index
    %c0_4 = arith.constant 0 : index
    %8 = vector.load %arg2[%c0_3, %c0_4] : memref<64x72xf32, #tpu.memory_space<vmem>>, vector<64x72xf32>
    %c0_5 = arith.constant 0 : index
    %c0_6 = arith.constant 0 : index
    %9 = vector.load %arg3[%c0_5, %c0_6] : memref<64x1xf32, #tpu.memory_space<vmem>>, vector<64x1xf32>
    %c0_7 = arith.constant 0 : index
    %c0_8 = arith.constant 0 : index
    %10 = vector.load %arg4[%c0_7, %c0_8] : memref<64x1xf32, #tpu.memory_space<vmem>>, vector<64x1xf32>
    %11 = vector.extract_strided_slice %4 {offsets = [0, 0, 0], sizes = [1, 8, 128], strides = [1, 1, 1]} : vector<8x8x128xf32> to vector<1x8x128xf32>
    %12 = vector.shape_cast %11 : vector<1x8x128xf32> to vector<8x128xf32>
    %13 = vector.extract_strided_slice %1 {offsets = [0, 0, 0], sizes = [1, 8, 128], strides = [1, 1, 1]} : vector<8x8x128xf32> to vector<1x8x128xf32>
    %14 = vector.shape_cast %13 : vector<1x8x128xf32> to vector<8x128xf32>
    %15 = vector.extract_strided_slice %7 {offsets = [0, 0, 0], sizes = [1, 8, 128], strides = [1, 1, 1]} : vector<8x8x128xf32> to vector<1x8x128xf32>
    %16 = vector.shape_cast %15 : vector<1x8x128xf32> to vector<8x128xf32>
    %17 = vector.extract_strided_slice %4 {offsets = [0, 0, 0], sizes = [1, 8, 128], strides = [1, 1, 1]} : vector<8x8x128xf32> to vector<1x8x128xf32>
    %18 = vector.shape_cast %17 : vector<1x8x128xf32> to vector<8x128xf32>
    %19 = vector.extract_strided_slice %1 {offsets = [0, 0, 0], sizes = [1, 8, 128], strides = [1, 1, 1]} : vector<8x8x128xf32> to vector<1x8x128xf32>
    %20 = vector.shape_cast %19 : vector<1x8x128xf32> to vector<8x128xf32>
    %21 = vector.extract_strided_slice %7 {offsets = [0, 0, 0], sizes = [1, 8, 128], strides = [1, 1, 1]} : vector<8x8x128xf32> to vector<1x8x128xf32>
    %22 = vector.shape_cast %21 : vector<1x8x128xf32> to vector<8x128xf32>
    %23 = vector.extract_strided_slice %4 {offsets = [1, 0, 0], sizes = [1, 8, 128], strides = [1, 1, 1]} : vector<8x8x128xf32> to vector<1x8x128xf32>
    %24 = vector.shape_cast %23 : vector<1x8x128xf32> to vector<8x128xf32>
    %25 = vector.extract_strided_slice %1 {offsets = [1, 0, 0], sizes = [1, 8, 128], strides = [1, 1, 1]} : vector<8x8x128xf32> to vector<1x8x128xf32>
    %26 = vector.shape_cast %25 : vector<1x8x128xf32> to vector<8x128xf32>
    %27 = vector.extract_strided_slice %7 {offsets = [1, 0, 0], sizes = [1, 8, 128], strides = [1, 1, 1]} : vector<8x8x128xf32> to vector<1x8x128xf32>
    %28 = vector.shape_cast %27 : vector<1x8x128xf32> to vector<8x128xf32>
    %29 = tpu.concatenate %12, %14, %16, %18, %20, %22, %24, %26, %28 in 0 : vector<8x128xf32>, vector<8x128xf32>, vector<8x128xf32>, vector<8x128xf32>, vector<8x128xf32>, vector<8x128xf32>, vector<8x128xf32>, vector<8x128xf32>, vector<8x128xf32> -> vector<72x128xf32>
    %cst = arith.constant dense<0.000000e+00> : vector<64x128xf32>
    %30 = tpu.matmul %8, %29, %cst {dimension_numbers = #tpu.dot_dimension_numbers<[1], [0], [0], [1], [0, 0, 1, 1], [], []>} : vector<64x72xf32>, vector<72x128xf32>, vector<64x128xf32> -> vector<64x128xf32>
    %31 = vector.broadcast %9 : vector<64x1xf32> to vector<64x128xf32>
    %32 = arith.mulf %30, %31 : vector<64x128xf32>
    %33 = vector.broadcast %10 : vector<64x1xf32> to vector<64x128xf32>
    %34 = arith.addf %32, %33 : vector<64x128xf32>
    %cst_9 = arith.constant 0.000000e+00 : f32
    %35 = vector.broadcast %cst_9 : f32 to vector<64x128xf32>
    %36 = arith.maximumf %34, %35 : vector<64x128xf32>
    %37 = tpu.transpose %36, [1, 0] : vector<64x128xf32> -> vector<128x64xf32>
    %38 = vector.shape_cast %37 : vector<128x64xf32> to vector<16x8x64xf32>
    %cst_10 = arith.constant dense<0xFF800000> : vector<16x64xf32>
    %39 = vector.multi_reduction <maximumf>, %38, %cst_10 [1] : vector<16x8x64xf32> to vector<16x64xf32>
    %40 = vector.extract_strided_slice %4 {offsets = [0, 0, 0], sizes = [1, 8, 128], strides = [1, 1, 1]} : vector<8x8x128xf32> to vector<1x8x128xf32>
    %41 = vector.shape_cast %40 : vector<1x8x128xf32> to vector<8x128xf32>
    %42 = vector.extract_strided_slice %1 {offsets = [0, 0, 0], sizes = [1, 8, 128], strides = [1, 1, 1]} : vector<8x8x128xf32> to vector<1x8x128xf32>
    %43 = vector.shape_cast %42 : vector<1x8x128xf32> to vector<8x128xf32>
    %44 = vector.extract_strided_slice %7 {offsets = [0, 0, 0], sizes = [1, 8, 128], strides = [1, 1, 1]} : vector<8x8x128xf32> to vector<1x8x128xf32>
    %45 = vector.shape_cast %44 : vector<1x8x128xf32> to vector<8x128xf32>
    %46 = vector.extract_strided_slice %4 {offsets = [1, 0, 0], sizes = [1, 8, 128], strides = [1, 1, 1]} : vector<8x8x128xf32> to vector<1x8x128xf32>
    %47 = vector.shape_cast %46 : vector<1x8x128xf32> to vector<8x128xf32>
    %48 = vector.extract_strided_slice %1 {offsets = [1, 0, 0], sizes = [1, 8, 128], strides = [1, 1, 1]} : vector<8x8x128xf32> to vector<1x8x128xf32>
    %49 = vector.shape_cast %48 : vector<1x8x128xf32> to vector<8x128xf32>
    %50 = vector.extract_strided_slice %7 {offsets = [1, 0, 0], sizes = [1, 8, 128], strides = [1, 1, 1]} : vector<8x8x128xf32> to vector<1x8x128xf32>
    %51 = vector.shape_cast %50 : vector<1x8x128xf32> to vector<8x128xf32>
    %52 = vector.extract_strided_slice %4 {offsets = [2, 0, 0], sizes = [1, 8, 128], strides = [1, 1, 1]} : vector<8x8x128xf32> to vector<1x8x128xf32>
    %53 = vector.shape_cast %52 : vector<1x8x128xf32> to vector<8x128xf32>
    %54 = vector.extract_strided_slice %1 {offsets = [2, 0, 0], sizes = [1, 8, 128], strides = [1, 1, 1]} : vector<8x8x128xf32> to vector<1x8x128xf32>
    %55 = vector.shape_cast %54 : vector<1x8x128xf32> to vector<8x128xf32>
    %56 = vector.extract_strided_slice %7 {offsets = [2, 0, 0], sizes = [1, 8, 128], strides = [1, 1, 1]} : vector<8x8x128xf32> to vector<1x8x128xf32>
    %57 = vector.shape_cast %56 : vector<1x8x128xf32> to vector<8x128xf32>
    %58 = tpu.concatenate %41, %43, %45, %47, %49, %51, %53, %55, %57 in 0 : vector<8x128xf32>, vector<8x128xf32>, vector<8x128xf32>, vector<8x128xf32>, vector<8x128xf32>, vector<8x128xf32>, vector<8x128xf32>, vector<8x128xf32>, vector<8x128xf32> -> vector<72x128xf32>
    %cst_11 = arith.constant dense<0.000000e+00> : vector<64x128xf32>
    %59 = tpu.matmul %8, %58, %cst_11 {dimension_numbers = #tpu.dot_dimension_numbers<[1], [0], [0], [1], [0, 0, 1, 1], [], []>} : vector<64x72xf32>, vector<72x128xf32>, vector<64x128xf32> -> vector<64x128xf32>
    %60 = vector.broadcast %9 : vector<64x1xf32> to vector<64x128xf32>
    %61 = arith.mulf %59, %60 : vector<64x128xf32>
    %62 = vector.broadcast %10 : vector<64x1xf32> to vector<64x128xf32>
    %63 = arith.addf %61, %62 : vector<64x128xf32>
    %cst_12 = arith.constant 0.000000e+00 : f32
    %64 = vector.broadcast %cst_12 : f32 to vector<64x128xf32>
    %65 = arith.maximumf %63, %64 : vector<64x128xf32>
    %66 = tpu.transpose %65, [1, 0] : vector<64x128xf32> -> vector<128x64xf32>
    %67 = vector.shape_cast %66 : vector<128x64xf32> to vector<16x8x64xf32>
    %cst_13 = arith.constant dense<0xFF800000> : vector<16x64xf32>
    %68 = vector.multi_reduction <maximumf>, %67, %cst_13 [1] : vector<16x8x64xf32> to vector<16x64xf32>
    %69 = vector.extract_strided_slice %4 {offsets = [1, 0, 0], sizes = [1, 8, 128], strides = [1, 1, 1]} : vector<8x8x128xf32> to vector<1x8x128xf32>
    %70 = vector.shape_cast %69 : vector<1x8x128xf32> to vector<8x128xf32>
    %71 = vector.extract_strided_slice %1 {offsets = [1, 0, 0], sizes = [1, 8, 128], strides = [1, 1, 1]} : vector<8x8x128xf32> to vector<1x8x128xf32>
    %72 = vector.shape_cast %71 : vector<1x8x128xf32> to vector<8x128xf32>
    %73 = vector.extract_strided_slice %7 {offsets = [1, 0, 0], sizes = [1, 8, 128], strides = [1, 1, 1]} : vector<8x8x128xf32> to vector<1x8x128xf32>
    %74 = vector.shape_cast %73 : vector<1x8x128xf32> to vector<8x128xf32>
    %75 = vector.extract_strided_slice %4 {offsets = [2, 0, 0], sizes = [1, 8, 128], strides = [1, 1, 1]} : vector<8x8x128xf32> to vector<1x8x128xf32>
    %76 = vector.shape_cast %75 : vector<1x8x128xf32> to vector<8x128xf32>
    %77 = vector.extract_strided_slice %1 {offsets = [2, 0, 0], sizes = [1, 8, 128], strides = [1, 1, 1]} : vector<8x8x128xf32> to vector<1x8x128xf32>
    %78 = vector.shape_cast %77 : vector<1x8x128xf32> to vector<8x128xf32>
    %79 = vector.extract_strided_slice %7 {offsets = [2, 0, 0], sizes = [1, 8, 128], strides = [1, 1, 1]} : vector<8x8x128xf32> to vector<1x8x128xf32>
    %80 = vector.shape_cast %79 : vector<1x8x128xf32> to vector<8x128xf32>
    %81 = vector.extract_strided_slice %4 {offsets = [3, 0, 0], sizes = [1, 8, 128], strides = [1, 1, 1]} : vector<8x8x128xf32> to vector<1x8x128xf32>
    %82 = vector.shape_cast %81 : vector<1x8x128xf32> to vector<8x128xf32>
    %83 = vector.extract_strided_slice %1 {offsets = [3, 0, 0], sizes = [1, 8, 128], strides = [1, 1, 1]} : vector<8x8x128xf32> to vector<1x8x128xf32>
    %84 = vector.shape_cast %83 : vector<1x8x128xf32> to vector<8x128xf32>
    %85 = vector.extract_strided_slice %7 {offsets = [3, 0, 0], sizes = [1, 8, 128], strides = [1, 1, 1]} : vector<8x8x128xf32> to vector<1x8x128xf32>
    %86 = vector.shape_cast %85 : vector<1x8x128xf32> to vector<8x128xf32>
    %87 = tpu.concatenate %70, %72, %74, %76, %78, %80, %82, %84, %86 in 0 : vector<8x128xf32>, vector<8x128xf32>, vector<8x128xf32>, vector<8x128xf32>, vector<8x128xf32>, vector<8x128xf32>, vector<8x128xf32>, vector<8x128xf32>, vector<8x128xf32> -> vector<72x128xf32>
    %cst_14 = arith.constant dense<0.000000e+00> : vector<64x128xf32>
    %88 = tpu.matmul %8, %87, %cst_14 {dimension_numbers = #tpu.dot_dimension_numbers<[1], [0], [0], [1], [0, 0, 1, 1], [], []>} : vector<64x72xf32>, vector<72x128xf32>, vector<64x128xf32> -> vector<64x128xf32>
    %89 = vector.broadcast %9 : vector<64x1xf32> to vector<64x128xf32>
    %90 = arith.mulf %88, %89 : vector<64x128xf32>
    %91 = vector.broadcast %10 : vector<64x1xf32> to vector<64x128xf32>
    %92 = arith.addf %90, %91 : vector<64x128xf32>
    %cst_15 = arith.constant 0.000000e+00 : f32
    %93 = vector.broadcast %cst_15 : f32 to vector<64x128xf32>
    %94 = arith.maximumf %92, %93 : vector<64x128xf32>
    %95 = tpu.transpose %94, [1, 0] : vector<64x128xf32> -> vector<128x64xf32>
    %96 = vector.shape_cast %95 : vector<128x64xf32> to vector<16x8x64xf32>
    %cst_16 = arith.constant dense<0xFF800000> : vector<16x64xf32>
    %97 = vector.multi_reduction <maximumf>, %96, %cst_16 [1] : vector<16x8x64xf32> to vector<16x64xf32>
    %98 = vector.extract_strided_slice %4 {offsets = [2, 0, 0], sizes = [1, 8, 128], strides = [1, 1, 1]} : vector<8x8x128xf32> to vector<1x8x128xf32>
    %99 = vector.shape_cast %98 : vector<1x8x128xf32> to vector<8x128xf32>
    %100 = vector.extract_strided_slice %1 {offsets = [2, 0, 0], sizes = [1, 8, 128], strides = [1, 1, 1]} : vector<8x8x128xf32> to vector<1x8x128xf32>
    %101 = vector.shape_cast %100 : vector<1x8x128xf32> to vector<8x128xf32>
    %102 = vector.extract_strided_slice %7 {offsets = [2, 0, 0], sizes = [1, 8, 128], strides = [1, 1, 1]} : vector<8x8x128xf32> to vector<1x8x128xf32>
    %103 = vector.shape_cast %102 : vector<1x8x128xf32> to vector<8x128xf32>
    %104 = vector.extract_strided_slice %4 {offsets = [3, 0, 0], sizes = [1, 8, 128], strides = [1, 1, 1]} : vector<8x8x128xf32> to vector<1x8x128xf32>
    %105 = vector.shape_cast %104 : vector<1x8x128xf32> to vector<8x128xf32>
    %106 = vector.extract_strided_slice %1 {offsets = [3, 0, 0], sizes = [1, 8, 128], strides = [1, 1, 1]} : vector<8x8x128xf32> to vector<1x8x128xf32>
    %107 = vector.shape_cast %106 : vector<1x8x128xf32> to vector<8x128xf32>
    %108 = vector.extract_strided_slice %7 {offsets = [3, 0, 0], sizes = [1, 8, 128], strides = [1, 1, 1]} : vector<8x8x128xf32> to vector<1x8x128xf32>
    %109 = vector.shape_cast %108 : vector<1x8x128xf32> to vector<8x128xf32>
    %110 = vector.extract_strided_slice %4 {offsets = [4, 0, 0], sizes = [1, 8, 128], strides = [1, 1, 1]} : vector<8x8x128xf32> to vector<1x8x128xf32>
    %111 = vector.shape_cast %110 : vector<1x8x128xf32> to vector<8x128xf32>
    %112 = vector.extract_strided_slice %1 {offsets = [4, 0, 0], sizes = [1, 8, 128], strides = [1, 1, 1]} : vector<8x8x128xf32> to vector<1x8x128xf32>
    %113 = vector.shape_cast %112 : vector<1x8x128xf32> to vector<8x128xf32>
    %114 = vector.extract_strided_slice %7 {offsets = [4, 0, 0], sizes = [1, 8, 128], strides = [1, 1, 1]} : vector<8x8x128xf32> to vector<1x8x128xf32>
    %115 = vector.shape_cast %114 : vector<1x8x128xf32> to vector<8x128xf32>
    %116 = tpu.concatenate %99, %101, %103, %105, %107, %109, %111, %113, %115 in 0 : vector<8x128xf32>, vector<8x128xf32>, vector<8x128xf32>, vector<8x128xf32>, vector<8x128xf32>, vector<8x128xf32>, vector<8x128xf32>, vector<8x128xf32>, vector<8x128xf32> -> vector<72x128xf32>
    %cst_17 = arith.constant dense<0.000000e+00> : vector<64x128xf32>
    %117 = tpu.matmul %8, %116, %cst_17 {dimension_numbers = #tpu.dot_dimension_numbers<[1], [0], [0], [1], [0, 0, 1, 1], [], []>} : vector<64x72xf32>, vector<72x128xf32>, vector<64x128xf32> -> vector<64x128xf32>
    %118 = vector.broadcast %9 : vector<64x1xf32> to vector<64x128xf32>
    %119 = arith.mulf %117, %118 : vector<64x128xf32>
    %120 = vector.broadcast %10 : vector<64x1xf32> to vector<64x128xf32>
    %121 = arith.addf %119, %120 : vector<64x128xf32>
    %cst_18 = arith.constant 0.000000e+00 : f32
    %122 = vector.broadcast %cst_18 : f32 to vector<64x128xf32>
    %123 = arith.maximumf %121, %122 : vector<64x128xf32>
    %124 = tpu.transpose %123, [1, 0] : vector<64x128xf32> -> vector<128x64xf32>
    %125 = vector.shape_cast %124 : vector<128x64xf32> to vector<16x8x64xf32>
    %cst_19 = arith.constant dense<0xFF800000> : vector<16x64xf32>
    %126 = vector.multi_reduction <maximumf>, %125, %cst_19 [1] : vector<16x8x64xf32> to vector<16x64xf32>
    %127 = vector.extract_strided_slice %4 {offsets = [3, 0, 0], sizes = [1, 8, 128], strides = [1, 1, 1]} : vector<8x8x128xf32> to vector<1x8x128xf32>
    %128 = vector.shape_cast %127 : vector<1x8x128xf32> to vector<8x128xf32>
    %129 = vector.extract_strided_slice %1 {offsets = [3, 0, 0], sizes = [1, 8, 128], strides = [1, 1, 1]} : vector<8x8x128xf32> to vector<1x8x128xf32>
    %130 = vector.shape_cast %129 : vector<1x8x128xf32> to vector<8x128xf32>
    %131 = vector.extract_strided_slice %7 {offsets = [3, 0, 0], sizes = [1, 8, 128], strides = [1, 1, 1]} : vector<8x8x128xf32> to vector<1x8x128xf32>
    %132 = vector.shape_cast %131 : vector<1x8x128xf32> to vector<8x128xf32>
    %133 = vector.extract_strided_slice %4 {offsets = [4, 0, 0], sizes = [1, 8, 128], strides = [1, 1, 1]} : vector<8x8x128xf32> to vector<1x8x128xf32>
    %134 = vector.shape_cast %133 : vector<1x8x128xf32> to vector<8x128xf32>
    %135 = vector.extract_strided_slice %1 {offsets = [4, 0, 0], sizes = [1, 8, 128], strides = [1, 1, 1]} : vector<8x8x128xf32> to vector<1x8x128xf32>
    %136 = vector.shape_cast %135 : vector<1x8x128xf32> to vector<8x128xf32>
    %137 = vector.extract_strided_slice %7 {offsets = [4, 0, 0], sizes = [1, 8, 128], strides = [1, 1, 1]} : vector<8x8x128xf32> to vector<1x8x128xf32>
    %138 = vector.shape_cast %137 : vector<1x8x128xf32> to vector<8x128xf32>
    %139 = vector.extract_strided_slice %4 {offsets = [5, 0, 0], sizes = [1, 8, 128], strides = [1, 1, 1]} : vector<8x8x128xf32> to vector<1x8x128xf32>
    %140 = vector.shape_cast %139 : vector<1x8x128xf32> to vector<8x128xf32>
    %141 = vector.extract_strided_slice %1 {offsets = [5, 0, 0], sizes = [1, 8, 128], strides = [1, 1, 1]} : vector<8x8x128xf32> to vector<1x8x128xf32>
    %142 = vector.shape_cast %141 : vector<1x8x128xf32> to vector<8x128xf32>
    %143 = vector.extract_strided_slice %7 {offsets = [5, 0, 0], sizes = [1, 8, 128], strides = [1, 1, 1]} : vector<8x8x128xf32> to vector<1x8x128xf32>
    %144 = vector.shape_cast %143 : vector<1x8x128xf32> to vector<8x128xf32>
    %145 = tpu.concatenate %128, %130, %132, %134, %136, %138, %140, %142, %144 in 0 : vector<8x128xf32>, vector<8x128xf32>, vector<8x128xf32>, vector<8x128xf32>, vector<8x128xf32>, vector<8x128xf32>, vector<8x128xf32>, vector<8x128xf32>, vector<8x128xf32> -> vector<72x128xf32>
    %cst_20 = arith.constant dense<0.000000e+00> : vector<64x128xf32>
    %146 = tpu.matmul %8, %145, %cst_20 {dimension_numbers = #tpu.dot_dimension_numbers<[1], [0], [0], [1], [0, 0, 1, 1], [], []>} : vector<64x72xf32>, vector<72x128xf32>, vector<64x128xf32> -> vector<64x128xf32>
    %147 = vector.broadcast %9 : vector<64x1xf32> to vector<64x128xf32>
    %148 = arith.mulf %146, %147 : vector<64x128xf32>
    %149 = vector.broadcast %10 : vector<64x1xf32> to vector<64x128xf32>
    %150 = arith.addf %148, %149 : vector<64x128xf32>
    %cst_21 = arith.constant 0.000000e+00 : f32
    %151 = vector.broadcast %cst_21 : f32 to vector<64x128xf32>
    %152 = arith.maximumf %150, %151 : vector<64x128xf32>
    %153 = tpu.transpose %152, [1, 0] : vector<64x128xf32> -> vector<128x64xf32>
    %154 = vector.shape_cast %153 : vector<128x64xf32> to vector<16x8x64xf32>
    %cst_22 = arith.constant dense<0xFF800000> : vector<16x64xf32>
    %155 = vector.multi_reduction <maximumf>, %154, %cst_22 [1] : vector<16x8x64xf32> to vector<16x64xf32>
    %156 = vector.extract_strided_slice %4 {offsets = [4, 0, 0], sizes = [1, 8, 128], strides = [1, 1, 1]} : vector<8x8x128xf32> to vector<1x8x128xf32>
    %157 = vector.shape_cast %156 : vector<1x8x128xf32> to vector<8x128xf32>
    %158 = vector.extract_strided_slice %1 {offsets = [4, 0, 0], sizes = [1, 8, 128], strides = [1, 1, 1]} : vector<8x8x128xf32> to vector<1x8x128xf32>
    %159 = vector.shape_cast %158 : vector<1x8x128xf32> to vector<8x128xf32>
    %160 = vector.extract_strided_slice %7 {offsets = [4, 0, 0], sizes = [1, 8, 128], strides = [1, 1, 1]} : vector<8x8x128xf32> to vector<1x8x128xf32>
    %161 = vector.shape_cast %160 : vector<1x8x128xf32> to vector<8x128xf32>
    %162 = vector.extract_strided_slice %4 {offsets = [5, 0, 0], sizes = [1, 8, 128], strides = [1, 1, 1]} : vector<8x8x128xf32> to vector<1x8x128xf32>
    %163 = vector.shape_cast %162 : vector<1x8x128xf32> to vector<8x128xf32>
    %164 = vector.extract_strided_slice %1 {offsets = [5, 0, 0], sizes = [1, 8, 128], strides = [1, 1, 1]} : vector<8x8x128xf32> to vector<1x8x128xf32>
    %165 = vector.shape_cast %164 : vector<1x8x128xf32> to vector<8x128xf32>
    %166 = vector.extract_strided_slice %7 {offsets = [5, 0, 0], sizes = [1, 8, 128], strides = [1, 1, 1]} : vector<8x8x128xf32> to vector<1x8x128xf32>
    %167 = vector.shape_cast %166 : vector<1x8x128xf32> to vector<8x128xf32>
    %168 = vector.extract_strided_slice %4 {offsets = [6, 0, 0], sizes = [1, 8, 128], strides = [1, 1, 1]} : vector<8x8x128xf32> to vector<1x8x128xf32>
    %169 = vector.shape_cast %168 : vector<1x8x128xf32> to vector<8x128xf32>
    %170 = vector.extract_strided_slice %1 {offsets = [6, 0, 0], sizes = [1, 8, 128], strides = [1, 1, 1]} : vector<8x8x128xf32> to vector<1x8x128xf32>
    %171 = vector.shape_cast %170 : vector<1x8x128xf32> to vector<8x128xf32>
    %172 = vector.extract_strided_slice %7 {offsets = [6, 0, 0], sizes = [1, 8, 128], strides = [1, 1, 1]} : vector<8x8x128xf32> to vector<1x8x128xf32>
    %173 = vector.shape_cast %172 : vector<1x8x128xf32> to vector<8x128xf32>
    %174 = tpu.concatenate %157, %159, %161, %163, %165, %167, %169, %171, %173 in 0 : vector<8x128xf32>, vector<8x128xf32>, vector<8x128xf32>, vector<8x128xf32>, vector<8x128xf32>, vector<8x128xf32>, vector<8x128xf32>, vector<8x128xf32>, vector<8x128xf32> -> vector<72x128xf32>
    %cst_23 = arith.constant dense<0.000000e+00> : vector<64x128xf32>
    %175 = tpu.matmul %8, %174, %cst_23 {dimension_numbers = #tpu.dot_dimension_numbers<[1], [0], [0], [1], [0, 0, 1, 1], [], []>} : vector<64x72xf32>, vector<72x128xf32>, vector<64x128xf32> -> vector<64x128xf32>
    %176 = vector.broadcast %9 : vector<64x1xf32> to vector<64x128xf32>
    %177 = arith.mulf %175, %176 : vector<64x128xf32>
    %178 = vector.broadcast %10 : vector<64x1xf32> to vector<64x128xf32>
    %179 = arith.addf %177, %178 : vector<64x128xf32>
    %cst_24 = arith.constant 0.000000e+00 : f32
    %180 = vector.broadcast %cst_24 : f32 to vector<64x128xf32>
    %181 = arith.maximumf %179, %180 : vector<64x128xf32>
    %182 = tpu.transpose %181, [1, 0] : vector<64x128xf32> -> vector<128x64xf32>
    %183 = vector.shape_cast %182 : vector<128x64xf32> to vector<16x8x64xf32>
    %cst_25 = arith.constant dense<0xFF800000> : vector<16x64xf32>
    %184 = vector.multi_reduction <maximumf>, %183, %cst_25 [1] : vector<16x8x64xf32> to vector<16x64xf32>
    %185 = vector.extract_strided_slice %4 {offsets = [5, 0, 0], sizes = [1, 8, 128], strides = [1, 1, 1]} : vector<8x8x128xf32> to vector<1x8x128xf32>
    %186 = vector.shape_cast %185 : vector<1x8x128xf32> to vector<8x128xf32>
    %187 = vector.extract_strided_slice %1 {offsets = [5, 0, 0], sizes = [1, 8, 128], strides = [1, 1, 1]} : vector<8x8x128xf32> to vector<1x8x128xf32>
    %188 = vector.shape_cast %187 : vector<1x8x128xf32> to vector<8x128xf32>
    %189 = vector.extract_strided_slice %7 {offsets = [5, 0, 0], sizes = [1, 8, 128], strides = [1, 1, 1]} : vector<8x8x128xf32> to vector<1x8x128xf32>
    %190 = vector.shape_cast %189 : vector<1x8x128xf32> to vector<8x128xf32>
    %191 = vector.extract_strided_slice %4 {offsets = [6, 0, 0], sizes = [1, 8, 128], strides = [1, 1, 1]} : vector<8x8x128xf32> to vector<1x8x128xf32>
    %192 = vector.shape_cast %191 : vector<1x8x128xf32> to vector<8x128xf32>
    %193 = vector.extract_strided_slice %1 {offsets = [6, 0, 0], sizes = [1, 8, 128], strides = [1, 1, 1]} : vector<8x8x128xf32> to vector<1x8x128xf32>
    %194 = vector.shape_cast %193 : vector<1x8x128xf32> to vector<8x128xf32>
    %195 = vector.extract_strided_slice %7 {offsets = [6, 0, 0], sizes = [1, 8, 128], strides = [1, 1, 1]} : vector<8x8x128xf32> to vector<1x8x128xf32>
    %196 = vector.shape_cast %195 : vector<1x8x128xf32> to vector<8x128xf32>
    %197 = vector.extract_strided_slice %4 {offsets = [7, 0, 0], sizes = [1, 8, 128], strides = [1, 1, 1]} : vector<8x8x128xf32> to vector<1x8x128xf32>
    %198 = vector.shape_cast %197 : vector<1x8x128xf32> to vector<8x128xf32>
    %199 = vector.extract_strided_slice %1 {offsets = [7, 0, 0], sizes = [1, 8, 128], strides = [1, 1, 1]} : vector<8x8x128xf32> to vector<1x8x128xf32>
    %200 = vector.shape_cast %199 : vector<1x8x128xf32> to vector<8x128xf32>
    %201 = vector.extract_strided_slice %7 {offsets = [7, 0, 0], sizes = [1, 8, 128], strides = [1, 1, 1]} : vector<8x8x128xf32> to vector<1x8x128xf32>
    %202 = vector.shape_cast %201 : vector<1x8x128xf32> to vector<8x128xf32>
    %203 = tpu.concatenate %186, %188, %190, %192, %194, %196, %198, %200, %202 in 0 : vector<8x128xf32>, vector<8x128xf32>, vector<8x128xf32>, vector<8x128xf32>, vector<8x128xf32>, vector<8x128xf32>, vector<8x128xf32>, vector<8x128xf32>, vector<8x128xf32> -> vector<72x128xf32>
    %cst_26 = arith.constant dense<0.000000e+00> : vector<64x128xf32>
    %204 = tpu.matmul %8, %203, %cst_26 {dimension_numbers = #tpu.dot_dimension_numbers<[1], [0], [0], [1], [0, 0, 1, 1], [], []>} : vector<64x72xf32>, vector<72x128xf32>, vector<64x128xf32> -> vector<64x128xf32>
    %205 = vector.broadcast %9 : vector<64x1xf32> to vector<64x128xf32>
    %206 = arith.mulf %204, %205 : vector<64x128xf32>
    %207 = vector.broadcast %10 : vector<64x1xf32> to vector<64x128xf32>
    %208 = arith.addf %206, %207 : vector<64x128xf32>
    %cst_27 = arith.constant 0.000000e+00 : f32
    %209 = vector.broadcast %cst_27 : f32 to vector<64x128xf32>
    %210 = arith.maximumf %208, %209 : vector<64x128xf32>
    %211 = tpu.transpose %210, [1, 0] : vector<64x128xf32> -> vector<128x64xf32>
    %212 = vector.shape_cast %211 : vector<128x64xf32> to vector<16x8x64xf32>
    %cst_28 = arith.constant dense<0xFF800000> : vector<16x64xf32>
    %213 = vector.multi_reduction <maximumf>, %212, %cst_28 [1] : vector<16x8x64xf32> to vector<16x64xf32>
    %214 = vector.extract_strided_slice %4 {offsets = [6, 0, 0], sizes = [1, 8, 128], strides = [1, 1, 1]} : vector<8x8x128xf32> to vector<1x8x128xf32>
    %215 = vector.shape_cast %214 : vector<1x8x128xf32> to vector<8x128xf32>
    %216 = vector.extract_strided_slice %1 {offsets = [6, 0, 0], sizes = [1, 8, 128], strides = [1, 1, 1]} : vector<8x8x128xf32> to vector<1x8x128xf32>
    %217 = vector.shape_cast %216 : vector<1x8x128xf32> to vector<8x128xf32>
    %218 = vector.extract_strided_slice %7 {offsets = [6, 0, 0], sizes = [1, 8, 128], strides = [1, 1, 1]} : vector<8x8x128xf32> to vector<1x8x128xf32>
    %219 = vector.shape_cast %218 : vector<1x8x128xf32> to vector<8x128xf32>
    %220 = vector.extract_strided_slice %4 {offsets = [7, 0, 0], sizes = [1, 8, 128], strides = [1, 1, 1]} : vector<8x8x128xf32> to vector<1x8x128xf32>
    %221 = vector.shape_cast %220 : vector<1x8x128xf32> to vector<8x128xf32>
    %222 = vector.extract_strided_slice %1 {offsets = [7, 0, 0], sizes = [1, 8, 128], strides = [1, 1, 1]} : vector<8x8x128xf32> to vector<1x8x128xf32>
    %223 = vector.shape_cast %222 : vector<1x8x128xf32> to vector<8x128xf32>
    %224 = vector.extract_strided_slice %7 {offsets = [7, 0, 0], sizes = [1, 8, 128], strides = [1, 1, 1]} : vector<8x8x128xf32> to vector<1x8x128xf32>
    %225 = vector.shape_cast %224 : vector<1x8x128xf32> to vector<8x128xf32>
    %226 = vector.extract_strided_slice %4 {offsets = [7, 0, 0], sizes = [1, 8, 128], strides = [1, 1, 1]} : vector<8x8x128xf32> to vector<1x8x128xf32>
    %227 = vector.shape_cast %226 : vector<1x8x128xf32> to vector<8x128xf32>
    %228 = vector.extract_strided_slice %1 {offsets = [7, 0, 0], sizes = [1, 8, 128], strides = [1, 1, 1]} : vector<8x8x128xf32> to vector<1x8x128xf32>
    %229 = vector.shape_cast %228 : vector<1x8x128xf32> to vector<8x128xf32>
    %230 = vector.extract_strided_slice %7 {offsets = [7, 0, 0], sizes = [1, 8, 128], strides = [1, 1, 1]} : vector<8x8x128xf32> to vector<1x8x128xf32>
    %231 = vector.shape_cast %230 : vector<1x8x128xf32> to vector<8x128xf32>
    %232 = tpu.concatenate %215, %217, %219, %221, %223, %225, %227, %229, %231 in 0 : vector<8x128xf32>, vector<8x128xf32>, vector<8x128xf32>, vector<8x128xf32>, vector<8x128xf32>, vector<8x128xf32>, vector<8x128xf32>, vector<8x128xf32>, vector<8x128xf32> -> vector<72x128xf32>
    %cst_29 = arith.constant dense<0.000000e+00> : vector<64x128xf32>
    %233 = tpu.matmul %8, %232, %cst_29 {dimension_numbers = #tpu.dot_dimension_numbers<[1], [0], [0], [1], [0, 0, 1, 1], [], []>} : vector<64x72xf32>, vector<72x128xf32>, vector<64x128xf32> -> vector<64x128xf32>
    %234 = vector.broadcast %9 : vector<64x1xf32> to vector<64x128xf32>
    %235 = arith.mulf %233, %234 : vector<64x128xf32>
    %236 = vector.broadcast %10 : vector<64x1xf32> to vector<64x128xf32>
    %237 = arith.addf %235, %236 : vector<64x128xf32>
    %cst_30 = arith.constant 0.000000e+00 : f32
    %238 = vector.broadcast %cst_30 : f32 to vector<64x128xf32>
    %239 = arith.maximumf %237, %238 : vector<64x128xf32>
    %240 = tpu.transpose %239, [1, 0] : vector<64x128xf32> -> vector<128x64xf32>
    %241 = vector.shape_cast %240 : vector<128x64xf32> to vector<16x8x64xf32>
    %cst_31 = arith.constant dense<0xFF800000> : vector<16x64xf32>
    %242 = vector.multi_reduction <maximumf>, %241, %cst_31 [1] : vector<16x8x64xf32> to vector<16x64xf32>
    %243 = vector.shape_cast %39 : vector<16x64xf32> to vector<1x16x64xf32>
    %244 = vector.shape_cast %68 : vector<16x64xf32> to vector<1x16x64xf32>
    %245 = vector.shape_cast %97 : vector<16x64xf32> to vector<1x16x64xf32>
    %246 = vector.shape_cast %126 : vector<16x64xf32> to vector<1x16x64xf32>
    %247 = vector.shape_cast %155 : vector<16x64xf32> to vector<1x16x64xf32>
    %248 = vector.shape_cast %184 : vector<16x64xf32> to vector<1x16x64xf32>
    %249 = vector.shape_cast %213 : vector<16x64xf32> to vector<1x16x64xf32>
    %250 = vector.shape_cast %242 : vector<16x64xf32> to vector<1x16x64xf32>
    %251 = tpu.concatenate %243, %244, %245, %246, %247, %248, %249, %250 in 0 : vector<1x16x64xf32>, vector<1x16x64xf32>, vector<1x16x64xf32>, vector<1x16x64xf32>, vector<1x16x64xf32>, vector<1x16x64xf32>, vector<1x16x64xf32>, vector<1x16x64xf32> -> vector<8x16x64xf32>
    %c0_32 = arith.constant 0 : index
    %c0_33 = arith.constant 0 : index
    %252 = vector.load %arg6[%c0_32, %c0_33] : memref<1x64xf32, #tpu.memory_space<vmem>>, vector<1x64xf32>
    %c0_34 = arith.constant 0 : index
    %c0_35 = arith.constant 0 : index
    %253 = vector.load %arg7[%c0_34, %c0_35] : memref<1x64xf32, #tpu.memory_space<vmem>>, vector<1x64xf32>
    %254 = vector.extract_strided_slice %251 {offsets = [0, 0, 0], sizes = [8, 1, 64], strides = [1, 1, 1]} : vector<8x16x64xf32> to vector<8x1x64xf32>
    %255 = vector.extract_strided_slice %251 {offsets = [0, 0, 0], sizes = [8, 15, 64], strides = [1, 1, 1]} : vector<8x16x64xf32> to vector<8x15x64xf32>
    %256 = tpu.concatenate %254, %255 in 1 : vector<8x1x64xf32>, vector<8x15x64xf32> -> vector<8x16x64xf32>
    %257 = vector.extract_strided_slice %251 {offsets = [0, 1, 0], sizes = [8, 15, 64], strides = [1, 1, 1]} : vector<8x16x64xf32> to vector<8x15x64xf32>
    %258 = vector.extract_strided_slice %251 {offsets = [0, 15, 0], sizes = [8, 1, 64], strides = [1, 1, 1]} : vector<8x16x64xf32> to vector<8x1x64xf32>
    %259 = tpu.concatenate %257, %258 in 1 : vector<8x15x64xf32>, vector<8x1x64xf32> -> vector<8x16x64xf32>
    %260 = vector.extract_strided_slice %256 {offsets = [0, 0, 0], sizes = [1, 16, 64], strides = [1, 1, 1]} : vector<8x16x64xf32> to vector<1x16x64xf32>
    %261 = vector.extract_strided_slice %256 {offsets = [7, 0, 0], sizes = [1, 16, 64], strides = [1, 1, 1]} : vector<8x16x64xf32> to vector<1x16x64xf32>
    %262 = tpu.concatenate %260, %256, %261 in 0 : vector<1x16x64xf32>, vector<8x16x64xf32>, vector<1x16x64xf32> -> vector<10x16x64xf32>
    %263 = vector.extract_strided_slice %262 {offsets = [0, 0, 0], sizes = [8, 16, 64], strides = [1, 1, 1]} : vector<10x16x64xf32> to vector<8x16x64xf32>
    %264 = vector.shape_cast %263 : vector<8x16x64xf32> to vector<128x64xf32>
    %265 = vector.extract_strided_slice %262 {offsets = [1, 0, 0], sizes = [8, 16, 64], strides = [1, 1, 1]} : vector<10x16x64xf32> to vector<8x16x64xf32>
    %266 = vector.shape_cast %265 : vector<8x16x64xf32> to vector<128x64xf32>
    %267 = vector.extract_strided_slice %262 {offsets = [2, 0, 0], sizes = [8, 16, 64], strides = [1, 1, 1]} : vector<10x16x64xf32> to vector<8x16x64xf32>
    %268 = vector.shape_cast %267 : vector<8x16x64xf32> to vector<128x64xf32>
    %269 = vector.extract_strided_slice %251 {offsets = [0, 0, 0], sizes = [1, 16, 64], strides = [1, 1, 1]} : vector<8x16x64xf32> to vector<1x16x64xf32>
    %270 = vector.extract_strided_slice %251 {offsets = [7, 0, 0], sizes = [1, 16, 64], strides = [1, 1, 1]} : vector<8x16x64xf32> to vector<1x16x64xf32>
    %271 = tpu.concatenate %269, %251, %270 in 0 : vector<1x16x64xf32>, vector<8x16x64xf32>, vector<1x16x64xf32> -> vector<10x16x64xf32>
    %272 = vector.extract_strided_slice %271 {offsets = [0, 0, 0], sizes = [8, 16, 64], strides = [1, 1, 1]} : vector<10x16x64xf32> to vector<8x16x64xf32>
    %273 = vector.shape_cast %272 : vector<8x16x64xf32> to vector<128x64xf32>
    %274 = vector.extract_strided_slice %271 {offsets = [1, 0, 0], sizes = [8, 16, 64], strides = [1, 1, 1]} : vector<10x16x64xf32> to vector<8x16x64xf32>
    %275 = vector.shape_cast %274 : vector<8x16x64xf32> to vector<128x64xf32>
    %276 = vector.extract_strided_slice %271 {offsets = [2, 0, 0], sizes = [8, 16, 64], strides = [1, 1, 1]} : vector<10x16x64xf32> to vector<8x16x64xf32>
    %277 = vector.shape_cast %276 : vector<8x16x64xf32> to vector<128x64xf32>
    %278 = vector.extract_strided_slice %259 {offsets = [0, 0, 0], sizes = [1, 16, 64], strides = [1, 1, 1]} : vector<8x16x64xf32> to vector<1x16x64xf32>
    %279 = vector.extract_strided_slice %259 {offsets = [7, 0, 0], sizes = [1, 16, 64], strides = [1, 1, 1]} : vector<8x16x64xf32> to vector<1x16x64xf32>
    %280 = tpu.concatenate %278, %259, %279 in 0 : vector<1x16x64xf32>, vector<8x16x64xf32>, vector<1x16x64xf32> -> vector<10x16x64xf32>
    %281 = vector.extract_strided_slice %280 {offsets = [0, 0, 0], sizes = [8, 16, 64], strides = [1, 1, 1]} : vector<10x16x64xf32> to vector<8x16x64xf32>
    %282 = vector.shape_cast %281 : vector<8x16x64xf32> to vector<128x64xf32>
    %283 = vector.extract_strided_slice %280 {offsets = [1, 0, 0], sizes = [8, 16, 64], strides = [1, 1, 1]} : vector<10x16x64xf32> to vector<8x16x64xf32>
    %284 = vector.shape_cast %283 : vector<8x16x64xf32> to vector<128x64xf32>
    %285 = vector.extract_strided_slice %280 {offsets = [2, 0, 0], sizes = [8, 16, 64], strides = [1, 1, 1]} : vector<10x16x64xf32> to vector<8x16x64xf32>
    %286 = vector.shape_cast %285 : vector<8x16x64xf32> to vector<128x64xf32>
    %287 = tpu.concatenate %264, %273 in 1 : vector<128x64xf32>, vector<128x64xf32> -> vector<128x128xf32>
    %c0_36 = arith.constant 0 : index
    %c0_37 = arith.constant 0 : index
    %288 = vector.load %arg5[%c0_36, %c0_37] : memref<576x64xf32, #tpu.memory_space<vmem>>, vector<128x64xf32>
    %cst_38 = arith.constant dense<0.000000e+00> : vector<128x64xf32>
    %289 = tpu.matmul %287, %288, %cst_38 {dimension_numbers = #tpu.dot_dimension_numbers<[1], [0], [0], [1], [0, 0, 1, 1], [], []>} : vector<128x128xf32>, vector<128x64xf32>, vector<128x64xf32> -> vector<128x64xf32>
    %290 = tpu.concatenate %282, %266 in 1 : vector<128x64xf32>, vector<128x64xf32> -> vector<128x128xf32>
    %c128 = arith.constant 128 : index
    %c0_39 = arith.constant 0 : index
    %291 = vector.load %arg5[%c128, %c0_39] : memref<576x64xf32, #tpu.memory_space<vmem>>, vector<128x64xf32>
    %cst_40 = arith.constant dense<0.000000e+00> : vector<128x64xf32>
    %292 = tpu.matmul %290, %291, %cst_40 {dimension_numbers = #tpu.dot_dimension_numbers<[1], [0], [0], [1], [0, 0, 1, 1], [], []>} : vector<128x128xf32>, vector<128x64xf32>, vector<128x64xf32> -> vector<128x64xf32>
    %293 = arith.addf %289, %292 : vector<128x64xf32>
    %294 = tpu.concatenate %275, %284 in 1 : vector<128x64xf32>, vector<128x64xf32> -> vector<128x128xf32>
    %c256 = arith.constant 256 : index
    %c0_41 = arith.constant 0 : index
    %295 = vector.load %arg5[%c256, %c0_41] : memref<576x64xf32, #tpu.memory_space<vmem>>, vector<128x64xf32>
    %cst_42 = arith.constant dense<0.000000e+00> : vector<128x64xf32>
    %296 = tpu.matmul %294, %295, %cst_42 {dimension_numbers = #tpu.dot_dimension_numbers<[1], [0], [0], [1], [0, 0, 1, 1], [], []>} : vector<128x128xf32>, vector<128x64xf32>, vector<128x64xf32> -> vector<128x64xf32>
    %297 = arith.addf %293, %296 : vector<128x64xf32>
    %298 = tpu.concatenate %268, %277 in 1 : vector<128x64xf32>, vector<128x64xf32> -> vector<128x128xf32>
    %c384 = arith.constant 384 : index
    %c0_43 = arith.constant 0 : index
    %299 = vector.load %arg5[%c384, %c0_43] : memref<576x64xf32, #tpu.memory_space<vmem>>, vector<128x64xf32>
    %cst_44 = arith.constant dense<0.000000e+00> : vector<128x64xf32>
    %300 = tpu.matmul %298, %299, %cst_44 {dimension_numbers = #tpu.dot_dimension_numbers<[1], [0], [0], [1], [0, 0, 1, 1], [], []>} : vector<128x128xf32>, vector<128x64xf32>, vector<128x64xf32> -> vector<128x64xf32>
    %301 = arith.addf %297, %300 : vector<128x64xf32>
    %c512 = arith.constant 512 : index
    %c0_45 = arith.constant 0 : index
    %302 = vector.load %arg5[%c512, %c0_45] : memref<576x64xf32, #tpu.memory_space<vmem>>, vector<64x64xf32>
    %cst_46 = arith.constant dense<0.000000e+00> : vector<128x64xf32>
    %303 = tpu.matmul %286, %302, %cst_46 {dimension_numbers = #tpu.dot_dimension_numbers<[1], [0], [0], [1], [0, 0, 1, 1], [], []>} : vector<128x64xf32>, vector<64x64xf32>, vector<128x64xf32> -> vector<128x64xf32>
    %304 = arith.addf %301, %303 : vector<128x64xf32>
    %305 = vector.broadcast %252 : vector<1x64xf32> to vector<128x64xf32>
    %306 = arith.mulf %304, %305 : vector<128x64xf32>
    %307 = vector.broadcast %253 : vector<1x64xf32> to vector<128x64xf32>
    %308 = arith.addf %306, %307 : vector<128x64xf32>
    %cst_47 = arith.constant 0.000000e+00 : f32
    %309 = vector.broadcast %cst_47 : f32 to vector<128x64xf32>
    %310 = arith.maximumf %308, %309 : vector<128x64xf32>
    %311 = vector.shape_cast %310 : vector<128x64xf32> to vector<16x8x64xf32>
    %cst_48 = arith.constant dense<0xFF800000> : vector<16x64xf32>
    %312 = vector.multi_reduction <maximumf>, %311, %cst_48 [1] : vector<16x8x64xf32> to vector<16x64xf32>
    %313 = vector.shape_cast %312 : vector<16x64xf32> to vector<8x2x64xf32>
    %c0_49 = arith.constant 0 : index
    %c0_50 = arith.constant 0 : index
    %314 = vector.load %arg9[%c0_49, %c0_50] : memref<1x64xf32, #tpu.memory_space<vmem>>, vector<1x64xf32>
    %c0_51 = arith.constant 0 : index
    %c0_52 = arith.constant 0 : index
    %315 = vector.load %arg10[%c0_51, %c0_52] : memref<1x64xf32, #tpu.memory_space<vmem>>, vector<1x64xf32>
    %316 = vector.extract_strided_slice %313 {offsets = [0, 0, 0], sizes = [8, 1, 64], strides = [1, 1, 1]} : vector<8x2x64xf32> to vector<8x1x64xf32>
    %317 = vector.extract_strided_slice %313 {offsets = [0, 0, 0], sizes = [8, 1, 64], strides = [1, 1, 1]} : vector<8x2x64xf32> to vector<8x1x64xf32>
    %318 = tpu.concatenate %316, %317 in 1 : vector<8x1x64xf32>, vector<8x1x64xf32> -> vector<8x2x64xf32>
    %319 = vector.extract_strided_slice %313 {offsets = [0, 1, 0], sizes = [8, 1, 64], strides = [1, 1, 1]} : vector<8x2x64xf32> to vector<8x1x64xf32>
    %320 = vector.extract_strided_slice %313 {offsets = [0, 1, 0], sizes = [8, 1, 64], strides = [1, 1, 1]} : vector<8x2x64xf32> to vector<8x1x64xf32>
    %321 = tpu.concatenate %319, %320 in 1 : vector<8x1x64xf32>, vector<8x1x64xf32> -> vector<8x2x64xf32>
    %322 = vector.extract_strided_slice %318 {offsets = [0, 0, 0], sizes = [1, 2, 64], strides = [1, 1, 1]} : vector<8x2x64xf32> to vector<1x2x64xf32>
    %323 = vector.extract_strided_slice %318 {offsets = [7, 0, 0], sizes = [1, 2, 64], strides = [1, 1, 1]} : vector<8x2x64xf32> to vector<1x2x64xf32>
    %324 = tpu.concatenate %322, %318, %323 in 0 : vector<1x2x64xf32>, vector<8x2x64xf32>, vector<1x2x64xf32> -> vector<10x2x64xf32>
    %325 = vector.extract_strided_slice %324 {offsets = [0, 0, 0], sizes = [8, 2, 64], strides = [1, 1, 1]} : vector<10x2x64xf32> to vector<8x2x64xf32>
    %326 = vector.shape_cast %325 : vector<8x2x64xf32> to vector<16x64xf32>
    %327 = vector.extract_strided_slice %324 {offsets = [1, 0, 0], sizes = [8, 2, 64], strides = [1, 1, 1]} : vector<10x2x64xf32> to vector<8x2x64xf32>
    %328 = vector.shape_cast %327 : vector<8x2x64xf32> to vector<16x64xf32>
    %329 = vector.extract_strided_slice %324 {offsets = [2, 0, 0], sizes = [8, 2, 64], strides = [1, 1, 1]} : vector<10x2x64xf32> to vector<8x2x64xf32>
    %330 = vector.shape_cast %329 : vector<8x2x64xf32> to vector<16x64xf32>
    %331 = vector.extract_strided_slice %313 {offsets = [0, 0, 0], sizes = [1, 2, 64], strides = [1, 1, 1]} : vector<8x2x64xf32> to vector<1x2x64xf32>
    %332 = vector.extract_strided_slice %313 {offsets = [7, 0, 0], sizes = [1, 2, 64], strides = [1, 1, 1]} : vector<8x2x64xf32> to vector<1x2x64xf32>
    %333 = tpu.concatenate %331, %313, %332 in 0 : vector<1x2x64xf32>, vector<8x2x64xf32>, vector<1x2x64xf32> -> vector<10x2x64xf32>
    %334 = vector.extract_strided_slice %333 {offsets = [0, 0, 0], sizes = [8, 2, 64], strides = [1, 1, 1]} : vector<10x2x64xf32> to vector<8x2x64xf32>
    %335 = vector.shape_cast %334 : vector<8x2x64xf32> to vector<16x64xf32>
    %336 = vector.extract_strided_slice %333 {offsets = [1, 0, 0], sizes = [8, 2, 64], strides = [1, 1, 1]} : vector<10x2x64xf32> to vector<8x2x64xf32>
    %337 = vector.shape_cast %336 : vector<8x2x64xf32> to vector<16x64xf32>
    %338 = vector.extract_strided_slice %333 {offsets = [2, 0, 0], sizes = [8, 2, 64], strides = [1, 1, 1]} : vector<10x2x64xf32> to vector<8x2x64xf32>
    %339 = vector.shape_cast %338 : vector<8x2x64xf32> to vector<16x64xf32>
    %340 = vector.extract_strided_slice %321 {offsets = [0, 0, 0], sizes = [1, 2, 64], strides = [1, 1, 1]} : vector<8x2x64xf32> to vector<1x2x64xf32>
    %341 = vector.extract_strided_slice %321 {offsets = [7, 0, 0], sizes = [1, 2, 64], strides = [1, 1, 1]} : vector<8x2x64xf32> to vector<1x2x64xf32>
    %342 = tpu.concatenate %340, %321, %341 in 0 : vector<1x2x64xf32>, vector<8x2x64xf32>, vector<1x2x64xf32> -> vector<10x2x64xf32>
    %343 = vector.extract_strided_slice %342 {offsets = [0, 0, 0], sizes = [8, 2, 64], strides = [1, 1, 1]} : vector<10x2x64xf32> to vector<8x2x64xf32>
    %344 = vector.shape_cast %343 : vector<8x2x64xf32> to vector<16x64xf32>
    %345 = vector.extract_strided_slice %342 {offsets = [1, 0, 0], sizes = [8, 2, 64], strides = [1, 1, 1]} : vector<10x2x64xf32> to vector<8x2x64xf32>
    %346 = vector.shape_cast %345 : vector<8x2x64xf32> to vector<16x64xf32>
    %347 = vector.extract_strided_slice %342 {offsets = [2, 0, 0], sizes = [8, 2, 64], strides = [1, 1, 1]} : vector<10x2x64xf32> to vector<8x2x64xf32>
    %348 = vector.shape_cast %347 : vector<8x2x64xf32> to vector<16x64xf32>
    %349 = tpu.concatenate %326, %335 in 1 : vector<16x64xf32>, vector<16x64xf32> -> vector<16x128xf32>
    %c0_53 = arith.constant 0 : index
    %c0_54 = arith.constant 0 : index
    %350 = vector.load %arg8[%c0_53, %c0_54] : memref<576x64xf32, #tpu.memory_space<vmem>>, vector<128x64xf32>
    %cst_55 = arith.constant dense<0.000000e+00> : vector<16x64xf32>
    %351 = tpu.matmul %349, %350, %cst_55 {dimension_numbers = #tpu.dot_dimension_numbers<[1], [0], [0], [1], [0, 0, 1, 1], [], []>} : vector<16x128xf32>, vector<128x64xf32>, vector<16x64xf32> -> vector<16x64xf32>
    %352 = tpu.concatenate %344, %328 in 1 : vector<16x64xf32>, vector<16x64xf32> -> vector<16x128xf32>
    %c128_56 = arith.constant 128 : index
    %c0_57 = arith.constant 0 : index
    %353 = vector.load %arg8[%c128_56, %c0_57] : memref<576x64xf32, #tpu.memory_space<vmem>>, vector<128x64xf32>
    %cst_58 = arith.constant dense<0.000000e+00> : vector<16x64xf32>
    %354 = tpu.matmul %352, %353, %cst_58 {dimension_numbers = #tpu.dot_dimension_numbers<[1], [0], [0], [1], [0, 0, 1, 1], [], []>} : vector<16x128xf32>, vector<128x64xf32>, vector<16x64xf32> -> vector<16x64xf32>
    %355 = arith.addf %351, %354 : vector<16x64xf32>
    %356 = tpu.concatenate %337, %346 in 1 : vector<16x64xf32>, vector<16x64xf32> -> vector<16x128xf32>
    %c256_59 = arith.constant 256 : index
    %c0_60 = arith.constant 0 : index
    %357 = vector.load %arg8[%c256_59, %c0_60] : memref<576x64xf32, #tpu.memory_space<vmem>>, vector<128x64xf32>
    %cst_61 = arith.constant dense<0.000000e+00> : vector<16x64xf32>
    %358 = tpu.matmul %356, %357, %cst_61 {dimension_numbers = #tpu.dot_dimension_numbers<[1], [0], [0], [1], [0, 0, 1, 1], [], []>} : vector<16x128xf32>, vector<128x64xf32>, vector<16x64xf32> -> vector<16x64xf32>
    %359 = arith.addf %355, %358 : vector<16x64xf32>
    %360 = tpu.concatenate %330, %339 in 1 : vector<16x64xf32>, vector<16x64xf32> -> vector<16x128xf32>
    %c384_62 = arith.constant 384 : index
    %c0_63 = arith.constant 0 : index
    %361 = vector.load %arg8[%c384_62, %c0_63] : memref<576x64xf32, #tpu.memory_space<vmem>>, vector<128x64xf32>
    %cst_64 = arith.constant dense<0.000000e+00> : vector<16x64xf32>
    %362 = tpu.matmul %360, %361, %cst_64 {dimension_numbers = #tpu.dot_dimension_numbers<[1], [0], [0], [1], [0, 0, 1, 1], [], []>} : vector<16x128xf32>, vector<128x64xf32>, vector<16x64xf32> -> vector<16x64xf32>
    %363 = arith.addf %359, %362 : vector<16x64xf32>
    %c512_65 = arith.constant 512 : index
    %c0_66 = arith.constant 0 : index
    %364 = vector.load %arg8[%c512_65, %c0_66] : memref<576x64xf32, #tpu.memory_space<vmem>>, vector<64x64xf32>
    %cst_67 = arith.constant dense<0.000000e+00> : vector<16x64xf32>
    %365 = tpu.matmul %348, %364, %cst_67 {dimension_numbers = #tpu.dot_dimension_numbers<[1], [0], [0], [1], [0, 0, 1, 1], [], []>} : vector<16x64xf32>, vector<64x64xf32>, vector<16x64xf32> -> vector<16x64xf32>
    %366 = arith.addf %363, %365 : vector<16x64xf32>
    %367 = vector.broadcast %314 : vector<1x64xf32> to vector<16x64xf32>
    %368 = arith.mulf %366, %367 : vector<16x64xf32>
    %369 = vector.broadcast %315 : vector<1x64xf32> to vector<16x64xf32>
    %370 = arith.addf %368, %369 : vector<16x64xf32>
    %cst_68 = arith.constant 0.000000e+00 : f32
    %371 = vector.broadcast %cst_68 : f32 to vector<16x64xf32>
    %372 = arith.maximumf %370, %371 : vector<16x64xf32>
    %373 = vector.shape_cast %372 : vector<16x64xf32> to vector<8x2x64xf32>
    %cst_69 = arith.constant dense<0xFF800000> : vector<8x64xf32>
    %374 = vector.multi_reduction <maximumf>, %373, %cst_69 [1] : vector<8x2x64xf32> to vector<8x64xf32>
    %375 = vector.shape_cast %374 : vector<8x64xf32> to vector<8x1x64xf32>
    %376 = tpu.transpose %375, [0, 2, 1] : vector<8x1x64xf32> -> vector<8x64x1xf32>
    %377 = vector.shape_cast %376 : vector<8x64x1xf32> to vector<8x64xf32>
    %378 = vector.shape_cast %377 : vector<8x64xf32> to vector<1x8x64xf32>
    %cst_70 = arith.constant dense<0.000000e+00> : vector<1xf32>
    %379 = vector.multi_reduction <add>, %378, %cst_70 [1, 2] : vector<1x8x64xf32> to vector<1xf32>
    %380 = vector.shape_cast %379 : vector<1xf32> to vector<1x1x1xf32>
    %381 = vector.extract %380[0, 0, 0] : f32 from vector<1x1x1xf32>
    %cst_71 = arith.constant 5.120000e+02 : f32
    %382 = arith.divf %381, %cst_71 : f32
    %383 = vector.broadcast %382 : f32 to vector<8x64xf32>
    %384 = arith.subf %377, %383 : vector<8x64xf32>
    %385 = arith.mulf %384, %384 : vector<8x64xf32>
    %386 = vector.shape_cast %385 : vector<8x64xf32> to vector<1x8x64xf32>
    %cst_72 = arith.constant dense<0.000000e+00> : vector<1xf32>
    %387 = vector.multi_reduction <add>, %386, %cst_72 [1, 2] : vector<1x8x64xf32> to vector<1xf32>
    %388 = vector.shape_cast %387 : vector<1xf32> to vector<1x1x1xf32>
    %389 = vector.extract %388[0, 0, 0] : f32 from vector<1x1x1xf32>
    %cst_73 = arith.constant 5.120000e+02 : f32
    %390 = arith.divf %389, %cst_73 : f32
    %cst_74 = arith.constant 9.99999974E-6 : f32
    %391 = arith.addf %390, %cst_74 : f32
    %392 = math.rsqrt %391 : f32
    %393 = vector.broadcast %382 : f32 to vector<8x64xf32>
    %394 = arith.subf %377, %393 : vector<8x64xf32>
    %395 = vector.broadcast %392 : f32 to vector<8x64xf32>
    %396 = arith.mulf %394, %395 : vector<8x64xf32>
    %c0_75 = arith.constant 0 : index
    %c0_76 = arith.constant 0 : index
    %397 = vector.load %arg11[%c0_75, %c0_76] : memref<8x64xf32, #tpu.memory_space<vmem>>, vector<8x64xf32>
    %398 = arith.mulf %396, %397 : vector<8x64xf32>
    %c0_77 = arith.constant 0 : index
    %c0_78 = arith.constant 0 : index
    %399 = vector.load %arg12[%c0_77, %c0_78] : memref<8x64xf32, #tpu.memory_space<vmem>>, vector<8x64xf32>
    %400 = arith.addf %398, %399 : vector<8x64xf32>
    %c0_79 = arith.constant 0 : index
    %c0_80 = arith.constant 0 : index
    %c0_81 = arith.constant 0 : index
    %401 = vector.load %arg13[%c0_79, %c0_80, %c0_81] : memref<1x8x64xf32, #tpu.memory_space<vmem>>, vector<1x8x64xf32>
    %402 = vector.shape_cast %401 : vector<1x8x64xf32> to vector<8x64xf32>
    %403 = vector.shape_cast %400 : vector<8x64xf32> to vector<1x8x64xf32>
    tpu.vector_store %arg13[%c0_79, %c0_80, %c0_81], %403 {strides = array<i32>} : memref<1x8x64xf32, #tpu.memory_space<vmem>>, vector<1x8x64xf32>,
    return
  }
  func.func @transform_0(%arg0: i32) -> (i32, i32, i32, i32) {
    %c0_i32 = arith.constant 0 : i32
    %c0_i32_0 = arith.constant 0 : i32
    %c0_i32_1 = arith.constant 0 : i32
    %c0_i32_2 = arith.constant 0 : i32
    return %arg0, %c0_i32, %c0_i32_0, %c0_i32_1 : i32, i32, i32, i32
  }
  func.func @transform_1(%arg0: i32) -> (i32, i32) {
    %c0_i32 = arith.constant 0 : i32
    %c0_i32_0 = arith.constant 0 : i32
    %c0_i32_1 = arith.constant 0 : i32
    return %c0_i32, %c0_i32_0 : i32, i32
  }
  func.func @transform_2(%arg0: i32) -> (i32, i32) {
    %c0_i32 = arith.constant 0 : i32
    %c0_i32_0 = arith.constant 0 : i32
    %c0_i32_1 = arith.constant 0 : i32
    return %c0_i32, %c0_i32_0 : i32, i32
  }
  func.func @transform_3(%arg0: i32) -> (i32, i32) {
    %c0_i32 = arith.constant 0 : i32
    %c0_i32_0 = arith.constant 0 : i32
    %c0_i32_1 = arith.constant 0 : i32
    return %c0_i32, %c0_i32_0 : i32, i32
  }
  func.func @transform_4(%arg0: i32) -> (i32, i32) {
    %c0_i32 = arith.constant 0 : i32
    %c0_i32_0 = arith.constant 0 : i32
    %c0_i32_1 = arith.constant 0 : i32
    return %c0_i32, %c0_i32_0 : i32, i32
  }
  func.func @transform_5(%arg0: i32) -> (i32, i32) {
    %c0_i32 = arith.constant 0 : i32
    %c0_i32_0 = arith.constant 0 : i32
    %c0_i32_1 = arith.constant 0 : i32
    return %c0_i32, %c0_i32_0 : i32, i32
  }
  func.func @transform_6(%arg0: i32) -> (i32, i32) {
    %c0_i32 = arith.constant 0 : i32
    %c0_i32_0 = arith.constant 0 : i32
    %c0_i32_1 = arith.constant 0 : i32
    return %c0_i32, %c0_i32_0 : i32, i32
  }
  func.func @transform_7(%arg0: i32) -> (i32, i32) {
    %c0_i32 = arith.constant 0 : i32
    %c0_i32_0 = arith.constant 0 : i32
    %c0_i32_1 = arith.constant 0 : i32
    return %c0_i32, %c0_i32_0 : i32, i32
  }
  func.func @transform_8(%arg0: i32) -> (i32, i32) {
    %c0_i32 = arith.constant 0 : i32
    %c0_i32_0 = arith.constant 0 : i32
    %c0_i32_1 = arith.constant 0 : i32
    return %c0_i32, %c0_i32_0 : i32, i32
  }
  func.func @transform_9(%arg0: i32) -> (i32, i32) {
    %c0_i32 = arith.constant 0 : i32
    %c0_i32_0 = arith.constant 0 : i32
    %c0_i32_1 = arith.constant 0 : i32
    return %c0_i32, %c0_i32_0 : i32, i32
  }
  func.func @transform_10(%arg0: i32) -> (i32, i32) {
    %c0_i32 = arith.constant 0 : i32
    %c0_i32_0 = arith.constant 0 : i32
    %c0_i32_1 = arith.constant 0 : i32
    return %c0_i32, %c0_i32_0 : i32, i32
  }
  func.func @transform_11(%arg0: i32) -> (i32, i32) {
    %c0_i32 = arith.constant 0 : i32
    %c0_i32_0 = arith.constant 0 : i32
    %c0_i32_1 = arith.constant 0 : i32
    return %c0_i32, %c0_i32_0 : i32, i32
  }
  func.func @transform_12(%arg0: i32) -> (i32, i32, i32) {
    %c0_i32 = arith.constant 0 : i32
    %c0_i32_0 = arith.constant 0 : i32
    %c0_i32_1 = arith.constant 0 : i32
    return %arg0, %c0_i32, %c0_i32_0 : i32, i32, i32
  }
}

</mosaic_0001>

<bundles_post_ra>
// kernel: tpu_custom_call.1
= control target key start
LH: loop header
LB: loop body
LE: loop exit
PB: predicated region body
PF: predicated region fallthrough
CT: control target
= control target key end

     0   :  { %s16370_s0 = inlined_call_operand.vmem [shape: f32[2,8,8,128], index: 0, kind: input, shape index: {}]   ;;  %s16371_s1 = inlined_call_operand.vmem [shape: f32[64,72], index: 1, kind: input, shape index: {}]   ;;  %s16372_s2 = inlined_call_operand.vmem [shape: f32[64,1], index: 2, kind: input, shape index: {}]   ;;  %s16373_s3 = inlined_call_operand.vmem [shape: f32[64,1], index: 3, kind: input, shape index: {}]   ;;  %s16374_s4 = inlined_call_operand.vmem [shape: f32[576,64], index: 4, kind: input, shape index: {}]   ;;  %s16375_s5 = inlined_call_operand.vmem [shape: f32[1,64], index: 5, kind: input, shape index: {}]   ;;  %s16376_s6 = inlined_call_operand.vmem [shape: f32[1,64], index: 6, kind: input, shape index: {}]   ;;  %s16377_s7 = inlined_call_operand.vmem [shape: f32[576,64], index: 7, kind: input, shape index: {}]   ;;  %s16378_s8 = inlined_call_operand.vmem [shape: f32[1,64], index: 8, kind: input, shape index: {}]   ;;  %s16379_s9 = inlined_call_operand.vmem [shape: f32[1,64], index: 9, kind: input, shape index: {}]   ;;  %s16380_s10 = inlined_call_operand.vmem [shape: f32[8,64], index: 10, kind: input, shape index: {}]   ;;  %s16381_s11 = inlined_call_operand.vmem [shape: f32[8,64], index: 11, kind: input, shape index: {}]   ;;  %s16382_s12 = inlined_call_operand.hbm [shape: f32[2,8,64], index: 12, kind: output, shape index: {}]  }
   0x1   :  { %16635 = sst [smem:[#allocation132_spill]] %s16370_s0 }
   0x2   :  { %17 = vsyncpa [#allocation3], 0 }
   0x3   :  { %19 = vsyncpa [#allocation3 + $0x1], 0  ;;  %s10857_s21 = smov 0   ;;  %s10859_s22 = smov 0  }
   0x4   :  { %s10861_s23 = smov 0   ;;  %s10863_s24 = smov 0  }
   0x5 LB: > { %s10878_s25 = sadd.s32 4294967295, %s10784_s24   ;;  %s8907_s26 = sadd.s32 4294967294, %s10784_s24   ;;  %s10784_s24 = sphi %s10863_s24, %s17384_s24   ;;  %s10780_s23 = sphi %s10861_s23, %s17383_s23   ;;  %s10776_s22 = sphi %s10859_s22, %s17382_s22   ;;  %s10772_s21 = sphi %s10857_s21, %s17381_s21  }
   0x6   : > { %s10882_s27 = sadd.s32 1, %s10784_s24   ;;  %s289_s28 = sadd.s32 1, %s10780_s23 }
   0x7   : > { %s286_s29 = ssub.s32 %s10784_s24, %s10882_s27  ;;  %p299_p0 = scmp.ne.s32.totalorder %s10780_s23, %s10776_s22 }
   0x8   : > { %p287_p1 = scmp.eq.s32.totalorder %s286_s29, 0  ;;  %p300_p2 = scmp.eq.s32.totalorder %s10878_s25, 1 }
   0x9   : > { %p305_p3 = scmp.ne.s32.totalorder %s10776_s22, %s10772_s21  ;;  %p306_p4 = scmp.eq.s32.totalorder %s8907_s26, 1 }
   0xa   : > { %s10893_s30 = scalar_select %p287_p1, %s10780_s23, %s289_s28  }
   0xb   : > { %p10895_p5 = por %p300_p2, %p299_p0  ;;  %p10899_p6 = por %p306_p4, %p305_p3 }
   0xc   : > { %p8910_p7 = scmp.ge.s32.totalorder %s10784_s24, 1  ;;  %p365_p8 = scmp.lt.s32.totalorder %s10784_s24, 3 }
   0xe   : > { %p366_p9 = pnand %p8910_p7, %p365_p8 }
  0x10   : > { %369 = sbr.rel (%p366_p9) target bundleno = 3343 (0xd0f), region = 68 }
  0x17   : > { %p407_p10 = scmp.lt.s32.totalorder %s10878_s25, 1  ;;  %s16638_s0 = sld [smem:[#allocation132_spill]]  ;;  %v10923_v3 = vld [vmem:[%s16371_s1] sm:$0xff]  ;;  %vm518_vm0 = vcmask 588800   ;;  %v503_v9 = vld [vmem:[%s16372_s2 + $0x8] sm:$0xff]  ;;  %v10788_v10 = vmov 0  }
  0x18   : > { %s10786_s20 = smov 1   ;;  %s10787_s26 = smov 127   ;;  %9393 = vmatprep.mubr.msk.f32.mxu0 %vm518_vm0, %v10923_v3  ;;  %9423 = vmatprep.mubr.msk.f32.mxu1 %vm518_vm0, %v10923_v3  ;;  %v504_v11 = vld [vmem:[%s16372_s2 + $0x10] sm:$0xff]  ;;  %v502_v12 = vld [vmem:[%s16372_s2] sm:$0xff]  ;;  %v505_v14 = vld [vmem:[%s16372_s2 + $0x18] sm:$0xff]  ;;  %vm452_vm1 = vcmask 7168  }
  0x19   : > { %s408_s15 = scalar_select %p407_p10, %s10878_s25, 1  ;;  %10578 = vset.pattern.permute.xlu1 %v10788_v10  ;;  %10577 = vset.pattern.permute.xlu0 %v10788_v10  ;;  %v506_v13 = vld [vmem:[%s16372_s2 + $0x20] sm:$0xff]  ;;  %v508_v15 = vld [vmem:[%s16372_s2 + $0x30] sm:$0xff]  ;;  %v507_v16 = vld [vmem:[%s16372_s2 + $0x28] sm:$0xff]  ;;  %vm485_vm2 = vcmask 1039360   ;;  %vm784_vm3 = vcmask 523264  }
  0x1a   : > { %v510_v17 = vld [vmem:[%s16373_s3] sm:$0xff]  ;;  %v509_v18 = vld [vmem:[%s16372_s2 + $0x38] sm:$0xff]  ;;  %v512_v19 = vld [vmem:[%s16373_s3 + $0x10] sm:$0xff]  ;;  %vm2932_vm4 = vcmask 1042434   ;;  %vm2950_vm5 = vcmask 1041409   ;;  %vm2935_vm6 = vcmask 1043459  }
  0x1b   : > { %s9004_s16 = sshll.u32 %s408_s15, 6  ;;  %v511_v20 = vld [vmem:[%s16373_s3 + $0x8] sm:$0xff]  ;;  %v514_v21 = vld [vmem:[%s16373_s3 + $0x20] sm:$0xff]  ;;  %v513_v22 = vld [vmem:[%s16373_s3 + $0x18] sm:$0xff]  ;;  %vm2938_vm7 = vcmask 1044484   ;;  %vm2941_vm8 = vcmask 1045509  }
  0x1c   : > { %v516_v23 = vld [vmem:[%s16373_s3 + $0x30] sm:$0xff]  ;;  %v515_v24 = vld [vmem:[%s16373_s3 + $0x28] sm:$0xff]  ;;  %v517_v25 = vld [vmem:[%s16373_s3 + $0x38] sm:$0xff]  ;;  %vm2944_vm9 = vcmask 1046534   ;;  %vm2947_vm10 = vcmask 1047559   ;;  %vm3425_vm11 = vcmask 1046528  }
  0x1d   : > { %s411_s19 = scalar_lea.vmem %s16638_s0, %s9004_s16  ;;  %v11019_v46 = vld [vmem:[%s16371_s1 + $0x8] sm:$0xff]  ;;  %v11030_v51 = vld [vmem:[%s16371_s1 + $0x10] sm:$0xff]  ;;  %v11037_v53 = vld [vmem:[%s16371_s1 + $0x18] sm:$0xff]  ;;  %vm3169_vm12 = vcmask 1040384   ;;  %s16479_s17 = smov 64   ;;  %vm5732_vm13 = vcmask 517120  }
  0x1e   : > { %v10910_v0 = vld [vmem:[%s411_s19] sm:$0xff]  ;;  %v10912_v1 = vld [vmem:[%s411_s19 + $0x8] sm:$0xff]  ;;  %v10918_v2 = vld [vmem:[%s411_s19 + $0x10] sm:$0xff]  ;;  %s16971_s18 = smov 64   ;;  %vm6312_vm14 = vcmask 130112   ;;  %vm6319_vm15 = vcmask 195712  }
  0x1f   : > { %428 = vrot.lane.b32.xlu0 %v10910_v0, %s10786_s20  ;;  %430 = vrot.lane.b32.xlu1 %v10912_v1, %s10786_s20  ;;  %v10931_v4 = vld [vmem:[%s411_s19 + $0x18] sm:$0xff]  ;;  %v10935_v5 = vld [vmem:[%s411_s19 + $0x20] sm:$0xff]  ;;  %s9001_s16 = sshll.u32 %s10878_s25, 7 }
  0x20   : > { %v10939_v6 = vld [vmem:[%s411_s19 + $0x28] sm:$0xff]  ;;  %v10943_v7 = vld [vmem:[%s411_s19 + $0x30] sm:$0xff]  ;;  %v10947_v8 = vld [vmem:[%s411_s19 + $0x38] sm:$0xff] }
  0x21   : > { %v11046_v55 = vld [vmem:[%s16371_s1 + $0x20] sm:$0xff]  ;;  %v11059_v59 = vld [vmem:[%s16371_s1 + $0x28] sm:$0xff]  ;;  %v11070_v62 = vld [vmem:[%s16371_s1 + $0x30] sm:$0xff] }
  0x23   : > { %461 = vrot.lane.b32.xlu0 %v10910_v0, %s10787_s26  ;;  %463 = vrot.lane.b32.xlu1 %v10912_v1, %s10787_s26 }
  0x27   : > { %432 = vrot.lane.b32.xlu0 %v10918_v2, %s10786_s20  ;;  %465 = vrot.lane.b32.xlu1 %v10918_v2, %s10787_s26 }
  0x2b   : > { %434 = vrot.lane.b32.xlu0 %v10931_v4, %s10786_s20  ;;  %467 = vrot.lane.b32.xlu1 %v10931_v4, %s10787_s26 }
  0x2f   : > { %436 = vrot.lane.b32.xlu0 %v10935_v5, %s10786_s20  ;;  %469 = vrot.lane.b32.xlu1 %v10935_v5, %s10787_s26 }
  0x33   : > { %438 = vrot.lane.b32.xlu0 %v10939_v6, %s10786_s20  ;;  %471 = vrot.lane.b32.xlu1 %v10939_v6, %s10787_s26 }
  0x37   : > { %440 = vrot.lane.b32.xlu0 %v10943_v7, %s10786_s20  ;;  %473 = vrot.lane.b32.xlu1 %v10943_v7, %s10787_s26 }
  0x3b   : > { %442 = vrot.lane.b32.xlu0 %v10947_v8, %s10786_s20  ;;  %475 = vrot.lane.b32.xlu1 %v10947_v8, %s10787_s26 }
  0x3f   : > { %655 = vperm.xlu1 %10578, %v503_v9   ;;  %650 = vperm.xlu0 %10577, %v502_v12  }
  0x43   : > { %660 = vperm.xlu1 %10578, %v504_v11   ;;  %665 = vperm.xlu0 %10577, %v505_v14  }
  0x47   : > { %670 = vperm.xlu1 %10578, %v506_v13   ;;  %675 = vperm.xlu0 %10577, %v507_v16  }
  0x4b   : > { %680 = vperm.xlu1 %10578, %v508_v15   ;;  %685 = vperm.xlu0 %10577, %v509_v18  }
  0x4f   : > { %698 = vperm.xlu1 %10578, %v510_v17   ;;  %703 = vperm.xlu0 %10577, %v511_v20  }
  0x53   : > { %708 = vperm.xlu1 %10578, %v512_v19   ;;  %713 = vperm.xlu0 %10577, %v513_v22  }
  0x57   : > { %718 = vperm.xlu1 %10578, %v514_v21   ;;  %723 = vperm.xlu0 %10577, %v515_v24  }
  0x5b   : > { %728 = vperm.xlu1 %10578, %v516_v23   ;;  %733 = vperm.xlu0 %10577, %v517_v25  }
  0x91   : > { %v429_v26 = vpop.permute.xlu0 %428  ;;  %v431_v27 = vpop.permute.xlu1 %430 }
  0x92   : > { %v453_v28 = vsel %vm452_vm1, %v10910_v0, %v429_v26  ;;  %v454_v30 = vsel %vm452_vm1, %v10912_v1, %v431_v27 }
  0x93   : > { %v10038_v29 = vpack.c.bf16 %v10910_v0, %v453_v28  ;;  %v10050_v42 = vpack.c.bf16 %v10912_v1, %v454_v30 }
  0x95   : > { %10039 = vmatprep.subr.bf16.mxu0 %v10038_v29  ;;  %10055 = vmatprep.subr.bf16.mxu1 %v10038_v29  ;;  %v462_v31 = vpop.permute.xlu0 %461  ;;  %v464_v32 = vpop.permute.xlu1 %463 }
  0x96   : > { %v486_v33 = vsel %vm485_vm2, %v462_v31, %v10910_v0  ;;  %10041 = vmatpush3.bf16.msra.mxu0 %v10038_v29  ;;  %10057 = vmatpush3.bf16.msra.mxu1 %v10038_v29  ;;  %v487_v34 = vsel %vm485_vm2, %v464_v32, %v10912_v1 }
  0x97   : > { %v10042_v35 = vpack.c.bf16 %v453_v28, %v486_v33  ;;  %v10058_v36 = vpack.c.bf16 %v454_v30, %v486_v33  ;;  %v10062_v37 = vpack.c.bf16 %v487_v34, %v10912_v1  ;;  %v10046_v39 = vpack.c.bf16 %v486_v33, %v10910_v0  ;;  %v11079_v0 = vld [vmem:[%s16371_s1 + $0x38] sm:$0xff] }
  0x99   : > { %10043 = vmatprep.subr.bf16.mxu0 %v10042_v35  ;;  %10059 = vmatprep.subr.bf16.mxu1 %v10058_v36  ;;  %v433_v38 = vpop.permute.xlu0 %432  ;;  %v466_v43 = vpop.permute.xlu1 %465 }
  0x9a   : > { %v455_v40 = vsel %vm452_vm1, %v10918_v2, %v433_v38  ;;  %10045 = vmatpush3.bf16.msra.mxu0 %v10042_v35  ;;  %10061 = vmatpush3.bf16.msra.mxu1 %v10058_v36  ;;  %v488_v44 = vsel %vm485_vm2, %v466_v43, %v10918_v2 }
  0x9b   : > { %v10066_v41 = vpack.c.bf16 %v10918_v2, %v455_v40  ;;  %10047 = vmatprep.subr.bf16.mxu0 %v10046_v39  ;;  %10063 = vmatprep.subr.bf16.mxu1 %v10062_v37  ;;  %v10074_v49 = vpack.c.bf16 %v455_v40, %v487_v34  ;;  %v10078_v57 = vpack.c.bf16 %v488_v44, %v10918_v2 }
  0x9d   : > { %v435_v45 = vpop.permute.xlu0 %434  ;;  %v468_v48 = vpop.permute.xlu1 %467 }
  0x9e   : > { %10049 = vmatpush3.bf16.msra.mxu0 %v10046_v39  ;;  %10065 = vmatpush3.bf16.msra.mxu1 %v10062_v37  ;;  %v456_v47 = vsel %vm452_vm1, %v10931_v4, %v435_v45  ;;  %v489_v52 = vsel %vm485_vm2, %v468_v48, %v10931_v4 }
  0x9f   : > { %10051 = vmatprep.subr.bf16.mxu0 %v10050_v42  ;;  %10067 = vmatprep.subr.bf16.mxu1 %v10066_v41  ;;  %v10090_v50 = vpack.c.bf16 %v456_v47, %v488_v44  ;;  %v10094_v56 = vpack.c.bf16 %v489_v52, %v10931_v4  ;;  %v10082_v60 = vpack.c.bf16 %v10931_v4, %v456_v47 }
  0xa1   : > { %v437_v54 = vpop.permute.xlu0 %436  ;;  %v470_v63 = vpop.permute.xlu1 %469 }
  0xa2   : > { %10053 = vmatpush3.bf16.msra.mxu0 %v10050_v42  ;;  %10069 = vmatpush3.bf16.msra.mxu1 %v10066_v41  ;;  %v457_v58 = vsel %vm452_vm1, %v10935_v5, %v437_v54  ;;  %v490_v1 = vsel %vm485_vm2, %v470_v63, %v10935_v5 }
  0xa3   : > { %9391 = vmatprep.subr.mxu0 %v487_v34  ;;  %9421 = vmatprep.subr.mxu1 %v488_v44  ;;  %v10098_v61 = vpack.c.bf16 %v10935_v5, %v457_v58  ;;  %v10106_v10 = vpack.c.bf16 %v457_v58, %v489_v52  ;;  %v10110_v14 = vpack.c.bf16 %v490_v1, %v10935_v5 }
  0xa5   : > { %v439_v2 = vpop.permute.xlu0 %438  ;;  %v472_v9 = vpop.permute.xlu1 %471 }
  0xa6   : > { %9392 = vmatpush3.msra.mxu0 %v487_v34  ;;  %9422 = vmatpush3.msra.mxu1 %v488_v44  ;;  %v458_v4 = vsel %vm452_vm1, %v10939_v6, %v439_v2  ;;  %v491_v12 = vsel %vm485_vm2, %v472_v9, %v10939_v6 }
  0xa7   : > { %9394 = vmatmul.mubr.msk.f32.vlgmr.msra.gmra.mrb[0].mxu0 %vm518_vm0, %v11019_v46  ;;  %9424 = vmatmul.mubr.msk.f32.vlgmr.msra.gmra.mrb[0].mxu1 %vm518_vm0, %v11019_v46  ;;  %v10122_v11 = vpack.c.bf16 %v458_v4, %v490_v1  ;;  %v10126_v15 = vpack.c.bf16 %v491_v12, %v10939_v6  ;;  %v10114_v5 = vpack.c.bf16 %v10939_v6, %v458_v4 }
  0xa8   : > { %10071 = vmatprep.subr.bf16.mxu0 %v10050_v42  ;;  %10087 = vmatprep.subr.bf16.mxu1 %v10066_v41 }
  0xa9   : > { %10073 = vmatpush3.bf16.msra.mxu0 %v10050_v42  ;;  %10089 = vmatpush3.bf16.msra.mxu1 %v10066_v41  ;;  %v441_v13 = vpop.permute.xlu0 %440  ;;  %v474_v18 = vpop.permute.xlu1 %473 }
  0xaa   : > { %10075 = vmatprep.subr.bf16.mxu0 %v10074_v49  ;;  %10091 = vmatprep.subr.bf16.mxu1 %v10090_v50  ;;  %v459_v16 = vsel %vm452_vm1, %v10943_v7, %v441_v13  ;;  %v492_v6 = vsel %vm485_vm2, %v474_v18, %v10943_v7 }
  0xab   : > { %9396 = vmatprep.mubr.msk.f32.mxu0 %vm518_vm0, %v11030_v51  ;;  %9426 = vmatprep.mubr.msk.f32.mxu1 %vm518_vm0, %v11030_v51  ;;  %v10130_v17 = vpack.c.bf16 %v10943_v7, %v459_v16  ;;  %v10138_v22 = vpack.c.bf16 %v459_v16, %v491_v12  ;;  %v10142_v25 = vpack.c.bf16 %v492_v6, %v10943_v7 }
  0xac   : > { %9397 = vmatmul.mubr.msk.f32.gmra.mrb[2].mxu0 %vm518_vm0, %v11037_v53  ;;  %9427 = vmatmul.mubr.msk.f32.gmra.mrb[2].mxu1 %vm518_vm0, %v11037_v53 }
  0xad   : > { %10077 = vmatpush3.bf16.msra.mxu0 %v10074_v49  ;;  %10093 = vmatpush3.bf16.msra.mxu1 %v10090_v50  ;;  %v443_v19 = vpop.permute.xlu0 %442  ;;  %v476_v21 = vpop.permute.xlu1 %475 }
  0xae   : > { %10079 = vmatprep.subr.bf16.mxu0 %v10078_v57  ;;  %9399 = vmatprep.mubr.msk.f32.mxu0 %vm518_vm0, %v11046_v55  ;;  %v460_v20 = vsel %vm452_vm1, %v10947_v8, %v443_v19  ;;  %v493_v24 = vsel %vm485_vm2, %v476_v21, %v10947_v8  ;;  %vm6333_vm1 = vcmask 326912   ;;  %vm6340_vm2 = vcmask 392512  }
  0xaf   : > { %9429 = vmatprep.mubr.msk.f32.mxu1 %vm518_vm0, %v11046_v55  ;;  %10095 = vmatprep.subr.bf16.mxu1 %v10094_v56  ;;  %v10154_v23 = vpack.c.bf16 %v460_v20, %v492_v6  ;;  %v10158_v26 = vpack.c.bf16 %v493_v24, %v10947_v8  ;;  %v10146_v27 = vpack.c.bf16 %v10947_v8, %v460_v20 }
  0xb0   : > { %9400 = vmatmul.mubr.msk.f32.gmra.mrb[4].mxu0 %vm518_vm0, %v11059_v59  ;;  %9430 = vmatmul.mubr.msk.f32.gmra.mrb[4].mxu1 %vm518_vm0, %v11059_v59 }
  0xb1   : > { %10081 = vmatpush3.bf16.msra.mxu0 %v10078_v57  ;;  %10097 = vmatpush3.bf16.msra.mxu1 %v10094_v56 }
  0xb2   : > { %9402 = vmatprep.mubr.msk.f32.mxu0 %vm518_vm0, %v11070_v62  ;;  %9432 = vmatprep.mubr.msk.f32.mxu1 %vm518_vm0, %v11070_v62 }
  0xb3   : > { %10083 = vmatprep.subr.bf16.mxu0 %v10082_v60  ;;  %10099 = vmatprep.subr.bf16.mxu1 %v10098_v61 }
  0xb4   : > { %9403 = vmatmul.mubr.msk.f32.gmra.mrb[6].mxu0 %vm518_vm0, %v11079_v0  ;;  %9433 = vmatmul.mubr.msk.f32.gmra.mrb[6].mxu1 %vm518_vm0, %v11079_v0 }
  0xb5   : > { %10085 = vmatpush3.bf16.msra.mxu0 %v10082_v60  ;;  %10101 = vmatpush3.bf16.msra.mxu1 %v10098_v61 }
  0xb6   : > { %9451 = vmatprep.subr.mxu0 %v489_v52  ;;  %9481 = vmatprep.subr.mxu1 %v490_v1 }
  0xb7   : > { %9453 = vmatprep.mubr.msk.f32.mxu0 %vm518_vm0, %v10923_v3  ;;  %9483 = vmatprep.mubr.msk.f32.mxu1 %vm518_vm0, %v10923_v3 }
  0xb9   : > { %9452 = vmatpush3.msra.mxu0 %v489_v52  ;;  %9482 = vmatpush3.msra.mxu1 %v490_v1 }
  0xba   : > { %9454 = vmatmul.mubr.msk.f32.vlgmr.msra.gmra.mrb[8].mxu0 %vm518_vm0, %v11019_v46  ;;  %9484 = vmatmul.mubr.msk.f32.vlgmr.msra.gmra.mrb[8].mxu1 %vm518_vm0, %v11019_v46 }
  0xbb   : > { %10103 = vmatprep.subr.bf16.mxu0 %v10082_v60  ;;  %10119 = vmatprep.subr.bf16.mxu1 %v10098_v61 }
  0xbc   : > { %10105 = vmatpush3.bf16.msra.mxu0 %v10082_v60  ;;  %10121 = vmatpush3.bf16.msra.mxu1 %v10098_v61 }
  0xbd   : > { %9456 = vmatprep.mubr.msk.f32.mxu0 %vm518_vm0, %v11030_v51  ;;  %9486 = vmatprep.mubr.msk.f32.mxu1 %vm518_vm0, %v11030_v51 }
  0xbe   : > { %9457 = vmatmul.mubr.msk.f32.gmra.mrb[10].mxu0 %vm518_vm0, %v11037_v53  ;;  %9487 = vmatmul.mubr.msk.f32.gmra.mrb[10].mxu1 %vm518_vm0, %v11037_v53  ;;  %v11208_v7 = vpop.permute.xlu0 %650 }
  0xbf   : > { %10107 = vmatprep.subr.bf16.mxu0 %v10106_v10  ;;  %10123 = vmatprep.subr.bf16.mxu1 %v10122_v11 }
  0xc0   : > { %10109 = vmatpush3.bf16.msra.mxu0 %v10106_v10  ;;  %10125 = vmatpush3.bf16.msra.mxu1 %v10122_v11 }
  0xc1   : > { %9459 = vmatprep.mubr.msk.f32.mxu0 %vm518_vm0, %v11046_v55  ;;  %9489 = vmatprep.mubr.msk.f32.mxu1 %vm518_vm0, %v11046_v55 }
  0xc2   : > { %9460 = vmatmul.mubr.msk.f32.gmra.mrb[12].mxu0 %vm518_vm0, %v11059_v59  ;;  %9490 = vmatmul.mubr.msk.f32.gmra.mrb[12].mxu1 %vm518_vm0, %v11059_v59  ;;  %v11212_v28 = vpop.permute.xlu0 %665 }
  0xc3   : > { %10111 = vmatprep.subr.bf16.mxu0 %v10110_v14  ;;  %10127 = vmatprep.subr.bf16.mxu1 %v10126_v15 }
  0xc4   : > { %10113 = vmatpush3.bf16.msra.mxu0 %v10110_v14  ;;  %10129 = vmatpush3.bf16.msra.mxu1 %v10126_v15 }
  0xc5   : > { %9462 = vmatprep.mubr.msk.f32.mxu0 %vm518_vm0, %v11070_v62  ;;  %9492 = vmatprep.mubr.msk.f32.mxu1 %vm518_vm0, %v11070_v62 }
  0xc6   : > { %9463 = vmatmul.mubr.msk.f32.gmra.mrb[14].mxu0 %vm518_vm0, %v11079_v0  ;;  %9493 = vmatmul.mubr.msk.f32.gmra.mrb[14].mxu1 %vm518_vm0, %v11079_v0  ;;  %v11216_v30 = vpop.permute.xlu0 %675 }
  0xc7   : > { %10115 = vmatprep.subr.bf16.mxu0 %v10114_v5  ;;  %10131 = vmatprep.subr.bf16.mxu1 %v10130_v17 }
  0xc8   : > { %10117 = vmatpush3.bf16.msra.mxu0 %v10114_v5  ;;  %10133 = vmatpush3.bf16.msra.mxu1 %v10130_v17 }
  0xc9   : > { %9511 = vmatprep.subr.mxu0 %v491_v12  ;;  %9541 = vmatprep.subr.mxu1 %v492_v6 }
  0xca   : > { %9513 = vmatprep.mubr.msk.f32.mxu0 %vm518_vm0, %v10923_v3  ;;  %9543 = vmatprep.mubr.msk.f32.mxu1 %vm518_vm0, %v10923_v3  ;;  %v11220_v32 = vpop.permute.xlu0 %685 }
  0xcc   : > { %9512 = vmatpush3.msra.mxu0 %v491_v12  ;;  %9542 = vmatpush3.msra.mxu1 %v492_v6 }
  0xcd   : > { %9514 = vmatmul.mubr.msk.f32.vlgmr.msra.gmra.mrb[16].mxu0 %vm518_vm0, %v11019_v46  ;;  %9544 = vmatmul.mubr.msk.f32.vlgmr.msra.gmra.mrb[16].mxu1 %vm518_vm0, %v11019_v46 }
  0xce   : > { %10135 = vmatprep.subr.bf16.mxu0 %v10114_v5  ;;  %10151 = vmatprep.subr.bf16.mxu1 %v10130_v17  ;;  %v11228_v42 = vpop.permute.xlu0 %703 }
  0xcf   : > { %10137 = vmatpush3.bf16.msra.mxu0 %v10114_v5  ;;  %10153 = vmatpush3.bf16.msra.mxu1 %v10130_v17 }
  0xd0   : > { %9516 = vmatprep.mubr.msk.f32.mxu0 %vm518_vm0, %v11030_v51  ;;  %9546 = vmatprep.mubr.msk.f32.mxu1 %vm518_vm0, %v11030_v51 }
  0xd1   : > { %9517 = vmatmul.mubr.msk.f32.gmra.mrb[18].mxu0 %vm518_vm0, %v11037_v53  ;;  %9547 = vmatmul.mubr.msk.f32.gmra.mrb[18].mxu1 %vm518_vm0, %v11037_v53 }
  0xd2   : > { %10139 = vmatprep.subr.bf16.mxu0 %v10138_v22  ;;  %10155 = vmatprep.subr.bf16.mxu1 %v10154_v23  ;;  %v11242_v2 = vpop.permute.xlu0 %713 }
  0xd3   : > { %10141 = vmatpush3.bf16.msra.mxu0 %v10138_v22  ;;  %10157 = vmatpush3.bf16.msra.mxu1 %v10154_v23 }
  0xd4   : > { %9519 = vmatprep.mubr.msk.f32.mxu0 %vm518_vm0, %v11046_v55  ;;  %9549 = vmatprep.mubr.msk.f32.mxu1 %vm518_vm0, %v11046_v55 }
  0xd5   : > { %9520 = vmatmul.mubr.msk.f32.gmra.mrb[20].mxu0 %vm518_vm0, %v11059_v59  ;;  %9550 = vmatmul.mubr.msk.f32.gmra.mrb[20].mxu1 %vm518_vm0, %v11059_v59 }
  0xd6   : > { %10143 = vmatprep.subr.bf16.mxu0 %v10142_v25  ;;  %10159 = vmatprep.subr.bf16.mxu1 %v10158_v26  ;;  %v11252_v19 = vpop.permute.xlu0 %723 }
  0xd7   : > { %10145 = vmatpush3.bf16.msra.mxu0 %v10142_v25  ;;  %10161 = vmatpush3.bf16.msra.mxu1 %v10158_v26 }
  0xd8   : > { %9522 = vmatprep.mubr.msk.f32.mxu0 %vm518_vm0, %v11070_v62  ;;  %9552 = vmatprep.mubr.msk.f32.mxu1 %vm518_vm0, %v11070_v62 }
  0xd9   : > { %9523 = vmatmul.mubr.msk.f32.gmra.mrb[22].mxu0 %vm518_vm0, %v11079_v0  ;;  %9553 = vmatmul.mubr.msk.f32.gmra.mrb[22].mxu1 %vm518_vm0, %v11079_v0 }
  0xda   : > { %10147 = vmatprep.subr.bf16.mxu0 %v10146_v27  ;;  %10163 = vmatprep.subr.bf16.mxu1 %v10146_v27 }
  0xdb   : > { %10149 = vmatpush3.bf16.msra.mxu0 %v10146_v27  ;;  %10165 = vmatpush3.bf16.msra.mxu1 %v10146_v27 }
  0xdc   : > { %9571 = vmatprep.subr.mxu0 %v493_v24  ;;  %9601 = vmatprep.subr.mxu1 %v493_v24 }
  0xdd   : > { %9573 = vmatprep.mubr.msk.f32.mxu0 %vm518_vm0, %v10923_v3  ;;  %9603 = vmatprep.mubr.msk.f32.mxu1 %vm518_vm0, %v10923_v3  ;;  %v11206_v3 = vpop.permute.xlu1 %655 }
  0xdf   : > { %9572 = vmatpush3.msra.mxu0 %v493_v24  ;;  %9602 = vmatpush3.msra.mxu1 %v493_v24 }
  0xe0   : > { %9574 = vmatmul.mubr.msk.f32.vlgmr.msra.gmra.mrb[24].mxu0 %vm518_vm0, %v11019_v46  ;;  %9604 = vmatmul.mubr.msk.f32.vlgmr.msra.gmra.mrb[24].mxu1 %vm518_vm0, %v11019_v46 }
  0xe1   : > { %9576 = vmatprep.mubr.msk.f32.mxu0 %vm518_vm0, %v11030_v51  ;;  %9606 = vmatprep.mubr.msk.f32.mxu1 %vm518_vm0, %v11030_v51  ;;  %v11210_v8 = vpop.permute.xlu1 %660 }
  0xe4   : > { %9577 = vmatmul.mubr.msk.f32.gmra.mrb[26].mxu0 %vm518_vm0, %v11037_v53  ;;  %9607 = vmatmul.mubr.msk.f32.gmra.mrb[26].mxu1 %vm518_vm0, %v11037_v53 }
  0xe5   : > { %9579 = vmatprep.mubr.msk.f32.mxu0 %vm518_vm0, %v11046_v55  ;;  %9609 = vmatprep.mubr.msk.f32.mxu1 %vm518_vm0, %v11046_v55  ;;  %v11214_v29 = vpop.permute.xlu1 %670 }
  0xe8   : > { %9580 = vmatmul.mubr.msk.f32.gmra.mrb[28].mxu0 %vm518_vm0, %v11059_v59  ;;  %9610 = vmatmul.mubr.msk.f32.gmra.mrb[28].mxu1 %vm518_vm0, %v11059_v59 }
  0xe9   : > { %9582 = vmatprep.mubr.msk.f32.mxu0 %vm518_vm0, %v11070_v62  ;;  %9612 = vmatprep.mubr.msk.f32.mxu1 %vm518_vm0, %v11070_v62  ;;  %v11218_v31 = vpop.permute.xlu1 %680 }
  0xec   : > { %9583 = vmatmul.mubr.msk.f32.gmra.mrb[30].mxu0 %vm518_vm0, %v11079_v0  ;;  %9613 = vmatmul.mubr.msk.f32.gmra.mrb[30].mxu1 %vm518_vm0, %v11079_v0  ;;  %vm6326_vm0 = vcmask 261312  }
  0xed   : > { %v11222_v37 = vpop.permute.xlu1 %698 }
  0xf1   : > { %v11236_v55 = vpop.permute.xlu1 %708 }
  0xf5   : > { %v11248_v17 = vpop.permute.xlu1 %718 }
 0x17a   : > { %v9395_v33 = vpop.f32.mrb[0].mxu0  ;;  %v9425_v34 = vpop.f32.mrb[0].mxu1 }
 0x17b   : > { %v609_v35 = vpop.f32.mrb[1].mxu0  ;;  %v963_v36 = vpop.f32.mrb[1].mxu1  ;;  %v689_v38 = vmul.f32 %v9395_v33, %v11206_v3  ;;  %v1003_v39 = vmul.f32 %v9425_v34, %v11206_v3 }
 0x17c   : > { %v688_v40 = vmul.f32 %v11208_v7, %v609_v35  ;;  %v1002_v41 = vmul.f32 %v963_v36, %v11208_v7 }
 0x17d   : > { %v737_v47 = vadd.f32 %v11228_v42, %v689_v38  ;;  %v1011_v48 = vadd.f32 %v1003_v39, %v11228_v42 }
 0x17e   : > { %v736_v43 = vadd.f32 %v11222_v37, %v688_v40  ;;  %v1010_v44 = vadd.f32 %v1002_v41, %v11222_v37 }
 0x17f   : > { %v9398_v45 = vpop.f32.mrb[2].mxu0  ;;  %v9428_v46 = vpop.f32.mrb[2].mxu1  ;;  %v745_v60 = vmax.f32 %v737_v47, 0.0  ;;  %v1019_v61 = vmax.f32 %v1011_v48, 0.0 }
 0x180   : > { %v744_v49 = vmax.f32 %v736_v43, 0.0  ;;  %v1018_v50 = vmax.f32 %v1010_v44, 0.0  ;;  %v619_v51 = vpop.f32.mrb[3].mxu0  ;;  %v973_v52 = vpop.f32.mrb[3].mxu1  ;;  %v691_v56 = vmul.f32 %v9398_v45, %v11212_v28  ;;  %v1005_v57 = vmul.f32 %v9428_v46, %v11212_v28 }
 0x181   : > { %v690_v53 = vmul.f32 %v11210_v8, %v619_v51  ;;  %v1004_v54 = vmul.f32 %v973_v52, %v11210_v8  ;;  %v11276_v45 = vpop.permute.xlu1 %728 }
 0x182   : > { %752 = vxpose.xlu1.b32.start [1/8] (short) %v744_v49, 128  ;;  %1026 = vxpose.xlu0.b32.start [1/8] (short) %v1018_v50, 128  ;;  %v739_v4 = vadd.f32 %v11242_v2, %v691_v56  ;;  %v1013_v9 = vadd.f32 %v1005_v57, %v11242_v2  ;;  %v11290_v57 = vpop.permute.xlu0 %733 }
 0x183   : > { %v9401_v58 = vpop.f32.mrb[4].mxu0  ;;  %v9431_v59 = vpop.f32.mrb[4].mxu1  ;;  %v738_v62 = vadd.f32 %v11236_v55, %v690_v53  ;;  %v1012_v63 = vadd.f32 %v1004_v54, %v11236_v55 }
 0x184   : > { %v629_v0 = vpop.f32.mrb[5].mxu0  ;;  %v983_v1 = vpop.f32.mrb[5].mxu1  ;;  %v693_v18 = vmul.f32 %v9401_v58, %v11216_v30  ;;  %v1007_v6 = vmul.f32 %v9431_v59, %v11216_v30  ;;  %v747_v20 = vmax.f32 %v739_v4, 0.0  ;;  %v1021_v21 = vmax.f32 %v1013_v9, 0.0 }
 0x185   : > { %v746_v12 = vmax.f32 %v738_v62, 0.0  ;;  %v1020_v13 = vmax.f32 %v1012_v63, 0.0  ;;  %v692_v14 = vmul.f32 %v11214_v29, %v629_v0  ;;  %v1006_v15 = vmul.f32 %v983_v1, %v11214_v29 }
 0x186   : > { %753 = vxpose.xlu1.b32.cont [2/8] (short) %v745_v60, 128  ;;  %1027 = vxpose.xlu0.b32.cont [2/8] (short) %v1019_v61, 128  ;;  %v741_v33 = vadd.f32 %v11252_v19, %v693_v18  ;;  %v1015_v34 = vadd.f32 %v1007_v6, %v11252_v19 }
 0x187   : > { %v9404_v10 = vpop.f32.mrb[6].mxu0  ;;  %v9434_v11 = vpop.f32.mrb[6].mxu1  ;;  %v740_v22 = vadd.f32 %v11248_v17, %v692_v14  ;;  %v1014_v23 = vadd.f32 %v1006_v15, %v11248_v17 }
 0x188   : > { %v639_v16 = vpop.f32.mrb[7].mxu0  ;;  %v993_v5 = vpop.f32.mrb[7].mxu1  ;;  %v749_v46 = vmax.f32 %v741_v33, 0.0  ;;  %v1023_v47 = vmax.f32 %v1015_v34, 0.0  ;;  %v695_v48 = vmul.f32 %v9404_v10, %v11220_v32  ;;  %v1009_v49 = vmul.f32 %v9434_v11, %v11220_v32 }
 0x189   : > { %v748_v35 = vmax.f32 %v740_v22, 0.0  ;;  %v1022_v36 = vmax.f32 %v1014_v23, 0.0  ;;  %v694_v38 = vmul.f32 %v11218_v31, %v639_v16  ;;  %v1008_v39 = vmul.f32 %v993_v5, %v11218_v31 }
 0x18a   : > { %754 = vxpose.xlu1.b32.cont [3/8] (short) %v746_v12, 128  ;;  %1028 = vxpose.xlu0.b32.cont [3/8] (short) %v1020_v13, 128  ;;  %v743_v58 = vadd.f32 %v11290_v57, %v695_v48  ;;  %v1017_v59 = vadd.f32 %v1009_v49, %v11290_v57 }
 0x18b   : > { %v742_v50 = vadd.f32 %v11276_v45, %v694_v38  ;;  %v1016_v51 = vadd.f32 %v1008_v39, %v11276_v45 }
 0x18c   : > { %v751_v4 = vmax.f32 %v743_v58, 0.0  ;;  %v1025_v9 = vmax.f32 %v1017_v59, 0.0 }
 0x18d   : > { %v11256_v24 = vpop.f32.mrb[8].mxu0  ;;  %v11258_v25 = vpop.f32.mrb[8].mxu1  ;;  %v750_v60 = vmax.f32 %v742_v50, 0.0  ;;  %v1024_v61 = vmax.f32 %v1016_v51, 0.0 }
 0x18e   : > { %v11260_v26 = vpop.f32.mrb[9].mxu0  ;;  %v11262_v27 = vpop.f32.mrb[9].mxu1  ;;  %755 = vxpose.xlu1.b32.cont [4/8] (short) %v747_v20, 128  ;;  %1029 = vxpose.xlu0.b32.cont [4/8] (short) %v1021_v21, 128  ;;  %v1276_v50 = vmul.f32 %v11256_v24, %v11206_v3  ;;  %v1549_v51 = vmul.f32 %v11258_v25, %v11206_v3 }
 0x191   : > { %v11268_v40 = vpop.f32.mrb[10].mxu0  ;;  %v11270_v41 = vpop.f32.mrb[10].mxu1 }
 0x192   : > { %v11272_v43 = vpop.f32.mrb[11].mxu0  ;;  %v11274_v44 = vpop.f32.mrb[11].mxu1  ;;  %756 = vxpose.xlu1.b32.cont [5/8] (short) %v748_v35, 128  ;;  %1030 = vxpose.xlu0.b32.cont [5/8] (short) %v1022_v36, 128 }
 0x195   : > { %v11282_v52 = vpop.f32.mrb[12].mxu0  ;;  %v11284_v53 = vpop.f32.mrb[12].mxu1 }
 0x196   : > { %v11286_v54 = vpop.f32.mrb[13].mxu0  ;;  %v11288_v56 = vpop.f32.mrb[13].mxu1  ;;  %757 = vxpose.xlu1.b32.cont [6/8] (short) %v749_v46, 128  ;;  %1031 = vxpose.xlu0.b32.cont [6/8] (short) %v1023_v47, 128  ;;  %v1275_v46 = vmul.f32 %v11260_v26, %v11208_v7  ;;  %v1548_v47 = vmul.f32 %v11262_v27, %v11208_v7 }
 0x198   : > { %v1556_v26 = vadd.f32 %v1548_v47, %v11222_v37 }
 0x199   : > { %v11294_v62 = vpop.f32.mrb[14].mxu0  ;;  %v11296_v63 = vpop.f32.mrb[14].mxu1 }
 0x19a   : > { %v11298_v0 = vpop.f32.mrb[15].mxu0  ;;  %v11300_v1 = vpop.f32.mrb[15].mxu1  ;;  %758 = vxpose.xlu1.b32.cont [7/8] (short) %v750_v60, 128  ;;  %1032 = vxpose.xlu0.b32.cont [7/8] (short) %v1024_v61, 128  ;;  %v1283_v60 = vadd.f32 %v1275_v46, %v11222_v37  ;;  %v1550_v46 = vmul.f32 %v11274_v44, %v11210_v8 }
 0x19c   : > { %v1291_v25 = vmax.f32 %v1283_v60, 0.0 }
 0x19e   : > { %759 = vxpose.xlu1.b32.end [8/8] (short) %v751_v4, 128  ;;  %1033 = vxpose.xlu0.b32.end [8/8] (short) %v1025_v9, 128  ;;  %v1284_v4 = vadd.f32 %v1276_v50, %v11228_v42  ;;  %v1557_v9 = vadd.f32 %v1549_v51, %v11228_v42  ;;  %v1278_v50 = vmul.f32 %v11268_v40, %v11212_v28 }
 0x19f   : > { %v1551_v51 = vmul.f32 %v11270_v41, %v11212_v28  ;;  %v1279_v41 = vmul.f32 %v11286_v54, %v11214_v29 }
 0x1a0   : > { %v11302_v10 = vpop.f32.mrb[16].mxu0  ;;  %v11304_v11 = vpop.f32.mrb[16].mxu1 }
 0x1a1   : > { %v11306_v12 = vpop.f32.mrb[17].mxu0  ;;  %v11308_v13 = vpop.f32.mrb[17].mxu1 }
 0x1a4   : > { %v11310_v14 = vpop.f32.mrb[18].mxu0  ;;  %v11312_v15 = vpop.f32.mrb[18].mxu1 }
 0x1a5   : > { %v11314_v16 = vpop.f32.mrb[19].mxu0  ;;  %v11316_v5 = vpop.f32.mrb[19].mxu1 }
 0x1a8   : > { %v11318_v18 = vpop.f32.mrb[20].mxu0  ;;  %v11320_v6 = vpop.f32.mrb[20].mxu1 }
 0x1a9   : > { %v11322_v20 = vpop.f32.mrb[21].mxu0  ;;  %v11324_v21 = vpop.f32.mrb[21].mxu1 }
 0x1ac   : > { %v11326_v22 = vpop.f32.mrb[22].mxu0  ;;  %v11328_v23 = vpop.f32.mrb[22].mxu1 }
 0x1ad   : > { %v11330_v33 = vpop.f32.mrb[23].mxu0  ;;  %v11332_v34 = vpop.f32.mrb[23].mxu1 }
 0x1b3   : > { %v11334_v35 = vpop.f32.mrb[24].mxu0  ;;  %v11336_v36 = vpop.f32.mrb[24].mxu1 }
 0x1b4   : > { %v11338_v38 = vpop.f32.mrb[25].mxu0  ;;  %v11340_v39 = vpop.f32.mrb[25].mxu1 }
 0x1b7   : > { %v11346_v48 = vpop.f32.mrb[26].mxu0  ;;  %v11348_v49 = vpop.f32.mrb[26].mxu1 }
 0x1b8   : > { %16639 = vst [vmem:[#allocation5_spill] sm:$0xff] %v11348_v49  ;;  %v11354_v58 = vpop.f32.mrb[27].mxu0  ;;  %v11356_v59 = vpop.f32.mrb[27].mxu1 }
 0x1b9   : > { %16640 = vst [vmem:[#allocation6_spill] sm:$0xff] %v11354_v58  ;;  %16641 = vst [vmem:[#allocation7_spill] sm:$0xff] %v11356_v59  ;;  %v1564_v58 = vmax.f32 %v1556_v26, 0.0  ;;  %v1277_v59 = vmul.f32 %v11272_v43, %v11210_v8  ;;  %v1292_v43 = vmax.f32 %v1284_v4, 0.0 }
 0x1bb   : > { %v11360_v61 = vpop.f32.mrb[28].mxu0  ;;  %v11362_v27 = vpop.f32.mrb[28].mxu1  ;;  %v1285_v44 = vadd.f32 %v1277_v59, %v11236_v55  ;;  %v1280_v59 = vmul.f32 %v11282_v52, %v11216_v30  ;;  %v1281_v52 = vmul.f32 %v11298_v0, %v11218_v31 }
 0x1bc   : > { %16642 = vst [vmem:[#allocation8_spill] sm:$0xff] %v11360_v61  ;;  %v11366_v24 = vpop.f32.mrb[29].mxu0  ;;  %v11368_v49 = vpop.f32.mrb[29].mxu1 }
 0x1bd   : > { %16643 = vst [vmem:[#allocation9_spill] sm:$0xff] %v11368_v49  ;;  %v1565_v49 = vmax.f32 %v1557_v9, 0.0  ;;  %v1293_v40 = vmax.f32 %v1285_v44, 0.0  ;;  %v1288_v54 = vadd.f32 %v1280_v59, %v11252_v19  ;;  %v1555_v44 = vmul.f32 %v11296_v63, %v11220_v32  ;;  %v4551_v63 = vld [vmem:[%s16374_s4 + $0x208] sm:$0xff] }
 0x1bf   : > { %v11374_v47 = vpop.f32.mrb[30].mxu0  ;;  %v11376_v61 = vpop.f32.mrb[30].mxu1  ;;  %1572 = vxpose.xlu1.b32.start [1/8] (short) %v1564_v58, 128  ;;  %1299 = vxpose.xlu0.b32.start [1/8] (short) %v1291_v25, 128  ;;  %v1286_v58 = vadd.f32 %v1278_v50, %v11242_v2  ;;  %v1559_v25 = vadd.f32 %v1551_v51, %v11242_v2  ;;  %v1296_v51 = vmax.f32 %v1288_v54, 0.0  ;;  %v4554_v54 = vld [vmem:[%s16374_s4 + $0x220] sm:$0xff] }
 0x1c0   : > { %16644 = vst [vmem:[#allocation10_spill] sm:$0xff] %v11374_v47  ;;  %16645 = vst [vmem:[#allocation11_spill] sm:$0xff] %v11376_v61  ;;  %v11382_v60 = vpop.f32.mrb[31].mxu0  ;;  %v11384_v26 = vpop.f32.mrb[31].mxu1  ;;  %v1558_v47 = vadd.f32 %v1550_v46, %v11236_v55  ;;  %v1287_v46 = vadd.f32 %v1279_v41, %v11248_v17 }
 0x1c1   : > { %16646 = vst [vmem:[#allocation12_spill] sm:$0xff] %v11384_v26  ;;  %v1552_v26 = vmul.f32 %v11288_v56, %v11214_v29  ;;  %v1294_v4 = vmax.f32 %v1286_v58, 0.0  ;;  %v1567_v9 = vmax.f32 %v1559_v25, 0.0  ;;  %v1289_v58 = vadd.f32 %v1281_v52, %v11276_v45  ;;  %v4557_v52 = vld [vmem:[%s16374_s4 + $0x238] sm:$0xff] }
 0x1c2   : > { %v1566_v61 = vmax.f32 %v1558_v47, 0.0 }
 0x1c3   : > { %1573 = vxpose.xlu1.b32.cont [2/8] (short) %v1565_v49, 128  ;;  %1300 = vxpose.xlu0.b32.cont [2/8] (short) %v1292_v43, 128  ;;  %v1553_v49 = vmul.f32 %v11284_v53, %v11216_v30  ;;  %v1560_v47 = vadd.f32 %v1552_v26, %v11248_v17  ;;  %v1554_v53 = vmul.f32 %v11300_v1, %v11218_v31 }
 0x1c4   : > { %v1282_v26 = vmul.f32 %v11294_v62, %v11220_v32  ;;  %v1563_v1 = vadd.f32 %v1555_v44, %v11290_v57  ;;  %v4550_v62 = vld [vmem:[%s16374_s4 + $0x200] sm:$0xff]  ;;  %v2095_v44 = vmul.f32 %v11304_v11, %v11206_v3 }
 0x1c5   : > { %v1561_v56 = vadd.f32 %v1553_v49, %v11252_v19  ;;  %v1568_v50 = vmax.f32 %v1560_v47, 0.0  ;;  %v1562_v25 = vadd.f32 %v1554_v53, %v11276_v45 }
 0x1c6   : > { %v1290_v0 = vadd.f32 %v1282_v26, %v11290_v57  ;;  %v1571_v49 = vmax.f32 %v1563_v1, 0.0  ;;  %v1822_v26 = vmul.f32 %v11302_v10, %v11206_v3  ;;  %v2096_v1 = vmul.f32 %v11316_v5, %v11210_v8 }
 0x1c7   : > { %1574 = vxpose.xlu1.b32.cont [3/8] (short) %v1566_v61, 128  ;;  %1301 = vxpose.xlu0.b32.cont [3/8] (short) %v1293_v40, 128  ;;  %v1295_v61 = vmax.f32 %v1287_v46, 0.0  ;;  %v1569_v43 = vmax.f32 %v1561_v56, 0.0  ;;  %v1297_v40 = vmax.f32 %v1289_v58, 0.0  ;;  %v1570_v41 = vmax.f32 %v1562_v25, 0.0  ;;  %v4553_v46 = vld [vmem:[%s16374_s4 + $0x218] sm:$0xff]  ;;  %v4555_v56 = vld [vmem:[%s16374_s4 + $0x228] sm:$0xff] }
 0x1c8   : > { %v1298_v59 = vmax.f32 %v1290_v0, 0.0  ;;  %v1824_v0 = vmul.f32 %v11310_v14, %v11212_v28  ;;  %v1830_v10 = vadd.f32 %v1822_v26, %v11228_v42  ;;  %v2103_v11 = vadd.f32 %v2095_v44, %v11228_v42 }
 0x1c9   : > { %v2099_v14 = vmul.f32 %v11320_v6, %v11216_v30 }
 0x1ca   : > { %v2111_v6 = vmax.f32 %v2103_v11, 0.0 }
 0x1cb   : > { %1575 = vxpose.xlu1.b32.cont [4/8] (short) %v1567_v9, 128  ;;  %1302 = vxpose.xlu0.b32.cont [4/8] (short) %v1294_v4, 128  ;;  %v10294_v4 = vpack.c.bf16 %v4551_v63, %v4550_v62  ;;  %v4552_v9 = vld [vmem:[%s16374_s4 + $0x210] sm:$0xff]  ;;  %v1825_v62 = vmul.f32 %v11322_v20, %v11214_v29  ;;  %v2098_v63 = vmul.f32 %v11324_v21, %v11214_v29 }
 0x1cc   : > { %v10298_v47 = vpack.c.bf16 %v4553_v46, %v4552_v9  ;;  %v2101_v9 = vmul.f32 %v11328_v23, %v11220_v32  ;;  %v1827_v20 = vmul.f32 %v11330_v33, %v11218_v31  ;;  %v2100_v21 = vmul.f32 %v11332_v34, %v11218_v31 }
 0x1cd   : > { %10295 = vmatprep.subr.bf16.mxu1 %v10294_v4 }
 0x1ce   : > { %10297 = vmatpush3.bf16.msra.mxu1 %v10294_v4  ;;  %v1828_v4 = vmul.f32 %v11326_v22, %v11220_v32  ;;  %v2368_v22 = vmul.f32 %v11334_v35, %v11206_v3  ;;  %v11500_v34 = vadd.f32 %v2101_v9, %v11290_v57  ;;  %v2367_v35 = vmul.f32 %v11338_v38, %v11208_v7 }
 0x1cf   : > { %1576 = vxpose.xlu1.b32.cont [5/8] (short) %v1568_v50, 128  ;;  %1303 = vxpose.xlu0.b32.cont [5/8] (short) %v1295_v61, 128  ;;  %v10302_v61 = vpack.c.bf16 %v4555_v56, %v4554_v54  ;;  %v4556_v50 = vld [vmem:[%s16374_s4 + $0x230] sm:$0xff]  ;;  %v11509_v26 = vadd.f32 %v1827_v20, %v11276_v45  ;;  %v11512_v44 = vadd.f32 %v2100_v21, %v11276_v45 }
 0x1d0   : > { %10299 = vmatprep.subr.bf16.mxu1 %v10298_v47  ;;  %v10306_v53 = vpack.c.bf16 %v4557_v52, %v4556_v50  ;;  %v11493_v50 = vadd.f32 %v1825_v62, %v11248_v17  ;;  %v2106_v52 = vadd.f32 %v2098_v63, %v11248_v17  ;;  %v11497_v33 = vadd.f32 %v1828_v4, %v11290_v57 }
 0x1d2   : > { %10301 = vmatpush3.bf16.msra.mxu1 %v10298_v47  ;;  %v11482_v47 = vadd.f32 %v2099_v14, %v11252_v19  ;;  %v1844_v11 = vmax.f32 %v11497_v33, 0.0 }
 0x1d3   : > { %1577 = vxpose.xlu1.b32.cont [6/8] (short) %v1569_v43, 128  ;;  %1304 = vxpose.xlu0.b32.cont [6/8] (short) %v1296_v51, 128  ;;  %v1821_v51 = vmul.f32 %v11306_v12, %v11208_v7  ;;  %v2094_v43 = vmul.f32 %v11308_v13, %v11208_v7  ;;  %v2097_v12 = vmul.f32 %v11312_v15, %v11212_v28 }
 0x1d4   : > { %10303 = vmatprep.subr.bf16.mxu1 %v10302_v61  ;;  %v1823_v13 = vmul.f32 %v11314_v16, %v11210_v8  ;;  %v11463_v15 = vadd.f32 %v1824_v0, %v11242_v2  ;;  %v11515_v0 = vadd.f32 %v2368_v22, %v11228_v42  ;;  %v2370_v22 = vmul.f32 %v11346_v48, %v11212_v28  ;;  %v16649_v48 = vld [vmem:[#allocation7_spill] sm:$0xff] }
 0x1d5   : > { %v1829_v58 = vadd.f32 %v1821_v51, %v11222_v37  ;;  %v2102_v25 = vadd.f32 %v2094_v43, %v11222_v37  ;;  %v11466_v16 = vadd.f32 %v2097_v12, %v11242_v2  ;;  %v2115_v43 = vmax.f32 %v11482_v47, 0.0 }
 0x1d6   : > { %10305 = vmatpush3.bf16.msra.mxu1 %v10302_v61  ;;  %v1831_v5 = vadd.f32 %v1823_v13, %v11236_v55  ;;  %v1840_v54 = vmax.f32 %v11463_v15, 0.0  ;;  %v1841_v12 = vmax.f32 %v11493_v50, 0.0  ;;  %v2114_v13 = vmax.f32 %v2106_v52, 0.0 }
 0x1d7   : > { %1578 = vxpose.xlu1.b32.cont [7/8] (short) %v1570_v41, 128  ;;  %1305 = vxpose.xlu0.b32.cont [7/8] (short) %v1297_v40, 128  ;;  %v1837_v40 = vmax.f32 %v1829_v58, 0.0  ;;  %v2110_v41 = vmax.f32 %v2102_v25, 0.0  ;;  %v2113_v56 = vmax.f32 %v11466_v16, 0.0 }
 0x1d8   : > { %10307 = vmatprep.subr.bf16.mxu1 %v10306_v53  ;;  %v1839_v23 = vmax.f32 %v1831_v5, 0.0 }
 0x1da   : > { %10309 = vmatpush3.bf16.msra.mxu1 %v10306_v53  ;;  %v2641_v53 = vmul.f32 %v11336_v36, %v11206_v3  ;;  %v2640_v3 = vmul.f32 %v11340_v39, %v11208_v7  ;;  %v11528_v7 = vadd.f32 %v2367_v35, %v11222_v37  ;;  %v1843_v39 = vmax.f32 %v11509_v26, 0.0 }
 0x1db   : > { %1579 = vxpose.xlu1.b32.end [8/8] (short) %v1571_v49, 128  ;;  %1306 = vxpose.xlu0.b32.end [8/8] (short) %v1298_v59, 128  ;;  %v1826_v59 = vmul.f32 %v11318_v18, %v11216_v30  ;;  %v2104_v49 = vadd.f32 %v2096_v1, %v11236_v55  ;;  %v1838_v18 = vmax.f32 %v1830_v10, 0.0 }
 0x1dc   : > { %v11534_v62 = vadd.f32 %v2640_v3, %v11222_v37  ;;  %v16647_v37 = vld [vmem:[#allocation5_spill] sm:$0xff] }
 0x1dd   : > { %v11479_v46 = vadd.f32 %v1826_v59, %v11252_v19  ;;  %v2112_v61 = vmax.f32 %v2104_v49, 0.0  ;;  %v2116_v59 = vmax.f32 %v11512_v44, 0.0 }
 0x1df   : > { %v1842_v51 = vmax.f32 %v11479_v46, 0.0 }
 0x1fc   : > { %2118 = vxpose.xlu1.b32.start [1/8] (short) %v2110_v41, 128  ;;  %1845 = vxpose.xlu0.b32.start [1/8] (short) %v1837_v40, 128  ;;  %v2117_v40 = vmax.f32 %v11500_v34, 0.0  ;;  %v11525_v41 = vadd.f32 %v2641_v53, %v11228_v42 }
 0x200   : > { %2119 = vxpose.xlu1.b32.cont [2/8] (short) %v2111_v6, 128  ;;  %1846 = vxpose.xlu0.b32.cont [2/8] (short) %v1838_v18, 128 }
 0x202   : > { %v768_v58 = vpop.trf.xlu1  ;;  %v1042_v25 = vpop.trf.xlu0 }
 0x203   : > { %v785_v36 = vsel %vm784_vm3, %v768_v58, -inf  ;;  %v1058_v38 = vsel %vm784_vm3, %v1042_v25, -inf }
 0x204   : > { %v786_v1 = vrot.slane %v785_v36, 4  ;;  %v1059_v10 = vrot.slane %v1058_v38, 4  ;;  %2120 = vxpose.xlu1.b32.cont [3/8] (short) %v2112_v61, 128  ;;  %1847 = vxpose.xlu0.b32.cont [3/8] (short) %v1839_v23, 128  ;;  %v2643_v23 = vmul.f32 %v16647_v37, %v11212_v28 }
 0x206   : > { %v787_v14 = vmax.f32 %v785_v36, %v786_v1  ;;  %v1060_v15 = vmax.f32 %v1058_v38, %v1059_v10  ;;  %v769_v16 = vpop.trf.xlu1  ;;  %v1043_v5 = vpop.trf.xlu0  ;;  %v2642_v38 = vmul.f32 %v16649_v48, %v11210_v8 }
 0x207   : > { %v792_v63 = vsel %vm784_vm3, %v769_v16, -inf  ;;  %v1065_v42 = vsel %vm784_vm3, %v1043_v5, -inf }
 0x208   : > { %v788_v18 = vrot.slane %v787_v14, 2  ;;  %v1061_v6 = vrot.slane %v1060_v15, 2  ;;  %v793_v4 = vrot.slane %v792_v63, 4  ;;  %v1066_v9 = vrot.slane %v1065_v42, 4  ;;  %2121 = vxpose.xlu1.b32.cont [4/8] (short) %v2113_v56, 128  ;;  %1848 = vxpose.xlu0.b32.cont [4/8] (short) %v1840_v54, 128  ;;  %v16648_v54 = vld [vmem:[#allocation6_spill] sm:$0xff] }
 0x209   : > { %v2369_v56 = vmul.f32 %v16648_v54, %v11210_v8 }
 0x20a   : > { %v789_v61 = vmax.f32 %v787_v14, %v788_v18  ;;  %v1062_v50 = vmax.f32 %v1060_v15, %v1061_v6  ;;  %v794_v52 = vmax.f32 %v792_v63, %v793_v4  ;;  %v1067_v53 = vmax.f32 %v1065_v42, %v1066_v9  ;;  %v770_v35 = vpop.trf.xlu1  ;;  %v1044_v58 = vpop.trf.xlu0 }
 0x20b   : > { %v799_v3 = vsel %vm784_vm3, %v770_v35, -inf  ;;  %v1072_v36 = vsel %vm784_vm3, %v1044_v58, -inf  ;;  %v11552_v14 = vadd.f32 %v2370_v22, %v11242_v2  ;;  %v11555_v15 = vadd.f32 %v2643_v23, %v11242_v2 }
 0x20c   : > { %v790_v28 = vrot.slane %v789_v61, 1  ;;  %v795_v1 = vrot.slane %v794_v52, 2  ;;  %v1068_v10 = vrot.slane %v1067_v53, 2  ;;  %2122 = vxpose.xlu1.b32.cont [5/8] (short) %v2114_v13, 128  ;;  %1849 = vxpose.xlu0.b32.cont [5/8] (short) %v1841_v12, 128  ;;  %v800_v16 = vrot.slane %v799_v3, 4 }
 0x20d   : > { %v1073_v5 = vrot.slane %v1072_v36, 4  ;;  %v1063_v42 = vrot.slane %v1062_v50, 1  ;;  %v11562_v22 = vadd.f32 %v2369_v56, %v11236_v55  ;;  %v11565_v2 = vadd.f32 %v2642_v38, %v11236_v55 }
 0x20e   : > { %v11557_v63 = vmax.f32 %v789_v61, %v790_v28  ;;  %v796_v18 = vmax.f32 %v794_v52, %v795_v1  ;;  %v1069_v6 = vmax.f32 %v1067_v53, %v1068_v10  ;;  %v771_v8 = vpop.trf.xlu1  ;;  %v1045_v4 = vpop.trf.xlu0  ;;  %v801_v9 = vmax.f32 %v799_v3, %v800_v16 }
 0x20f   : > { %v1074_v37 = vmax.f32 %v1072_v36, %v1073_v5  ;;  %v806_v12 = vsel %vm784_vm3, %v771_v8, -inf  ;;  %v1079_v13 = vsel %vm784_vm3, %v1045_v4, -inf  ;;  %v11572_v56 = vmax.f32 %v1062_v50, %v1063_v42 }
 0x210   : > { %16650 = vst [vmem:[#allocation5_spill] sm:$0xff] %v11557_v63  ;;  %v797_v23 = vrot.slane %v796_v18, 1  ;;  %v1070_v61 = vrot.slane %v1069_v6, 1  ;;  %2123 = vxpose.xlu1.b32.cont [6/8] (short) %v2115_v43, 128  ;;  %1850 = vxpose.xlu0.b32.cont [6/8] (short) %v1842_v51, 128  ;;  %v802_v52 = vrot.slane %v801_v9, 2  ;;  %v807_v35 = vrot.slane %v806_v12, 4 }
 0x211   : > { %v1075_v53 = vrot.slane %v1074_v37, 2  ;;  %v1080_v58 = vrot.slane %v1079_v13, 4  ;;  %v2930_v54 = vrot.slane %v11557_v63, 7  ;;  %v2964_v8 = vrot.slane %v11572_v56, 7 }
 0x212   : > { %v798_v3 = vmax.f32 %v796_v18, %v797_v23  ;;  %v11574_v55 = vmax.f32 %v1069_v6, %v1070_v61  ;;  %v772_v36 = vpop.trf.xlu1  ;;  %v1046_v48 = vpop.trf.xlu0  ;;  %v803_v38 = vmax.f32 %v801_v9, %v802_v52  ;;  %v808_v47 = vmax.f32 %v806_v12, %v807_v35 }
 0x213   : > { %v1076_v28 = vmax.f32 %v1074_v37, %v1075_v53  ;;  %v1081_v43 = vmax.f32 %v1079_v13, %v1080_v58  ;;  %v813_v61 = vsel %vm784_vm3, %v772_v36, -inf }
 0x214   : > { %v2931_v1 = vrot.slane %v798_v3, 6  ;;  %v3434_v46 = vrot.slane %v798_v3, 7  ;;  %v2965_v51 = vrot.slane %v11574_v55, 6  ;;  %v3461_v10 = vrot.slane %v11574_v55, 7  ;;  %2124 = vxpose.xlu1.b32.cont [7/8] (short) %v2116_v59, 128  ;;  %1851 = vxpose.xlu0.b32.cont [7/8] (short) %v1843_v39, 128 }
 0x215   : > { %v804_v50 = vrot.slane %v803_v38, 1  ;;  %v1077_v16 = vrot.slane %v1076_v28, 1  ;;  %v809_v5 = vrot.slane %v808_v47, 2  ;;  %v1082_v42 = vrot.slane %v1081_v43, 2 }
 0x216   : > { %v2933_v4 = vsel %vm2932_vm4, %v2931_v1, %v2930_v54  ;;  %v11586_v9 = vpop.trf.xlu1  ;;  %v1047_v44 = vpop.trf.xlu0  ;;  %v3435_v12 = vsel %vm2950_vm5, %v3434_v46, %v11557_v63  ;;  %v2966_v13 = vsel %vm2932_vm4, %v2965_v51, %v2964_v8  ;;  %v3462_v23 = vsel %vm2950_vm5, %v3461_v10, %v11572_v56  ;;  %v16651_v1 = vld [vmem:[#allocation8_spill] sm:$0xff] }
 0x217   : > { %v805_v59 = vmax.f32 %v803_v38, %v804_v50  ;;  %v11588_v37 = vmax.f32 %v1076_v28, %v1077_v16  ;;  %v810_v26 = vmax.f32 %v808_v47, %v809_v5  ;;  %v1083_v39 = vmax.f32 %v1081_v43, %v1082_v42 }
 0x218   : > { %2125 = vxpose.xlu1.b32.end [8/8] (short) %v2117_v40, 128  ;;  %1852 = vxpose.xlu0.b32.end [8/8] (short) %v1844_v11, 128  ;;  %v1086_v47 = vsel %vm784_vm3, %v1046_v48, -inf  ;;  %v2372_v46 = vmul.f32 %v16651_v1, %v11216_v30  ;;  %v2645_v48 = vmul.f32 %v11362_v27, %v11216_v30  ;;  %v814_v16 = vrot.slane %v813_v61, 4 }
 0x219   : > { %v2934_v52 = vrot.slane %v805_v59, 5  ;;  %v3186_v53 = vrot.slane %v805_v59, 7  ;;  %v3436_v35 = vrot.slane %v805_v59, 6  ;;  %v2967_v58 = vrot.slane %v11588_v37, 5 }
 0x21a   : > { %v3463_v54 = vrot.slane %v11588_v37, 6  ;;  %v811_v38 = vrot.slane %v810_v26, 1  ;;  %v1084_v28 = vrot.slane %v1083_v39, 1  ;;  %v11603_v43 = vpop.trf.xlu1  ;;  %v1048_v36 = vpop.trf.xlu0  ;;  %v1087_v5 = vrot.slane %v1086_v47, 4 }
 0x21b   : > { %v2936_v34 = vsel %vm2935_vm6, %v2934_v52, %v2933_v4  ;;  %v3187_v40 = vsel %vm2950_vm5, %v3186_v53, %v798_v3  ;;  %v3437_v33 = vsel %vm2932_vm4, %v3436_v35, %v3435_v12  ;;  %v2968_v11 = vsel %vm2935_vm6, %v2967_v58, %v2966_v13 }
 0x21c   : > { %v3464_v51 = vsel %vm2932_vm4, %v3463_v54, %v3462_v23  ;;  %v812_v10 = vmax.f32 %v810_v26, %v811_v38  ;;  %v11612_v50 = vmax.f32 %v1083_v39, %v1084_v28  ;;  %v1093_v42 = vsel %vm784_vm3, %v1047_v44, -inf  ;;  %v16653_v28 = vld [vmem:[#allocation9_spill] sm:$0xff] }
 0x21d   : > { %v2371_v23 = vmul.f32 %v11366_v24, %v11214_v29  ;;  %v815_v39 = vmax.f32 %v813_v61, %v814_v16  ;;  %v1088_v52 = vmax.f32 %v1086_v47, %v1087_v5  ;;  %v1094_v38 = vrot.slane %v1093_v42, 4 }
 0x21e   : > { %v2937_v3 = vrot.slane %v812_v10, 4  ;;  %v3188_v8 = vrot.slane %v812_v10, 6  ;;  %v3438_v4 = vrot.slane %v812_v10, 5  ;;  %v2969_v59 = vrot.slane %v11612_v50, 4  ;;  %v775_v12 = vpop.trf.xlu1  ;;  %v1049_v13 = vpop.trf.xlu0 }
 0x21f   : > { %v3465_v26 = vrot.slane %v11612_v50, 5  ;;  %v816_v58 = vrot.slane %v815_v39, 2  ;;  %v1089_v54 = vrot.slane %v1088_v52, 2  ;;  %v11630_v61 = vadd.f32 %v2372_v46, %v11252_v19 }
 0x220   : > { %v2939_v30 = vsel %vm2938_vm7, %v2937_v3, %v2936_v34  ;;  %v11623_v27 = vsel %vm2932_vm4, %v3188_v8, %v3187_v40  ;;  %v3439_v44 = vsel %vm2935_vm6, %v3438_v4, %v3437_v33  ;;  %v2970_v53 = vsel %vm2938_vm7, %v2969_v59, %v2968_v11 }
 0x221   : > { %16652 = vst [vmem:[#allocation6_spill] sm:$0xff] %v11623_v27  ;;  %v3466_v35 = vsel %vm2935_vm6, %v3465_v26, %v3464_v51  ;;  %v2644_v47 = vmul.f32 %v16653_v28, %v11214_v29  ;;  %v1100_v34 = vsel %vm784_vm3, %v1048_v36, -inf  ;;  %v11636_v11 = vadd.f32 %v2645_v48, %v11252_v19 }
 0x222   : > { %v776_v40 = vpop.trf.xlu1  ;;  %v1050_v33 = vpop.trf.xlu0  ;;  %v817_v1 = vmax.f32 %v815_v39, %v816_v58  ;;  %v1090_v51 = vmax.f32 %v1088_v52, %v1089_v54  ;;  %v1101_v10 = vrot.slane %v1100_v34, 4  ;;  %v11639_v16 = vadd.f32 %v2371_v23, %v11248_v17 }
 0x223   : > { %v820_v46 = vsel %vm784_vm3, %v11586_v9, -inf  ;;  %v834_v5 = vsel %vm784_vm3, %v775_v12, -inf  ;;  %v1107_v29 = vsel %vm784_vm3, %v1049_v13, -inf  ;;  %v1095_v4 = vmax.f32 %v1093_v42, %v1094_v38  ;;  %v16655_v42 = vld [vmem:[#allocation10_spill] sm:$0xff]  ;;  %v16656_v38 = vld [vmem:[#allocation11_spill] sm:$0xff] }
 0x224   : > { %v818_v3 = vrot.slane %v817_v1, 1  ;;  %v1091_v8 = vrot.slane %v1090_v51, 1  ;;  %v11647_v19 = vadd.f32 %v2644_v47, %v11248_v17  ;;  %v1102_v48 = vmax.f32 %v1100_v34, %v1101_v10 }
 0x225   : > { %v835_v59 = vrot.slane %v834_v5, 4  ;;  %v1108_v26 = vrot.slane %v1107_v29, 4  ;;  %v821_v13 = vrot.slane %v820_v46, 4  ;;  %v11658_v17 = vmul.f32 %v16655_v42, %v11220_v32 }
 0x226   : > { %v777_v23 = vpop.trf.xlu1  ;;  %v1051_v39 = vpop.trf.xlu0  ;;  %v11650_v9 = vmax.f32 %v817_v1, %v818_v3  ;;  %v11652_v12 = vmax.f32 %v1090_v51, %v1091_v8  ;;  %v11662_v28 = vmul.f32 %v16656_v38, %v11220_v32  ;;  %v1096_v51 = vrot.slane %v1095_v4, 2 }
 0x227   : > { %v1103_v3 = vrot.slane %v1102_v48, 2  ;;  %v836_v8 = vmax.f32 %v834_v5, %v835_v59  ;;  %v1109_v52 = vmax.f32 %v1107_v29, %v1108_v26  ;;  %v822_v18 = vmax.f32 %v820_v46, %v821_v13 }
 0x228   : > { %16654 = vst [vmem:[#allocation7_spill] sm:$0xff] %v11650_v9  ;;  %v2940_v47 = vrot.slane %v11650_v9, 3  ;;  %v3440_v34 = vrot.slane %v11650_v9, 4  ;;  %v2971_v1 = vrot.slane %v11652_v12, 3  ;;  %v3467_v10 = vrot.slane %v11652_v12, 4 }
 0x229   : > { %v2373_v24 = vmul.f32 %v11382_v60, %v11218_v31  ;;  %v827_v29 = vsel %vm784_vm3, %v11603_v43, -inf  ;;  %v1097_v26 = vmax.f32 %v1095_v4, %v1096_v51  ;;  %v1104_v46 = vmax.f32 %v1102_v48, %v1103_v3 }
 0x22a   : > { %v778_v58 = vpop.trf.xlu1  ;;  %v1052_v54 = vpop.trf.xlu0  ;;  %v11669_v42 = vsel %vm2941_vm8, %v2940_v47, %v2939_v30  ;;  %v11672_v32 = vsel %vm2938_vm7, %v3440_v34, %v3439_v44  ;;  %v11675_v38 = vsel %vm2941_vm8, %v2971_v1, %v2970_v53  ;;  %v11681_v5 = vsel %vm2938_vm7, %v3467_v10, %v3466_v35  ;;  %v16660_v30 = vld [vmem:[#allocation12_spill] sm:$0xff] }
 0x22b   : > { %16657 = vst [vmem:[#allocation8_spill] sm:$0xff] %v11669_v42  ;;  %16658 = vst [vmem:[#allocation9_spill] sm:$0xff] %v11672_v32  ;;  %v2646_v59 = vmul.f32 %v16660_v30, %v11218_v31  ;;  %v3212_v44 = vrot.slane %v11588_v37, 7  ;;  %v3214_v53 = vrot.slane %v11612_v50, 6  ;;  %v837_v13 = vrot.slane %v836_v8, 2 }
 0x22c   : > { %16659 = vst [vmem:[#allocation10_spill] sm:$0xff] %v11681_v5  ;;  %v1110_v47 = vrot.slane %v1109_v52, 2  ;;  %v841_v34 = vsel %vm784_vm3, %v776_v40, -inf  ;;  %v823_v35 = vrot.slane %v822_v18, 2  ;;  %v828_v10 = vrot.slane %v827_v29, 4 }
 0x22d   : > { %v842_v6 = vrot.slane %v841_v34, 4  ;;  %v1114_v43 = vsel %vm784_vm3, %v1050_v33, -inf  ;;  %v838_v36 = vmax.f32 %v836_v8, %v837_v13  ;;  %v848_v37 = vsel %vm784_vm3, %v777_v23, -inf }
 0x22e   : > { %v779_v60 = vpop.trf.xlu1  ;;  %v1053_v1 = vpop.trf.xlu0  ;;  %v1111_v49 = vmax.f32 %v1109_v52, %v1110_v47  ;;  %v1115_v31 = vrot.slane %v1114_v43, 4  ;;  %v11693_v50 = vadd.f32 %v2373_v24, %v11276_v45  ;;  %v3213_v4 = vsel %vm2950_vm5, %v3212_v44, %v11574_v55 }
 0x22f   : > { %v1098_v48 = vrot.slane %v1097_v26, 1  ;;  %v843_v40 = vmax.f32 %v841_v34, %v842_v6  ;;  %v1105_v51 = vrot.slane %v1104_v46, 1  ;;  %v839_v3 = vrot.slane %v838_v36, 1 }
 0x230   : > { %v1112_v30 = vrot.slane %v1111_v49, 1  ;;  %v1116_v20 = vmax.f32 %v1114_v43, %v1115_v31  ;;  %v849_v52 = vrot.slane %v848_v37, 4  ;;  %v1121_v8 = vsel %vm784_vm3, %v1051_v39, -inf }
 0x231   : > { %v844_v33 = vrot.slane %v843_v40, 2  ;;  %v855_v23 = vsel %vm784_vm3, %v778_v58, -inf  ;;  %v11702_v24 = vadd.f32 %v2646_v59, %v11276_v45  ;;  %v11705_v55 = vsel %vm2932_vm4, %v3214_v53, %v3213_v4 }
 0x232   : > { %v780_v21 = vpop.trf.xlu1  ;;  %v11697_v25 = vpop.trf.xlu0  ;;  %v11707_v6 = vmax.f32 %v822_v18, %v823_v35  ;;  %v11709_v44 = vmax.f32 %v827_v29, %v828_v10  ;;  %v1117_v34 = vrot.slane %v1116_v20, 2  ;;  %v850_v43 = vmax.f32 %v848_v37, %v849_v52 }
 0x233   : > { %v845_v47 = vmax.f32 %v843_v40, %v844_v33  ;;  %v11712_v31 = vmax.f32 %v1097_v26, %v1098_v48  ;;  %v11714_v39 = vmax.f32 %v1104_v46, %v1105_v51  ;;  %v1122_v58 = vrot.slane %v1121_v8, 4 }
 0x234   : > { %v856_v27 = vrot.slane %v855_v23, 4  ;;  %v11720_v53 = vmax.f32 %v838_v36, %v839_v3  ;;  %v11722_v18 = vmax.f32 %v1111_v49, %v1112_v30  ;;  %v1118_v35 = vmax.f32 %v1116_v20, %v1117_v34 }
 0x235   : > { %v846_v29 = vrot.slane %v845_v47, 1  ;;  %v851_v10 = vrot.slane %v850_v43, 2  ;;  %v1123_v4 = vmax.f32 %v1121_v8, %v1122_v58  ;;  %v1128_v26 = vsel %vm784_vm3, %v1052_v54, -inf }
 0x236   : > { %v11716_v45 = vpop.trf.xlu1  ;;  %v11718_v59 = vpop.trf.xlu0  ;;  %16661 = vst [vmem:[#allocation11_spill] sm:$0xff] %v11720_v53  ;;  %16662 = vst [vmem:[#allocation12_spill] sm:$0xff] %v11722_v18  ;;  %v857_v40 = vmax.f32 %v855_v23, %v856_v27  ;;  %v1119_v46 = vrot.slane %v1118_v35, 1  ;;  %v1129_v48 = vrot.slane %v1128_v26, 4  ;;  %v862_v51 = vsel %vm784_vm3, %v779_v60, -inf }
 0x237   : > { %v11725_v37 = vmax.f32 %v845_v47, %v846_v29  ;;  %v852_v33 = vmax.f32 %v850_v43, %v851_v10  ;;  %v1124_v52 = vrot.slane %v1123_v4, 2  ;;  %v863_v36 = vrot.slane %v862_v51, 4 }
 0x238   : > { %v858_v13 = vrot.slane %v857_v40, 2  ;;  %v16664_v49 = vmax.f32 %v11534_v62, 0.0  ;;  %v16665_v27 = vmax.f32 %v11528_v7, 0.0  ;;  %v11737_v30 = vmax.f32 %v1118_v35, %v1119_v46 }
 0x239   : > { %16663 = vst [vmem:[#allocation13_spill] sm:$0xff] %v11725_v37  ;;  %v2949_v54 = vrot.slane %v11725_v37, 7  ;;  %v1130_v8 = vmax.f32 %v1128_v26, %v1129_v48  ;;  %v1135_v60 = vsel %vm784_vm3, %v1053_v1, -inf  ;;  %v853_v23 = vrot.slane %v852_v33, 1 }
 0x23a   : > { %v11728_v3 = vpop.trf.xlu1  ;;  %2664 = vxpose.xlu1.b32.start [1/8] (short) %v16664_v49, 128  ;;  %v11732_v20 = vpop.trf.xlu0  ;;  %2391 = vxpose.xlu0.b32.start [1/8] (short) %v16665_v27, 128  ;;  %v1125_v47 = vmax.f32 %v1123_v4, %v1124_v52  ;;  %v859_v34 = vmax.f32 %v857_v40, %v858_v13  ;;  %v864_v43 = vmax.f32 %v862_v51, %v863_v36  ;;  %v2977_v58 = vrot.slane %v11737_v30, 7 }
 0x23b   : > { %v2951_v62 = vsel %vm2950_vm5, %v2949_v54, %v11720_v53  ;;  %v1131_v29 = vrot.slane %v1130_v8, 2  ;;  %v1136_v10 = vrot.slane %v1135_v60, 4  ;;  %v854_v7 = vmax.f32 %v852_v33, %v853_v23 }
 0x23c   : > { %v1126_v49 = vrot.slane %v1125_v47, 1  ;;  %v860_v27 = vrot.slane %v859_v34, 1  ;;  %v865_v32 = vrot.slane %v864_v43, 2  ;;  %v16666_v26 = vmax.f32 %v11525_v41, 0.0 }
 0x23d   : > { %v16667_v1 = vmax.f32 %v11515_v0, 0.0  ;;  %v2978_v13 = vsel %vm2950_vm5, %v2977_v58, %v11722_v18  ;;  %v1132_v4 = vmax.f32 %v1130_v8, %v1131_v29  ;;  %v1137_v40 = vmax.f32 %v1135_v60, %v1136_v10 }
 0x23e   : > { %v11743_v35 = vpop.trf.xlu1  ;;  %2665 = vxpose.xlu1.b32.cont [2/8] (short) %v16666_v26, 128  ;;  %v869_v46 = vsel %vm784_vm3, %v780_v21, -inf  ;;  %v2952_v48 = vrot.slane %v854_v7, 6  ;;  %v3448_v51 = vrot.slane %v854_v7, 7  ;;  %v11752_v33 = vmax.f32 %v1125_v47, %v1126_v49  ;;  %v11754_v26 = vpop.trf.xlu0 }
 0x23f   : > { %2392 = vxpose.xlu0.b32.cont [2/8] (short) %v16667_v1, 128  ;;  %v861_v52 = vmax.f32 %v859_v34, %v860_v27  ;;  %v1133_v36 = vrot.slane %v1132_v4, 1  ;;  %v866_v54 = vmax.f32 %v864_v43, %v865_v32  ;;  %v1138_v23 = vrot.slane %v1137_v40, 2 }
 0x240   : > { %v870_v41 = vrot.slane %v869_v46, 4  ;;  %v2953_v0 = vsel %vm2932_vm4, %v2952_v48, %v2951_v62  ;;  %v3449_v58 = vsel %vm2950_vm5, %v3448_v51, %v11725_v37  ;;  %v2979_v8 = vrot.slane %v11752_v33, 6 }
 0x241   : > { %v3475_v21 = vrot.slane %v11752_v33, 7  ;;  %v16668_v60 = vmax.f32 %v11565_v2, 0.0  ;;  %v16669_v47 = vmax.f32 %v11562_v22, 0.0  ;;  %v2954_v32 = vrot.slane %v861_v52, 5 }
 0x242   : > { %v3200_v34 = vrot.slane %v861_v52, 7  ;;  %v3450_v43 = vrot.slane %v861_v52, 6  ;;  %v11765_v29 = vmax.f32 %v1132_v4, %v1133_v36  ;;  %v2980_v62 = vsel %vm2932_vm4, %v2979_v8, %v2978_v13  ;;  %v11770_v1 = vpop.trf.xlu1 }
 0x243   : > { %2666 = vxpose.xlu1.b32.cont [3/8] (short) %v16668_v60, 128  ;;  %2393 = vxpose.xlu0.b32.cont [3/8] (short) %v16669_v47, 128  ;;  %v3476_v10 = vsel %vm2950_vm5, %v3475_v21, %v11737_v30  ;;  %v867_v49 = vrot.slane %v866_v54, 1  ;;  %v1139_v27 = vmax.f32 %v1137_v40, %v1138_v23  ;;  %v2955_v2 = vsel %vm2935_vm6, %v2954_v32, %v2953_v0  ;;  %v11786_v21 = vpop.trf.xlu0 }
 0x244   : > { %v3201_v22 = vsel %vm2950_vm5, %v3200_v34, %v854_v7  ;;  %v3451_v48 = vsel %vm2932_vm4, %v3450_v43, %v3449_v58  ;;  %v2981_v51 = vrot.slane %v11765_v29, 5  ;;  %v3218_v4 = vrot.slane %v11712_v31, 4 }
 0x245   : > { %v3477_v13 = vrot.slane %v11765_v29, 6  ;;  %v868_v52 = vmax.f32 %v866_v54, %v867_v49  ;;  %v1140_v36 = vrot.slane %v1139_v27, 1  ;;  %v16670_v40 = vmax.f32 %v11555_v15, 0.0 }
 0x246   : > { %v16671_v23 = vmax.f32 %v11552_v14, 0.0  ;;  %v3220_v0 = vrot.slane %v11714_v39, 3  ;;  %v2982_v7 = vsel %vm2935_vm6, %v2981_v51, %v2980_v62  ;;  %v871_v58 = vmax.f32 %v869_v46, %v870_v41 }
 0x247   : > { %2667 = vxpose.xlu1.b32.cont [4/8] (short) %v16670_v40, 128  ;;  %v1142_v8 = vsel %vm784_vm3, %v11697_v25, -inf  ;;  %v3222_v60 = vrot.slane %v11722_v18, 2  ;;  %v3478_v54 = vsel %vm2932_vm4, %v3477_v13, %v3476_v10  ;;  %v2956_v47 = vrot.slane %v868_v52, 4  ;;  %v11801_v10 = vpop.trf.xlu1 }
 0x248   : > { %2394 = vxpose.xlu0.b32.cont [4/8] (short) %v16671_v23, 128  ;;  %v3202_v15 = vrot.slane %v868_v52, 6  ;;  %v3452_v32 = vrot.slane %v868_v52, 5  ;;  %v11790_v34 = vmax.f32 %v1139_v27, %v1140_v36  ;;  %v872_v14 = vrot.slane %v871_v58, 2  ;;  %v11820_v23 = vpop.trf.xlu0 }
 0x249   : > { %v1143_v43 = vrot.slane %v1142_v8, 4  ;;  %v11793_v49 = vsel %vm2938_vm7, %v2956_v47, %v2955_v2  ;;  %v16673_v25 = vrot.slane %v11652_v12, 5  ;;  %v3224_v62 = vrot.slane %v11737_v30, 1 }
 0x24a   : > { %16672 = vst [vmem:[#allocation14_spill] sm:$0xff] %v11793_v49  ;;  %v3203_v46 = vsel %vm2932_vm4, %v3202_v15, %v3201_v22  ;;  %v16674_v51 = vmax.f32 %v11647_v19, 0.0  ;;  %v16675_v27 = vmax.f32 %v11639_v16, 0.0  ;;  %v3453_v2 = vsel %vm2935_vm6, %v3452_v32, %v3451_v48 }
 0x24b   : > { %v3217_v41 = vsel %vm2935_vm6, %v16673_v25, %v11705_v55  ;;  %v2983_v13 = vrot.slane %v11790_v34, 4  ;;  %v3479_v22 = vrot.slane %v11790_v34, 5  ;;  %v873_v52 = vmax.f32 %v871_v58, %v872_v14 }
 0x24c   : > { %2668 = vxpose.xlu1.b32.cont [5/8] (short) %v16674_v51, 128  ;;  %2395 = vxpose.xlu0.b32.cont [5/8] (short) %v16675_v27, 128  ;;  %v3219_v12 = vsel %vm2938_vm7, %v3218_v4, %v3217_v41  ;;  %v1144_v55 = vmax.f32 %v1142_v8, %v1143_v43  ;;  %v876_v36 = vsel %vm784_vm3, %v11716_v45, -inf  ;;  %v830_v19 = vrot.slane %v11709_v44, 2  ;;  %v11841_v43 = vpop.trf.xlu1 }
 0x24d   : > { %v3221_v30 = vsel %vm2941_vm8, %v3220_v0, %v3219_v12  ;;  %v11816_v16 = vsel %vm2938_vm7, %v2983_v13, %v2982_v7  ;;  %v3480_v48 = vsel %vm2935_vm6, %v3479_v22, %v3478_v54  ;;  %v874_v47 = vrot.slane %v873_v52, 1  ;;  %v1317_v13 = vpop.trf.xlu0 }
 0x24e   : > { %v3223_v40 = vsel %vm2944_vm9, %v3222_v60, %v3221_v30  ;;  %v1145_v4 = vrot.slane %v1144_v55, 2  ;;  %v877_v0 = vrot.slane %v876_v36, 4  ;;  %v16677_v8 = vmax.f32 %v11636_v11, 0.0 }
 0x24f   : > { %v11823_v58 = vsel %vm2947_vm10, %v3224_v62, %v3223_v40  ;;  %v16678_v45 = vmax.f32 %v11630_v61, 0.0  ;;  %v2382_v7 = vadd.f32 %v11658_v17, %v11290_v57  ;;  %v2655_v60 = vadd.f32 %v11662_v28, %v11290_v57 }
 0x250   : > { %16676 = vst [vmem:[#allocation15_spill] sm:$0xff] %v11823_v58  ;;  %2669 = vxpose.xlu1.b32.cont [6/8] (short) %v16677_v8, 128  ;;  %v2389_v54 = vmax.f32 %v11693_v50, 0.0  ;;  %9855 = vmatprep.mubr.msk.f32.mxu1 %vm784_vm3, %v11823_v58  ;;  %v1149_v15 = vsel %vm784_vm3, %v11718_v59, -inf  ;;  %v2662_v11 = vmax.f32 %v11702_v24, 0.0  ;;  %v11839_v32 = vmax.f32 %v873_v52, %v874_v47  ;;  %v1591_v40 = vpop.trf.xlu1 }
 0x251   : > { %2396 = vxpose.xlu0.b32.cont [6/8] (short) %v16678_v45, 128  ;;  %v1146_v61 = vmax.f32 %v1144_v55, %v1145_v4  ;;  %v878_v14 = vmax.f32 %v876_v36, %v877_v0  ;;  %v825_v17 = vrot.slane %v11707_v6, 1  ;;  %v831_v57 = vmax.f32 %v11709_v44, %v830_v19  ;;  %v11871_v45 = vpop.trf.xlu0 }
 0x252   : > { %16679 = vst [vmem:[#allocation16_spill] sm:$0xff] %v11839_v32  ;;  %v1156_v28 = vsel %vm784_vm3, %v11732_v20, -inf  ;;  %v3204_v50 = vrot.slane %v11839_v32, 5  ;;  %v3454_v25 = vrot.slane %v11839_v32, 4  ;;  %v1150_v41 = vrot.slane %v1149_v15, 4 }
 0x253   : > { %v1147_v59 = vrot.slane %v1146_v61, 1  ;;  %v2390_v24 = vmax.f32 %v2382_v7, 0.0  ;;  %v2663_v62 = vmax.f32 %v2655_v60, 0.0  ;;  %v879_v51 = vrot.slane %v878_v14, 2 }
 0x254   : > { %2670 = vxpose.xlu1.b32.cont [7/8] (short) %v2662_v11, 128  ;;  %v883_v27 = vsel %vm784_vm3, %v11728_v3, -inf  ;;  %v3205_v44 = vsel %vm2935_vm6, %v3204_v50, %v3203_v46  ;;  %v11853_v22 = vsel %vm2938_vm7, %v3454_v25, %v3453_v2  ;;  %v1157_v12 = vrot.slane %v1156_v28, 4  ;;  %v11883_v25 = vpop.trf.xlu1 }
 0x255   : > { %2397 = vxpose.xlu0.b32.cont [7/8] (short) %v2389_v54, 128  ;;  %16680 = vst [vmem:[#allocation17_spill] sm:$0xff] %v11853_v22  ;;  %v11855_v20 = vmax.f32 %v1146_v61, %v1147_v59  ;;  %v880_v52 = vmax.f32 %v878_v14, %v879_v51  ;;  %v1163_v55 = vsel %vm784_vm3, %v11754_v26, -inf  ;;  %v11860_v30 = vmax.f32 %v11707_v6, %v825_v17 }
 0x256   : > { %v832_v36 = vrot.slane %v831_v57, 1  ;;  %v1151_v3 = vmax.f32 %v1149_v15, %v1150_v41  ;;  %v884_v2 = vrot.slane %v883_v27, 4  ;;  %v1158_v4 = vmax.f32 %v1156_v28, %v1157_v12 }
 0x257   : > { %16681 = vst [vmem:[#allocation18_spill] sm:$0xff] %v11860_v30  ;;  %v3481_v19 = vrot.slane %v11855_v20, 4  ;;  %v881_v46 = vrot.slane %v880_v52, 1  ;;  %v890_v0 = vsel %vm784_vm3, %v11743_v35, -inf  ;;  %v1164_v26 = vrot.slane %v1163_v55, 4 }
 0x258   : > { %2671 = vxpose.xlu1.b32.end [8/8] (short) %v2663_v62, 128  ;;  %v11874_v60 = vmax.f32 %v831_v57, %v832_v36  ;;  %v3226_v54 = vrot.slane %v11765_v29, 7  ;;  %v1152_v15 = vrot.slane %v1151_v3, 2  ;;  %v11879_v61 = vmax.f32 %v883_v27, %v884_v2 }
 0x259   : > { %2398 = vxpose.xlu0.b32.end [8/8] (short) %v2390_v24, 128  ;;  %v11864_v47 = vsel %vm2938_vm7, %v3481_v19, %v3480_v48  ;;  %v11869_v8 = vmax.f32 %v880_v52, %v881_v46  ;;  %v3228_v48 = vrot.slane %v11790_v34, 6  ;;  %v891_v35 = vrot.slane %v890_v0, 4 }
 0x25a   : > { %16682 = vst [vmem:[#allocation19_spill] sm:$0xff] %v11864_v47  ;;  %16684 = vst [vmem:[#allocation21_spill] sm:$0xff] %v11874_v60  ;;  %v1159_v28 = vrot.slane %v1158_v4, 2  ;;  %v1165_v50 = vmax.f32 %v1163_v55, %v1164_v26  ;;  %v1604_v34 = vsel %vm784_vm3, %v11770_v1, -inf  ;;  %v1331_v59 = vsel %vm784_vm3, %v11786_v21, -inf  ;;  %v11904_v1 = vpop.trf.xlu0 }
 0x25b   : > { %16683 = vst [vmem:[#allocation20_spill] sm:$0xff] %v11869_v8  ;;  %v3206_v11 = vrot.slane %v11869_v8, 4  ;;  %v3227_v62 = vsel %vm2950_vm5, %v3226_v54, %v11752_v33  ;;  %v1153_v51 = vmax.f32 %v1151_v3, %v1152_v15  ;;  %v11902_v52 = vmax.f32 %v890_v0, %v891_v35 }
 0x25c   : > { %v11899_v12 = vsel %vm2932_vm4, %v3228_v48, %v3227_v62  ;;  %v1160_v21 = vmax.f32 %v1158_v4, %v1159_v28  ;;  %v1166_v55 = vrot.slane %v1165_v50, 2  ;;  %v1605_v36 = vrot.slane %v1604_v34, 4  ;;  %v11913_v48 = vpop.trf.xlu1 }
 0x25d   : > { %v11887_v29 = vsel %vm2938_vm7, %v3206_v11, %v3205_v44  ;;  %v886_v44 = vrot.slane %v11879_v61, 2  ;;  %v1332_v19 = vrot.slane %v1331_v59, 4  ;;  %v1611_v46 = vsel %vm784_vm3, %v11801_v10, -inf }
 0x25e   : > { %16685 = vst [vmem:[#allocation22_spill] sm:$0xff] %v11887_v29  ;;  %v1338_v33 = vsel %vm784_vm3, %v11820_v23, -inf  ;;  %v1618_v3 = vsel %vm784_vm3, %v11841_v43, -inf  ;;  %v1345_v2 = vsel %vm784_vm3, %v1317_v13, -inf  ;;  %v1154_v26 = vrot.slane %v1153_v51, 1  ;;  %v11916_v13 = vpop.trf.xlu0 }
 0x25f   : > { %v1606_v0 = vmax.f32 %v1604_v34, %v1605_v36  ;;  %v1333_v54 = vmax.f32 %v1331_v59, %v1332_v19  ;;  %v1612_v15 = vrot.slane %v1611_v46, 4  ;;  %v1339_v4 = vrot.slane %v1338_v33, 4 }
 0x260   : > { %v1619_v11 = vrot.slane %v1618_v3, 4  ;;  %v1346_v35 = vrot.slane %v1345_v2, 4  ;;  %v1625_v28 = vsel %vm784_vm3, %v1591_v40, -inf  ;;  %v1161_v10 = vrot.slane %v1160_v21, 1 }
 0x261   : > { %v1167_v62 = vmax.f32 %v1165_v50, %v1166_v55  ;;  %v1607_v27 = vrot.slane %v1606_v0, 2  ;;  %v1613_v23 = vmax.f32 %v1611_v46, %v1612_v15  ;;  %v1340_v14 = vmax.f32 %v1338_v33, %v1339_v4  ;;  %v11925_v33 = vpop.trf.xlu1 }
 0x262   : > { %v1620_v6 = vmax.f32 %v1618_v3, %v1619_v11  ;;  %v1347_v43 = vmax.f32 %v1345_v2, %v1346_v35  ;;  %v1626_v17 = vrot.slane %v1625_v28, 4  ;;  %v3230_v34 = vrot.slane %v11855_v20, 5 }
 0x263   : > { %v11919_v59 = vmax.f32 %v1153_v51, %v1154_v26  ;;  %v1608_v36 = vmax.f32 %v1606_v0, %v1607_v27  ;;  %v1334_v19 = vrot.slane %v1333_v54, 2  ;;  %v1614_v41 = vrot.slane %v1613_v23, 2 }
 0x264   : > { %v1341_v24 = vrot.slane %v1340_v14, 2  ;;  %v1621_v7 = vrot.slane %v1620_v6, 2  ;;  %v1348_v40 = vrot.slane %v1347_v43, 2  ;;  %v11921_v57 = vmax.f32 %v1160_v21, %v1161_v10  ;;  %v11927_v10 = vpop.trf.xlu0 }
 0x265   : > { %v1168_v50 = vrot.slane %v1167_v62, 1  ;;  %v1627_v55 = vmax.f32 %v1625_v28, %v1626_v17  ;;  %v1352_v46 = vsel %vm784_vm3, %v11871_v45, -inf  ;;  %v1615_v3 = vmax.f32 %v1613_v23, %v1614_v41 }
 0x266   : > { %v1342_v2 = vmax.f32 %v1340_v14, %v1341_v24  ;;  %v1622_v15 = vmax.f32 %v1620_v6, %v1621_v7  ;;  %v1349_v51 = vmax.f32 %v1347_v43, %v1348_v40  ;;  %v1609_v26 = vrot.slane %v1608_v36, 1  ;;  %v11943_v40 = vpop.trf.xlu1 }
 0x267   : > { %v1335_v27 = vmax.f32 %v1333_v54, %v1334_v19  ;;  %v1628_v0 = vrot.slane %v1627_v55, 2  ;;  %v1353_v4 = vrot.slane %v1352_v46, 4  ;;  %v1616_v11 = vrot.slane %v1615_v3, 1 }
 0x268   : > { %v1343_v35 = vrot.slane %v1342_v2, 1  ;;  %v1623_v58 = vrot.slane %v1622_v15, 1  ;;  %v1350_v21 = vrot.slane %v1349_v51, 1  ;;  %v893_v17 = vrot.slane %v11902_v52, 2 }
 0x269   : > { %v11930_v45 = vmax.f32 %v1167_v62, %v1168_v50  ;;  %v1629_v28 = vmax.f32 %v1627_v55, %v1628_v0  ;;  %v1354_v41 = vmax.f32 %v1352_v46, %v1353_v4  ;;  %v887_v6 = vmax.f32 %v11879_v61, %v886_v44 }
 0x26a   : > { %v11933_v7 = vmax.f32 %v1615_v3, %v1616_v11  ;;  %v11935_v14 = vmax.f32 %v1342_v2, %v1343_v35  ;;  %v11937_v24 = vmax.f32 %v1622_v15, %v1623_v58  ;;  %v3232_v54 = vrot.slane %v11919_v59, 4 }
 0x26b   : > { %16686 = vst [vmem:[#allocation23_spill] sm:$0xff] %v11930_v45  ;;  %v3234_v23 = vrot.slane %v11921_v57, 3  ;;  %v11941_v43 = vmax.f32 %v1608_v36, %v1609_v26  ;;  %v1336_v19 = vrot.slane %v1335_v27, 1  ;;  %v11946_v50 = vmax.f32 %v1349_v51, %v1350_v21  ;;  %v11958_v26 = vpop.trf.xlu0 }
 0x26c   : > { %v3515_v62 = vrot.slane %v11933_v7, 7  ;;  %v1630_v61 = vrot.slane %v1629_v28, 1  ;;  %v1355_v44 = vrot.slane %v1354_v41, 2  ;;  %v3231_v55 = vsel %vm2935_vm6, %v3230_v34, %v11899_v12 }
 0x26d   : > { %16687 = vst [vmem:[#allocation24_spill] sm:$0xff] %v11941_v43  ;;  %v3236_v58 = vrot.slane %v11930_v45, 2  ;;  %v3488_v46 = vrot.slane %v11935_v14, 7  ;;  %v3517_v3 = vrot.slane %v11937_v24, 6  ;;  %v888_v36 = vrot.slane %v887_v6, 1 }
 0x26e   : > { %v894_v2 = vmax.f32 %v11902_v52, %v893_v17  ;;  %v3516_v15 = vsel %vm2950_vm5, %v3515_v62, %v11941_v43  ;;  %v1632_v51 = vsel %vm784_vm3, %v11883_v25, -inf  ;;  %v3233_v0 = vsel %vm2938_vm7, %v3232_v54, %v3231_v55  ;;  %v1596_v55 = vpop.trf.xlu1 }
 0x26f   : > { %v16385_v12 = vrot.slane %v11930_v45, 1  ;;  %v11962_v34 = vmax.f32 %v1335_v27, %v1336_v19  ;;  %v3518_v4 = vsel %vm2932_vm4, %v3517_v3, %v3516_v15  ;;  %v3490_v11 = vrot.slane %v11946_v50, 6 }
 0x270   : > { %v11966_v35 = vmax.f32 %v1629_v28, %v1630_v61  ;;  %v1356_v52 = vmax.f32 %v1354_v41, %v1355_v44  ;;  %v3235_v21 = vsel %vm2941_vm8, %v3234_v23, %v3233_v0  ;;  %v1633_v62 = vrot.slane %v1632_v51, 4 }
 0x271   : > { %16688 = vst [vmem:[#allocation25_spill] sm:$0xff] %v11962_v34  ;;  %v3489_v25 = vsel %vm2950_vm5, %v3488_v46, %v11962_v34  ;;  %v3237_v54 = vsel %vm2944_vm9, %v3236_v58, %v3235_v21  ;;  %v895_v19 = vrot.slane %v894_v2, 1  ;;  %v1359_v28 = vsel %vm784_vm3, %v11904_v1, -inf  ;;  %v11992_v1 = vpop.trf.xlu0 }
 0x272   : > { %v3491_v3 = vsel %vm2932_vm4, %v3490_v11, %v3489_v25  ;;  %v3519_v41 = vrot.slane %v11966_v35, 5  ;;  %v1357_v23 = vrot.slane %v1356_v52, 1  ;;  %v11981_v61 = vsel %vm3425_vm11, %v3237_v54, %v16385_v12 }
 0x273   : > { %16689 = vst [vmem:[#allocation26_spill] sm:$0xff] %v11981_v61  ;;  %v1639_v44 = vsel %vm784_vm3, %v11913_v48, -inf  ;;  %v11988_v0 = vmax.f32 %v887_v6, %v888_v36  ;;  %9856 = vmatmul.mubr.msk.f32.vlgmr.msra.gmra.mrb[32].mxu1 %vm784_vm3, %v11981_v61  ;;  %v1634_v48 = vmax.f32 %v1632_v51, %v1633_v62  ;;  %v1360_v15 = vrot.slane %v1359_v28, 4 }
 0x274   : > { %v11996_v21 = vsel %vm2935_vm6, %v3519_v41, %v3518_v4  ;;  %v11998_v25 = vmax.f32 %v1356_v52, %v1357_v23  ;;  %v1640_v6 = vrot.slane %v1639_v44, 4  ;;  %v12003_v17 = vmax.f32 %v894_v2, %v895_v19  ;;  %v12008_v4 = vpop.trf.xlu1 }
 0x275   : > { %16690 = vst [vmem:[#allocation27_spill] sm:$0xff] %v11988_v0  ;;  %16691 = vst [vmem:[#allocation28_spill] sm:$0xff] %v11996_v21  ;;  %v1366_v11 = vsel %vm784_vm3, %v11916_v13, -inf  ;;  %v1635_v58 = vrot.slane %v1634_v48, 2  ;;  %v1361_v36 = vmax.f32 %v1359_v28, %v1360_v15  ;;  %v1324_v52 = vpop.trf.xlu0  ;;  %v3019_v23 = vrot.slane %v11933_v7, 6 }
 0x276   : > { %16692 = vst [vmem:[#allocation29_spill] sm:$0xff] %v12003_v17  ;;  %v3492_v12 = vrot.slane %v11998_v25, 5  ;;  %v1641_v54 = vmax.f32 %v1639_v44, %v1640_v6  ;;  %v1367_v27 = vrot.slane %v1366_v11, 4  ;;  %v2992_v2 = vrot.slane %v11935_v14, 6 }
 0x277   : > { %v1646_v28 = vsel %vm784_vm3, %v11925_v33, -inf  ;;  %v3018_v44 = vrot.slane %v11941_v43, 7  ;;  %v2991_v15 = vrot.slane %v11962_v34, 7  ;;  %v2994_v6 = vrot.slane %v11946_v50, 5 }
 0x278   : > { %v12017_v19 = vsel %vm2935_vm6, %v3492_v12, %v3491_v3  ;;  %v3021_v12 = vrot.slane %v11937_v24, 5  ;;  %v3264_v3 = vrot.slane %v11937_v24, 7  ;;  %v1636_v62 = vmax.f32 %v1634_v48, %v1635_v58  ;;  %v1598_v51 = vpop.trf.xlu1 }
 0x279   : > { %16693 = vst [vmem:[#allocation30_spill] sm:$0xff] %v12017_v19  ;;  %v1362_v41 = vrot.slane %v1361_v36, 2  ;;  %v1642_v13 = vrot.slane %v1641_v54, 2  ;;  %v1368_v46 = vmax.f32 %v1366_v11, %v1367_v27  ;;  %v1373_v61 = vsel %vm784_vm3, %v11927_v10, -inf  ;;  %v1325_v11 = vpop.trf.xlu0 }
 0x27a   : > { %v3020_v29 = vsel %vm2932_vm4, %v3019_v23, %v3018_v44  ;;  %v3238_v24 = vrot.slane %v11946_v50, 7  ;;  %v1647_v37 = vrot.slane %v1646_v28, 4  ;;  %v1660_v33 = vsel %vm784_vm3, %v1596_v55, -inf }
 0x27b   : > { %v2993_v9 = vsel %vm2932_vm4, %v2992_v2, %v2991_v15  ;;  %v3022_v19 = vsel %vm2935_vm6, %v3021_v12, %v3020_v29  ;;  %v12041_v58 = vsel %vm2950_vm5, %v3264_v3, %v11933_v7  ;;  %v3023_v27 = vrot.slane %v11966_v35, 4 }
 0x27c   : > { %v2996_v10 = vrot.slane %v11998_v25, 4  ;;  %v1637_v48 = vrot.slane %v1636_v62, 1  ;;  %v1374_v23 = vrot.slane %v1373_v61, 4  ;;  %v1380_v50 = vsel %vm784_vm3, %v11958_v26, -inf  ;;  %v1599_v21 = vpop.trf.xlu1 }
 0x27d   : > { %v12047_v44 = vmax.f32 %v1361_v36, %v1362_v41  ;;  %v12049_v55 = vmax.f32 %v1641_v54, %v1642_v13  ;;  %v1369_v2 = vrot.slane %v1368_v46, 2  ;;  %v1661_v29 = vrot.slane %v1660_v33, 4 }
 0x27e   : > { %v2995_v12 = vsel %vm2935_vm6, %v2994_v6, %v2993_v9  ;;  %v12054_v7 = vsel %vm2950_vm5, %v3238_v24, %v11935_v14  ;;  %v12057_v15 = vmax.f32 %v1646_v28, %v1647_v37  ;;  %v12060_v17 = vsel %vm2938_vm7, %v3023_v27, %v3022_v19  ;;  %v1326_v24 = vpop.trf.xlu0 }
 0x27f   : > { %16694 = vst [vmem:[#allocation31_spill] sm:$0xff] %v12060_v17  ;;  %v1381_v54 = vrot.slane %v1380_v50, 4  ;;  %v1662_v36 = vmax.f32 %v1660_v33, %v1661_v29  ;;  %v12064_v41 = vsel %vm2938_vm7, %v2996_v10, %v2995_v12  ;;  %v12066_v9 = vmax.f32 %v1636_v62, %v1637_v48 }
 0x280   : > { %16695 = vst [vmem:[#allocation32_spill] sm:$0xff] %v12064_v41  ;;  %v1375_v13 = vmax.f32 %v1373_v61, %v1374_v23  ;;  %v1387_v14 = vsel %vm784_vm3, %v11992_v1, -inf  ;;  %v12072_v6 = vmax.f32 %v1368_v46, %v1369_v2  ;;  %v1653_v19 = vsel %vm784_vm3, %v11943_v40, -inf  ;;  %v12082_v40 = vpop.trf.xlu1 }
 0x281   : > { %v1663_v27 = vrot.slane %v1662_v36, 2  ;;  %v1388_v10 = vrot.slane %v1387_v14, 4  ;;  %v1667_v61 = vsel %vm784_vm3, %v12008_v4, -inf  ;;  %v1382_v62 = vmax.f32 %v1380_v50, %v1381_v54 }
 0x282   : > { %v1668_v48 = vrot.slane %v1667_v61, 4  ;;  %v1394_v1 = vsel %vm784_vm3, %v1324_v52, -inf  ;;  %v1674_v23 = vsel %vm784_vm3, %v1598_v51, -inf  ;;  %v1376_v2 = vrot.slane %v1375_v13, 2  ;;  %v12087_v53 = vpop.trf.xlu0 }
 0x283   : > { %v1389_v29 = vmax.f32 %v1387_v14, %v1388_v10  ;;  %v1395_v12 = vrot.slane %v1394_v1, 4  ;;  %v1675_v33 = vrot.slane %v1674_v23, 4  ;;  %v1401_v28 = vsel %vm784_vm3, %v1325_v11, -inf }
 0x284   : > { %v1669_v26 = vmax.f32 %v1667_v61, %v1668_v48  ;;  %v1664_v50 = vmax.f32 %v1662_v36, %v1663_v27  ;;  %v1383_v37 = vrot.slane %v1382_v62, 2  ;;  %v1402_v46 = vrot.slane %v1401_v28, 4 }
 0x285   : > { %v1390_v54 = vrot.slane %v1389_v29, 2  ;;  %v1396_v52 = vmax.f32 %v1394_v1, %v1395_v12  ;;  %v1676_v22 = vmax.f32 %v1674_v23, %v1675_v33  ;;  %v1371_v14 = vrot.slane %v12072_v6, 1  ;;  %v12091_v12 = vpop.trf.xlu1 }
 0x286   : > { %v1670_v51 = vrot.slane %v1669_v26, 2  ;;  %v1377_v10 = vmax.f32 %v1375_v13, %v1376_v2  ;;  %v1403_v18 = vmax.f32 %v1401_v28, %v1402_v46  ;;  %v1681_v11 = vsel %vm784_vm3, %v1599_v21, -inf  ;;  %v1328_v46 = vpop.trf.xlu0 }
 0x287   : > { %v1391_v45 = vmax.f32 %v1389_v29, %v1390_v54  ;;  %v1397_v3 = vrot.slane %v1396_v52, 2  ;;  %v1677_v48 = vrot.slane %v1676_v22, 2  ;;  %v1654_v4 = vrot.slane %v1653_v19, 4 }
 0x288   : > { %v1671_v61 = vmax.f32 %v1669_v26, %v1670_v51  ;;  %v1665_v36 = vrot.slane %v1664_v50, 1  ;;  %v1682_v1 = vrot.slane %v1681_v11, 4  ;;  %v1384_v33 = vmax.f32 %v1382_v62, %v1383_v37 }
 0x289   : > { %v1398_v27 = vmax.f32 %v1396_v52, %v1397_v3  ;;  %v1678_v47 = vmax.f32 %v1676_v22, %v1677_v48  ;;  %v1404_v5 = vrot.slane %v1403_v18, 2  ;;  %v1392_v43 = vrot.slane %v1391_v45, 1 }
 0x28a   : > { %v1672_v23 = vrot.slane %v1671_v61, 1  ;;  %v1683_v13 = vmax.f32 %v1681_v11, %v1682_v1  ;;  %v1408_v2 = vsel %vm784_vm3, %v1326_v24, -inf  ;;  %v1378_v26 = vrot.slane %v1377_v10, 1 }
 0x28b   : > { %v1399_v17 = vrot.slane %v1398_v27, 1  ;;  %v1679_v28 = vrot.slane %v1678_v47, 1  ;;  %v1405_v21 = vmax.f32 %v1403_v18, %v1404_v5  ;;  %v1655_v54 = vmax.f32 %v1653_v19, %v1654_v4  ;;  %v12106_v5 = vpop.trf.xlu1 }
 0x28c   : > { %v12094_v29 = vmax.f32 %v1671_v61, %v1672_v23  ;;  %v12096_v3 = vmax.f32 %v1664_v50, %v1665_v36  ;;  %v1684_v37 = vrot.slane %v1683_v13, 2  ;;  %v1409_v48 = vrot.slane %v1408_v2, 4 }
 0x28d   : > { %v12098_v52 = vmax.f32 %v1398_v27, %v1399_v17  ;;  %v12101_v62 = vmax.f32 %v1678_v47, %v1679_v28  ;;  %v1406_v51 = vrot.slane %v1405_v21, 1  ;;  %v1385_v11 = vrot.slane %v1384_v33, 1 }
 0x28e   : > { %v3529_v22 = vrot.slane %v12094_v29, 7  ;;  %v12103_v24 = vmax.f32 %v1391_v45, %v1392_v43  ;;  %v1685_v1 = vmax.f32 %v1683_v13, %v1684_v37  ;;  %v16696_v18 = vrot.slane %v12047_v44, 1 }
 0x28f   : > { %v3502_v61 = vrot.slane %v12098_v52, 7  ;;  %v16698_v19 = vrot.slane %v12049_v55, 1  ;;  %v12119_v4 = vmax.f32 %v12072_v6, %v1371_v14  ;;  %v1656_v43 = vrot.slane %v1655_v54, 2  ;;  %v12132_v6 = vpop.trf.xlu0 }
 0x290   : > { %v12111_v17 = vmax.f32 %v12047_v44, %v16696_v18  ;;  %v3530_v45 = vsel %vm2950_vm5, %v3529_v22, %v12096_v3  ;;  %v3531_v36 = vrot.slane %v12101_v62, 6  ;;  %v12126_v27 = vmax.f32 %v1405_v21, %v1406_v51 }
 0x291   : > { %v12116_v47 = vmax.f32 %v12049_v55, %v16698_v19  ;;  %16700 = vst [vmem:[#allocation35_spill] sm:$0xff] %v12119_v4  ;;  %v3503_v50 = vsel %vm2950_vm5, %v3502_v61, %v12103_v24  ;;  %v12128_v44 = vmax.f32 %v1377_v10, %v1378_v26  ;;  %v1686_v23 = vrot.slane %v1685_v1, 1 }
 0x292   : > { %16697 = vst [vmem:[#allocation33_spill] sm:$0xff] %v12111_v17  ;;  %v1410_v13 = vmax.f32 %v1408_v2, %v1409_v48  ;;  %v1688_v55 = vsel %vm784_vm3, %v12082_v40, -inf  ;;  %v16702_v14 = vrot.slane %v12057_v15, 2  ;;  %v12137_v37 = vmax.f32 %v1384_v33, %v1385_v11 }
 0x293   : > { %16699 = vst [vmem:[#allocation34_spill] sm:$0xff] %v12116_v47  ;;  %16701 = vst [vmem:[#allocation36_spill] sm:$0xff] %v12128_v44  ;;  %v3532_v22 = vsel %vm2932_vm4, %v3531_v36, %v3530_v45  ;;  %v3504_v21 = vrot.slane %v12126_v27, 6  ;;  %v3242_v26 = vrot.slane %v12111_v17, 5  ;;  %v12143_v2 = vmax.f32 %v1685_v1, %v1686_v23 }
 0x294   : > { %v1650_v28 = vmax.f32 %v12057_v15, %v16702_v14  ;;  %16703 = vst [vmem:[#allocation37_spill] sm:$0xff] %v12137_v37  ;;  %v1411_v51 = vrot.slane %v1410_v13, 2  ;;  %v3244_v40 = vrot.slane %v12119_v4, 4  ;;  %v1657_v48 = vmax.f32 %v1655_v54, %v1656_v43  ;;  %v12147_v15 = vpop.trf.xlu1 }
 0x295   : > { %v3505_v61 = vsel %vm2932_vm4, %v3504_v21, %v3503_v50  ;;  %v1689_v18 = vrot.slane %v1688_v55, 4  ;;  %v3246_v33 = vrot.slane %v12128_v44, 3  ;;  %v3533_v11 = vrot.slane %v12143_v2, 5 }
 0x296   : > { %v1412_v19 = vmax.f32 %v1410_v13, %v1411_v51  ;;  %v1415_v45 = vsel %vm784_vm3, %v12087_v53, -inf  ;;  %v1651_v36 = vrot.slane %v1650_v28, 1  ;;  %v16704_v23 = vrot.slane %v11998_v25, 6  ;;  %v1330_v51 = vpop.trf.xlu0 }
 0x297   : > { %v3248_v43 = vrot.slane %v12137_v37, 2  ;;  %v12160_v50 = vsel %vm2935_vm6, %v3533_v11, %v3532_v22  ;;  %v3250_v13 = vrot.slane %v12103_v24, 1  ;;  %v1658_v53 = vrot.slane %v1657_v48, 1 }
 0x298   : > { %v3241_v54 = vsel %vm2932_vm4, %v16704_v23, %v12054_v7  ;;  %16705 = vst [vmem:[#allocation38_spill] sm:$0xff] %v12160_v50  ;;  %v1413_v14 = vrot.slane %v1412_v19, 1  ;;  %v1690_v10 = vmax.f32 %v1688_v55, %v1689_v18  ;;  %v1416_v1 = vrot.slane %v1415_v45, 4  ;;  %v2134_v55 = vpop.trf.xlu1 }
 0x299   : > { %v3243_v21 = vsel %vm2935_vm6, %v3242_v26, %v3241_v54  ;;  %v1422_v22 = vsel %vm784_vm3, %v1328_v46, -inf  ;;  %v12170_v11 = vmax.f32 %v1650_v28, %v1651_v36  ;;  %v1695_v23 = vsel %vm784_vm3, %v12091_v12, -inf }
 0x29a   : > { %v3245_v63 = vsel %vm2938_vm7, %v3244_v40, %v3243_v21  ;;  %v12166_v0 = vmax.f32 %v1412_v19, %v1413_v14  ;;  %v1423_v54 = vrot.slane %v1422_v22, 4  ;;  %v3031_v46 = vrot.slane %v12096_v3, 7 }
 0x29b   : > { %v3247_v7 = vsel %vm2941_vm8, %v3246_v33, %v3245_v63  ;;  %16706 = vst [vmem:[#allocation39_spill] sm:$0xff] %v12170_v11  ;;  %v12181_v63 = vmax.f32 %v1657_v48, %v1658_v53  ;;  %v1691_v28 = vrot.slane %v1690_v10, 2  ;;  %v1417_v33 = vmax.f32 %v1415_v45, %v1416_v1 }
 0x29c   : > { %v3249_v26 = vsel %vm2944_vm9, %v3248_v43, %v3247_v7  ;;  %v3506_v19 = vrot.slane %v12166_v0, 5  ;;  %v3004_v36 = vrot.slane %v12103_v24, 7  ;;  %v1696_v21 = vrot.slane %v1695_v23, 4  ;;  %v1861_v7 = vpop.trf.xlu0  ;;  %v2135_v12 = vpop.trf.xlu1 }
 0x29d   : > { %v12179_v14 = vsel %vm2947_vm10, %v3250_v13, %v3249_v26  ;;  %16708 = vst [vmem:[#allocation41_spill] sm:$0xff] %v12181_v63  ;;  %v3033_v53 = vrot.slane %v12094_v29, 6  ;;  %v1424_v26 = vmax.f32 %v1422_v22, %v1423_v54  ;;  %v1692_v25 = vmax.f32 %v1690_v10, %v1691_v28 }
 0x29e   : > { %16707 = vst [vmem:[#allocation40_spill] sm:$0xff] %v12179_v14  ;;  %9858 = vmatprep.mubr.msk.f32.mxu1 %vm784_vm3, %v12179_v14  ;;  %v12189_v43 = vsel %vm2935_vm6, %v3506_v19, %v3505_v61  ;;  %v3032_v19 = vsel %vm2950_vm5, %v3031_v46, %v12181_v63  ;;  %v1418_v13 = vrot.slane %v1417_v33, 2  ;;  %v3005_v48 = vsel %vm2950_vm5, %v3004_v36, %v12137_v37 }
 0x29f   : > { %16709 = vst [vmem:[#allocation42_spill] sm:$0xff] %v12189_v43  ;;  %v3006_v22 = vrot.slane %v12098_v52, 6  ;;  %v1697_v54 = vmax.f32 %v1695_v23, %v1696_v21  ;;  %v1702_v1 = vsel %vm784_vm3, %v12106_v5, -inf  ;;  %v3034_v40 = vsel %vm2932_vm4, %v3033_v53, %v3032_v19 }
 0x2a0   : > { %v3035_v24 = vrot.slane %v12101_v62, 5  ;;  %v1425_v61 = vrot.slane %v1424_v26, 2  ;;  %v1429_v46 = vsel %vm784_vm3, %v12132_v6, -inf  ;;  %v3278_v10 = vrot.slane %v12101_v62, 7  ;;  %v1862_v21 = vpop.trf.xlu0 }
 0x2a1   : > { %v3008_v28 = vrot.slane %v12126_v27, 5  ;;  %v1709_v36 = vsel %vm784_vm3, %v12147_v15, -inf  ;;  %v1436_v23 = vsel %vm784_vm3, %v1330_v51, -inf  ;;  %v3252_v5 = vrot.slane %v12126_v27, 7  ;;  %v2136_v15 = vpop.trf.xlu1 }
 0x2a2   : > { %v1693_v45 = vrot.slane %v1692_v25, 1  ;;  %v1419_v53 = vmax.f32 %v1417_v33, %v1418_v13  ;;  %v1703_v19 = vrot.slane %v1702_v1, 4  ;;  %v1698_v18 = vrot.slane %v1697_v54, 2 }
 0x2a3   : > { %v1430_v14 = vrot.slane %v1429_v46, 4  ;;  %v2150_v43 = vsel %vm784_vm3, %v2134_v55, -inf  ;;  %v1877_v6 = vsel %vm784_vm3, %v1861_v7, -inf  ;;  %v3007_v62 = vsel %vm2932_vm4, %v3006_v22, %v3005_v48 }
 0x2a4   : > { %v1426_v50 = vmax.f32 %v1424_v26, %v1425_v61  ;;  %v1710_v8 = vrot.slane %v1709_v36, 4  ;;  %v1437_v32 = vrot.slane %v1436_v23, 4  ;;  %v12221_v49 = vsel %vm2935_vm6, %v3035_v24, %v3034_v40  ;;  %v1863_v24 = vpop.trf.xlu0 }
 0x2a5   : > { %16710 = vst [vmem:[#allocation43_spill] sm:$0xff] %v12221_v49  ;;  %v12225_v27 = vsel %vm2950_vm5, %v3278_v10, %v12094_v29  ;;  %v12228_v33 = vsel %vm2935_vm6, %v3008_v28, %v3007_v62  ;;  %v12232_v55 = vsel %vm2950_vm5, %v3252_v5, %v12098_v52  ;;  %v1704_v7 = vmax.f32 %v1702_v1, %v1703_v19 }
 0x2a6   : > { %16711 = vst [vmem:[#allocation44_spill] sm:$0xff] %v12228_v33  ;;  %v2151_v13 = vrot.slane %v2150_v43, 4  ;;  %v1878_v48 = vrot.slane %v1877_v6, 4  ;;  %v12234_v26 = vmax.f32 %v1692_v25, %v1693_v45  ;;  %v1420_v61 = vrot.slane %v1419_v53, 1 }
 0x2a7   : > { %v12236_v22 = vmax.f32 %v1697_v54, %v1698_v18  ;;  %v1431_v40 = vmax.f32 %v1429_v46, %v1430_v14  ;;  %v1427_v10 = vrot.slane %v1426_v50, 1  ;;  %v12239_v51 = vmax.f32 %v1709_v36, %v1710_v8  ;;  %v2137_v54 = vpop.trf.xlu1 }
 0x2a8   : > { %v1438_v28 = vmax.f32 %v1436_v23, %v1437_v32  ;;  %v2157_v25 = vsel %vm784_vm3, %v2135_v12, -inf  ;;  %v1705_v45 = vrot.slane %v1704_v7, 2  ;;  %v2152_v5 = vmax.f32 %v2150_v43, %v2151_v13  ;;  %v1864_v13 = vpop.trf.xlu0 }
 0x2a9   : > { %v1879_v18 = vmax.f32 %v1877_v6, %v1878_v48  ;;  %v1884_v14 = vsel %vm784_vm3, %v1862_v21, -inf  ;;  %v12247_v19 = vmax.f32 %v1419_v53, %v1420_v61  ;;  %v1700_v32 = vrot.slane %v12236_v22, 1 }
 0x2aa   : > { %v1432_v8 = vrot.slane %v1431_v40, 2  ;;  %v12250_v36 = vmax.f32 %v1426_v50, %v1427_v10  ;;  %v1712_v23 = vrot.slane %v12239_v51, 2  ;;  %v1439_v29 = vrot.slane %v1438_v28, 2 }
 0x2ab   : > { %16712 = vst [vmem:[#allocation45_spill] sm:$0xff] %v12247_v19  ;;  %v2158_v52 = vrot.slane %v2157_v25, 4  ;;  %v1885_v12 = vrot.slane %v1884_v14, 4  ;;  %v2164_v43 = vsel %vm784_vm3, %v2136_v15, -inf  ;;  %v1891_v6 = vsel %vm784_vm3, %v1863_v24, -inf }
 0x2ac   : > { %16713 = vst [vmem:[#allocation46_spill] sm:$0xff] %v12250_v36  ;;  %v2171_v21 = vsel %vm784_vm3, %v2137_v54, -inf  ;;  %v1706_v48 = vmax.f32 %v1704_v7, %v1705_v45  ;;  %v2153_v53 = vrot.slane %v2152_v5, 2  ;;  %v1880_v61 = vrot.slane %v1879_v18, 2 }
 0x2ad   : > { %v2159_v46 = vmax.f32 %v2157_v25, %v2158_v52  ;;  %v1886_v62 = vmax.f32 %v1884_v14, %v1885_v12  ;;  %v2165_v1 = vrot.slane %v2164_v43, 4  ;;  %v1892_v50 = vrot.slane %v1891_v6, 4 }
 0x2ae   : > { %v2172_v10 = vrot.slane %v2171_v21, 4  ;;  %v1433_v37 = vmax.f32 %v1431_v40, %v1432_v8  ;;  %v1440_v49 = vmax.f32 %v1438_v28, %v1439_v29  ;;  %v1898_v30 = vsel %vm784_vm3, %v1864_v13, -inf }
 0x2af   : > { %v2160_v60 = vrot.slane %v2159_v46, 2  ;;  %v1887_v42 = vrot.slane %v1886_v62, 2  ;;  %v2166_v15 = vmax.f32 %v2164_v43, %v2165_v1  ;;  %v1893_v34 = vmax.f32 %v1891_v6, %v1892_v50 }
 0x2b0   : > { %v2173_v24 = vmax.f32 %v2171_v21, %v2172_v10  ;;  %v2154_v44 = vmax.f32 %v2152_v5, %v2153_v53  ;;  %v1881_v54 = vmax.f32 %v1879_v18, %v1880_v61  ;;  %v1899_v7 = vrot.slane %v1898_v30, 4  ;;  %v2138_v53 = vpop.trf.xlu1 }
 0x2b1   : > { %v2161_v4 = vmax.f32 %v2159_v46, %v2160_v60  ;;  %v1888_v45 = vmax.f32 %v1886_v62, %v1887_v42  ;;  %v2167_v33 = vrot.slane %v2166_v15, 2  ;;  %v1894_v52 = vrot.slane %v1893_v34, 2 }
 0x2b2   : > { %v2174_v25 = vrot.slane %v2173_v24, 2  ;;  %v1434_v14 = vrot.slane %v1433_v37, 1  ;;  %v1441_v12 = vrot.slane %v1440_v49, 1  ;;  %v1900_v40 = vmax.f32 %v1898_v30, %v1899_v7 }
 0x2b3   : > { %v2162_v17 = vrot.slane %v2161_v4, 1  ;;  %v1889_v29 = vrot.slane %v1888_v45, 1  ;;  %v2168_v28 = vmax.f32 %v2166_v15, %v2167_v33  ;;  %v1895_v8 = vmax.f32 %v1893_v34, %v1894_v52 }
 0x2b4   : > { %v2175_v13 = vmax.f32 %v2173_v24, %v2174_v25  ;;  %v2155_v41 = vrot.slane %v2154_v44, 1  ;;  %v1882_v1 = vrot.slane %v1881_v54, 1  ;;  %v1901_v5 = vrot.slane %v1900_v40, 2 }
 0x2b5   : > { %v12257_v43 = vmax.f32 %v2161_v4, %v2162_v17  ;;  %v12259_v18 = vmax.f32 %v1888_v45, %v1889_v29  ;;  %v2169_v60 = vrot.slane %v2168_v28, 1  ;;  %v1896_v42 = vrot.slane %v1895_v8, 1  ;;  %v2139_v29 = vpop.trf.xlu1 }
 0x2b6   : > { %v2176_v62 = vrot.slane %v2175_v13, 1  ;;  %v1707_v46 = vrot.slane %v1706_v48, 1  ;;  %v12261_v6 = vmax.f32 %v1433_v37, %v1434_v14  ;;  %v1713_v21 = vmax.f32 %v12239_v51, %v1712_v23 }
 0x2b7   : > { %v1902_v30 = vmax.f32 %v1900_v40, %v1901_v5  ;;  %v3569_v34 = vrot.slane %v12257_v43, 7  ;;  %v3542_v33 = vrot.slane %v12259_v18, 7  ;;  %v12266_v61 = vmax.f32 %v2168_v28, %v2169_v60 }
 0x2b8   : > { %16714 = vst [vmem:[#allocation47_spill] sm:$0xff] %v12261_v6  ;;  %v12268_v17 = vmax.f32 %v1895_v8, %v1896_v42  ;;  %v3256_v4 = vrot.slane %v12247_v19, 5  ;;  %v12272_v50 = vmax.f32 %v12236_v22, %v1700_v32  ;;  %v3258_v37 = vrot.slane %v12250_v36, 4  ;;  %v1865_v22 = vpop.trf.xlu0 }
 0x2b9   : > { %v12275_v10 = vmax.f32 %v1440_v49, %v1441_v12  ;;  %v12277_v51 = vmax.f32 %v2154_v44, %v2155_v41  ;;  %v12279_v23 = vmax.f32 %v1881_v54, %v1882_v1  ;;  %v12281_v15 = vmax.f32 %v2175_v13, %v2176_v62 }
 0x2ba   : > { %16715 = vst [vmem:[#allocation48_spill] sm:$0xff] %v12272_v50  ;;  %v1903_v24 = vrot.slane %v1902_v30, 1  ;;  %v3260_v7 = vrot.slane %v12261_v6, 3  ;;  %v1714_v45 = vrot.slane %v1713_v21, 1  ;;  %v3571_v52 = vrot.slane %v12266_v61, 6 }
 0x2bb   : > { %16716 = vst [vmem:[#allocation49_spill] sm:$0xff] %v12275_v10  ;;  %v3544_v25 = vrot.slane %v12268_v17, 6  ;;  %v12286_v32 = vmax.f32 %v1706_v48, %v1707_v46  ;;  %v3570_v49 = vsel %vm2950_vm5, %v3569_v34, %v12277_v51  ;;  %v3543_v41 = vsel %vm2950_vm5, %v3542_v33, %v12279_v23 }
 0x2bc   : > { %v16718_v44 = vrot.slane %v12166_v0, 6  ;;  %v3262_v14 = vrot.slane %v12275_v10, 2  ;;  %v3572_v12 = vsel %vm2932_vm4, %v3571_v52, %v3570_v49  ;;  %v3573_v28 = vrot.slane %v12281_v15, 5 }
 0x2bd   : > { %16717 = vst [vmem:[#allocation50_spill] sm:$0xff] %v12286_v32  ;;  %v3545_v40 = vsel %vm2932_vm4, %v3544_v25, %v3543_v41  ;;  %v12301_v8 = vmax.f32 %v1902_v30, %v1903_v24  ;;  %v16417_v1 = vrot.slane %v12275_v10, 1  ;;  %v12305_v5 = vmax.f32 %v1713_v21, %v1714_v45 }
 0x2be   : > { %v3255_v54 = vsel %vm2932_vm4, %v16718_v44, %v12232_v55  ;;  %v16720_v60 = vrot.slane %v11966_v35, 6  ;;  %v3274_v62 = vrot.slane %v12181_v63, 2  ;;  %v12314_v46 = vsel %vm2935_vm6, %v3573_v28, %v3572_v12 }
 0x2bf   : > { %v3257_v48 = vsel %vm2935_vm6, %v3256_v4, %v3255_v54  ;;  %16719 = vst [vmem:[#allocation51_spill] sm:$0xff] %v12305_v5  ;;  %v3546_v30 = vrot.slane %v12301_v8, 5  ;;  %v16721_v34 = vrot.slane %v12066_v9, 5  ;;  %v3276_v21 = vrot.slane %v12096_v3, 1 }
 0x2c0   : > { %v3259_v13 = vsel %vm2938_vm7, %v3258_v37, %v3257_v48  ;;  %v3267_v42 = vsel %vm2932_vm4, %v16720_v60, %v12041_v58  ;;  %v3284_v4 = vrot.slane %v12272_v50, 4  ;;  %v16722_v35 = vrot.slane %v12116_v47, 4 }
 0x2c1   : > { %v3261_v55 = vsel %vm2941_vm8, %v3260_v7, %v3259_v13  ;;  %v3269_v33 = vsel %vm2935_vm6, %v16721_v34, %v3267_v42  ;;  %v2178_v24 = vsel %vm784_vm3, %v2138_v53, -inf  ;;  %v1866_v7 = vpop.trf.xlu0  ;;  %v12328_v45 = vsel %vm2935_vm6, %v3546_v30, %v3545_v40 }
 0x2c2   : > { %v3263_v37 = vsel %vm2944_vm9, %v3262_v14, %v3261_v55  ;;  %v3271_v58 = vsel %vm2938_vm7, %v16722_v35, %v3269_v33  ;;  %16723 = vst [vmem:[#allocation52_spill] sm:$0xff] %v12328_v45  ;;  %v16725_v3 = vrot.slane %v12170_v11, 3  ;;  %v1905_v49 = vsel %vm784_vm3, %v1865_v22, -inf  ;;  %v2140_v14 = vpop.trf.xlu1 }
 0x2c3   : > { %v12333_v52 = vsel %vm3425_vm11, %v3263_v37, %v16417_v1  ;;  %v3286_v41 = vrot.slane %v12286_v32, 3  ;;  %v3288_v44 = vrot.slane %v12305_v5, 2  ;;  %v2179_v54 = vrot.slane %v2178_v24, 4 }
 0x2c4   : > { %16724 = vst [vmem:[#allocation53_spill] sm:$0xff] %v12333_v52  ;;  %v3273_v25 = vsel %vm2941_vm8, %v16725_v3, %v3271_v58  ;;  %9859 = vmatmul.mubr.msk.f32.gmra.mrb[34].mxu1 %vm784_vm3, %v12333_v52  ;;  %v16727_v40 = vrot.slane %v11712_v31, 2  ;;  %v16728_v22 = vrot.slane %v11855_v20, 3  ;;  %v1906_v55 = vrot.slane %v1905_v49, 4 }
 0x2c5   : > { %v3275_v53 = vsel %vm2944_vm9, %v3274_v62, %v3273_v25  ;;  %v2180_v13 = vmax.f32 %v2178_v24, %v2179_v54  ;;  %v16729_v60 = vrot.slane %v11714_v39, 1  ;;  %v16730_v62 = vrot.slane %v11919_v59, 2  ;;  %v12383_v25 = vpop.trf.xlu0 }
 0x2c6   : > { %v12345_v12 = vsel %vm2947_vm10, %v3276_v21, %v3275_v53  ;;  %v2974_v48 = vsel %vm2944_vm9, %v16727_v40, %v11675_v38  ;;  %v2986_v28 = vsel %vm2941_vm8, %v16728_v22, %v11816_v16  ;;  %v16418_v38 = vrot.slane %v12305_v5, 1 }
 0x2c7   : > { %16726 = vst [vmem:[#allocation54_spill] sm:$0xff] %v12345_v12  ;;  %9861 = vmatprep.mubr.msk.f32.mxu1 %vm784_vm3, %v12345_v12  ;;  %v2976_v42 = vsel %vm2947_vm10, %v16729_v60, %v2974_v48  ;;  %v2988_v30 = vsel %vm2944_vm9, %v16730_v62, %v2986_v28  ;;  %v16731_v20 = vrot.slane %v11921_v57, 1  ;;  %v16734_v33 = vrot.slane %v12143_v2, 6 }
 0x2c8   : > { %v12371_v34 = vsel %vm3169_vm12, %v11572_v56, %v2976_v42  ;;  %v2181_v37 = vrot.slane %v2180_v13, 2  ;;  %v16735_v58 = vrot.slane %v12234_v26, 5  ;;  %v2185_v3 = vsel %vm784_vm3, %v2139_v29, -inf  ;;  %v2141_v29 = vpop.trf.xlu1 }
 0x2c9   : > { %v12367_v16 = vsel %vm2947_vm10, %v16731_v20, %v2988_v30  ;;  %16733 = vst [vmem:[#allocation56_spill] sm:$0xff] %v12371_v34  ;;  %v3281_v21 = vsel %vm2932_vm4, %v16734_v33, %v12225_v27  ;;  %v3012_v54 = vrot.slane %v12247_v19, 3  ;;  %v3014_v40 = vrot.slane %v12250_v36, 2 }
 0x2ca   : > { %16732 = vst [vmem:[#allocation55_spill] sm:$0xff] %v12367_v16  ;;  %v10584_v35 = vpack.i.bf16 %v12367_v16, %v12371_v34  ;;  %v3283_v24 = vsel %vm2935_vm6, %v16735_v58, %v3281_v21  ;;  %v2182_v48 = vmax.f32 %v2180_v13, %v2181_v37  ;;  %v1907_v22 = vmax.f32 %v1905_v49, %v1906_v55  ;;  %v16737_v49 = vld [vmem:[#allocation32_spill] sm:$0xff]  ;;  %v16738_v13 = vld [vmem:[#allocation33_spill] sm:$0xff] }
 0x2cb   : > { %v3285_v27 = vsel %vm2938_vm7, %v3284_v4, %v3283_v24  ;;  %v3016_v60 = vrot.slane %v12261_v6, 1  ;;  %v2186_v62 = vrot.slane %v2185_v3, 4  ;;  %v1912_v30 = vsel %vm784_vm3, %v1866_v7, -inf }
 0x2cc   : > { %10585 = vrot.lane.b32.xlu1 %v10584_v35, %s16479_s17  ;;  %v3287_v28 = vsel %vm2941_vm8, %v3286_v41, %v3285_v27  ;;  %v2183_v20 = vrot.slane %v2182_v48, 1  ;;  %v16739_v55 = vrot.slane %v16738_v13, 3  ;;  %v16740_v41 = vld [vmem:[#allocation44_spill] sm:$0xff]  ;;  %v16741_v21 = vrot.slane %v12166_v0, 4  ;;  %v16742_v35 = vld [vmem:[#allocation35_spill] sm:$0xff] }
 0x2cd   : > { %v3289_v42 = vsel %vm2944_vm9, %v3288_v44, %v3287_v28  ;;  %v16743_v58 = vrot.slane %v16742_v35, 2  ;;  %v2192_v44 = vsel %vm784_vm3, %v2140_v14, -inf  ;;  %v3045_v53 = vrot.slane %v12279_v23, 7 }
 0x2ce   : > { %v12398_v4 = vsel %vm3425_vm11, %v3289_v42, %v16418_v38  ;;  %v2999_v33 = vsel %vm2941_vm8, %v16739_v55, %v16737_v49  ;;  %v3011_v37 = vsel %vm2938_vm7, %v16741_v21, %v16740_v41  ;;  %v12416_v28 = vmax.f32 %v2182_v48, %v2183_v20  ;;  %v16744_v49 = vld [vmem:[#allocation36_spill] sm:$0xff]  ;;  %v12422_v21 = vpop.trf.xlu0 }
 0x2cf   : > { %16736 = vst [vmem:[#allocation57_spill] sm:$0xff] %v12398_v4  ;;  %9862 = vmatmul.mubr.msk.f32.gmra.mrb[36].mxu1 %vm784_vm3, %v12398_v4  ;;  %v3001_v24 = vsel %vm2944_vm9, %v16743_v58, %v2999_v33  ;;  %v3013_v27 = vsel %vm2941_vm8, %v3012_v54, %v3011_v37  ;;  %v1908_v42 = vrot.slane %v1907_v22, 2  ;;  %v16745_v0 = vrot.slane %v16744_v49, 1  ;;  %v2142_v58 = vpop.trf.xlu1 }
 0x2d0   : > { %v3015_v41 = vsel %vm2944_vm9, %v3014_v40, %v3013_v27  ;;  %v1913_v38 = vrot.slane %v1912_v30, 4  ;;  %v3072_v54 = vrot.slane %v12277_v51, 7  ;;  %v3073_v48 = vrot.slane %v12257_v43, 6  ;;  %v16747_v27 = vld [vmem:[#allocation25_spill] sm:$0xff] }
 0x2d1   : > { %v3003_v55 = vsel %vm2947_vm10, %v16745_v0, %v3001_v24  ;;  %v12427_v33 = vsel %vm2947_vm10, %v3016_v60, %v3015_v41  ;;  %v3575_v20 = vrot.slane %v12416_v28, 4  ;;  %v2187_v37 = vmax.f32 %v2185_v3, %v2186_v62 }
 0x2d2   : > { %16746 = vst [vmem:[#allocation32_spill] sm:$0xff] %v12427_v33  ;;  %v3046_v40 = vrot.slane %v12259_v18, 6  ;;  %v3075_v24 = vrot.slane %v12266_v61, 5  ;;  %v12436_v0 = vsel %vm3169_vm12, %v16747_v27, %v3003_v55  ;;  %v3316_v60 = vrot.slane %v12266_v61, 7 }
 0x2d3   : > { %16748 = vst [vmem:[#allocation44_spill] sm:$0xff] %v12436_v0  ;;  %v12442_v41 = vsel %vm2938_vm7, %v3575_v20, %v12314_v46  ;;  %v1909_v1 = vmax.f32 %v1907_v22, %v1908_v42  ;;  %v10589_v3 = vpack.i.bf16 %v12427_v33, %v12436_v0  ;;  %v3048_v7 = vrot.slane %v12268_v17, 5  ;;  %v1869_v20 = vpop.trf.xlu0  ;;  %v2143_v27 = vpop.trf.xlu1  ;;  %v16750_v0 = vld [vmem:[#allocation8_spill] sm:$0xff] }
 0x2d4   : > { %16749 = vst [vmem:[#allocation25_spill] sm:$0xff] %v12442_v41  ;;  %v1914_v55 = vmax.f32 %v1912_v30, %v1913_v38  ;;  %v3074_v14 = vsel %vm2932_vm4, %v3073_v48, %v3072_v54  ;;  %v2188_v61 = vrot.slane %v2187_v37, 2  ;;  %v2193_v46 = vrot.slane %v2192_v44, 4 }
 0x2d5   : > { %10590 = vrot.lane.b32.xlu1 %v10589_v3, %s16479_s17  ;;  %v3047_v42 = vsel %vm2932_vm4, %v3046_v40, %v3045_v53  ;;  %v3076_v62 = vsel %vm2935_vm6, %v3075_v24, %v3074_v14  ;;  %v3290_v56 = vrot.slane %v12268_v17, 7  ;;  %v3317_v38 = vsel %vm2950_vm5, %v3316_v60, %v12257_v43  ;;  %v16751_v53 = vld [vmem:[#allocation18_spill] sm:$0xff] }
 0x2d6   : > { %v3077_v30 = vrot.slane %v12281_v15, 4  ;;  %v3318_v54 = vrot.slane %v12281_v15, 6  ;;  %v1910_v48 = vrot.slane %v1909_v1, 1  ;;  %v3049_v3 = vsel %vm2935_vm6, %v3048_v7, %v3047_v42  ;;  %v16753_v15 = vld [vmem:[#allocation21_spill] sm:$0xff]  ;;  %v16755_v7 = vld [vmem:[#allocation14_spill] sm:$0xff]  ;;  %v16756_v42 = vld [vmem:[#allocation16_spill] sm:$0xff] }
 0x2d7   : > { %v3050_v33 = vrot.slane %v12301_v8, 4  ;;  %v1915_v22 = vrot.slane %v1914_v55, 2  ;;  %v16752_v40 = vrot.slane %v16751_v53, 2  ;;  %v2189_v17 = vmax.f32 %v2187_v37, %v2188_v61  ;;  %v1870_v37 = vpop.trf.xlu0 }
 0x2d8   : > { %v2194_v14 = vmax.f32 %v2192_v44, %v2193_v46  ;;  %v1919_v43 = vsel %vm784_vm3, %v12383_v25, -inf  ;;  %v2199_v60 = vsel %vm784_vm3, %v2141_v29, -inf  ;;  %v16754_v16 = vrot.slane %v16753_v15, 1 }
 0x2d9   : > { %v2945_v24 = vsel %vm2944_vm9, %v16752_v40, %v16750_v0  ;;  %v16757_v4 = vrot.slane %v16756_v42, 3  ;;  %v2206_v52 = vsel %vm784_vm3, %v2142_v58, -inf  ;;  %v1933_v0 = vsel %vm784_vm3, %v1869_v20, -inf }
 0x2da   : > { %v2948_v34 = vsel %vm2947_vm10, %v16754_v16, %v2945_v24  ;;  %v12480_v44 = vsel %vm2950_vm5, %v3290_v56, %v12259_v18  ;;  %v12483_v25 = vsel %vm2938_vm7, %v3077_v30, %v3076_v62  ;;  %v12486_v29 = vsel %vm2932_vm4, %v3318_v54, %v3317_v38  ;;  %v2144_v30 = vpop.trf.xlu1 }
 0x2db   : > { %v2959_v12 = vsel %vm2941_vm8, %v16757_v4, %v16755_v7  ;;  %v12488_v16 = vmax.f32 %v1909_v1, %v1910_v48  ;;  %v1920_v61 = vrot.slane %v1919_v43, 4  ;;  %v2200_v46 = vrot.slane %v2199_v60, 4  ;;  %v16759_v4 = vld [vmem:[#allocation20_spill] sm:$0xff]  ;;  %v16761_v48 = vld [vmem:[#allocation27_spill] sm:$0xff] }
 0x2dc   : > { %v16760_v40 = vrot.slane %v16759_v4, 2  ;;  %v2207_v20 = vrot.slane %v2206_v52, 4  ;;  %v12494_v24 = vsel %vm2938_vm7, %v3050_v33, %v3049_v3  ;;  %v2190_v56 = vrot.slane %v2189_v17, 1  ;;  %v16764_v3 = vld [vmem:[#allocation5_spill] sm:$0xff]  ;;  %v1871_v33 = vpop.trf.xlu0 }
 0x2dd   : > { %16758 = vst [vmem:[#allocation8_spill] sm:$0xff] %v12488_v16  ;;  %v1934_v62 = vrot.slane %v1933_v0, 4  ;;  %v12497_v38 = vmax.f32 %v1914_v55, %v1915_v22  ;;  %v2195_v1 = vrot.slane %v2194_v14, 2  ;;  %v1926_v54 = vsel %vm784_vm3, %v12422_v21, -inf }
 0x2de   : > { %v2961_v58 = vsel %vm2944_vm9, %v16760_v40, %v2959_v12  ;;  %v16762_v7 = vrot.slane %v16761_v48, 1  ;;  %v12510_v40 = vsel %vm3169_vm12, %v16764_v3, %v2948_v34  ;;  %v2208_v18 = vmax.f32 %v2206_v52, %v2207_v20 }
 0x2df   : > { %16765 = vst [vmem:[#allocation21_spill] sm:$0xff] %v12510_v40  ;;  %v1921_v22 = vmax.f32 %v1919_v43, %v1920_v61  ;;  %v12513_v45 = vmax.f32 %v2199_v60, %v2200_v46  ;;  %v1927_v12 = vrot.slane %v1926_v54, 4  ;;  %v1935_v41 = vmax.f32 %v1933_v0, %v1934_v62  ;;  %v16766_v43 = vld [vmem:[#allocation31_spill] sm:$0xff]  ;;  %v2145_v62 = vpop.trf.xlu1 }
 0x2e0   : > { %v12504_v42 = vsel %vm2947_vm10, %v16762_v7, %v2961_v58  ;;  %v12519_v10 = vmax.f32 %v2189_v17, %v2190_v56  ;;  %v12522_v52 = vmax.f32 %v2194_v14, %v2195_v1  ;;  %v16767_v60 = vrot.slane %v12066_v9, 3  ;;  %v16769_v0 = vld [vmem:[#allocation43_spill] sm:$0xff] }
 0x2e1   : > { %16763 = vst [vmem:[#allocation18_spill] sm:$0xff] %v12504_v42  ;;  %v10579_v21 = vpack.i.bf16 %v12504_v42, %v12510_v40  ;;  %v2209_v46 = vrot.slane %v2208_v18, 2  ;;  %v16768_v20 = vrot.slane %v12116_v47, 2  ;;  %v16770_v17 = vrot.slane %v12143_v2, 4 }
 0x2e2   : > { %v3026_v61 = vsel %vm2941_vm8, %v16767_v60, %v16766_v43  ;;  %v2213_v14 = vsel %vm784_vm3, %v2143_v27, -inf  ;;  %v1922_v1 = vrot.slane %v1921_v22, 2  ;;  %v16771_v7 = vrot.slane %v12170_v11, 1 }
 0x2e3   : > { %10580 = vrot.lane.b32.xlu0 %v10579_v21, %s16479_s17  ;;  %v3028_v3 = vsel %vm2944_vm9, %v16768_v20, %v3026_v61  ;;  %v3038_v56 = vsel %vm2938_vm7, %v16770_v17, %v16769_v0  ;;  %v16772_v60 = vrot.slane %v12234_v26, 3  ;;  %v1928_v61 = vmax.f32 %v1926_v54, %v1927_v12  ;;  %v16776_v21 = vld [vmem:[#allocation24_spill] sm:$0xff] }
 0x2e4   : > { %v3030_v43 = vsel %vm2947_vm10, %v16771_v7, %v3028_v3  ;;  %v1936_v20 = vrot.slane %v1935_v41, 2  ;;  %v16773_v2 = vrot.slane %v12272_v50, 2  ;;  %v2214_v17 = vrot.slane %v2213_v14, 4 }
 0x2e5   : > { %v3040_v55 = vsel %vm2941_vm8, %v16772_v60, %v3038_v56  ;;  %v16774_v27 = vrot.slane %v12286_v32, 1  ;;  %v12554_v34 = vsel %vm3169_vm12, %v16776_v21, %v3030_v43  ;;  %v1940_v7 = vsel %vm784_vm3, %v1870_v37, -inf  ;;  %v1872_v60 = vpop.trf.xlu0 }
 0x2e6   : > { %v3042_v0 = vsel %vm2944_vm9, %v16773_v2, %v3040_v55  ;;  %16777 = vst [vmem:[#allocation16_spill] sm:$0xff] %v12554_v34  ;;  %v2220_v3 = vsel %vm784_vm3, %v2144_v30, -inf  ;;  %v2210_v54 = vmax.f32 %v2208_v18, %v2209_v46  ;;  %v2215_v56 = vmax.f32 %v2213_v14, %v2214_v17  ;;  %v2146_v18 = vpop.trf.xlu1 }
 0x2e7   : > { %v12550_v58 = vsel %vm2947_vm10, %v16774_v27, %v3042_v0  ;;  %v1941_v55 = vrot.slane %v1940_v7, 4  ;;  %v12560_v2 = vmax.f32 %v1921_v22, %v1922_v1  ;;  %v2221_v42 = vrot.slane %v2220_v3, 4 }
 0x2e8   : > { %16775 = vst [vmem:[#allocation14_spill] sm:$0xff] %v12550_v58  ;;  %v10594_v12 = vpack.i.bf16 %v12550_v58, %v12554_v34  ;;  %v1947_v0 = vsel %vm784_vm3, %v1871_v33, -inf  ;;  %v2227_v27 = vsel %vm784_vm3, %v2145_v62, -inf  ;;  %v1929_v21 = vrot.slane %v1928_v61, 2 }
 0x2e9   : > { %v2216_v37 = vrot.slane %v2215_v56, 2  ;;  %v1942_v43 = vmax.f32 %v1940_v7, %v1941_v55  ;;  %v1948_v30 = vrot.slane %v1947_v0, 4  ;;  %v1937_v46 = vmax.f32 %v1935_v41, %v1936_v20  ;;  %v1873_v20 = vpop.trf.xlu0 }
 0x2ea   : > { %10595 = vrot.lane.b32.xlu0 %v10594_v12, %s16479_s17  ;;  %v2222_v40 = vmax.f32 %v2220_v3, %v2221_v42  ;;  %v2228_v58 = vrot.slane %v2227_v27, 4  ;;  %v1954_v14 = vsel %vm784_vm3, %v1872_v60, -inf  ;;  %v2211_v17 = vrot.slane %v2210_v54, 1 }
 0x2eb   : > { %v2217_v22 = vmax.f32 %v2215_v56, %v2216_v37  ;;  %v1943_v1 = vrot.slane %v1942_v43, 2  ;;  %v1949_v34 = vmax.f32 %v1947_v0, %v1948_v30  ;;  %v1955_v36 = vrot.slane %v1954_v14, 4 }
 0x2ec   : > { %v2223_v6 = vrot.slane %v2222_v40, 2  ;;  %v2229_v33 = vmax.f32 %v2227_v27, %v2228_v58  ;;  %v2234_v62 = vsel %vm784_vm3, %v2146_v18, -inf  ;;  %v1930_v55 = vmax.f32 %v1928_v61, %v1929_v21 }
 0x2ed   : > { %v2218_v19 = vrot.slane %v2217_v22, 1  ;;  %v1944_v12 = vmax.f32 %v1942_v43, %v1943_v1  ;;  %v1950_v49 = vrot.slane %v1949_v34, 2  ;;  %v2235_v7 = vrot.slane %v2234_v62, 4 }
 0x2ee   : > { %v2224_v5 = vmax.f32 %v2222_v40, %v2223_v6  ;;  %v2230_v41 = vrot.slane %v2229_v33, 2  ;;  %v1956_v42 = vmax.f32 %v1954_v14, %v1955_v36  ;;  %v1938_v3 = vrot.slane %v1937_v46, 1  ;;  %v2147_v6 = vpop.trf.xlu1 }
 0x2ef   : > { %v12567_v60 = vmax.f32 %v2217_v22, %v2218_v19  ;;  %v1945_v56 = vrot.slane %v1944_v12, 1  ;;  %v1951_v37 = vmax.f32 %v1949_v34, %v1950_v49  ;;  %v2236_v27 = vmax.f32 %v2234_v62, %v2235_v7  ;;  %v1874_v62 = vpop.trf.xlu0 }
 0x2f0   : > { %v2225_v0 = vrot.slane %v2224_v5, 1  ;;  %v2231_v30 = vmax.f32 %v2229_v33, %v2230_v41  ;;  %v1957_v58 = vrot.slane %v1956_v42, 2  ;;  %v12569_v35 = vmax.f32 %v2210_v54, %v2211_v17 }
 0x2f1   : > { %v3583_v43 = vrot.slane %v12567_v60, 7  ;;  %v12572_v18 = vmax.f32 %v1944_v12, %v1945_v56  ;;  %v1952_v61 = vrot.slane %v1951_v37, 1  ;;  %v1924_v36 = vrot.slane %v12560_v2, 1 }
 0x2f2   : > { %v12575_v40 = vmax.f32 %v2224_v5, %v2225_v0  ;;  %v2232_v19 = vrot.slane %v2231_v30, 1  ;;  %v1958_v21 = vmax.f32 %v1956_v42, %v1957_v58  ;;  %v1931_v14 = vrot.slane %v1930_v55, 1 }
 0x2f3   : > { %v12577_v49 = vmax.f32 %v1937_v46, %v1938_v3  ;;  %v3584_v34 = vsel %vm2950_vm5, %v3583_v43, %v12569_v35  ;;  %v3556_v54 = vrot.slane %v12572_v18, 7  ;;  %v12583_v22 = vmax.f32 %v1951_v37, %v1952_v61  ;;  %v2148_v61 = vpop.trf.xlu1 }
 0x2f4   : > { %v3585_v17 = vrot.slane %v12575_v40, 6  ;;  %v2237_v1 = vrot.slane %v2236_v27, 2  ;;  %v1961_v33 = vsel %vm784_vm3, %v1873_v20, -inf  ;;  %v16778_v5 = vrot.slane %v12497_v38, 1 }
 0x2f5   : > { %v3557_v46 = vsel %vm2950_vm5, %v3556_v54, %v12577_v49  ;;  %v12593_v7 = vmax.f32 %v2231_v30, %v2232_v19  ;;  %v1959_v41 = vrot.slane %v1958_v21, 1  ;;  %v16780_v42 = vrot.slane %v12416_v28, 3 }
 0x2f6   : > { %v12589_v12 = vmax.f32 %v12497_v38, %v16778_v5  ;;  %v2197_v56 = vrot.slane %v12522_v52, 1  ;;  %v3586_v37 = vsel %vm2932_vm4, %v3585_v17, %v3584_v34  ;;  %v12605_v38 = vmax.f32 %v12560_v2, %v1924_v36 }
 0x2f7   : > { %v12599_v3 = vsel %vm2941_vm8, %v16780_v42, %v12483_v25  ;;  %v16782_v0 = vrot.slane %v12513_v45, 2  ;;  %v3558_v58 = vrot.slane %v12583_v22, 6  ;;  %v1962_v43 = vrot.slane %v1961_v33, 4 }
 0x2f8   : > { %16779 = vst [vmem:[#allocation20_spill] sm:$0xff] %v12589_v12  ;;  %16781 = vst [vmem:[#allocation27_spill] sm:$0xff] %v12605_v38  ;;  %v12611_v19 = vmax.f32 %v1930_v55, %v1931_v14  ;;  %v3587_v25 = vrot.slane %v12593_v7, 5  ;;  %v12614_v54 = vmax.f32 %v1958_v21, %v1959_v41  ;;  %v2238_v5 = vmax.f32 %v2236_v27, %v2237_v1 }
 0x2f9   : > { %v2203_v30 = vmax.f32 %v12513_v45, %v16782_v0  ;;  %v3559_v17 = vsel %vm2932_vm4, %v3558_v58, %v3557_v46  ;;  %v3296_v45 = vrot.slane %v12589_v12, 4  ;;  %v1875_v0 = vpop.trf.xlu0  ;;  %v12625_v21 = vmax.f32 %v12522_v52, %v2197_v56 }
 0x2fa   : > { %16783 = vst [vmem:[#allocation5_spill] sm:$0xff] %v12611_v19  ;;  %v3588_v55 = vsel %vm2935_vm6, %v3587_v25, %v3586_v37  ;;  %v3560_v14 = vrot.slane %v12614_v54, 5  ;;  %v3298_v27 = vrot.slane %v12605_v38, 3  ;;  %v2239_v1 = vrot.slane %v2238_v5, 1 }
 0x2fb   : > { %16784 = vst [vmem:[#allocation31_spill] sm:$0xff] %v12625_v21  ;;  %v1963_v41 = vmax.f32 %v1961_v33, %v1962_v43  ;;  %v2204_v2 = vrot.slane %v2203_v30, 1  ;;  %v16785_v46 = vrot.slane %v12301_v8, 6  ;;  %v3300_v37 = vrot.slane %v12611_v19, 2  ;;  %v2149_v33 = vpop.trf.xlu1 }
 0x2fc   : > { %v3561_v34 = vsel %vm2935_vm6, %v3560_v14, %v3559_v17  ;;  %v12634_v25 = vmax.f32 %v2238_v5, %v2239_v1  ;;  %v16786_v52 = vrot.slane %v12488_v16, 5  ;;  %v3302_v36 = vrot.slane %v12577_v49, 1 }
 0x2fd   : > { %v3293_v58 = vsel %vm2932_vm4, %v16785_v46, %v12480_v44  ;;  %v1964_v42 = vrot.slane %v1963_v41, 2  ;;  %v2241_v17 = vsel %vm784_vm3, %v2147_v6, -inf  ;;  %v1968_v8 = vsel %vm784_vm3, %v1874_v62, -inf  ;;  %v1876_v63 = vpop.trf.xlu0 }
 0x2fe   : > { %v3295_v56 = vsel %vm2935_vm6, %v16786_v52, %v3293_v58  ;;  %v2248_v44 = vsel %vm784_vm3, %v2148_v61, -inf  ;;  %v3589_v5 = vrot.slane %v12634_v25, 4  ;;  %v2242_v52 = vrot.slane %v2241_v17, 4 }
 0x2ff   : > { %v3297_v43 = vsel %vm2938_vm7, %v3296_v45, %v3295_v56  ;;  %v1965_v1 = vmax.f32 %v1963_v41, %v1964_v42  ;;  %v1969_v20 = vrot.slane %v1968_v8, 4  ;;  %v2249_v32 = vrot.slane %v2248_v44, 4 }
 0x300   : > { %v3299_v46 = vsel %vm2941_vm8, %v3298_v27, %v3297_v43  ;;  %v12649_v45 = vsel %vm2938_vm7, %v3589_v5, %v3588_v55  ;;  %v1975_v61 = vsel %vm784_vm3, %v1875_v0, -inf  ;;  %v12656_v42 = vmax.f32 %v2203_v30, %v2204_v2 }
 0x301   : > { %v3301_v58 = vsel %vm2944_vm9, %v3300_v37, %v3299_v46  ;;  %16787 = vst [vmem:[#allocation43_spill] sm:$0xff] %v12649_v45  ;;  %v1966_v6 = vrot.slane %v1965_v1, 1  ;;  %v2243_v27 = vmax.f32 %v2241_v17, %v2242_v52  ;;  %v2250_v41 = vmax.f32 %v2248_v44, %v2249_v32  ;;  %v2407_v37 = vpop.trf.xlu0 }
 0x302   : > { %v12652_v62 = vsel %vm2947_vm10, %v3302_v36, %v3301_v58  ;;  %16789 = vst [vmem:[#allocation58_spill] sm:$0xff] %v12656_v42  ;;  %v3085_v55 = vrot.slane %v12569_v35, 7  ;;  %v1976_v5 = vrot.slane %v1975_v61, 4  ;;  %v2680_v36 = vpop.trf.xlu1  ;;  %v3058_v0 = vrot.slane %v12577_v49, 7 }
 0x303   : > { %16788 = vst [vmem:[#allocation24_spill] sm:$0xff] %v12652_v62  ;;  %9864 = vmatprep.mubr.msk.f32.mxu1 %vm784_vm3, %v12652_v62  ;;  %v12662_v43 = vmax.f32 %v1965_v1, %v1966_v6  ;;  %v2244_v58 = vrot.slane %v2243_v27, 2  ;;  %v1970_v30 = vmax.f32 %v1968_v8, %v1969_v20  ;;  %v3087_v56 = vrot.slane %v12567_v60, 6 }
 0x304   : > { %v2251_v17 = vrot.slane %v2250_v41, 2  ;;  %v2255_v6 = vsel %vm784_vm3, %v2149_v33, -inf  ;;  %v3086_v49 = vsel %vm2950_vm5, %v3085_v55, %v12656_v42  ;;  %v1977_v8 = vmax.f32 %v1975_v61, %v1976_v5 }
 0x305   : > { %v3562_v32 = vrot.slane %v12662_v43, 4  ;;  %v1982_v2 = vsel %vm784_vm3, %v1876_v63, -inf  ;;  %v3059_v46 = vsel %vm2950_vm5, %v3058_v0, %v12611_v19  ;;  %v3060_v44 = vrot.slane %v12572_v18, 6  ;;  %v2408_v19 = vpop.trf.xlu0 }
 0x306   : > { %v2245_v1 = vmax.f32 %v2243_v27, %v2244_v58  ;;  %v1971_v14 = vrot.slane %v1970_v30, 2  ;;  %v3088_v52 = vsel %vm2932_vm4, %v3087_v56, %v3086_v49  ;;  %v3089_v33 = vrot.slane %v12575_v40, 5  ;;  %v2681_v55 = vpop.trf.xlu1 }
 0x307   : > { %v12676_v20 = vsel %vm2938_vm7, %v3562_v32, %v3561_v34  ;;  %v2252_v62 = vmax.f32 %v2250_v41, %v2251_v17  ;;  %v2256_v45 = vrot.slane %v2255_v6, 4  ;;  %v3330_v34 = vrot.slane %v12575_v40, 7 }
 0x308   : > { %16790 = vst [vmem:[#allocation59_spill] sm:$0xff] %v12676_v20  ;;  %v3062_v61 = vrot.slane %v12583_v22, 5  ;;  %v1983_v5 = vrot.slane %v1982_v2, 4  ;;  %v2696_v63 = vsel %vm784_vm3, %v2680_v36, -inf  ;;  %v3304_v0 = vrot.slane %v12583_v22, 7 }
 0x309   : > { %v3091_v32 = vrot.slane %v12593_v7, 4  ;;  %v3332_v27 = vrot.slane %v12593_v7, 6  ;;  %v1978_v58 = vrot.slane %v1977_v8, 2  ;;  %v3061_v56 = vsel %vm2932_vm4, %v3060_v44, %v3059_v46 }
 0x30a   : > { %v3064_v41 = vrot.slane %v12614_v54, 4  ;;  %v2246_v17 = vrot.slane %v2245_v1, 1  ;;  %v1972_v49 = vmax.f32 %v1970_v30, %v1971_v14  ;;  %v3090_v40 = vsel %vm2935_vm6, %v3089_v33, %v3088_v52  ;;  %v2682_v52 = vpop.trf.xlu1 }
 0x30b   : > { %v2253_v20 = vrot.slane %v2252_v62, 1  ;;  %v2257_v13 = vmax.f32 %v2255_v6, %v2256_v45  ;;  %v2697_v50 = vrot.slane %v2696_v63, 4  ;;  %v3331_v22 = vsel %vm2950_vm5, %v3330_v34, %v12567_v60 }
 0x30c   : > { %v3063_v36 = vsel %vm2935_vm6, %v3062_v61, %v3061_v56  ;;  %v3306_v7 = vrot.slane %v12614_v54, 6  ;;  %v1984_v11 = vmax.f32 %v1982_v2, %v1983_v5  ;;  %v3305_v46 = vsel %vm2950_vm5, %v3304_v0, %v12572_v18 }
 0x30d   : > { %v3092_v44 = vsel %vm2938_vm7, %v3091_v32, %v3090_v40  ;;  %v12701_v14 = vsel %vm2932_vm4, %v3332_v27, %v3331_v22  ;;  %v1979_v30 = vmax.f32 %v1977_v8, %v1978_v58  ;;  %v3065_v45 = vsel %vm2938_vm7, %v3064_v41, %v3063_v36  ;;  %v2409_v32 = vpop.trf.xlu0 }
 0x30e   : > { %v12704_v6 = vmax.f32 %v2245_v1, %v2246_v17  ;;  %v1973_v60 = vrot.slane %v1972_v49, 1  ;;  %v2703_v33 = vsel %vm784_vm3, %v2681_v55, -inf  ;;  %v12707_v34 = vmax.f32 %v2252_v62, %v2253_v20  ;;  %v2683_v22 = vpop.trf.xlu1 }
 0x30f   : > { %v2258_v54 = vrot.slane %v2257_v13, 2  ;;  %v2698_v2 = vmax.f32 %v2696_v63, %v2697_v50  ;;  %v2423_v18 = vsel %vm784_vm3, %v2407_v37, -inf  ;;  %v12711_v61 = vsel %vm2932_vm4, %v3306_v7, %v3305_v46 }
 0x310   : > { %16791 = vst [vmem:[#allocation60_spill] sm:$0xff] %v12704_v6  ;;  %16792 = vst [vmem:[#allocation61_spill] sm:$0xff] %v12707_v34  ;;  %v3093_v5 = vrot.slane %v12634_v25, 3  ;;  %v1985_v0 = vrot.slane %v1984_v11, 2  ;;  %v3066_v1 = vrot.slane %v12662_v43, 3  ;;  %v1980_v55 = vrot.slane %v1979_v30, 1 }
 0x311   : > { %v2704_v62 = vrot.slane %v2703_v33, 4  ;;  %v3095_v20 = vrot.slane %v12704_v6, 2  ;;  %v12718_v50 = vmax.f32 %v1972_v49, %v1973_v60  ;;  %v2424_v37 = vrot.slane %v2423_v18, 4 }
 0x312   : > { %v2430_v63 = vsel %vm784_vm3, %v2408_v19, -inf  ;;  %v3097_v58 = vrot.slane %v12707_v34, 1  ;;  %v2259_v56 = vmax.f32 %v2257_v13, %v2258_v54  ;;  %v2699_v41 = vrot.slane %v2698_v2, 2 }
 0x313   : > { %16793 = vst [vmem:[#allocation62_spill] sm:$0xff] %v12718_v50  ;;  %v16794_v17 = vrot.slane %v12519_v10, 2  ;;  %v1986_v7 = vmax.f32 %v1984_v11, %v1985_v0  ;;  %v2710_v46 = vsel %vm784_vm3, %v2682_v52, -inf  ;;  %v16795_v49 = vrot.slane %v12625_v21, 1  ;;  %v2410_v11 = vpop.trf.xlu0 }
 0x314   : > { %v12731_v19 = vmax.f32 %v1979_v30, %v1980_v55  ;;  %v2705_v8 = vmax.f32 %v2703_v33, %v2704_v62  ;;  %v2431_v13 = vrot.slane %v2430_v63, 4  ;;  %v3094_v54 = vsel %vm2941_vm8, %v3093_v5, %v3092_v44 }
 0x315   : > { %v3082_v40 = vsel %vm2944_vm9, %v16794_v17, %v12599_v3  ;;  %v3068_v3 = vrot.slane %v12718_v50, 2  ;;  %v2425_v17 = vmax.f32 %v2423_v18, %v2424_v37  ;;  %v3096_v36 = vsel %vm2944_vm9, %v3095_v20, %v3094_v54 }
 0x316   : > { %v3084_v60 = vsel %vm2947_vm10, %v16795_v49, %v3082_v40  ;;  %16796 = vst [vmem:[#allocation63_spill] sm:$0xff] %v12731_v19  ;;  %v2711_v0 = vrot.slane %v2710_v46, 4  ;;  %v2437_v52 = vsel %vm784_vm3, %v2409_v32, -inf  ;;  %v12739_v47 = vsel %vm2947_vm10, %v3097_v58, %v3096_v36  ;;  %v2684_v58 = vpop.trf.xlu1 }
 0x317   : > { %16797 = vst [vmem:[#allocation64_spill] sm:$0xff] %v12739_v47  ;;  %v12743_v30 = vsel %vm3169_vm12, %v12277_v51, %v3084_v60  ;;  %v3310_v44 = vrot.slane %v12718_v50, 4  ;;  %v2260_v33 = vrot.slane %v2259_v56, 1  ;;  %v1987_v5 = vrot.slane %v1986_v7, 1 }
 0x318   : > { %16798 = vst [vmem:[#allocation65_spill] sm:$0xff] %v12743_v30  ;;  %v10604_v18 = vpack.i.bf16 %v12739_v47, %v12743_v30  ;;  %v3070_v55 = vrot.slane %v12731_v19, 1  ;;  %v2706_v62 = vrot.slane %v2705_v8, 2  ;;  %v2432_v20 = vmax.f32 %v2430_v63, %v2431_v13  ;;  %v2411_v30 = vpop.trf.xlu0 }
 0x319   : > { %v16799_v32 = vrot.slane %v12488_v16, 3  ;;  %v2438_v40 = vrot.slane %v2437_v52, 4  ;;  %v16800_v36 = vrot.slane %v12589_v12, 2  ;;  %v2717_v60 = vsel %vm784_vm3, %v2683_v22, -inf }
 0x31a   : > { %10605 = vrot.lane.b32.xlu0 %v10604_v18, %s16479_s17  ;;  %v2426_v54 = vrot.slane %v2425_v17, 2  ;;  %v2712_v27 = vmax.f32 %v2710_v46, %v2711_v0  ;;  %v16801_v63 = vrot.slane %v12605_v38, 1  ;;  %v12765_v51 = vmax.f32 %v1986_v7, %v1987_v5 }
 0x31b   : > { %v3053_v37 = vsel %vm2941_vm8, %v16799_v32, %v12494_v24  ;;  %v3067_v24 = vsel %vm2941_vm8, %v3066_v1, %v3065_v45  ;;  %v12763_v32 = vmax.f32 %v2259_v56, %v2260_v33  ;;  %v2700_v47 = vmax.f32 %v2698_v2, %v2699_v41  ;;  %v2685_v41 = vpop.trf.xlu1 }
 0x31c   : > { %v3055_v49 = vsel %vm2944_vm9, %v16800_v36, %v3053_v37  ;;  %16803 = vst [vmem:[#allocation67_spill] sm:$0xff] %v12765_v51  ;;  %v3069_v18 = vsel %vm2944_vm9, %v3068_v3, %v3067_v24  ;;  %v2707_v12 = vmax.f32 %v2705_v8, %v2706_v62  ;;  %v2433_v37 = vrot.slane %v2432_v20, 2 }
 0x31d   : > { %v3057_v13 = vsel %vm2947_vm10, %v16801_v63, %v3055_v49  ;;  %16802 = vst [vmem:[#allocation66_spill] sm:$0xff] %v12763_v32  ;;  %v12769_v22 = vsel %vm2947_vm10, %v3070_v55, %v3069_v18  ;;  %v2718_v46 = vrot.slane %v2717_v60, 4  ;;  %v3338_v0 = vrot.slane %v12707_v34, 3 }
 0x31e   : > { %16804 = vst [vmem:[#allocation68_spill] sm:$0xff] %v12769_v22  ;;  %v2439_v49 = vmax.f32 %v2437_v52, %v2438_v40  ;;  %v12775_v45 = vsel %vm3169_vm12, %v12279_v23, %v3057_v13  ;;  %v3312_v2 = vrot.slane %v12731_v19, 3  ;;  %v2427_v1 = vmax.f32 %v2425_v17, %v2426_v54 }
 0x31f   : > { %16805 = vst [vmem:[#allocation69_spill] sm:$0xff] %v12775_v45  ;;  %v2713_v56 = vrot.slane %v2712_v27, 2  ;;  %v10599_v8 = vpack.i.bf16 %v12769_v22, %v12775_v45  ;;  %v3314_v7 = vrot.slane %v12765_v51, 2  ;;  %v2701_v3 = vrot.slane %v2700_v47, 1 }
 0x320   : > { %v2719_v33 = vmax.f32 %v2717_v60, %v2718_v46  ;;  %v2444_v5 = vsel %vm784_vm3, %v2410_v11, -inf  ;;  %v3340_v52 = vrot.slane %v12763_v32, 2  ;;  %v2708_v55 = vrot.slane %v2707_v12, 1  ;;  %v2412_v60 = vpop.trf.xlu0 }
 0x321   : > { %v2434_v62 = vmax.f32 %v2432_v20, %v2433_v37  ;;  %10600 = vrot.lane.b32.xlu1 %v10599_v8, %s16479_s17  ;;  %v16806_v23 = vrot.slane %v12662_v43, 5  ;;  %v2440_v40 = vrot.slane %v2439_v49, 2  ;;  %v2445_v54 = vrot.slane %v2444_v5, 4 }
 0x322   : > { %v16449_v13 = vrot.slane %v12765_v51, 1  ;;  %v16450_v11 = vrot.slane %v12763_v32, 1  ;;  %v2428_v24 = vrot.slane %v2427_v1, 1  ;;  %v2714_v18 = vmax.f32 %v2712_v27, %v2713_v56 }
 0x323   : > { %v3309_v17 = vsel %vm2935_vm6, %v16806_v23, %v12711_v61  ;;  %v2720_v37 = vrot.slane %v2719_v33, 2  ;;  %v2446_v46 = vmax.f32 %v2444_v5, %v2445_v54  ;;  %v16807_v43 = vrot.slane %v12416_v28, 5  ;;  %v2686_v5 = vpop.trf.xlu1 }
 0x324   : > { %v3311_v63 = vsel %vm2938_vm7, %v3310_v44, %v3309_v17  ;;  %v16809_v23 = vrot.slane %v12519_v10, 4  ;;  %v2724_v56 = vsel %vm784_vm3, %v2684_v58, -inf  ;;  %v2435_v17 = vrot.slane %v2434_v62, 1 }
 0x325   : > { %v3313_v20 = vsel %vm2941_vm8, %v3312_v2, %v3311_v63  ;;  %v3321_v61 = vsel %vm2935_vm6, %v16807_v43, %v12486_v29  ;;  %v3328_v2 = vrot.slane %v12569_v35, 1  ;;  %v2441_v28 = vmax.f32 %v2439_v49, %v2440_v40  ;;  %v2413_v40 = vpop.trf.xlu0 }
 0x326   : > { %v3315_v8 = vsel %vm2944_vm9, %v3314_v7, %v3313_v20  ;;  %v3323_v27 = vsel %vm2938_vm7, %v16809_v23, %v3321_v61  ;;  %v12807_v7 = vmax.f32 %v2707_v12, %v2708_v55  ;;  %v16811_v29 = vrot.slane %v12625_v21, 3 }
 0x327   : > { %v12800_v44 = vsel %vm3425_vm11, %v3315_v8, %v16449_v13  ;;  %v2715_v63 = vrot.slane %v2714_v18, 1  ;;  %v16812_v20 = vrot.slane %v12656_v42, 2  ;;  %v2725_v35 = vrot.slane %v2724_v56, 4 }
 0x328   : > { %16808 = vst [vmem:[#allocation70_spill] sm:$0xff] %v12800_v44  ;;  %16810 = vst [vmem:[#allocation71_spill] sm:$0xff] %v12807_v7  ;;  %9865 = vmatmul.mubr.msk.f32.gmra.mrb[38].mxu1 %vm784_vm3, %v12800_v44  ;;  %v3325_v54 = vsel %vm2941_vm8, %v16811_v29, %v3323_v27  ;;  %v2451_v58 = vsel %vm784_vm3, %v2411_v30, -inf  ;;  %v2721_v43 = vmax.f32 %v2719_v33, %v2720_v37  ;;  %v2447_v12 = vrot.slane %v2446_v46, 2 }
 0x329   : > { %v3327_v8 = vsel %vm2944_vm9, %v16812_v20, %v3325_v54  ;;  %v2452_v49 = vrot.slane %v2451_v58, 4  ;;  %v12821_v61 = vmax.f32 %v2700_v47, %v2701_v3  ;;  %v12823_v23 = vmax.f32 %v2427_v1, %v2428_v24 }
 0x32a   : > { %v12819_v55 = vsel %vm2947_vm10, %v3328_v2, %v3327_v8  ;;  %v2726_v27 = vmax.f32 %v2724_v56, %v2725_v35  ;;  %v2731_v29 = vsel %vm784_vm3, %v2685_v41, -inf  ;;  %v3127_v54 = vrot.slane %v12807_v7, 6  ;;  %v2687_v8 = vpop.trf.xlu1 }
 0x32b   : > { %16813 = vst [vmem:[#allocation72_spill] sm:$0xff] %v12819_v55  ;;  %9867 = vmatprep.mubr.msk.f32.mxu1 %vm784_vm3, %v12819_v55  ;;  %v2436_v30 = vmax.f32 %v2434_v62, %v2435_v17  ;;  %v2442_v33 = vrot.slane %v2441_v28, 1  ;;  %v16814_v37 = vrot.slane %v12634_v25, 5  ;;  %v2453_v47 = vmax.f32 %v2451_v58, %v2452_v49 }
 0x32c   : > { %v2727_v20 = vrot.slane %v2726_v27, 2  ;;  %v16815_v1 = vrot.slane %v12704_v6, 4  ;;  %v2732_v24 = vrot.slane %v2731_v29, 4  ;;  %v12836_v56 = vmax.f32 %v2714_v18, %v2715_v63 }
 0x32d   : > { %v3335_v2 = vsel %vm2935_vm6, %v16814_v37, %v12701_v14  ;;  %v2722_v41 = vrot.slane %v2721_v43, 1  ;;  %v2448_v35 = vmax.f32 %v2446_v46, %v2447_v12  ;;  %v2454_v17 = vrot.slane %v2453_v47, 2  ;;  %v2414_v46 = vpop.trf.xlu0 }
 0x32e   : > { %v3337_v3 = vsel %vm2938_vm7, %v16815_v1, %v3335_v2  ;;  %16816 = vst [vmem:[#allocation73_spill] sm:$0xff] %v12836_v56  ;;  %v2733_v14 = vmax.f32 %v2731_v29, %v2732_v24  ;;  %v2458_v58 = vsel %vm784_vm3, %v2412_v60, -inf  ;;  %v3126_v37 = vrot.slane %v12821_v61, 7 }
 0x32f   : > { %v3339_v62 = vsel %vm2941_vm8, %v3338_v0, %v3337_v3  ;;  %v2443_v2 = vmax.f32 %v2441_v28, %v2442_v33  ;;  %v3099_v63 = vrot.slane %v12823_v23, 7  ;;  %v3100_v0 = vrot.slane %v2436_v30, 6 }
 0x330   : > { %v3341_v25 = vsel %vm2944_vm9, %v3340_v52, %v3339_v62  ;;  %v3596_v12 = vrot.slane %v2436_v30, 7  ;;  %v2728_v1 = vmax.f32 %v2726_v27, %v2727_v20  ;;  %v3128_v52 = vsel %vm2932_vm4, %v3127_v54, %v3126_v37 }
 0x331   : > { %v12848_v18 = vsel %vm3425_vm11, %v3341_v25, %v16450_v11  ;;  %v3129_v60 = vrot.slane %v12836_v56, 5  ;;  %v12855_v29 = vmax.f32 %v2721_v43, %v2722_v41  ;;  %v2459_v28 = vrot.slane %v2458_v58, 4  ;;  %v2688_v25 = vpop.trf.xlu1 }
 0x332   : > { %16817 = vst [vmem:[#allocation74_spill] sm:$0xff] %v12848_v18  ;;  %9868 = vmatmul.mubr.msk.f32.gmra.mrb[40].mxu1 %vm784_vm3, %v12848_v18  ;;  %v2449_v33 = vrot.slane %v2448_v35, 1  ;;  %v2455_v3 = vmax.f32 %v2453_v47, %v2454_v17  ;;  %v2734_v24 = vrot.slane %v2733_v14, 2  ;;  %v2738_v62 = vsel %vm784_vm3, %v2686_v5, -inf  ;;  %v2415_v17 = vpop.trf.xlu0 }
 0x333   : > { %16818 = vst [vmem:[#allocation75_spill] sm:$0xff] %v12855_v29  ;;  %v3368_v13 = vrot.slane %v12836_v56, 7  ;;  %v3102_v49 = vrot.slane %v2443_v2, 5  ;;  %v2460_v27 = vmax.f32 %v2458_v58, %v2459_v28  ;;  %v2739_v20 = vrot.slane %v2738_v62, 4 }
 0x334   : > { %v3101_v11 = vsel %vm2932_vm4, %v3100_v0, %v3099_v63  ;;  %v3342_v36 = vrot.slane %v2443_v2, 7  ;;  %v3598_v54 = vrot.slane %v2443_v2, 6  ;;  %v2729_v37 = vrot.slane %v2728_v1, 1 }
 0x335   : > { %v3131_v43 = vrot.slane %v12855_v29, 4  ;;  %v3370_v41 = vrot.slane %v12855_v29, 6  ;;  %v2461_v22 = vrot.slane %v2460_v27, 2  ;;  %v2465_v47 = vsel %vm784_vm3, %v2413_v40, -inf }
 0x336   : > { %v3597_v5 = vsel %vm2950_vm5, %v3596_v12, %v12823_v23  ;;  %v12865_v45 = vmax.f32 %v2448_v35, %v2449_v33  ;;  %v2456_v58 = vrot.slane %v2455_v3, 1  ;;  %v2735_v28 = vmax.f32 %v2733_v14, %v2734_v24  ;;  %v2689_v35 = vpop.trf.xlu1 }
 0x337   : > { %v3130_v63 = vsel %vm2935_vm6, %v3129_v60, %v3128_v52  ;;  %v3369_v2 = vsel %vm2950_vm5, %v3368_v13, %v12807_v7  ;;  %v3103_v0 = vsel %vm2935_vm6, %v3102_v49, %v3101_v11  ;;  %v2740_v18 = vmax.f32 %v2738_v62, %v2739_v20  ;;  %v2416_v20 = vpop.trf.xlu0 }
 0x338   : > { %16819 = vst [vmem:[#allocation76_spill] sm:$0xff] %v12865_v45  ;;  %v3343_v55 = vsel %vm2950_vm5, %v3342_v36, %v2436_v30  ;;  %v12873_v40 = vsel %vm2932_vm4, %v3598_v54, %v3597_v5  ;;  %v12875_v44 = vmax.f32 %v2728_v1, %v2729_v37  ;;  %v2466_v12 = vrot.slane %v2465_v47, 4 }
 0x339   : > { %16820 = vst [vmem:[#allocation77_spill] sm:$0xff] %v12873_v40  ;;  %v3132_v33 = vsel %vm2938_vm7, %v3131_v43, %v3130_v63  ;;  %v12879_v14 = vsel %vm2932_vm4, %v3370_v41, %v3369_v2  ;;  %v2462_v52 = vmax.f32 %v2460_v27, %v2461_v22  ;;  %v2745_v13 = vsel %vm784_vm3, %v2687_v8, -inf }
 0x33a   : > { %v3104_v11 = vrot.slane %v12865_v45, 4  ;;  %v3344_v49 = vrot.slane %v12865_v45, 6  ;;  %v12884_v36 = vmax.f32 %v2455_v3, %v2456_v58  ;;  %v2736_v30 = vrot.slane %v2735_v28, 1  ;;  %v2690_v63 = vpop.trf.xlu1 }
 0x33b   : > { %v2741_v60 = vrot.slane %v2740_v18, 2  ;;  %v2752_v1 = vsel %vm784_vm3, %v2688_v25, -inf  ;;  %v2479_v24 = vsel %vm784_vm3, %v2415_v17, -inf  ;;  %v2759_v62 = vsel %vm784_vm3, %v2689_v35, -inf  ;;  %v2417_v7 = vpop.trf.xlu0 }
 0x33c   : > { %16821 = vst [vmem:[#allocation78_spill] sm:$0xff] %v12884_v36  ;;  %v3133_v22 = vrot.slane %v12875_v44, 3  ;;  %v2467_v8 = vmax.f32 %v2465_v47, %v2466_v12  ;;  %v2746_v27 = vrot.slane %v2745_v13, 4  ;;  %v2463_v37 = vrot.slane %v2462_v52, 1 }
 0x33d   : > { %v2472_v43 = vsel %vm784_vm3, %v2414_v46, -inf  ;;  %v2753_v3 = vrot.slane %v2752_v1, 4  ;;  %v2480_v41 = vrot.slane %v2479_v24, 4  ;;  %v3105_v5 = vsel %vm2938_vm7, %v3104_v11, %v3103_v0 }
 0x33e   : > { %v12894_v25 = vsel %vm2932_vm4, %v3344_v49, %v3343_v55  ;;  %v2760_v58 = vrot.slane %v2759_v62, 4  ;;  %v3106_v35 = vrot.slane %v12884_v36, 3  ;;  %v12900_v47 = vmax.f32 %v2735_v28, %v2736_v30 }
 0x33f   : > { %v2742_v12 = vmax.f32 %v2740_v18, %v2741_v60  ;;  %v2754_v54 = vmax.f32 %v2752_v1, %v2753_v3  ;;  %v2468_v29 = vrot.slane %v2467_v8, 2  ;;  %v2747_v56 = vmax.f32 %v2745_v13, %v2746_v27 }
 0x340   : > { %v2473_v0 = vrot.slane %v2472_v43, 4  ;;  %v2481_v11 = vmax.f32 %v2479_v24, %v2480_v41  ;;  %v12905_v55 = vsel %vm2941_vm8, %v3133_v22, %v3132_v33  ;;  %v12908_v17 = vmax.f32 %v2462_v52, %v2463_v37  ;;  %v2691_v37 = vpop.trf.xlu1 }
 0x341   : > { %v2761_v28 = vmax.f32 %v2759_v62, %v2760_v58  ;;  %v2486_v18 = vsel %vm784_vm3, %v2416_v20, -inf  ;;  %v2766_v30 = vsel %vm784_vm3, %v2690_v63, -inf  ;;  %v12913_v60 = vsel %vm2941_vm8, %v3106_v35, %v3105_v5 }
 0x342   : > { %v2482_v45 = vrot.slane %v2481_v11, 2  ;;  %v2743_v1 = vrot.slane %v2742_v12, 1  ;;  %v2469_v24 = vmax.f32 %v2467_v8, %v2468_v29  ;;  %v2748_v22 = vrot.slane %v2747_v56, 2  ;;  %v2418_v8 = vpop.trf.xlu0 }
 0x343   : > { %v2474_v52 = vmax.f32 %v2472_v43, %v2473_v0  ;;  %v2762_v27 = vrot.slane %v2761_v28, 2  ;;  %v2487_v20 = vrot.slane %v2486_v18, 4  ;;  %v2767_v41 = vrot.slane %v2766_v30, 4 }
 0x344   : > { %v2483_v63 = vmax.f32 %v2481_v11, %v2482_v45  ;;  %v2493_v33 = vsel %vm784_vm3, %v2417_v7, -inf  ;;  %v2773_v29 = vsel %vm784_vm3, %v2691_v37, -inf  ;;  %v12922_v43 = vmax.f32 %v2742_v12, %v2743_v1 }
 0x345   : > { %v2763_v35 = vmax.f32 %v2761_v28, %v2762_v27  ;;  %v2488_v13 = vmax.f32 %v2486_v18, %v2487_v20  ;;  %v2768_v49 = vmax.f32 %v2766_v30, %v2767_v41  ;;  %v2470_v0 = vrot.slane %v2469_v24, 1  ;;  %v2692_v30 = vpop.trf.xlu1 }
 0x346   : > { %v12897_v2 = vpop.f32.mrb[32].mxu1  ;;  %v2749_v3 = vmax.f32 %v2747_v56, %v2748_v22  ;;  %v2494_v51 = vrot.slane %v2493_v33, 4  ;;  %v2774_v38 = vrot.slane %v2773_v29, 4 }
 0x347   : > { %16822 = vst [vmem:[#allocation79_spill] sm:$0xff] %v12897_v2  ;;  %v12902_v46 = vpop.f32.mrb[33].mxu1  ;;  %v2755_v2 = vrot.slane %v2754_v54, 2  ;;  %v2489_v62 = vrot.slane %v2488_v13, 2  ;;  %v2769_v40 = vrot.slane %v2768_v49, 2  ;;  %v2764_v45 = vrot.slane %v2763_v35, 1 }
 0x348   : > { %16823 = vst [vmem:[#allocation80_spill] sm:$0xff] %v12902_v46  ;;  %v2475_v46 = vrot.slane %v2474_v52, 2  ;;  %v2495_v7 = vmax.f32 %v2493_v33, %v2494_v51  ;;  %v2775_v18 = vmax.f32 %v2773_v29, %v2774_v38  ;;  %v12927_v56 = vmax.f32 %v2469_v24, %v2470_v0  ;;  %v2419_v51 = vpop.trf.xlu0  ;;  %v3771_v24 = vld [vmem:[%s16374_s4 + $0xa0] sm:$0xff] }
 0x349   : > { %v2756_v5 = vmax.f32 %v2754_v54, %v2755_v2  ;;  %v2484_v54 = vrot.slane %v2483_v63, 1  ;;  %v2500_v2 = vsel %vm784_vm3, %v2418_v8, -inf  ;;  %v2490_v11 = vmax.f32 %v2488_v13, %v2489_v62 }
 0x34a   : > { %v2770_v28 = vmax.f32 %v2768_v49, %v2769_v40  ;;  %v2476_v22 = vmax.f32 %v2474_v52, %v2475_v46  ;;  %v2496_v20 = vrot.slane %v2495_v7, 2  ;;  %v2776_v41 = vrot.slane %v2775_v18, 2 }
 0x34b   : > { %v2757_v58 = vrot.slane %v2756_v5, 1  ;;  %v2491_v27 = vrot.slane %v2490_v11, 1  ;;  %v2750_v19 = vrot.slane %v2749_v3, 1  ;;  %v2501_v8 = vrot.slane %v2500_v2, 4 }
 0x34c   : > { %v2771_v37 = vrot.slane %v2770_v28, 1  ;;  %v2780_v40 = vsel %vm784_vm3, %v2692_v30, -inf  ;;  %v12932_v38 = vmax.f32 %v2483_v63, %v2484_v54  ;;  %v12934_v49 = vmax.f32 %v2763_v35, %v2764_v45 }
 0x34d   : > { %v12929_v32 = vmax.f32 %v2756_v5, %v2757_v58  ;;  %v2497_v13 = vmax.f32 %v2495_v7, %v2496_v20  ;;  %v2777_v33 = vmax.f32 %v2775_v18, %v2776_v41  ;;  %v12937_v46 = vmax.f32 %v2490_v11, %v2491_v27 }
 0x34e   : > { %16824 = vst [vmem:[#allocation81_spill] sm:$0xff] %v12934_v49  ;;  %v12939_v52 = vmax.f32 %v2770_v28, %v2771_v37  ;;  %v2502_v62 = vmax.f32 %v2500_v2, %v2501_v8  ;;  %v3350_v5 = vrot.slane %v12927_v56, 3  ;;  %v2477_v29 = vrot.slane %v2476_v22, 1  ;;  %v2420_v37 = vpop.trf.xlu0 }
 0x34f   : > { %v2781_v0 = vrot.slane %v2780_v40, 4  ;;  %v12943_v30 = vmax.f32 %v2749_v3, %v2750_v19  ;;  %v3139_v63 = vrot.slane %v12929_v32, 7  ;;  %v2498_v35 = vrot.slane %v2497_v13, 1  ;;  %v2693_v3 = vpop.trf.xlu1 }
 0x350   : > { %16825 = vst [vmem:[#allocation82_spill] sm:$0xff] %v12939_v52  ;;  %v2503_v54 = vrot.slane %v2502_v62, 2  ;;  %v3112_v45 = vrot.slane %v12932_v38, 7  ;;  %v3141_v11 = vrot.slane %v12934_v49, 6  ;;  %v2778_v7 = vrot.slane %v2777_v33, 1 }
 0x351   : > { %v2507_v28 = vsel %vm784_vm3, %v2419_v51, -inf  ;;  %v3114_v2 = vrot.slane %v12937_v46, 6  ;;  %v3610_v18 = vrot.slane %v12937_v46, 7  ;;  %v3143_v27 = vrot.slane %v12939_v52, 5 }
 0x352   : > { %v3382_v19 = vrot.slane %v12939_v52, 7  ;;  %v12953_v20 = vmax.f32 %v2476_v22, %v2477_v29  ;;  %v2499_v41 = vmax.f32 %v2497_v13, %v2498_v35  ;;  %v2504_v8 = vmax.f32 %v2502_v62, %v2503_v54  ;;  %v3767_v13 = vld [vmem:[%s16374_s4 + $0x80] sm:$0xff]  ;;  %v3768_v62 = vld [vmem:[%s16374_s4 + $0x88] sm:$0xff] }
 0x353   : > { %v2782_v12 = vmax.f32 %v2780_v40, %v2781_v0  ;;  %v3140_v51 = vsel %vm2950_vm5, %v3139_v63, %v12943_v30  ;;  %v2508_v1 = vrot.slane %v2507_v28, 4  ;;  %v12962_v16 = vmax.f32 %v2777_v33, %v2778_v7 }
 0x354   : > { %16826 = vst [vmem:[#allocation83_spill] sm:$0xff] %v12953_v20  ;;  %v3113_v50 = vsel %vm2950_vm5, %v3112_v45, %v12953_v20  ;;  %v3142_v52 = vsel %vm2932_vm4, %v3141_v11, %v3140_v51  ;;  %v16827_v22 = vrot.slane %v12884_v36, 5  ;;  %v3611_v0 = vsel %vm2950_vm5, %v3610_v18, %v12932_v38  ;;  %v2694_v18 = vpop.trf.xlu1 }
 0x355   : > { %v3115_v29 = vsel %vm2932_vm4, %v3114_v2, %v3113_v50  ;;  %v3144_v33 = vsel %vm2935_vm6, %v3143_v27, %v3142_v52  ;;  %v12980_v63 = vsel %vm2950_vm5, %v3382_v19, %v12934_v49  ;;  %v2505_v35 = vrot.slane %v2504_v8, 1 }
 0x356   : > { %v3347_v40 = vsel %vm2935_vm6, %v16827_v22, %v12894_v25  ;;  %v3116_v25 = vrot.slane %v2499_v41, 5  ;;  %v2783_v54 = vrot.slane %v2782_v12, 2  ;;  %v3352_v45 = vrot.slane %v12953_v20, 2  ;;  %v2421_v22 = vpop.trf.xlu0 }
 0x357   : > { %v2509_v11 = vmax.f32 %v2507_v28, %v2508_v1  ;;  %v16828_v7 = vrot.slane %v12908_v17, 4  ;;  %v3354_v50 = vrot.slane %v12932_v38, 1  ;;  %v10166_v2 = vpack.c.bf16 %v3768_v62, %v3767_v13  ;;  %v3769_v38 = vld [vmem:[%s16374_s4 + $0x90] sm:$0xff] }
 0x358   : > { %v3356_v52 = vrot.slane %v2499_v41, 7  ;;  %v3612_v27 = vrot.slane %v2499_v41, 6  ;;  %v3145_v19 = vrot.slane %v12962_v16, 4  ;;  %v2787_v1 = vsel %vm784_vm3, %v2693_v3, -inf  ;;  %v3770_v41 = vld [vmem:[%s16374_s4 + $0x98] sm:$0xff] }
 0x359   : > { %v3349_v51 = vsel %vm2938_vm7, %v16828_v7, %v3347_v40  ;;  %v2510_v58 = vrot.slane %v2509_v11, 2  ;;  %10167 = vmatprep.subr.bf16.mxu0 %v10166_v2  ;;  %v2514_v28 = vsel %vm784_vm3, %v2420_v37, -inf  ;;  %v12999_v40 = vsel %vm2935_vm6, %v3116_v25, %v3115_v29  ;;  %v3772_v29 = vld [vmem:[%s16374_s4 + $0xa8] sm:$0xff] }
 0x35a   : > { %v3351_v49 = vsel %vm2941_vm8, %v3350_v5, %v3349_v51  ;;  %v13001_v13 = vmax.f32 %v2504_v8, %v2505_v35  ;;  %v2784_v62 = vmax.f32 %v2782_v12, %v2783_v54  ;;  %10169 = vmatpush3.bf16.msra.mxu0 %v10166_v2  ;;  %v2788_v7 = vrot.slane %v2787_v1, 4 }
 0x35b   : > { %v3353_v5 = vsel %vm2944_vm9, %v3352_v45, %v3351_v49  ;;  %v2511_v3 = vmax.f32 %v2509_v11, %v2510_v58  ;;  %v2515_v51 = vrot.slane %v2514_v28, 4  ;;  %v3357_v12 = vsel %vm2950_vm5, %v3356_v52, %v12937_v46  ;;  %v2695_v11 = vpop.trf.xlu1  ;;  %v3773_v46 = vld [vmem:[%s16374_s4 + $0xb0] sm:$0xff] }
 0x35c   : > { %v13005_v37 = vsel %vm2947_vm10, %v3354_v50, %v3353_v5  ;;  %v3613_v49 = vsel %vm2932_vm4, %v3612_v27, %v3611_v0  ;;  %v13017_v58 = vsel %vm2938_vm7, %v3145_v19, %v3144_v33  ;;  %v10170_v8 = vpack.c.bf16 %v3770_v41, %v3769_v38  ;;  %v2422_v50 = vpop.trf.xlu0  ;;  %v3774_v0 = vld [vmem:[%s16374_s4 + $0xb8] sm:$0xff] }
 0x35d   : > { %16829 = vst [vmem:[#allocation84_spill] sm:$0xff] %v13005_v37  ;;  %9870 = vmatprep.mubr.msk.f32.mxu1 %vm784_vm3, %v13005_v37  ;;  %v2512_v25 = vrot.slane %v2511_v3, 1  ;;  %v2789_v35 = vmax.f32 %v2787_v1, %v2788_v7  ;;  %v2516_v54 = vmax.f32 %v2514_v28, %v2515_v51  ;;  %v2794_v45 = vsel %vm784_vm3, %v2694_v18, -inf  ;;  %v3775_v51 = vld [vmem:[%s16374_s4 + $0xc0] sm:$0xff] }
 0x35e   : > { %v3118_v33 = vrot.slane %v13001_v13, 4  ;;  %10171 = vmatprep.subr.bf16.mxu0 %v10170_v8  ;;  %v2795_v2 = vrot.slane %v2794_v45, 4  ;;  %v2521_v52 = vsel %vm784_vm3, %v2421_v22, -inf  ;;  %v10174_v27 = vpack.c.bf16 %v3772_v29, %v3771_v24  ;;  %v3776_v24 = vld [vmem:[%s16374_s4 + $0xc8] sm:$0xff] }
 0x35f   : > { %v2785_v19 = vrot.slane %v2784_v62, 1  ;;  %v2790_v1 = vrot.slane %v2789_v35, 2  ;;  %v2517_v18 = vrot.slane %v2516_v54, 2  ;;  %v2522_v28 = vrot.slane %v2521_v52, 4  ;;  %10173 = vmatpush3.bf16.msra.mxu0 %v10170_v8 }
 0x360   : > { %v2796_v38 = vmax.f32 %v2794_v45, %v2795_v2  ;;  %10175 = vmatprep.subr.bf16.mxu0 %v10174_v27  ;;  %v2801_v41 = vsel %vm784_vm3, %v2695_v11, -inf  ;;  %v2528_v5 = vsel %vm784_vm3, %v2422_v50, -inf  ;;  %v10178_v7 = vpack.c.bf16 %v3774_v0, %v3773_v46 }
 0x361   : > { %v3358_v22 = vrot.slane %v13001_v13, 6  ;;  %v3614_v29 = vrot.slane %v13001_v13, 5  ;;  %v13040_v8 = vmax.f32 %v2511_v3, %v2512_v25  ;;  %v2791_v45 = vmax.f32 %v2789_v35, %v2790_v1  ;;  %v3777_v1 = vld [vmem:[%s16374_s4 + $0xd0] sm:$0xff] }
 0x362   : > { %v2518_v2 = vmax.f32 %v2516_v54, %v2517_v18  ;;  %v2797_v11 = vrot.slane %v2796_v38, 2  ;;  %v2523_v37 = vmax.f32 %v2521_v52, %v2522_v28  ;;  %v2802_v50 = vrot.slane %v2801_v41, 4  ;;  %v3778_v18 = vld [vmem:[%s16374_s4 + $0xd8] sm:$0xff] }
 0x363   : > { %v13042_v46 = vmax.f32 %v2784_v62, %v2785_v19  ;;  %v2792_v0 = vrot.slane %v2791_v45, 1  ;;  %v2529_v36 = vrot.slane %v2528_v5, 4  ;;  %10177 = vmatpush3.bf16.msra.mxu0 %v10174_v27  ;;  %v10182_v20 = vpack.c.bf16 %v3776_v24, %v3775_v51 }
 0x364   : > { %v2519_v34 = vrot.slane %v2518_v2, 1  ;;  %v2798_v6 = vmax.f32 %v2796_v38, %v2797_v11  ;;  %v2524_v42 = vrot.slane %v2523_v37, 2  ;;  %v2803_v21 = vmax.f32 %v2801_v41, %v2802_v50  ;;  %10179 = vmatprep.subr.bf16.mxu0 %v10178_v7 }
 0x365   : > { %v16830_v13 = vrot.slane %v12962_v16, 6  ;;  %v3616_v25 = vrot.slane %v13040_v8, 4  ;;  %v13051_v35 = vmax.f32 %v2791_v45, %v2792_v0  ;;  %v2530_v62 = vmax.f32 %v2528_v5, %v2529_v36  ;;  %v13070_v45 = vpop.permute.xlu1 %10585 }
 0x366   : > { %v13053_v54 = vmax.f32 %v2518_v2, %v2519_v34  ;;  %v2799_v52 = vrot.slane %v2798_v6, 1  ;;  %v2525_v27 = vmax.f32 %v2523_v37, %v2524_v42  ;;  %v2804_v19 = vrot.slane %v2803_v21, 2 }
 0x367   : > { %v13048_v3 = vsel %vm2932_vm4, %v16830_v13, %v12980_v63  ;;  %v3119_v63 = vsel %vm2938_vm7, %v3118_v33, %v12999_v40  ;;  %v3359_v28 = vsel %vm2932_vm4, %v3358_v22, %v3357_v12  ;;  %v3615_v36 = vsel %vm2935_vm6, %v3614_v29, %v3613_v49  ;;  %10181 = vmatpush3.bf16.msra.mxu0 %v10178_v7 }
 0x368   : > { %v2531_v34 = vrot.slane %v2530_v62, 2  ;;  %v3147_v42 = vrot.slane %v13042_v46, 3  ;;  %v3386_v37 = vrot.slane %v13042_v46, 5  ;;  %v3120_v38 = vrot.slane %v13040_v8, 3  ;;  %10183 = vmatprep.subr.bf16.mxu0 %v10182_v20 }
 0x369   : > { %v13068_v41 = vmax.f32 %v2798_v6, %v2799_v52  ;;  %v2526_v5 = vrot.slane %v2525_v27, 1  ;;  %v2805_v51 = vmax.f32 %v2803_v21, %v2804_v19  ;;  %v10186_v40 = vpack.c.bf16 %v3778_v18, %v3777_v1 }
 0x36a   : > { %v2532_v24 = vmax.f32 %v2530_v62, %v2531_v34  ;;  %v3360_v12 = vrot.slane %v13040_v8, 5  ;;  %v13074_v49 = vsel %vm2938_vm7, %v3616_v25, %v3615_v36  ;;  %v3149_v33 = vrot.slane %v13051_v35, 2  ;;  %v3779_v36 = vld [vmem:[%s16374_s4 + $0xe0] sm:$0xff] }
 0x36b   : > { %v3122_v7 = vrot.slane %v13053_v54, 2  ;;  %v3151_v22 = vrot.slane %v13068_v41, 1  ;;  %v13079_v6 = vmax.f32 %v2525_v27, %v2526_v5  ;;  %v2806_v29 = vrot.slane %v2805_v51, 1  ;;  %10185 = vmatpush3.bf16.msra.mxu0 %v10182_v20 }
 0x36c   : > { %v2533_v2 = vrot.slane %v2532_v24, 1  ;;  %v3362_v21 = vrot.slane %v13053_v54, 4  ;;  %v10587_v11 = vunpack.i.l.bf16 %v13070_v45  ;;  %10187 = vmatprep.subr.bf16.mxu0 %v10186_v40  ;;  %v16831_v8 = vrot.slane %v12900_v47, 2 }
 0x36d   : > { %v3148_v0 = vsel %vm2941_vm8, %v3147_v42, %v13017_v58  ;;  %v3124_v13 = vrot.slane %v13079_v6, 1  ;;  %v3364_v25 = vrot.slane %v13079_v6, 3  ;;  %v16832_v20 = vrot.slane %v12908_v17, 2 }
 0x36e   : > { %v3136_v50 = vsel %vm2944_vm9, %v16831_v8, %v12905_v55  ;;  %v3121_v52 = vsel %vm2941_vm8, %v3120_v38, %v3119_v63  ;;  %v13096_v27 = vmax.f32 %v2532_v24, %v2533_v2  ;;  %v16833_v19 = vrot.slane %v12922_v43, 1  ;;  %v16835_v8 = vld [vmem:[#allocation10_spill] sm:$0xff] }
 0x36f   : > { %v3109_v62 = vsel %vm2944_vm9, %v16832_v20, %v12913_v60  ;;  %v3150_v1 = vsel %vm2944_vm9, %v3149_v33, %v3148_v0  ;;  %v16834_v58 = vrot.slane %v12927_v56, 1  ;;  %v3780_v60 = vld [vmem:[%s16374_s4 + $0xe8] sm:$0xff]  ;;  %v13111_v63 = vmax.f32 %v2805_v51, %v2806_v29  ;;  %10189 = vmatpush3.bf16.msra.mxu0 %v10186_v40 }
 0x370   : > { %v3138_v55 = vsel %vm2947_vm10, %v16833_v19, %v3136_v50  ;;  %v13114_v34 = vsel %vm2947_vm10, %v3151_v22, %v3150_v1  ;;  %v3123_v38 = vsel %vm2944_vm9, %v3122_v7, %v3121_v52  ;;  %v3366_v5 = vrot.slane %v13096_v27, 2 }
 0x371   : > { %v3111_v18 = vsel %vm2947_vm10, %v16834_v58, %v3109_v62  ;;  %v13118_v42 = vsel %vm3169_vm12, %v12821_v61, %v3138_v55  ;;  %v13125_v33 = vsel %vm2947_vm10, %v3124_v13, %v3123_v38  ;;  %v10190_v22 = vpack.c.bf16 %v3780_v60, %v3779_v36  ;;  %v16837_v13 = vld [vmem:[#allocation19_spill] sm:$0xff]  ;;  %v16839_v62 = vld [vmem:[#allocation9_spill] sm:$0xff]  ;;  %v16843_v58 = vld [vmem:[#allocation12_spill] sm:$0xff] }
 0x372   : > { %v10614_v24 = vpack.i.bf16 %v13114_v34, %v13118_v42  ;;  %v13129_v51 = vsel %vm3169_vm12, %v12823_v23, %v3111_v18  ;;  %v3361_v29 = vsel %vm2935_vm6, %v3360_v12, %v3359_v28  ;;  %v3415_v7 = vrot.slane %v13096_v27, 1  ;;  %v16845_v60 = vld [vmem:[#allocation23_spill] sm:$0xff] }
 0x373   : > { %v10609_v40 = vpack.i.bf16 %v13125_v33, %v13129_v51  ;;  %v3363_v2 = vsel %vm2938_vm7, %v3362_v21, %v3361_v29  ;;  %v16836_v50 = vrot.slane %v11712_v31, 3  ;;  %v16838_v23 = vrot.slane %v11919_v59, 3  ;;  %10191 = vmatprep.subr.bf16.mxu0 %v10190_v22  ;;  %v16848_v29 = vld [vmem:[#allocation11_spill] sm:$0xff] }
 0x374   : > { %10615 = vrot.lane.b32.xlu0 %v10614_v24, %s16479_s17  ;;  %v16840_v52 = vrot.slane %v16751_v53, 3  ;;  %v3388_v12 = vrot.slane %v13051_v35, 4  ;;  %v3365_v21 = vsel %vm2941_vm8, %v3364_v25, %v3363_v2  ;;  %v16841_v31 = vrot.slane %v11714_v39, 2  ;;  %10193 = vmatpush3.bf16.msra.mxu0 %v10190_v22 }
 0x375   : > { %v3470_v0 = vsel %vm2941_vm8, %v16836_v50, %v16835_v8  ;;  %v3484_v20 = vsel %vm2941_vm8, %v16838_v23, %v16837_v13  ;;  %10610 = vrot.lane.b32.xlu1 %v10609_v40, %s16479_s17  ;;  %v16842_v59 = vrot.slane %v11921_v57, 2  ;;  %v3367_v1 = vsel %vm2944_vm9, %v3366_v5, %v3365_v21  ;;  %v3781_v57 = vld [vmem:[%s16374_s4 + $0xf0] sm:$0xff]  ;;  %v3782_v5 = vld [vmem:[%s16374_s4 + $0xf8] sm:$0xff] }
 0x376   : > { %v3443_v28 = vsel %vm2941_vm8, %v16840_v52, %v16839_v62  ;;  %v3472_v19 = vsel %vm2944_vm9, %v16841_v31, %v3470_v0  ;;  %v16844_v18 = vrot.slane %v16843_v58, 1  ;;  %v16846_v38 = vrot.slane %v16845_v60, 1  ;;  %v16850_v50 = vld [vmem:[#allocation17_spill] sm:$0xff] }
 0x377   : > { %v3486_v55 = vsel %vm2944_vm9, %v16842_v59, %v3484_v20  ;;  %v16847_v39 = vrot.slane %v16753_v15, 2  ;;  %v13181_v40 = vsel %vm3425_vm11, %v3367_v1, %v3415_v7  ;;  %v16849_v2 = vrot.slane %v16848_v29, 1  ;;  %v16854_v31 = vld [vmem:[#allocation29_spill] sm:$0xff] }
 0x378   : > { %v13162_v36 = vsel %vm2947_vm10, %v16844_v18, %v3472_v19  ;;  %v13167_v25 = vsel %vm2947_vm10, %v16846_v38, %v3486_v55  ;;  %v16851_v0 = vrot.slane %v16759_v4, 3  ;;  %v3390_v23 = vrot.slane %v13068_v41, 3  ;;  %9871 = vmatmul.mubr.msk.f32.gmra.mrb[42].mxu1 %vm784_vm3, %v13181_v40 }
 0x379   : > { %v3445_v24 = vsel %vm2944_vm9, %v16847_v39, %v3443_v28  ;;  %v10624_v22 = vpack.i.bf16 %v13167_v25, %v13162_v36  ;;  %v16852_v20 = vrot.slane %v16761_v48, 2  ;;  %v16853_v52 = vrot.slane %v12875_v44, 5 }
 0x37a   : > { %v13188_v8 = vsel %vm2947_vm10, %v16849_v2, %v3445_v24  ;;  %v3457_v13 = vsel %vm2941_vm8, %v16851_v0, %v16850_v50  ;;  %v3380_v21 = vrot.slane %v12929_v32, 1  ;;  %v3392_v4 = vrot.slane %v13111_v63, 2  ;;  %v16861_v0 = vld [vmem:[#allocation38_spill] sm:$0xff] }
 0x37b   : > { %v3459_v62 = vsel %vm2944_vm9, %v16852_v20, %v3457_v13  ;;  %v3373_v28 = vsel %vm2935_vm6, %v16853_v52, %v12879_v14  ;;  %10625 = vrot.lane.b32.xlu0 %v10624_v22, %s16479_s17  ;;  %v16855_v19 = vrot.slane %v16854_v31, 1  ;;  %v16856_v55 = vrot.slane %v12900_v47, 4  ;;  %v16863_v52 = vld [vmem:[#allocation34_spill] sm:$0xff] }
 0x37c   : > { %v10194_v58 = vpack.c.bf16 %v3782_v5, %v3781_v57  ;;  %v16857_v14 = vrot.slane %v12922_v43, 3  ;;  %v3387_v38 = vsel %vm2935_vm6, %v3386_v37, %v13048_v3  ;;  %v3416_v39 = vrot.slane %v13111_v63, 1  ;;  %v16859_v5 = vld [vmem:[#allocation28_spill] sm:$0xff] }
 0x37d   : > { %v13210_v59 = vsel %vm2947_vm10, %v16855_v19, %v3459_v62  ;;  %v3375_v1 = vsel %vm2938_vm7, %v16856_v55, %v3373_v28  ;;  %v16858_v24 = vrot.slane %v12943_v30, 2  ;;  %v3389_v57 = vsel %vm2938_vm7, %v3388_v12, %v3387_v38  ;;  %v10581_v62 = vpop.permute.xlu0 %10580  ;;  %v16865_v19 = vld [vmem:[#allocation39_spill] sm:$0xff]  ;;  %v3688_v63 = vld [vmem:[%s16374_s4 + $0x48] sm:$0xff] }
 0x37e   : > { %v10619_v18 = vpack.i.bf16 %v13210_v59, %v13188_v8  ;;  %v3377_v60 = vsel %vm2941_vm8, %v16857_v14, %v3375_v1  ;;  %10195 = vmatprep.subr.bf16.mxu0 %v10194_v58  ;;  %v16860_v2 = vrot.slane %v12066_v9, 4  ;;  %v16862_v13 = vrot.slane %v12234_v26, 4 }
 0x37f   : > { %v3379_v22 = vsel %vm2944_vm9, %v16858_v24, %v3377_v60  ;;  %v3618_v3 = vrot.slane %v13053_v54, 3  ;;  %10197 = vmatpush3.bf16.msra.mxu0 %v10194_v58  ;;  %v3391_v12 = vsel %vm2941_vm8, %v3390_v23, %v3389_v57  ;;  %v16864_v9 = vrot.slane %v16863_v52, 3  ;;  %v16869_v58 = vld [vmem:[#allocation30_spill] sm:$0xff]  ;;  %v16870_v60 = vld [vmem:[#allocation33_spill] sm:$0xff]  ;;  %v16878_v52 = vld [vmem:[#allocation51_spill] sm:$0xff] }
 0x380   : > { %v3522_v50 = vsel %vm2938_vm7, %v16860_v2, %v16859_v5  ;;  %v3536_v20 = vsel %vm2938_vm7, %v16862_v13, %v16861_v0  ;;  %10620 = vrot.lane.b32.xlu1 %v10619_v18, %s16479_s17  ;;  %v13240_v37 = vsel %vm2947_vm10, %v3380_v21, %v3379_v22  ;;  %v3393_v26 = vsel %vm2944_vm9, %v3392_v4, %v3391_v12  ;;  %v16867_v18 = vld [vmem:[#allocation48_spill] sm:$0xff]  ;;  %v16872_v22 = vld [vmem:[#allocation41_spill] sm:$0xff]  ;;  %v16874_v5 = vld [vmem:[#allocation50_spill] sm:$0xff] }
 0x381   : > { %v3524_v28 = vsel %vm2941_vm8, %v16864_v9, %v3522_v50  ;;  %9873 = vmatprep.mubr.msk.f32.mxu1 %vm784_vm3, %v13240_v37  ;;  %v16866_v55 = vrot.slane %v16865_v19, 2  ;;  %v16868_v21 = vrot.slane %v16867_v18, 3  ;;  %v16871_v23 = vrot.slane %v16870_v60, 4  ;;  %v16876_v0 = vld [vmem:[#allocation35_spill] sm:$0xff]  ;;  %v16883_v18 = vld [vmem:[#allocation45_spill] sm:$0xff] }
 0x382   : > { %v13262_v24 = vsel %vm3425_vm11, %v3393_v26, %v3416_v39  ;;  %v16873_v4 = vrot.slane %v16872_v22, 1  ;;  %v16875_v2 = vrot.slane %v16874_v5, 2  ;;  %v16877_v13 = vrot.slane %v16876_v0, 3  ;;  %v16880_v26 = vld [vmem:[#allocation36_spill] sm:$0xff] }
 0x383   : > { %v3526_v1 = vsel %vm2944_vm9, %v16866_v55, %v3524_v28  ;;  %v3538_v14 = vsel %vm2941_vm8, %v16868_v21, %v3536_v20  ;;  %v3495_v38 = vsel %vm2938_vm7, %v16871_v23, %v16869_v58  ;;  %v10583_v12 = vunpack.i.h.bf16 %v10581_v62  ;;  %9874 = vmatmul.mubr.msk.f32.gmra.mrb[44].mxu1 %vm784_vm3, %v13262_v24  ;;  %v16885_v23 = vld [vmem:[#allocation37_spill] sm:$0xff] }
 0x384   : > { %v13267_v57 = vsel %vm2947_vm10, %v16873_v4, %v3526_v1  ;;  %v3540_v50 = vsel %vm2944_vm9, %v16875_v2, %v3538_v14  ;;  %v3497_v20 = vsel %vm2941_vm8, %v16877_v13, %v3495_v38  ;;  %v16879_v9 = vrot.slane %v16878_v52, 1  ;;  %v16882_v1 = vld [vmem:[#allocation42_spill] sm:$0xff]  ;;  %9876 = vmatprep.mubr.msk.f32.mxu1 %vm784_vm3, %v13240_v37 }
 0x385   : > { %v16881_v19 = vrot.slane %v16880_v26, 2  ;;  %v16884_v21 = vrot.slane %v16883_v18, 4  ;;  %v10582_v58 = vunpack.i.l.bf16 %v10581_v62  ;;  %v16886_v38 = vrot.slane %v16885_v23, 1  ;;  %v16887_v4 = vld [vmem:[#allocation46_spill] sm:$0xff]  ;;  %v16894_v26 = vld [vmem:[#allocation13_spill] sm:$0xff] }
 0x386   : > { %v13280_v28 = vsel %vm2947_vm10, %v16879_v9, %v3540_v50  ;;  %v16888_v5 = vrot.slane %v16887_v4, 3  ;;  %v16889_v50 = vld [vmem:[#allocation47_spill] sm:$0xff]  ;;  %v16891_v62 = vld [vmem:[#allocation6_spill] sm:$0xff]  ;;  %vm6354_vm12 = vcmask 523712  }
 0x387   : > { %v3499_v55 = vsel %vm2944_vm9, %v16881_v19, %v3497_v20  ;;  %v3509_v14 = vsel %vm2938_vm7, %v16884_v21, %v16882_v1  ;;  %v10634_v60 = vpack.i.bf16 %v13280_v28, %v13267_v57  ;;  %v16890_v0 = vrot.slane %v16889_v50, 2  ;;  %v16892_v20 = vld [vmem:[#allocation7_spill] sm:$0xff]  ;;  %v16897_v21 = vld [vmem:[#allocation49_spill] sm:$0xff]  ;;  %9877 = vmatmul.mubr.msk.f32.gmra.mrb[46].mxu1 %vm784_vm3, %v13262_v24 }
 0x388   : > { %v13294_v22 = vsel %vm2947_vm10, %v16886_v38, %v3499_v55  ;;  %v3511_v2 = vsel %vm2941_vm8, %v16888_v5, %v3509_v14  ;;  %v16893_v52 = vrot.slane %v16892_v20, 5  ;;  %v3198_v19 = vrot.slane %v16894_v26, 1  ;;  %v16895_v55 = vld [vmem:[#allocation22_spill] sm:$0xff]  ;;  %v16901_v50 = vld [vmem:[#allocation25_spill] sm:$0xff] }
 0x389   : > { %v3513_v13 = vsel %vm2944_vm9, %v16890_v0, %v3511_v2  ;;  %v16896_v1 = vrot.slane %v16761_v48, 3  ;;  %10635 = vrot.lane.b32.xlu0 %v10634_v60, %s16479_s17  ;;  %v16898_v14 = vrot.slane %v16897_v21, 1  ;;  %v16899_v38 = vrot.slane %v16751_v53, 4 }
 0x38a   : > { %v3191_v9 = vsel %vm2935_vm6, %v16893_v52, %v16891_v62  ;;  %v16900_v5 = vrot.slane %v16854_v31, 2  ;;  %v16902_v48 = vrot.slane %v12519_v10, 3  ;;  %v16903_v62 = vrot.slane %v16753_v15, 3  ;;  %v16905_v52 = vld [vmem:[#allocation31_spill] sm:$0xff]  ;;  %v16908_v15 = vld [vmem:[#allocation58_spill] sm:$0xff] }
 0x38b   : > { %v3209_v18 = vsel %vm2941_vm8, %v16896_v1, %v16895_v55  ;;  %v13317_v23 = vsel %vm2947_vm10, %v16898_v14, %v3513_v13  ;;  %v3193_v4 = vsel %vm2938_vm7, %v16899_v38, %v3191_v9  ;;  %v16904_v53 = vrot.slane %v16854_v31, 1  ;;  %v16910_v31 = vld [vmem:[#allocation43_spill] sm:$0xff]  ;;  %v16911_v14 = vld [vmem:[#allocation60_spill] sm:$0xff] }
 0x38c   : > { %v3211_v2 = vsel %vm2944_vm9, %v16900_v5, %v3209_v18  ;;  %v3578_v0 = vsel %vm2941_vm8, %v16902_v48, %v16901_v50  ;;  %v10629_v60 = vpack.i.bf16 %v13317_v23, %v13294_v22  ;;  %v3195_v13 = vsel %vm2941_vm8, %v16903_v62, %v3193_v4  ;;  %v10591_v5 = vpop.permute.xlu1 %10590 }
 0x38d   : > { %v3426_v20 = vsel %vm3425_vm11, %v3211_v2, %v16904_v53  ;;  %v16906_v9 = vrot.slane %v16905_v52, 2  ;;  %v16907_v26 = vrot.slane %v16848_v29, 2  ;;  %v16909_v18 = vrot.slane %v16908_v15, 1  ;;  %v16913_v29 = vld [vmem:[#allocation61_spill] sm:$0xff]  ;;  %v16918_v53 = vld [vmem:[#allocation59_spill] sm:$0xff]  ;;  %v16919_v52 = vld [vmem:[#allocation62_spill] sm:$0xff] }
 0x38e   : > { %v3752_v1 = vsel %vm784_vm3, %v3426_v20, %v10583_v12  ;;  %v16912_v38 = vrot.slane %v16911_v14, 3  ;;  %10630 = vrot.lane.b32.xlu1 %v10629_v60, %s16479_s17  ;;  %v16914_v50 = vrot.slane %v16913_v29, 2  ;;  %v16915_v12 = vld [vmem:[#allocation52_spill] sm:$0xff]  ;;  %vm6347_vm11 = vcmask 458112  }
 0x38f   : > { %v3580_v10 = vsel %vm2944_vm9, %v16906_v9, %v3578_v0  ;;  %v3197_v55 = vsel %vm2944_vm9, %v16907_v26, %v3195_v13  ;;  %v16916_v0 = vld [vmem:[#allocation8_spill] sm:$0xff]  ;;  %v16920_v9 = vrot.slane %v16919_v52, 3  ;;  %v3620_v26 = vrot.slane %v13079_v6, 2  ;;  %v16929_v52 = vld [vmem:[#allocation67_spill] sm:$0xff] }
 0x390   : > { %v13349_v21 = vsel %vm2947_vm10, %v16909_v18, %v3580_v10  ;;  %v3592_v4 = vsel %vm2941_vm8, %v16912_v38, %v16910_v31  ;;  %v3199_v2 = vsel %vm2947_vm10, %v3198_v19, %v3197_v55  ;;  %v16917_v62 = vrot.slane %v16916_v0, 4  ;;  %v16921_v19 = vld [vmem:[#allocation66_spill] sm:$0xff]  ;;  %v16923_v38 = vld [vmem:[#allocation20_spill] sm:$0xff]  ;;  %v16927_v0 = vld [vmem:[#allocation27_spill] sm:$0xff] }
 0x391   : > { %v3594_v48 = vsel %vm2944_vm9, %v16914_v50, %v3592_v4  ;;  %v3565_v10 = vsel %vm2941_vm8, %v16920_v9, %v16918_v53  ;;  %v10654_v15 = vpack.i.bf16 %v3426_v20, %v3199_v2  ;;  %v3751_v60 = vsel %vm784_vm3, %v3199_v2, %v10582_v58  ;;  %v16925_v50 = vld [vmem:[#allocation63_spill] sm:$0xff] }
 0x392   : > { %v3549_v13 = vsel %vm2938_vm7, %v16917_v62, %v16915_v12  ;;  %v16922_v55 = vrot.slane %v16921_v19, 1  ;;  %v10588_v31 = vunpack.i.h.bf16 %v13070_v45  ;;  %9647 = vmatprep.mubr.f32.mxu0 %v3751_v60  ;;  %v16924_v4 = vrot.slane %v16923_v38, 3  ;;  %v16932_v19 = vld [vmem:[#allocation76_spill] sm:$0xff]  ;;  %v16934_v38 = vld [vmem:[#allocation83_spill] sm:$0xff]  ;;  %v16935_v45 = vld [vmem:[#allocation5_spill] sm:$0xff] }
 0x393   : > { %v16926_v6 = vrot.slane %v16925_v50, 2  ;;  %v10592_v58 = vunpack.i.l.bf16 %v10591_v5  ;;  %9648 = vmatmul.mubr.f32.vlgmr.msra.gmra.mrb[32].mxu0 %v3752_v1  ;;  %v16928_v62 = vrot.slane %v16927_v0, 2  ;;  %v16930_v9 = vrot.slane %v16929_v52, 1  ;;  %v16937_v50 = vld [vmem:[#allocation71_spill] sm:$0xff] }
 0x394   : > { %v13373_v18 = vsel %vm2947_vm10, %v16922_v55, %v3594_v48  ;;  %v3551_v29 = vsel %vm2941_vm8, %v16924_v4, %v3549_v13  ;;  %v3753_v48 = vsel %vm784_vm3, %v3199_v2, %v10587_v11  ;;  %v16931_v13 = vld [vmem:[#allocation77_spill] sm:$0xff]  ;;  %v16933_v55 = vrot.slane %v16932_v19, 5  ;;  %v10596_v4 = vpop.permute.xlu0 %10595 }
 0x395   : > { %v10644_v14 = vpack.i.bf16 %v13373_v18, %v13349_v21  ;;  %v3567_v12 = vsel %vm2944_vm9, %v16926_v6, %v3565_v10  ;;  %v3553_v53 = vsel %vm2944_vm9, %v16928_v62, %v3551_v29  ;;  %v3608_v1 = vrot.slane %v16934_v38, 1  ;;  %9650 = vmatprep.mubr.f32.mxu0 %v3753_v48 }
 0x396   : > { %v13393_v60 = vsel %vm2947_vm10, %v16930_v9, %v3567_v12  ;;  %v3601_v10 = vsel %vm2935_vm6, %v16933_v55, %v16931_v13  ;;  %v16936_v11 = vrot.slane %v16935_v45, 1  ;;  %v3619_v29 = vsel %vm2941_vm8, %v3618_v3, %v13074_v49  ;;  %v16938_v12 = vld [vmem:[#allocation78_spill] sm:$0xff]  ;;  %v3679_v3 = vld [vmem:[%s16374_s4] sm:$0xff]  ;;  %v16944_v55 = vld [vmem:[#allocation40_spill] sm:$0xff] }
 0x397   : > { %10645 = vrot.lane.b32.xlu0 %v10644_v14, %s16479_s17  ;;  %v4073_v6 = vrot.slane %v16937_v50, 7  ;;  %v16939_v0 = vrot.slane %v16938_v12, 4  ;;  %v3621_v14 = vsel %vm2944_vm9, %v3620_v26, %v3619_v29  ;;  %v10593_v52 = vunpack.i.h.bf16 %v10591_v5  ;;  %v3680_v26 = vld [vmem:[%s16374_s4 + $0x8] sm:$0xff]  ;;  %v16941_v5 = vld [vmem:[#allocation73_spill] sm:$0xff] }
 0x398   : > { %v13404_v2 = vsel %vm2947_vm10, %v16936_v11, %v3553_v53  ;;  %v3754_v53 = vsel %vm784_vm3, %v3426_v20, %v10588_v31  ;;  %v16940_v9 = vrot.slane %v12908_v17, 3  ;;  %v13424_v49 = vsel %vm2947_vm10, %v3415_v7, %v3621_v14  ;;  %v16942_v17 = vld [vmem:[#allocation15_spill] sm:$0xff]  ;;  %v16946_v45 = vld [vmem:[#allocation81_spill] sm:$0xff]  ;;  %v16949_v14 = vld [vmem:[#allocation54_spill] sm:$0xff] }
 0x399   : > { %v3603_v62 = vsel %vm2938_vm7, %v16939_v0, %v3601_v10  ;;  %v10639_v48 = vpack.i.bf16 %v13393_v60, %v13404_v2  ;;  %v4075_v13 = vrot.slane %v16941_v5, 6  ;;  %v10597_v20 = vunpack.i.l.bf16 %v10596_v4  ;;  %9651 = vmatmul.mubr.f32.gmra.mrb[34].mxu0 %v3754_v53  ;;  %v16945_v10 = vld [vmem:[#allocation53_spill] sm:$0xff]  ;;  %v16952_v5 = vld [vmem:[#allocation24_spill] sm:$0xff] }
 0x39a   : > { %v3605_v54 = vsel %vm2941_vm8, %v16940_v9, %v3603_v62  ;;  %v3755_v27 = vsel %vm784_vm3, %v16942_v17, %v10592_v58  ;;  %v16943_v7 = vrot.slane %v12927_v56, 2  ;;  %v10664_v38 = vpack.i.bf16 %v16945_v10, %v16944_v55  ;;  %v3681_v56 = vld [vmem:[%s16374_s4 + $0x10] sm:$0xff]  ;;  %v16948_v62 = vld [vmem:[#allocation26_spill] sm:$0xff] }
 0x39b   : > { %10640 = vrot.lane.b32.xlu1 %v10639_v48, %s16479_s17  ;;  %9653 = vmatprep.mubr.f32.mxu0 %v3755_v27  ;;  %v4087_v11 = vrot.slane %v16946_v45, 7  ;;  %v10198_v50 = vpack.c.bf16 %v3680_v26, %v3679_v3  ;;  %v4074_v58 = vsel %vm2950_vm5, %v4073_v6, %v12821_v61  ;;  %v10598_v0 = vunpack.i.h.bf16 %v10596_v4  ;;  %v16950_v53 = vld [vmem:[#allocation57_spill] sm:$0xff]  ;;  %v16951_v61 = vld [vmem:[#allocation75_spill] sm:$0xff]  ;;  %v16953_v4 = vld [vmem:[#allocation70_spill] sm:$0xff] }
 0x39c   : > { %v3607_v31 = vsel %vm2944_vm9, %v16943_v7, %v3605_v54  ;;  %10655 = vrot.lane.b32.xlu0 %v10654_v15, %s16479_s17  ;;  %v3682_v15 = vld [vmem:[%s16374_s4 + $0x18] sm:$0xff]  ;;  %v3756_v48 = vsel %vm784_vm3, %v16948_v62, %v10593_v52  ;;  %v10669_v9 = vpack.i.bf16 %v16950_v53, %v16949_v14  ;;  %v4076_v54 = vsel %vm2932_vm4, %v4075_v13, %v4074_v58  ;;  %v10606_v7 = vpop.permute.xlu0 %10605 }
 0x39d   : > { %v13441_v19 = vsel %vm2947_vm10, %v3608_v1, %v3607_v31  ;;  %v16947_v1 = vld [vmem:[#allocation82_spill] sm:$0xff]  ;;  %v4091_v3 = vrot.slane %v12962_v16, 5  ;;  %9654 = vmatmul.mubr.f32.gmra.mrb[36].mxu0 %v3756_v48  ;;  %v3757_v26 = vsel %vm784_vm3, %v16944_v55, %v10597_v20  ;;  %v4077_v6 = vrot.slane %v16951_v61, 5  ;;  %10199 = vmatprep.subr.bf16.mxu0 %v10198_v50 }
 0x39e   : > { %v10649_v29 = vpack.i.bf16 %v13424_v49, %v13441_v19  ;;  %v4089_v12 = vrot.slane %v16947_v1, 6  ;;  %v10674_v27 = vpack.i.bf16 %v16953_v4, %v16952_v5  ;;  %v4093_v52 = vrot.slane %v13042_v46, 4  ;;  %9656 = vmatprep.mubr.f32.mxu0 %v3757_v26  ;;  %10201 = vmatpush3.bf16.msra.mxu0 %v10198_v50 }
 0x39f   : > { %v10202_v13 = vpack.c.bf16 %v3682_v15, %v3681_v56  ;;  %v4079_v16 = vrot.slane %v12875_v44, 4  ;;  %v4088_v31 = vsel %vm2950_vm5, %v4087_v11, %v12929_v32  ;;  %v4095_v45 = vrot.slane %v13051_v35, 3  ;;  %v10601_v56 = vpop.permute.xlu1 %10600  ;;  %v3683_v32 = vld [vmem:[%s16374_s4 + $0x20] sm:$0xff]  ;;  %v3684_v44 = vld [vmem:[%s16374_s4 + $0x28] sm:$0xff] }
 0x3a0   : > { %10650 = vrot.lane.b32.xlu1 %v10649_v29, %s16479_s17  ;;  %10665 = vrot.lane.b32.xlu0 %v10664_v38, %s16479_s17  ;;  %v10659_v20 = vpack.i.bf16 %v16948_v62, %v16942_v17  ;;  %v4081_v55 = vrot.slane %v12900_v47, 3  ;;  %v4090_v46 = vsel %vm2932_vm4, %v4089_v12, %v4088_v31  ;;  %v4097_v29 = vrot.slane %v13068_v41, 2 }
 0x3a1   : > { %v3758_v38 = vsel %vm784_vm3, %v16945_v10, %v10598_v0  ;;  %v4092_v35 = vsel %vm2935_vm6, %v4091_v3, %v4090_v46  ;;  %v10603_v47 = vunpack.i.h.bf16 %v10601_v56  ;;  %v10602_v41 = vunpack.i.l.bf16 %v10601_v56  ;;  %10203 = vmatprep.subr.bf16.mxu0 %v10202_v13  ;;  %v13500_v0 = vpop.f32.mrb[34].mxu1  ;;  %v3690_v46 = vld [vmem:[%s16374_s4 + $0x58] sm:$0xff] }
 0x3a2   : > { %9657 = vmatmul.mubr.f32.gmra.mrb[38].mxu0 %v3758_v38  ;;  %v10607_v17 = vunpack.i.l.bf16 %v10606_v7  ;;  %v4078_v10 = vsel %vm2935_vm6, %v4077_v6, %v4076_v54  ;;  %v4083_v11 = vrot.slane %v12922_v43, 2  ;;  %v4085_v50 = vrot.slane %v12943_v30, 1  ;;  %v3685_v43 = vld [vmem:[%s16374_s4 + $0x30] sm:$0xff]  ;;  %v3686_v30 = vld [vmem:[%s16374_s4 + $0x38] sm:$0xff]  ;;  %v16954_v54 = vld [vmem:[#allocation84_spill] sm:$0xff] }
 0x3a3   : > { %v4094_v15 = vsel %vm2938_vm7, %v4093_v52, %v4092_v35  ;;  %v3759_v1 = vsel %vm784_vm3, %v16949_v14, %v10602_v41  ;;  %v3760_v12 = vsel %vm784_vm3, %v16950_v53, %v10603_v47  ;;  %v10206_v62 = vpack.c.bf16 %v3684_v44, %v3683_v32  ;;  %v13512_v53 = vpop.f32.mrb[35].mxu1  ;;  %10205 = vmatpush3.bf16.msra.mxu0 %v10202_v13  ;;  %v16956_v13 = vld [vmem:[#allocation74_spill] sm:$0xff]  ;;  %v3691_v32 = vld [vmem:[%s16374_s4 + $0x60] sm:$0xff]  ;;  %v3692_v44 = vld [vmem:[%s16374_s4 + $0x68] sm:$0xff] }
 0x3a4   : > { %10660 = vrot.lane.b32.xlu1 %v10659_v20, %s16479_s17  ;;  %10675 = vrot.lane.b32.xlu0 %v10674_v27, %s16479_s17  ;;  %v4096_v58 = vsel %vm2941_vm8, %v4095_v45, %v4094_v15  ;;  %v4080_v48 = vsel %vm2938_vm7, %v4079_v16, %v4078_v10  ;;  %v10684_v3 = vpack.i.bf16 %v13181_v40, %v16954_v54  ;;  %v10608_v26 = vunpack.i.h.bf16 %v10606_v7  ;;  %v3694_v35 = vld [vmem:[%s16374_s4 + $0x78] sm:$0xff]  ;;  %v4188_v41 = vld [vmem:[%s16374_s4 + $0x100] sm:$0xff] }
 0x3a5   : > { %v4098_v14 = vsel %vm2944_vm9, %v4097_v29, %v4096_v58  ;;  %9659 = vmatprep.mubr.f32.mxu0 %v3759_v1  ;;  %v4082_v61 = vsel %vm2941_vm8, %v4081_v55, %v4080_v48  ;;  %v3761_v27 = vsel %vm784_vm3, %v16952_v5, %v10607_v17  ;;  %v10210_v7 = vpack.c.bf16 %v3686_v30, %v3685_v43  ;;  %v3689_v55 = vld [vmem:[%s16374_s4 + $0x50] sm:$0xff]  ;;  %v4189_v17 = vld [vmem:[%s16374_s4 + $0x108] sm:$0xff] }
 0x3a6   : > { %v13519_v6 = vsel %vm2947_vm10, %v3416_v39, %v4098_v14  ;;  %9660 = vmatmul.mubr.f32.gmra.mrb[40].mxu0 %v3760_v12  ;;  %v4084_v52 = vsel %vm2944_vm9, %v4083_v11, %v4082_v61  ;;  %v16955_v39 = vld [vmem:[#allocation72_spill] sm:$0xff]  ;;  %10207 = vmatprep.subr.bf16.mxu0 %v10206_v62  ;;  %v3762_v45 = vsel %vm784_vm3, %v16953_v4, %v10608_v26  ;;  %v13550_v4 = vpop.f32.mrb[36].mxu1  ;;  %v4190_v61 = vld [vmem:[%s16374_s4 + $0x110] sm:$0xff] }
 0x3a7   : > { %9662 = vmatprep.mubr.f32.mxu0 %v3761_v27  ;;  %v10679_v16 = vpack.i.bf16 %v16956_v13, %v16955_v39  ;;  %v13534_v31 = vsel %vm2947_vm10, %v4085_v50, %v4084_v52  ;;  %10209 = vmatpush3.bf16.msra.mxu0 %v10206_v62  ;;  %v10689_v29 = vpack.i.bf16 %v13262_v24, %v13240_v37  ;;  %v13553_v38 = vpop.f32.mrb[37].mxu1  ;;  %v3693_v24 = vld [vmem:[%s16374_s4 + $0x70] sm:$0xff]  ;;  %v4191_v27 = vld [vmem:[%s16374_s4 + $0x118] sm:$0xff] }
 0x3a8   : > { %10670 = vrot.lane.b32.xlu1 %v10669_v9, %s16479_s17  ;;  %10685 = vrot.lane.b32.xlu0 %v10684_v3, %s16479_s17  ;;  %v3687_v9 = vld [vmem:[%s16374_s4 + $0x40] sm:$0xff]  ;;  %v10694_v5 = vpack.i.bf16 %v13519_v6, %v13534_v31  ;;  %v10218_v56 = vpack.c.bf16 %v3690_v46, %v3689_v55  ;;  %v10222_v37 = vpack.c.bf16 %v3692_v44, %v3691_v32  ;;  %v4194_v55 = vld [vmem:[%s16374_s4 + $0x130] sm:$0xff] }
 0x3a9   : > { %v10214_v20 = vpack.c.bf16 %v3688_v63, %v3687_v9  ;;  %10211 = vmatprep.subr.bf16.mxu0 %v10210_v7  ;;  %v10226_v47 = vpack.c.bf16 %v3694_v35, %v3693_v24  ;;  %v10230_v10 = vpack.c.bf16 %v4189_v17, %v4188_v41  ;;  %v10234_v9 = vpack.c.bf16 %v4191_v27, %v4190_v61  ;;  %v16958_v63 = vld [vmem:[#allocation18_spill] sm:$0xff]  ;;  %v16960_v41 = vld [vmem:[#allocation55_spill] sm:$0xff] }
 0x3aa   : > { %9663 = vmatmul.mubr.f32.gmra.mrb[42].mxu0 %v3762_v45  ;;  %v4195_v46 = vld [vmem:[%s16374_s4 + $0x138] sm:$0xff] }
 0x3ab   : > { %10213 = vmatpush3.bf16.msra.mxu0 %v10210_v7  ;;  %v16957_v7 = vld [vmem:[#allocation21_spill] sm:$0xff]  ;;  %v10242_v24 = vpack.c.bf16 %v4195_v46, %v4194_v55 }
 0x3ac   : > { %10680 = vrot.lane.b32.xlu1 %v10679_v16, %s16479_s17  ;;  %10695 = vrot.lane.b32.xlu0 %v10694_v5, %s16479_s17 }
 0x3ad   : > { %10215 = vmatprep.subr.bf16.mxu0 %v10214_v20 }
 0x3af   : > { %10217 = vmatpush3.bf16.msra.mxu0 %v10214_v20 }
 0x3b0   : > { %10690 = vrot.lane.b32.xlu1 %v10689_v29, %s16479_s17  ;;  %10219 = vmatprep.subr.bf16.mxu0 %v10218_v56 }
 0x3b3   : > { %10221 = vmatpush3.bf16.msra.mxu0 %v10218_v56  ;;  %v16959_v56 = vld [vmem:[#allocation56_spill] sm:$0xff] }
 0x3b4   : > { %10223 = vmatprep.subr.bf16.mxu0 %v10222_v37 }
 0x3b7   : > { %10225 = vmatpush3.bf16.msra.mxu0 %v10222_v37 }
 0x3b8   : > { %10227 = vmatprep.subr.bf16.mxu0 %v10226_v47 }
 0x3bb   : > { %10229 = vmatpush3.bf16.msra.mxu0 %v10226_v47 }
 0x3bc   : > { %10231 = vmatprep.subr.bf16.mxu0 %v10230_v10 }
 0x3e6   : > { %v10616_v11 = vpop.permute.xlu0 %10615 }
 0x3e7   : > { %v10611_v50 = vpop.permute.xlu1 %10610  ;;  %v10617_v1 = vunpack.i.l.bf16 %v10616_v11  ;;  %v10618_v43 = vunpack.i.h.bf16 %v10616_v11  ;;  %v4197_v11 = vld [vmem:[%s16374_s4 + $0x148] sm:$0xff] }
 0x3e8   : > { %v10613_v15 = vunpack.i.h.bf16 %v10611_v50  ;;  %v10612_v58 = vunpack.i.l.bf16 %v10611_v50 }
 0x3e9   : > { %v3765_v30 = vsel %vm784_vm3, %v16954_v54, %v10617_v1  ;;  %v3766_v26 = vsel %vm784_vm3, %v13181_v40, %v10618_v43  ;;  %v4192_v40 = vld [vmem:[%s16374_s4 + $0x120] sm:$0xff]  ;;  %v16962_v43 = vld [vmem:[#allocation32_spill] sm:$0xff] }
 0x3ea   : > { %v3763_v12 = vsel %vm784_vm3, %v16955_v39, %v10612_v58  ;;  %v3764_v62 = vsel %vm784_vm3, %v16956_v13, %v10613_v15  ;;  %v4193_v13 = vld [vmem:[%s16374_s4 + $0x128] sm:$0xff] }
 0x3eb   : > { %9665 = vmatprep.mubr.f32.mxu0 %v3763_v12  ;;  %v10238_v5 = vpack.c.bf16 %v4193_v13, %v4192_v40  ;;  %v16961_v15 = vld [vmem:[#allocation44_spill] sm:$0xff] }
 0x3ec   : > { %9666 = vmatmul.mubr.f32.gmra.mrb[44].mxu0 %v3764_v62  ;;  %v4201_v40 = vld [vmem:[%s16374_s4 + $0x168] sm:$0xff] }
 0x3ed   : > { %9668 = vmatprep.mubr.f32.mxu0 %v3765_v30  ;;  %v10626_v52 = vpop.permute.xlu0 %10625 }
 0x3ee   : > { %v10627_v16 = vunpack.i.l.bf16 %v10626_v52  ;;  %v10628_v45 = vunpack.i.h.bf16 %v10626_v52 }
 0x3f0   : > { %9669 = vmatmul.mubr.f32.gmra.mrb[46].mxu0 %v3766_v26  ;;  %v13605_v32 = vsel %vm784_vm3, %v16959_v56, %v10627_v16  ;;  %v13614_v17 = vsel %vm784_vm3, %v16960_v41, %v10628_v45  ;;  %v16963_v26 = vld [vmem:[#allocation16_spill] sm:$0xff]  ;;  %v16967_v41 = vld [vmem:[#allocation65_spill] sm:$0xff] }
 0x3f2   : > { %v10621_v48 = vpop.permute.xlu1 %10620 }
 0x3f3   : > { %v10623_v3 = vunpack.i.h.bf16 %v10621_v48  ;;  %v10622_v14 = vunpack.i.l.bf16 %v10621_v48  ;;  %v4198_v48 = vld [vmem:[%s16374_s4 + $0x150] sm:$0xff] }
 0x3f5   : > { %v3665_v54 = vsel %vm784_vm3, %v16957_v7, %v10622_v14  ;;  %v3666_v39 = vsel %vm784_vm3, %v16958_v63, %v10623_v3  ;;  %v4199_v3 = vld [vmem:[%s16374_s4 + $0x158] sm:$0xff] }
 0x3f6   : > { %9703 = vmatprep.mubr.f32.mxu0 %v3665_v54  ;;  %v10250_v52 = vpack.c.bf16 %v4199_v3, %v4198_v48 }
 0x3f7   : > { %9704 = vmatmul.mubr.f32.vlgmr.msra.gmra.mrb[32].mxu0 %v3666_v39 }
 0x3f8   : > { %10233 = vmatpush3.bf16.msra.mxu0 %v10230_v10  ;;  %9706 = vmatprep.mubr.f32.mxu0 %v3665_v54  ;;  %v4196_v10 = vld [vmem:[%s16374_s4 + $0x140] sm:$0xff] }
 0x3f9   : > { %10235 = vmatprep.subr.bf16.mxu0 %v10234_v9  ;;  %v10246_v12 = vpack.c.bf16 %v4197_v11, %v4196_v10 }
 0x3fb   : > { %9707 = vmatmul.mubr.f32.gmra.mrb[34].mxu0 %v3666_v39  ;;  %v10636_v44 = vpop.permute.xlu0 %10635  ;;  %v13608_v37 = vpop.f32.mrb[38].mxu1  ;;  %v4200_v39 = vld [vmem:[%s16374_s4 + $0x160] sm:$0xff] }
 0x3fc   : > { %10237 = vmatpush3.bf16.msra.mxu0 %v10234_v9  ;;  %9709 = vmatprep.mubr.f32.mxu0 %v13605_v32  ;;  %v13610_v35 = vpop.f32.mrb[39].mxu1  ;;  %v10637_v50 = vunpack.i.l.bf16 %v10636_v44  ;;  %v10638_v62 = vunpack.i.h.bf16 %v10636_v44  ;;  %v16964_v9 = vld [vmem:[#allocation14_spill] sm:$0xff]  ;;  %v10254_v55 = vpack.c.bf16 %v4201_v40, %v4200_v39  ;;  %v4202_v44 = vld [vmem:[%s16374_s4 + $0x170] sm:$0xff] }
 0x3fd   : > { %10239 = vmatprep.subr.bf16.mxu0 %v10238_v5 }
 0x3fe   : > { %v13641_v61 = vsel %vm784_vm3, %v16963_v26, %v10637_v50  ;;  %v13648_v63 = vsel %vm784_vm3, %v16964_v9, %v10638_v62  ;;  %v4373_v62 = vld [vmem:[%s16374_s4 + $0x180] sm:$0xff] }
 0x3ff   : > { %9710 = vmatmul.mubr.f32.gmra.mrb[36].mxu0 %v13614_v17 }
 0x400   : > { %v10631_v20 = vpop.permute.xlu1 %10630  ;;  %10241 = vmatpush3.bf16.msra.mxu0 %v10238_v5  ;;  %v16965_v5 = vld [vmem:[#allocation69_spill] sm:$0xff] }
 0x401   : > { %v10632_v29 = vunpack.i.l.bf16 %v10631_v20  ;;  %v10633_v47 = vunpack.i.h.bf16 %v10631_v20  ;;  %10243 = vmatprep.subr.bf16.mxu0 %v10242_v24 }
 0x403   : > { %v13625_v58 = vsel %vm784_vm3, %v16961_v15, %v10632_v29  ;;  %v13630_v30 = vsel %vm784_vm3, %v16962_v43, %v10633_v47  ;;  %v16966_v29 = vld [vmem:[#allocation68_spill] sm:$0xff] }
 0x404   : > { %9712 = vmatprep.mubr.f32.mxu0 %v13625_v58  ;;  %10245 = vmatpush3.bf16.msra.mxu0 %v10242_v24  ;;  %v4203_v24 = vld [vmem:[%s16374_s4 + $0x178] sm:$0xff]  ;;  %v4374_v43 = vld [vmem:[%s16374_s4 + $0x188] sm:$0xff] }
 0x405   : > { %9713 = vmatmul.mubr.f32.gmra.mrb[38].mxu0 %v13630_v30  ;;  %10247 = vmatprep.subr.bf16.mxu0 %v10246_v12  ;;  %v13644_v7 = vpop.f32.mrb[40].mxu1  ;;  %v10258_v50 = vpack.c.bf16 %v4203_v24, %v4202_v44  ;;  %v10262_v26 = vpack.c.bf16 %v4374_v43, %v4373_v62  ;;  %v4381_v62 = vld [vmem:[%s16374_s4 + $0x1c0] sm:$0xff]  ;;  %v4382_v43 = vld [vmem:[%s16374_s4 + $0x1c8] sm:$0xff] }
 0x406   : > { %9715 = vmatprep.mubr.f32.mxu0 %v13641_v61  ;;  %v13656_v13 = vpop.f32.mrb[41].mxu1 }
 0x408   : > { %10249 = vmatpush3.bf16.msra.mxu0 %v10246_v12 }
 0x409   : > { %v10646_v27 = vpop.permute.xlu0 %10645  ;;  %9716 = vmatmul.mubr.f32.gmra.mrb[40].mxu0 %v13648_v63  ;;  %10251 = vmatprep.subr.bf16.mxu0 %v10250_v52 }
 0x40a   : > { %v10647_v16 = vunpack.i.l.bf16 %v10646_v27  ;;  %v10648_v46 = vunpack.i.h.bf16 %v10646_v27 }
 0x40c   : > { %v13677_v10 = vsel %vm784_vm3, %v16967_v41, %v10647_v16  ;;  %10253 = vmatpush3.bf16.msra.mxu0 %v10250_v52  ;;  %v4380_v41 = vld [vmem:[%s16374_s4 + $0x1b8] sm:$0xff] }
 0x40d   : > { %v10641_v1 = vpop.permute.xlu1 %10640  ;;  %10255 = vmatprep.subr.bf16.mxu0 %v10254_v55 }
 0x40e   : > { %v10642_v14 = vunpack.i.l.bf16 %v10641_v1  ;;  %v10643_v54 = vunpack.i.h.bf16 %v10641_v1  ;;  %v10656_v11 = vpop.permute.xlu0 %10655  ;;  %v16968_v1 = vld [vmem:[#allocation64_spill] sm:$0xff] }
 0x40f   : > { %v13682_v12 = vsel %vm784_vm3, %v16968_v1, %v10648_v46  ;;  %v10657_v48 = vunpack.i.l.bf16 %v10656_v11  ;;  %v10658_v27 = vunpack.i.h.bf16 %v10656_v11 }
 0x410   : > { %v13661_v45 = vsel %vm784_vm3, %v16965_v5, %v10642_v14  ;;  %v13666_v56 = vsel %vm784_vm3, %v16966_v29, %v10643_v54  ;;  %10257 = vmatpush3.bf16.msra.mxu0 %v10254_v55  ;;  %v4375_v54 = vld [vmem:[%s16374_s4 + $0x190] sm:$0xff]  ;;  %v4378_v55 = vld [vmem:[%s16374_s4 + $0x1a8] sm:$0xff] }
 0x411   : > { %9718 = vmatprep.mubr.f32.mxu0 %v13661_v45  ;;  %10259 = vmatprep.subr.bf16.mxu0 %v10258_v50  ;;  %v4172_v39 = vsel %vm784_vm3, %v13188_v8, %v10657_v48  ;;  %v4173_v5 = vsel %vm784_vm3, %v13210_v59, %v10658_v27 }
 0x412   : > { %v10651_v20 = vpop.permute.xlu1 %10650  ;;  %9719 = vmatmul.mubr.f32.gmra.mrb[42].mxu0 %v13666_v56  ;;  %v10666_v40 = vpop.permute.xlu0 %10665 }
 0x413   : > { %v10652_v47 = vunpack.i.l.bf16 %v10651_v20  ;;  %9721 = vmatprep.mubr.f32.mxu0 %v13677_v10  ;;  %v10653_v15 = vunpack.i.h.bf16 %v10651_v20  ;;  %v4377_v20 = vld [vmem:[%s16374_s4 + $0x1a0] sm:$0xff]  ;;  %v10667_v46 = vunpack.i.l.bf16 %v10666_v40  ;;  %v10668_v24 = vunpack.i.h.bf16 %v10666_v40 }
 0x414   : > { %10261 = vmatpush3.bf16.msra.mxu0 %v10258_v50  ;;  %v10270_v44 = vpack.c.bf16 %v4378_v55, %v4377_v20 }
 0x415   : > { %v13693_v3 = vsel %vm784_vm3, %v13129_v51, %v10652_v47  ;;  %v13698_v52 = vsel %vm784_vm3, %v13125_v33, %v10653_v15  ;;  %v4376_v51 = vld [vmem:[%s16374_s4 + $0x198] sm:$0xff]  ;;  %10263 = vmatprep.subr.bf16.mxu0 %v10262_v26  ;;  %v4379_v47 = vld [vmem:[%s16374_s4 + $0x1b0] sm:$0xff] }
 0x416   : > { %9722 = vmatmul.mubr.f32.gmra.mrb[44].mxu0 %v13682_v12  ;;  %v10661_v14 = vpop.permute.xlu1 %10660  ;;  %v10266_v33 = vpack.c.bf16 %v4376_v51, %v4375_v54  ;;  %v10676_v50 = vpop.permute.xlu0 %10675  ;;  %v10274_v15 = vpack.c.bf16 %v4380_v41, %v4379_v47  ;;  %v4383_v54 = vld [vmem:[%s16374_s4 + $0x1d0] sm:$0xff]  ;;  %v4384_v51 = vld [vmem:[%s16374_s4 + $0x1d8] sm:$0xff] }
 0x417   : > { %9724 = vmatprep.mubr.f32.mxu0 %v13693_v3  ;;  %v10662_v9 = vunpack.i.l.bf16 %v10661_v14  ;;  %v10663_v16 = vunpack.i.h.bf16 %v10661_v14  ;;  %v10677_v48 = vunpack.i.l.bf16 %v10676_v50  ;;  %v10678_v27 = vunpack.i.h.bf16 %v10676_v50 }
 0x418   : > { %v10282_v40 = vpack.c.bf16 %v4384_v51, %v4383_v54  ;;  %v16969_v54 = vld [vmem:[#allocation79_spill] sm:$0xff] }
 0x419   : > { %v4174_v8 = vsel %vm784_vm3, %v13162_v36, %v10662_v9  ;;  %v4175_v59 = vsel %vm784_vm3, %v13167_v25, %v10663_v16  ;;  %v4176_v36 = vsel %vm784_vm3, %v13294_v22, %v10667_v46  ;;  %v4177_v25 = vsel %vm784_vm3, %v13317_v23, %v10668_v24  ;;  %v4385_v16 = vld [vmem:[%s16374_s4 + $0x1e0] sm:$0xff] }
 0x41a   : > { %9725 = vmatmul.mubr.f32.gmra.mrb[46].mxu0 %v13698_v52  ;;  %v10671_v29 = vpop.permute.xlu1 %10670 }
 0x41b   : > { %9759 = vmatprep.mubr.f32.mxu0 %v4172_v39  ;;  %v10672_v11 = vunpack.i.l.bf16 %v10671_v29  ;;  %v10673_v1 = vunpack.i.h.bf16 %v10671_v29  ;;  %v10686_v39 = vpop.permute.xlu0 %10685  ;;  %v4387_v29 = vld [vmem:[%s16374_s4 + $0x1f0] sm:$0xff] }
 0x41c   : > { %v10687_v20 = vunpack.i.l.bf16 %v10686_v39 }
 0x41d   : > { %v4178_v22 = vsel %vm784_vm3, %v13267_v57, %v10672_v11  ;;  %v4179_v23 = vsel %vm784_vm3, %v13280_v28, %v10673_v1  ;;  %v4180_v57 = vsel %vm784_vm3, %v13404_v2, %v10677_v48  ;;  %v4181_v28 = vsel %vm784_vm3, %v13393_v60, %v10678_v27  ;;  %v5109_v1 = vld [vmem:[%s16377_s7 + $0xb8] sm:$0xff]  ;;  %v13842_v27 = vld [vmem:[%s16375_s5] ss:$0 sm:$0xff] }
 0x41e   : > { %9760 = vmatmul.mubr.f32.vlgmr.msra.gmra.mrb[32].mxu0 %v4173_v5  ;;  %v10681_v14 = vpop.permute.xlu1 %10680  ;;  %v4386_v5 = vld [vmem:[%s16374_s4 + $0x1e8] sm:$0xff] }
 0x41f   : > { %10265 = vmatpush3.bf16.msra.mxu0 %v10262_v26  ;;  %9762 = vmatprep.mubr.f32.mxu0 %v4174_v8  ;;  %v10278_v26 = vpack.c.bf16 %v4382_v43, %v4381_v62  ;;  %v10682_v9 = vunpack.i.l.bf16 %v10681_v14  ;;  %v10286_v46 = vpack.c.bf16 %v4386_v5, %v4385_v16  ;;  %v10688_v8 = vunpack.i.h.bf16 %v10686_v39  ;;  %v5110_v62 = vld [vmem:[%s16377_s7 + $0xc0] sm:$0xff]  ;;  %v5111_v43 = vld [vmem:[%s16377_s7 + $0xc8] sm:$0xff] }
 0x420   : > { %10267 = vmatprep.subr.bf16.mxu0 %v10266_v33  ;;  %v10326_v48 = vpack.c.bf16 %v5111_v43, %v5110_v62  ;;  %v16970_v39 = vld [vmem:[#allocation80_spill] sm:$0xff] }
 0x421   : > { %v4182_v2 = vsel %vm784_vm3, %v13349_v21, %v10682_v9  ;;  %v4184_v21 = vsel %vm784_vm3, %v13441_v19, %v10687_v20 }
 0x422   : > { %9763 = vmatmul.mubr.f32.gmra.mrb[34].mxu0 %v4175_v59  ;;  %v10691_v55 = vpop.permute.xlu1 %10690 }
 0x423   : > { %10269 = vmatpush3.bf16.msra.mxu0 %v10266_v33  ;;  %9765 = vmatprep.mubr.f32.mxu0 %v4176_v36  ;;  %v10683_v33 = vunpack.i.h.bf16 %v10681_v14  ;;  %v10692_v24 = vunpack.i.l.bf16 %v10691_v55  ;;  %v10693_v47 = vunpack.i.h.bf16 %v10691_v55  ;;  %v5107_v36 = vld [vmem:[%s16377_s7 + $0xa8] sm:$0xff]  ;;  %v5113_v14 = vld [vmem:[%s16377_s7 + $0xd8] sm:$0xff] }
 0x424   : > { %10271 = vmatprep.subr.bf16.mxu0 %v10270_v44 }
 0x425   : > { %v4183_v60 = vsel %vm784_vm3, %v13373_v18, %v10683_v33  ;;  %v4185_v18 = vsel %vm784_vm3, %v13424_v49, %v10688_v8  ;;  %v4186_v41 = vsel %vm784_vm3, %v13534_v31, %v10692_v24  ;;  %v4187_v11 = vsel %vm784_vm3, %v13519_v6, %v10693_v47  ;;  %v10696_v49 = vpop.permute.xlu0 %10695 }
 0x426   : > { %9766 = vmatmul.mubr.f32.gmra.mrb[36].mxu0 %v4177_v25  ;;  %v10697_v19 = vunpack.i.l.bf16 %v10696_v49  ;;  %v10698_v6 = vunpack.i.h.bf16 %v10696_v49 }
 0x427   : > { %10273 = vmatpush3.bf16.msra.mxu0 %v10270_v44  ;;  %9768 = vmatprep.mubr.f32.mxu0 %v4178_v22  ;;  %v4388_v44 = vld [vmem:[%s16374_s4 + $0x1f8] sm:$0xff]  ;;  %v5112_v22 = vld [vmem:[%s16377_s7 + $0xd0] sm:$0xff] }
 0x428   : > { %10275 = vmatprep.subr.bf16.mxu0 %v10274_v15  ;;  %v10290_v59 = vpack.c.bf16 %v4388_v44, %v4387_v29  ;;  %v4371_v31 = vsel %vm784_vm3, %v13118_v42, %v10697_v19  ;;  %v5102_v42 = vld [vmem:[%s16377_s7 + $0x80] sm:$0xff]  ;;  %v16483_v29 = vlaneseq }
 0x42a   : > { %9769 = vmatmul.mubr.f32.gmra.mrb[38].mxu0 %v4179_v23 }
 0x42b   : > { %10277 = vmatpush3.bf16.msra.mxu0 %v10274_v15  ;;  %9771 = vmatprep.mubr.f32.mxu0 %v4180_v57  ;;  %v5108_v15 = vld [vmem:[%s16377_s7 + $0xb0] sm:$0xff]  ;;  %v13848_v57 = vld [vmem:[%s16376_s6] ss:$0 sm:$0xff] }
 0x42c   : > { %10279 = vmatprep.subr.bf16.mxu0 %v10278_v26  ;;  %v10322_v25 = vpack.c.bf16 %v5109_v1, %v5108_v15 }
 0x42e   : > { %9772 = vmatmul.mubr.f32.gmra.mrb[40].mxu0 %v4181_v28 }
 0x42f   : > { %10281 = vmatpush3.bf16.msra.mxu0 %v10278_v26  ;;  %9774 = vmatprep.mubr.f32.mxu0 %v4182_v2  ;;  %v10330_v26 = vpack.c.bf16 %v5113_v14, %v5112_v22 }
 0x430   : > { %10283 = vmatprep.subr.bf16.mxu0 %v10282_v40 }
 0x432   : > { %9775 = vmatmul.mubr.f32.gmra.mrb[42].mxu0 %v4183_v60 }
 0x433   : > { %10285 = vmatpush3.bf16.msra.mxu0 %v10282_v40  ;;  %9777 = vmatprep.mubr.f32.mxu0 %v4184_v21 }
 0x434   : > { %10287 = vmatprep.subr.bf16.mxu0 %v10286_v46 }
 0x436   : > { %9778 = vmatmul.mubr.f32.gmra.mrb[44].mxu0 %v4185_v18 }
 0x437   : > { %10289 = vmatpush3.bf16.msra.mxu0 %v10286_v46  ;;  %9780 = vmatprep.mubr.f32.mxu0 %v4186_v41 }
 0x438   : > { %10291 = vmatprep.subr.bf16.mxu0 %v10290_v59 }
 0x43a   : > { %9781 = vmatmul.mubr.f32.gmra.mrb[46].mxu0 %v4187_v11 }
 0x43b   : > { %10293 = vmatpush3.bf16.msra.mxu0 %v10290_v59  ;;  %9815 = vmatprep.mubr.f32.mxu0 %v13605_v32  ;;  %v10790_v59 = vmov 1983009808  }
 0x43c   : > { %v13859_v47 = vunpack.c.l.s4 %v10790_v59 }
 0x43e   : > { %9816 = vmatmul.mubr.f32.vlgmr.msra.gmra.mrb[32].mxu0 %v13614_v17  ;;  %v4372_v17 = vsel %vm784_vm3, %v13114_v34, %v10698_v6  ;;  %v5103_v34 = vld [vmem:[%s16377_s7 + $0x88] sm:$0xff] }
 0x43f   : > { %9818 = vmatprep.mubr.f32.mxu0 %v13625_v58 }
 0x442   : > { %9819 = vmatmul.mubr.f32.gmra.mrb[34].mxu0 %v13630_v30 }
 0x443   : > { %9821 = vmatprep.mubr.f32.mxu0 %v13641_v61 }
 0x446   : > { %9822 = vmatmul.mubr.f32.gmra.mrb[36].mxu0 %v13648_v63 }
 0x447   : > { %9824 = vmatprep.mubr.f32.mxu0 %v13661_v45 }
 0x44a   : > { %9825 = vmatmul.mubr.f32.gmra.mrb[38].mxu0 %v13666_v56  ;;  %v5104_v56 = vld [vmem:[%s16377_s7 + $0x90] sm:$0xff] }
 0x44b   : > { %9827 = vmatprep.mubr.f32.mxu0 %v13677_v10  ;;  %v13789_v32 = vpop.f32.mrb[42].mxu1  ;;  %v10310_v10 = vpack.c.bf16 %v5103_v34, %v5102_v42  ;;  %v13869_v34 = vshrl.u32 %v16483_v29, 7 }
 0x44c   : > { %v13793_v58 = vpop.f32.mrb[43].mxu1 }
 0x44d   : > { %10311 = vmatprep.subr.bf16.mxu1 %v10310_v10 }
 0x44e   : > { %9828 = vmatmul.mubr.f32.gmra.mrb[40].mxu0 %v13682_v12  ;;  %v5105_v12 = vld [vmem:[%s16377_s7 + $0x98] sm:$0xff]  ;;  %10313 = vmatpush3.bf16.msra.mxu1 %v10310_v10 }
 0x44f   : > { %9830 = vmatprep.mubr.f32.mxu0 %v13693_v3  ;;  %v10314_v3 = vpack.c.bf16 %v5105_v12, %v5104_v56 }
 0x451   : > { %10315 = vmatprep.subr.bf16.mxu1 %v10314_v3 }
 0x452   : > { %9831 = vmatmul.mubr.f32.gmra.mrb[42].mxu0 %v13698_v52  ;;  %v5106_v52 = vld [vmem:[%s16377_s7 + $0xa0] sm:$0xff]  ;;  %10317 = vmatpush3.bf16.msra.mxu1 %v10314_v3  ;;  %v4932_v3 = vunpack.c.0.s8 %v13859_v47 }
 0x453   : > { %9833 = vmatprep.mubr.f32.mxu0 %v4371_v31  ;;  %v10318_v50 = vpack.c.bf16 %v5107_v36, %v5106_v52 }
 0x455   : > { %10319 = vmatprep.subr.bf16.mxu1 %v10318_v50 }
 0x456   : > { %9834 = vmatmul.mubr.f32.gmra.mrb[44].mxu0 %v4372_v17  ;;  %v13795_v30 = vpop.f32.mrb[44].mxu1  ;;  %10321 = vmatpush3.bf16.msra.mxu1 %v10318_v50 }
 0x457   : > { %9836 = vmatprep.mubr.f32.mxu0 %v4371_v31  ;;  %v13797_v61 = vpop.f32.mrb[45].mxu1  ;;  %10323 = vmatprep.subr.bf16.mxu1 %v10322_v25 }
 0x45a   : > { %9837 = vmatmul.mubr.f32.gmra.mrb[46].mxu0 %v4372_v17  ;;  %v13799_v63 = vpop.f32.mrb[46].mxu1  ;;  %10325 = vmatpush3.bf16.msra.mxu1 %v10322_v25 }
 0x45b   : > { %v13801_v45 = vpop.f32.mrb[47].mxu1  ;;  %10327 = vmatprep.subr.bf16.mxu1 %v10326_v48 }
 0x45e   : > { %10329 = vmatpush3.bf16.msra.mxu1 %v10326_v48 }
 0x45f   : > { %10331 = vmatprep.subr.bf16.mxu1 %v10330_v26 }
 0x462   : > { %10333 = vmatpush3.bf16.msra.mxu1 %v10330_v26 }
 0x511   : > { %v9817_v23 = vpop.f32.mrb[32].mxu0 }
 0x512   : > { %v10454_v51 = vadd.f32 %v16969_v54, %v9817_v23  ;;  %v4455_v9 = vpop.f32.mrb[33].mxu0 }
 0x513   : > { %v10455_v40 = vadd.f32 %v16970_v39, %v4455_v9 }
 0x514   : > { %v4754_v33 = vmul.f32 %v10454_v51, %v13842_v27 }
 0x515   : > { %v4753_v28 = vmul.f32 %v10455_v40, %v13842_v27  ;;  %v9820_v16 = vpop.f32.mrb[34].mxu0 }
 0x516   : > { %v4776_v5 = vadd.f32 %v13848_v57, %v4754_v33  ;;  %v10456_v20 = vadd.f32 %v13500_v0, %v9820_v16  ;;  %v4465_v2 = vpop.f32.mrb[35].mxu0 }
 0x517   : > { %v4775_v55 = vadd.f32 %v13848_v57, %v4753_v28  ;;  %v10457_v46 = vadd.f32 %v13512_v53, %v4465_v2 }
 0x518   : > { %v4792_v8 = vmax.f32 %v4776_v5, 0.0  ;;  %v4756_v60 = vmul.f32 %v10456_v20, %v13842_v27 }
 0x519   : > { %v4791_v44 = vmax.f32 %v4775_v55, 0.0  ;;  %v4755_v24 = vmul.f32 %v10457_v46, %v13842_v27  ;;  %v9823_v21 = vpop.f32.mrb[36].mxu0 }
 0x51a   : > { %v4814_v18 = vsel %vm784_vm3, %v4792_v8, -inf  ;;  %v4778_v0 = vadd.f32 %v13848_v57, %v4756_v60  ;;  %v10458_v41 = vadd.f32 %v13550_v4, %v9823_v21  ;;  %v4475_v11 = vpop.f32.mrb[37].mxu0 }
 0x51b   : > { %v4815_v49 = vrot.slane %v4814_v18, 4  ;;  %v4807_v53 = vsel %vm784_vm3, %v4791_v44, -inf  ;;  %v4777_v19 = vadd.f32 %v13848_v57, %v4755_v24  ;;  %v10459_v6 = vadd.f32 %v13553_v38, %v4475_v11 }
 0x51c   : > { %v4808_v31 = vrot.slane %v4807_v53, 4  ;;  %v4794_v17 = vmax.f32 %v4778_v0, 0.0  ;;  %v4758_v42 = vmul.f32 %v10458_v41, %v13842_v27 }
 0x51d   : > { %v4816_v56 = vmax.f32 %v4814_v18, %v4815_v49  ;;  %v4793_v10 = vmax.f32 %v4777_v19, 0.0  ;;  %v4757_v12 = vmul.f32 %v10459_v6, %v13842_v27  ;;  %v9826_v4 = vpop.f32.mrb[38].mxu0 }
 0x51e   : > { %v4809_v52 = vmax.f32 %v4807_v53, %v4808_v31  ;;  %v4828_v36 = vsel %vm784_vm3, %v4794_v17, -inf  ;;  %v4780_v50 = vadd.f32 %v13848_v57, %v4758_v42  ;;  %v10460_v38 = vadd.f32 %v13608_v37, %v9826_v4  ;;  %v4485_v15 = vpop.f32.mrb[39].mxu0 }
 0x51f   : > { %v4817_v1 = vrot.slane %v4816_v56, 2  ;;  %v4829_v25 = vrot.slane %v4828_v36, 4  ;;  %v4821_v62 = vsel %vm784_vm3, %v4793_v10, -inf  ;;  %v4779_v43 = vadd.f32 %v13848_v57, %v4757_v12 }
 0x520   : > { %v4810_v48 = vrot.slane %v4809_v52, 2  ;;  %v4822_v22 = vrot.slane %v4821_v62, 4  ;;  %v4796_v14 = vmax.f32 %v4780_v50, 0.0  ;;  %v4760_v26 = vmul.f32 %v10460_v38, %v13842_v27 }
 0x521   : > { %v4818_v23 = vmax.f32 %v4816_v56, %v4817_v1  ;;  %v4830_v54 = vmax.f32 %v4828_v36, %v4829_v25  ;;  %v4795_v51 = vmax.f32 %v4779_v43, 0.0  ;;  %v10461_v9 = vadd.f32 %v13610_v35, %v4485_v15  ;;  %v9829_v39 = vpop.f32.mrb[40].mxu0 }
 0x522   : > { %v4811_v40 = vmax.f32 %v4809_v52, %v4810_v48  ;;  %v4823_v37 = vmax.f32 %v4821_v62, %v4822_v22  ;;  %v4842_v33 = vsel %vm784_vm3, %v4796_v14, -inf  ;;  %v4782_v28 = vadd.f32 %v13848_v57, %v4760_v26  ;;  %v4495_v16 = vpop.f32.mrb[41].mxu0 }
 0x523   : > { %v4819_v5 = vrot.slane %v4818_v23, 1  ;;  %v4831_v20 = vrot.slane %v4830_v54, 2  ;;  %v4843_v2 = vrot.slane %v4842_v33, 4  ;;  %v4835_v55 = vsel %vm784_vm3, %v4795_v51, -inf }
 0x524   : > { %v4812_v46 = vrot.slane %v4811_v40, 1  ;;  %v4824_v8 = vrot.slane %v4823_v37, 2  ;;  %v4836_v60 = vrot.slane %v4835_v55, 4  ;;  %v4798_v44 = vmax.f32 %v4782_v28, 0.0 }
 0x525   : > { %v13883_v24 = vmax.f32 %v4818_v23, %v4819_v5  ;;  %v4832_v35 = vmax.f32 %v4830_v54, %v4831_v20  ;;  %v4844_v21 = vmax.f32 %v4842_v33, %v4843_v2  ;;  %v4759_v59 = vmul.f32 %v10461_v9, %v13842_v27  ;;  %v9832_v47 = vpop.f32.mrb[42].mxu0 }
 0x526   : > { %v13886_v18 = vmax.f32 %v4811_v40, %v4812_v46  ;;  %v4825_v0 = vmax.f32 %v4823_v37, %v4824_v8  ;;  %v4837_v41 = vmax.f32 %v4835_v55, %v4836_v60  ;;  %v4856_v11 = vsel %vm784_vm3, %v4798_v44, -inf  ;;  %v4505_v49 = vpop.f32.mrb[43].mxu0 }
 0x527   : > { %v4971_v53 = vrot.slane %v13883_v24, 7  ;;  %v4833_v19 = vrot.slane %v4832_v35, 1  ;;  %v4845_v6 = vrot.slane %v4844_v21, 2  ;;  %v13891_v31 = vsub.s32 %v4932_v3, %v13869_v34 }
 0x528   : > { %v4975_v17 = vrot.slane %v13883_v24, 5  ;;  %v4826_v42 = vrot.slane %v4825_v0, 1  ;;  %v4838_v56 = vrot.slane %v4837_v41, 2  ;;  %v4857_v10 = vrot.slane %v4856_v11, 4 }
 0x529   : > { %v13896_v12 = vsel %vm2950_vm5, %v4971_v53, %v13886_v18  ;;  %v13898_v4 = vmax.f32 %v4832_v35, %v4833_v19  ;;  %v4846_v52 = vmax.f32 %v4844_v21, %v4845_v6  ;;  %v4781_v36 = vadd.f32 %v13848_v57, %v4759_v59  ;;  %v9835_v50 = vpop.f32.mrb[44].mxu0 }
 0x52a   : > { %v4973_v38 = vrot.slane %v13886_v18, 6  ;;  %v4839_v15 = vmax.f32 %v4837_v41, %v4838_v56  ;;  %v4858_v3 = vmax.f32 %v4856_v11, %v4857_v10  ;;  %v10462_v1 = vadd.f32 %v13644_v7, %v9829_v39  ;;  %v4515_v25 = vpop.f32.mrb[45].mxu0 }
 0x52b   : > { %v13903_v62 = vmax.f32 %v4825_v0, %v4826_v42  ;;  %v4847_v43 = vrot.slane %v4846_v52, 1  ;;  %v4797_v48 = vmax.f32 %v4781_v36, 0.0  ;;  %v10463_v22 = vadd.f32 %v13656_v13, %v4495_v16 }
 0x52c   : > { %v5444_v14 = vrot.slane %v13898_v4, 7  ;;  %v4859_v26 = vrot.slane %v4858_v3, 2  ;;  %v4762_v23 = vmul.f32 %v10462_v1, %v13842_v27  ;;  %v10464_v54 = vadd.f32 %v13789_v32, %v9832_v47 }
 0x52d   : > { %v4840_v51 = vrot.slane %v4839_v15, 1  ;;  %v4849_v9 = vsel %vm784_vm3, %v4797_v48, -inf  ;;  %v4761_v40 = vmul.f32 %v10463_v22, %v13842_v27  ;;  %v10465_v7 = vadd.f32 %v13793_v58, %v4505_v49  ;;  %v9838_v39 = vpop.f32.mrb[46].mxu0 }
 0x52e   : > { %v13912_v37 = vmax.f32 %v4846_v52, %v4847_v43  ;;  %v4860_v33 = vmax.f32 %v4858_v3, %v4859_v26  ;;  %v4850_v28 = vrot.slane %v4849_v9, 4  ;;  %v4784_v13 = vadd.f32 %v13848_v57, %v4762_v23  ;;  %v4525_v16 = vpop.f32.mrb[47].mxu0 }
 0x52f   : > { %v4783_v5 = vadd.f32 %v13848_v57, %v4761_v40  ;;  %v4764_v20 = vmul.f32 %v10464_v54, %v13842_v27  ;;  %v4763_v32 = vmul.f32 %v10465_v7, %v13842_v27  ;;  %v10466_v2 = vadd.f32 %v13795_v30, %v9835_v50 }
 0x530   : > { %v4861_v55 = vrot.slane %v4860_v33, 1  ;;  %v4851_v46 = vmax.f32 %v4849_v9, %v4850_v28  ;;  %v4800_v8 = vmax.f32 %v4784_v13, 0.0  ;;  %v10467_v58 = vadd.f32 %v13797_v61, %v4515_v25 }
 0x531   : > { %v4799_v60 = vmax.f32 %v4783_v5, 0.0  ;;  %v4786_v44 = vadd.f32 %v13848_v57, %v4764_v20  ;;  %v4785_v35 = vadd.f32 %v13848_v57, %v4763_v32  ;;  %v4766_v21 = vmul.f32 %v10466_v2, %v13842_v27 }
 0x532   : > { %v13923_v59 = vmax.f32 %v4860_v33, %v4861_v55  ;;  %v4852_v47 = vrot.slane %v4851_v46, 2  ;;  %v4870_v0 = vsel %vm784_vm3, %v4800_v8, -inf  ;;  %v4765_v41 = vmul.f32 %v10467_v58, %v13842_v27 }
 0x533   : > { %v4871_v30 = vrot.slane %v4870_v0, 4  ;;  %v4863_v11 = vsel %vm784_vm3, %v4799_v60, -inf  ;;  %v4802_v49 = vmax.f32 %v4786_v44, 0.0  ;;  %v4801_v53 = vmax.f32 %v4785_v35, 0.0 }
 0x534   : > { %v13928_v61 = vmax.f32 %v4839_v15, %v4840_v51  ;;  %v4853_v19 = vmax.f32 %v4851_v46, %v4852_v47  ;;  %v4864_v6 = vrot.slane %v4863_v11, 4  ;;  %v4788_v42 = vadd.f32 %v13848_v57, %v4766_v21 }
 0x535   : > { %v4872_v56 = vmax.f32 %v4870_v0, %v4871_v30  ;;  %v4884_v10 = vsel %vm784_vm3, %v4802_v49, -inf  ;;  %v4877_v52 = vsel %vm784_vm3, %v4801_v53, -inf  ;;  %v4787_v36 = vadd.f32 %v13848_v57, %v4765_v41 }
 0x536   : > { %v4985_v50 = vrot.slane %v13923_v59, 7  ;;  %v4865_v3 = vmax.f32 %v4863_v11, %v4864_v6  ;;  %v4885_v1 = vrot.slane %v4884_v10, 4  ;;  %v4878_v25 = vrot.slane %v4877_v52, 4 }
 0x537   : > { %v4873_v43 = vrot.slane %v4872_v56, 2  ;;  %v4804_v48 = vmax.f32 %v4788_v42, 0.0  ;;  %v4803_v15 = vmax.f32 %v4787_v36, 0.0  ;;  %v10468_v22 = vadd.f32 %v13799_v63, %v9838_v39 }
 0x538   : > { %v4854_v26 = vrot.slane %v4853_v19, 1  ;;  %v4866_v23 = vrot.slane %v4865_v3, 2  ;;  %v4886_v54 = vmax.f32 %v4884_v10, %v4885_v1  ;;  %v4879_v51 = vmax.f32 %v4877_v52, %v4878_v25 }
 0x539   : > { %v4874_v9 = vmax.f32 %v4872_v56, %v4873_v43  ;;  %v4898_v40 = vsel %vm784_vm3, %v4804_v48, -inf  ;;  %v4891_v7 = vsel %vm784_vm3, %v4803_v15, -inf  ;;  %v4768_v33 = vmul.f32 %v10468_v22, %v13842_v27 }
 0x53a   : > { %v4867_v28 = vmax.f32 %v4865_v3, %v4866_v23  ;;  %v4887_v13 = vrot.slane %v4886_v54, 2  ;;  %v4880_v5 = vrot.slane %v4879_v51, 2  ;;  %v4899_v20 = vrot.slane %v4898_v40, 4 }
 0x53b   : > { %v4875_v32 = vrot.slane %v4874_v9, 1  ;;  %v4892_v2 = vrot.slane %v4891_v7, 4  ;;  %v4790_v55 = vadd.f32 %v13848_v57, %v4768_v33  ;;  %v10469_v63 = vadd.f32 %v13801_v45, %v4525_v16 }
 0x53c   : > { %v4868_v39 = vrot.slane %v4867_v28, 1  ;;  %v4888_v46 = vmax.f32 %v4886_v54, %v4887_v13  ;;  %v4881_v8 = vmax.f32 %v4879_v51, %v4880_v5  ;;  %v4900_v58 = vmax.f32 %v4898_v40, %v4899_v20 }
 0x53d   : > { %v13941_v60 = vmax.f32 %v4853_v19, %v4854_v26  ;;  %v4893_v44 = vmax.f32 %v4891_v7, %v4892_v2  ;;  %v4806_v35 = vmax.f32 %v4790_v55, 0.0  ;;  %v4767_v21 = vmul.f32 %v10469_v63, %v13842_v27 }
 0x53e   : > { %v13944_v47 = vmax.f32 %v4874_v9, %v4875_v32  ;;  %v4889_v0 = vrot.slane %v4888_v46, 1  ;;  %v4882_v41 = vrot.slane %v4881_v8, 1  ;;  %v4901_v30 = vrot.slane %v4900_v58, 2 }
 0x53f   : > { %v4894_v11 = vrot.slane %v4893_v44, 2  ;;  %v4912_v49 = vsel %vm784_vm3, %v4806_v35, -inf  ;;  %v4789_v45 = vadd.f32 %v13848_v57, %v4767_v21  ;;  %v4974_v16 = vsel %vm2932_vm4, %v4973_v38, %v13896_v12 }
 0x540   : > { %v13952_v53 = vmax.f32 %v4867_v28, %v4868_v39  ;;  %v13954_v19 = vmax.f32 %v4888_v46, %v4889_v0  ;;  %v4902_v27 = vmax.f32 %v4900_v58, %v4901_v30  ;;  %v4913_v6 = vrot.slane %v4912_v49, 4 }
 0x541   : > { %v4895_v42 = vmax.f32 %v4893_v44, %v4894_v11  ;;  %v4805_v56 = vmax.f32 %v4789_v45, 0.0  ;;  %v4976_v10 = vsel %vm2935_vm6, %v4975_v17, %v4974_v16  ;;  %v4977_v52 = vrot.slane %v13903_v62, 4 }
 0x542   : > { %v13960_v57 = vmax.f32 %v4881_v8, %v4882_v41  ;;  %v4903_v36 = vrot.slane %v4902_v27, 1  ;;  %v4914_v3 = vmax.f32 %v4912_v49, %v4913_v6  ;;  %v4979_v38 = vrot.slane %v13898_v4, 3 }
 0x543   : > { %v4896_v1 = vrot.slane %v4895_v42, 1  ;;  %v4905_v25 = vsel %vm784_vm3, %v4805_v56, -inf  ;;  %v4978_v43 = vsel %vm2938_vm7, %v4977_v52, %v4976_v10  ;;  %v4981_v48 = vrot.slane %v13928_v61, 2 }
 0x544   : > { %v13966_v15 = vmax.f32 %v4902_v27, %v4903_v36  ;;  %v4915_v22 = vrot.slane %v4914_v3, 2  ;;  %v4906_v26 = vrot.slane %v4905_v25, 4  ;;  %v4980_v17 = vsel %vm2941_vm8, %v4979_v38, %v4978_v43 }
 0x545   : > { %v13969_v23 = vmax.f32 %v4895_v42, %v4896_v1  ;;  %v4982_v54 = vsel %vm2944_vm9, %v4981_v48, %v4980_v17  ;;  %v4983_v51 = vrot.slane %v13912_v37, 1  ;;  %v4986_v9 = vsel %vm2950_vm5, %v4985_v50, %v13941_v60 }
 0x546   : > { %v4916_v40 = vmax.f32 %v4914_v3, %v4915_v22  ;;  %v4907_v7 = vmax.f32 %v4905_v25, %v4906_v26  ;;  %v4987_v33 = vrot.slane %v13952_v53, 6  ;;  %v4989_v28 = vrot.slane %v13944_v47, 5 }
 0x547   : > { %v4984_v13 = vsel %vm2947_vm10, %v4983_v51, %v4982_v54  ;;  %v4991_v5 = vrot.slane %v13960_v57, 4  ;;  %v4993_v20 = vrot.slane %v13954_v19, 3  ;;  %v4995_v32 = vrot.slane %v13969_v23, 2 }
 0x548   : > { %v4917_v2 = vrot.slane %v4916_v40, 1  ;;  %v4908_v55 = vrot.slane %v4907_v7, 2  ;;  %v4988_v63 = vsel %vm2932_vm4, %v4987_v33, %v4986_v9  ;;  %v4997_v50 = vrot.slane %v13966_v15, 1 }
 0x549   : > { %v4990_v39 = vsel %vm2935_vm6, %v4989_v28, %v4988_v63  ;;  %v5297_v46 = vcombine.low %v13883_v24, %v13898_v4  ;;  %v5298_v8 = vcombine.low %v13912_v37, %v13923_v59  ;;  %v5314_v58 = vcombine.low %v13944_v47, %v13954_v19 }
 0x54a   : > { %v13992_v44 = vmax.f32 %v4916_v40, %v4917_v2  ;;  %v4909_v35 = vmax.f32 %v4907_v7, %v4908_v55  ;;  %v4992_v21 = vsel %vm2938_vm7, %v4991_v5, %v4990_v39  ;;  %v5060_v0 = vcombine.low %v13886_v18, %v13903_v62  ;;  %v5114_v40 = vld [vmem:[%s16377_s7 + $0xe0] sm:$0xff]  ;;  %v5116_v5 = vld [vmem:[%s16377_s7 + $0xf0] sm:$0xff] }
 0x54b   : > { %v4994_v41 = vsel %vm2941_vm8, %v4993_v20, %v4992_v21  ;;  %v5305_v30 = vrot.slane %v5297_v46, %v13891_v31  ;;  %v5312_v11 = vrot.slane %v5298_v8, %v13891_v31  ;;  %v5322_v49 = vrot.slane %v5314_v58, %v13891_v31  ;;  %v5117_v20 = vld [vmem:[%s16377_s7 + $0xf8] sm:$0xff] }
 0x54c   : > { %v4910_v45 = vrot.slane %v4909_v35, 1  ;;  %v4996_v16 = vsel %vm2944_vm9, %v4995_v32, %v4994_v41  ;;  %v5315_v27 = vcombine.low %v13966_v15, %v13992_v44  ;;  %v5061_v6 = vcombine.low %v13928_v61, %v13941_v60 }
 0x54d   : > { %v4998_v42 = vsel %vm2947_vm10, %v4997_v50, %v4996_v16  ;;  %v5313_v56 = vcombine.low %v5305_v30, %v5312_v11  ;;  %v5068_v10 = vrot.slane %v5060_v0, %v13891_v31  ;;  %v5077_v52 = vcombine.low %v13952_v53, %v13960_v57 }
 0x54e   : > { %v14010_v36 = vmax.f32 %v4909_v35, %v4910_v45  ;;  %v10699_v3 = vpack.i.bf16 %v4998_v42, %v4984_v13  ;;  %v5329_v38 = vrot.slane %v5315_v27, %v13891_v31  ;;  %v5075_v1 = vrot.slane %v5061_v6, %v13891_v31  ;;  %v5008_v45 = vld [vmem:[%s16377_s7 + $0x8] sm:$0xff] }
 0x54f   : > { %v5458_v25 = vrot.slane %v13954_v19, 7  ;;  %v5446_v43 = vrot.slane %v13928_v61, 6  ;;  %v5445_v17 = vsel %vm2950_vm5, %v5444_v14, %v13903_v62  ;;  %v5448_v51 = vrot.slane %v13912_v37, 5  ;;  %v5115_v14 = vld [vmem:[%s16377_s7 + $0xe8] sm:$0xff] }
 0x550   : > { %10700 = vrot.lane.b32.xlu1 %v10699_v3, %s16971_s18  ;;  %v5330_v48 = vcombine.low %v5322_v49, %v5329_v38  ;;  %v5076_v22 = vcombine.low %v5068_v10, %v5075_v1  ;;  %v5078_v26 = vcombine.low %v13969_v23, %v14010_v36  ;;  %v5450_v9 = vrot.slane %v13941_v60, 4  ;;  %v5007_v49 = vld [vmem:[%s16377_s7] sm:$0xff] }
 0x551   : > { %v5447_v54 = vsel %vm2932_vm4, %v5446_v43, %v5445_v17  ;;  %v5085_v33 = vrot.slane %v5077_v52, %v13891_v31  ;;  %v5452_v13 = vrot.slane %v13923_v59, 3  ;;  %v5454_v2 = vrot.slane %v13952_v53, 2 }
 0x552   : > { %v10709_v7 = vpack.i.bf16 %v5330_v48, %v5313_v56  ;;  %v5092_v28 = vrot.slane %v5078_v26, %v13891_v31  ;;  %v5449_v32 = vsel %vm2935_vm6, %v5448_v51, %v5447_v54  ;;  %v5459_v55 = vsel %vm2950_vm5, %v5458_v25, %v13960_v57 }
 0x553   : > { %v5460_v63 = vrot.slane %v13969_v23, 6  ;;  %v5451_v39 = vsel %vm2938_vm7, %v5450_v9, %v5449_v32  ;;  %v5462_v46 = vrot.slane %v13966_v15, 5  ;;  %v5464_v8 = vrot.slane %v14010_v36, 4 }
 0x554   : > { %10710 = vrot.lane.b32.xlu1 %v10709_v7, %s16971_s18  ;;  %v5093_v50 = vcombine.low %v5085_v33, %v5092_v28  ;;  %v5453_v58 = vsel %vm2941_vm8, %v5452_v13, %v5451_v39  ;;  %v10334_v21 = vpack.c.bf16 %v5115_v14, %v5114_v40  ;;  %v10338_v0 = vpack.c.bf16 %v5117_v20, %v5116_v5 }
 0x555   : > { %v5461_v35 = vsel %vm2932_vm4, %v5460_v63, %v5459_v55  ;;  %v5466_v11 = vrot.slane %v13992_v44, 3  ;;  %v5291_v16 = vrot.slane %v14010_v36, 2  ;;  %v5455_v27 = vsel %vm2944_vm9, %v5454_v2, %v5453_v58 }
 0x556   : > { %v10704_v41 = vpack.i.bf16 %v5093_v50, %v5076_v22  ;;  %v5463_v30 = vsel %vm2935_vm6, %v5462_v46, %v5461_v35  ;;  %10335 = vmatprep.subr.bf16.mxu1 %v10334_v21  ;;  %v5293_v42 = vrot.slane %v13992_v44, 1  ;;  %v5456_v56 = vrot.slane %v13944_v47, 1 }
 0x557   : > { %v5465_v6 = vsel %vm2938_vm7, %v5464_v8, %v5463_v30  ;;  %10337 = vmatpush3.bf16.msra.mxu1 %v10334_v21  ;;  %v14068_v3 = vpack.c.bf16 %v5008_v45, %v5007_v49  ;;  %v4928_v38 = vcombine.low %v13886_v18, %v13886_v18  ;;  %v4929_v43 = vcombine.low %v13903_v62, %v13928_v61 }
 0x558   : > { %10705 = vrot.lane.b32.xlu0 %v10704_v41, %s16971_s18  ;;  %v5467_v10 = vsel %vm2941_vm8, %v5466_v11, %v5465_v6  ;;  %10339 = vmatprep.subr.bf16.mxu1 %v10338_v0  ;;  %v5457_v1 = vsel %vm2947_vm10, %v5456_v56, %v5455_v27  ;;  %v5269_v17 = vrot.slane %v13903_v62, 6  ;;  %v5271_v54 = vrot.slane %v13898_v4, 5 }
 0x559   : > { %v5468_v52 = vsel %vm2944_vm9, %v5291_v16, %v5467_v10  ;;  %v14077_v22 = vrot.slane %v4928_v38, %v13891_v31  ;;  %v14080_v26 = vrot.slane %v4929_v43, %v13891_v31  ;;  %v5273_v51 = vrot.slane %v13928_v61, 4 }
 0x55a   : > { %v5469_v25 = vsel %vm2947_vm10, %v5293_v42, %v5468_v52  ;;  %v5270_v9 = vsel %vm2932_vm4, %v5269_v17, %v13896_v12  ;;  %v5277_v40 = vrot.slane %v13941_v60, 2  ;;  %v5275_v33 = vrot.slane %v13912_v37, 3 }
 0x55b   : > { %v10714_v48 = vpack.i.bf16 %v5469_v25, %v5457_v1  ;;  %10341 = vmatpush3.bf16.msra.mxu1 %v10338_v0  ;;  %v4944_v18 = vcombine.low %v14077_v22, %v14080_v26  ;;  %v5272_v7 = vsel %vm2935_vm6, %v5271_v54, %v5270_v9  ;;  %v5279_v14 = vrot.slane %v13923_v59, 1  ;;  %v5012_v22 = vld [vmem:[%s16377_s7 + $0x28] sm:$0xff]  ;;  %v5014_v9 = vld [vmem:[%s16377_s7 + $0x38] sm:$0xff] }
 0x55c   : > { %10343 = vmatprep.subr.bf16.mxu1 %v14068_v3  ;;  %v5274_v28 = vsel %vm2938_vm7, %v5273_v51, %v5272_v7  ;;  %v4945_v12 = vcombine.low %v13941_v60, %v13952_v53  ;;  %v5281_v20 = vrot.slane %v13944_v47, 7  ;;  %v5283_v32 = vrot.slane %v13960_v57, 6  ;;  %v5013_v51 = vld [vmem:[%s16377_s7 + $0x30] sm:$0xff] }
 0x55d   : > { %10715 = vrot.lane.b32.xlu0 %v10714_v48, %s16971_s18  ;;  %v5276_v13 = vsel %vm2941_vm8, %v5275_v33, %v5274_v28  ;;  %v5287_v2 = vrot.slane %v13969_v23, 4  ;;  %v5285_v63 = vrot.slane %v13954_v19, 5  ;;  %v5289_v60 = vrot.slane %v13966_v15, 3  ;;  %v5011_v48 = vld [vmem:[%s16377_s7 + $0x20] sm:$0xff]  ;;  %v5017_v33 = vld [vmem:[%s16377_s7 + $0x50] sm:$0xff]  ;;  %v5018_v28 = vld [vmem:[%s16377_s7 + $0x58] sm:$0xff] }
 0x55e   : > { %v5278_v62 = vsel %vm2944_vm9, %v5277_v40, %v5276_v13  ;;  %v14104_v61 = vrot.slane %v4945_v12, %v13891_v31  ;;  %v5282_v55 = vsel %vm2950_vm5, %v5281_v20, %v13952_v53  ;;  %v14126_v53 = vld [vmem:[%s16380_s10] sm:$0xff]  ;;  %v16482_v0 = vsub.s32 0, %v13869_v34  ;;  %v5021_v20 = vld [vmem:[%s16377_s7 + $0x70] sm:$0xff] }
 0x55f   : > { %v14099_v5 = vsel %vm2947_vm10, %v5279_v14, %v5278_v62  ;;  %v5284_v50 = vsel %vm2932_vm4, %v5283_v32, %v5282_v55  ;;  %v16481_v41 = vsub.s32 1, %v13869_v34  ;;  %v5024_v49 = vcombine.low %v13898_v4, %v13912_v37  ;;  %v5019_v14 = vld [vmem:[%s16377_s7 + $0x60] sm:$0xff]  ;;  %v5020_v62 = vld [vmem:[%s16377_s7 + $0x68] sm:$0xff]  ;;  %v5022_v32 = vld [vmem:[%s16377_s7 + $0x78] sm:$0xff] }
 0x560   : > { %v5286_v39 = vsel %vm2935_vm6, %v5285_v63, %v5284_v50  ;;  %v5432_v46 = vcombine.low %v14080_v26, %v14104_v61  ;;  %v7442_v30 = vrot.slane %v14126_v53, %v16482_v0  ;;  %v5041_v45 = vcombine.low %v13954_v19, %v13966_v15  ;;  %v5339_v63 = vld [vmem:[%s16377_s7 + $0x100] sm:$0xff]  ;;  %v5340_v50 = vld [vmem:[%s16377_s7 + $0x108] sm:$0xff] }
 0x561   : > { %v5288_v8 = vsel %vm2938_vm7, %v5287_v2, %v5286_v39  ;;  %v14136_v11 = vrot.slane %v14126_v53, %v16481_v41  ;;  %v5040_v27 = vcombine.low %v13923_v59, %v13944_v47  ;;  %v14148_v6 = vrot.slane %v5024_v49, %v13891_v31  ;;  %v5009_v59 = vld [vmem:[%s16377_s7 + $0x10] sm:$0xff]  ;;  %v5010_v47 = vld [vmem:[%s16377_s7 + $0x18] sm:$0xff]  ;;  %v5486_v26 = vld [vmem:[%s16377_s7 + $0x1c0] sm:$0xff] }
 0x562   : > { %v5290_v58 = vsel %vm2941_vm8, %v5289_v60, %v5288_v8  ;;  %7444 = vbcast.lane.b32.xlu0 %v7442_v30, 256  ;;  %v10346_v43 = vpack.c.bf16 %v5010_v47, %v5009_v59  ;;  %v10350_v54 = vpack.c.bf16 %v5012_v22, %v5011_v48  ;;  %v10354_v40 = vpack.c.bf16 %v5014_v9, %v5013_v51  ;;  %v5341_v8 = vld [vmem:[%s16377_s7 + $0x110] sm:$0xff]  ;;  %v5347_v47 = vld [vmem:[%s16377_s7 + $0x140] sm:$0xff]  ;;  %v5354_v22 = vld [vmem:[%s16377_s7 + $0x178] sm:$0xff] }
 0x563   : > { %v5292_v35 = vsel %vm2944_vm9, %v5291_v16, %v5290_v58  ;;  %7483 = vbcast.lane.b32.xlu1 %v14136_v11, 264  ;;  %v5023_v16 = vcombine.low %v13883_v24, %v13883_v24  ;;  %v14157_v19 = vrot.slane %v5040_v27, %v13891_v31  ;;  %v10362_v13 = vpack.c.bf16 %v5018_v28, %v5017_v33  ;;  %v5342_v58 = vld [vmem:[%s16377_s7 + $0x118] sm:$0xff]  ;;  %v5344_v27 = vld [vmem:[%s16377_s7 + $0x128] sm:$0xff]  ;;  %v5353_v48 = vld [vmem:[%s16377_s7 + $0x170] sm:$0xff] }
 0x564   : > { %v14121_v21 = vsel %vm2947_vm10, %v5293_v42, %v5292_v35  ;;  %v14151_v42 = vrot.slane %v5041_v45, %v13891_v31  ;;  %v10366_v12 = vpack.c.bf16 %v5020_v62, %v5019_v14  ;;  %v4946_v2 = vcombine.low %v13960_v57, %v13969_v23  ;;  %v5479_v51 = vld [vmem:[%s16377_s7 + $0x188] sm:$0xff]  ;;  %v5482_v14 = vld [vmem:[%s16377_s7 + $0x1a0] sm:$0xff] }
 0x565   : > { %v5031_v37 = vrot.slane %v5023_v16, %v13891_v31  ;;  %v10370_v55 = vpack.c.bf16 %v5022_v32, %v5021_v20  ;;  %v10374_v57 = vpack.c.bf16 %v5340_v50, %v5339_v63  ;;  %v10378_v49 = vpack.c.bf16 %v5342_v58, %v5341_v8  ;;  %v5343_v16 = vld [vmem:[%s16377_s7 + $0x120] sm:$0xff]  ;;  %v5483_v62 = vld [vmem:[%s16377_s7 + $0x1a8] sm:$0xff]  ;;  %v5485_v32 = vld [vmem:[%s16377_s7 + $0x1b8] sm:$0xff] }
 0x566   : > { %7448 = vbcast.lane.b32.xlu0 %v7442_v30, 264  ;;  %v5056_v38 = vcombine.low %v14157_v19, %v14151_v42  ;;  %v14222_v60 = vrot.slane %v4946_v2, %v13891_v31  ;;  %v10414_v20 = vpack.c.bf16 %v5483_v62, %v5482_v14  ;;  %v5489_v63 = vld [vmem:[%s16377_s7 + $0x1d8] sm:$0xff]  ;;  %v5492_v8 = vld [vmem:[%s16377_s7 + $0x1f0] sm:$0xff] }
 0x567   : > { %v5039_v24 = vcombine.low %v5031_v37, %v14148_v6  ;;  %v10382_v37 = vpack.c.bf16 %v5344_v27, %v5343_v16  ;;  %v5493_v58 = vld [vmem:[%s16377_s7 + $0x1f8] sm:$0xff] }
 0x56a   : > { %7452 = vbcast.lane.b32.xlu0 %v7442_v30, 272 }
 0x56e   : > { %7456 = vbcast.lane.b32.xlu0 %v7442_v30, 280 }
 0x572   : > { %7460 = vbcast.lane.b32.xlu0 %v7442_v30, 288 }
 0x576   : > { %7464 = vbcast.lane.b32.xlu0 %v7442_v30, 296 }
 0x57a   : > { %7468 = vbcast.lane.b32.xlu0 %v7442_v30, 304 }
 0x57e   : > { %7472 = vbcast.lane.b32.xlu0 %v7442_v30, 312  ;;  %v4961_v30 = vcombine.low %v14104_v61, %v14222_v60  ;;  %v5487_v61 = vld [vmem:[%s16377_s7 + $0x1c8] sm:$0xff] }
 0x582   : > { %7479 = vbcast.lane.b32.xlu0 %v14136_v11, 256 }
 0x586   : > { %7487 = vbcast.lane.b32.xlu0 %v14136_v11, 272 }
 0x58a   : > { %7491 = vbcast.lane.b32.xlu0 %v14136_v11, 280 }
 0x5c2   : > { %v14153_v4 = vpop.permute.xlu1 %10700 }
 0x5c3   : > { %v10702_v56 = vunpack.i.l.bf16 %v14153_v4  ;;  %v10703_v23 = vunpack.i.h.bf16 %v14153_v4 }
 0x5c5   : > { %v5005_v17 = vsel %vm784_vm3, %v4944_v18, %v10702_v56  ;;  %v5015_v18 = vld [vmem:[%s16377_s7 + $0x40] sm:$0xff]  ;;  %v5006_v45 = vsel %vm784_vm3, %v4961_v30, %v10703_v23  ;;  %v10434_v30 = vpack.c.bf16 %v5493_v58, %v5492_v8 }
 0x5c6   : > { %v14219_v39 = vpop.permute.xlu1 %10710 }
 0x5c7   : > { %v10712_v35 = vunpack.i.l.bf16 %v14219_v39 }
 0x5c9   : > { %v5337_v4 = vsel %vm784_vm3, %v14099_v5, %v10712_v35  ;;  %v5348_v5 = vld [vmem:[%s16377_s7 + $0x148] sm:$0xff]  ;;  %v5433_v35 = vcombine.low %v14010_v36, %v14010_v36  ;;  %v5573_v36 = vld [vmem:[%s16377_s7 + $0x210] sm:$0xff] }
 0x5ca   : > { %v10706_v15 = vpop.permute.xlu0 %10705  ;;  %v10390_v56 = vpack.c.bf16 %v5348_v5, %v5347_v47  ;;  %v5579_v47 = vcombine.low %v14148_v6, %v14157_v19  ;;  %v5575_v5 = vld [vmem:[%s16377_s7 + $0x220] sm:$0xff]  ;;  %v5578_v6 = vld [vmem:[%s16377_s7 + $0x238] sm:$0xff] }
 0x5cb   : > { %v10708_v10 = vunpack.i.h.bf16 %v10706_v15  ;;  %v10707_v52 = vunpack.i.l.bf16 %v10706_v15  ;;  %v5345_v15 = vld [vmem:[%s16377_s7 + $0x130] sm:$0xff]  ;;  %v5440_v16 = vrot.slane %v5433_v35, %v13891_v31 }
 0x5cd   : > { %v5100_v1 = vsel %vm784_vm3, %v5039_v24, %v10707_v52  ;;  %v5101_v25 = vsel %vm784_vm3, %v5056_v38, %v10708_v10  ;;  %v5346_v24 = vld [vmem:[%s16377_s7 + $0x138] sm:$0xff]  ;;  %v5349_v10 = vld [vmem:[%s16377_s7 + $0x150] sm:$0xff] }
 0x5ce   : > { %9911 = vmatprep.mubr.f32.mxu1 %v5100_v1  ;;  %v10386_v59 = vpack.c.bf16 %v5346_v24, %v5345_v15  ;;  %v5350_v52 = vld [vmem:[%s16377_s7 + $0x158] sm:$0xff]  ;;  %v5351_v1 = vld [vmem:[%s16377_s7 + $0x160] sm:$0xff]  ;;  %v5441_v15 = vcombine.low %v14222_v60, %v5440_v16 }
 0x5cf   : > { %9912 = vmatmul.mubr.f32.vlgmr.msra.gmra.mrb[48].mxu1 %v5101_v25  ;;  %v10394_v38 = vpack.c.bf16 %v5350_v52, %v5349_v10  ;;  %v5352_v25 = vld [vmem:[%s16377_s7 + $0x168] sm:$0xff]  ;;  %v10716_v9 = vpop.permute.xlu0 %10715  ;;  %v5577_v10 = vld [vmem:[%s16377_s7 + $0x230] sm:$0xff]  ;;  %v5580_v52 = vcombine.low %v13992_v44, %v13992_v44 }
 0x5d0   : > { %10345 = vmatpush3.bf16.msra.mxu1 %v14068_v3  ;;  %9946 = vmatprep.mubr.f32.mxu1 %v5005_v17  ;;  %v5016_v3 = vld [vmem:[%s16377_s7 + $0x48] sm:$0xff]  ;;  %v10402_v17 = vpack.c.bf16 %v5354_v22, %v5353_v48  ;;  %v10717_v33 = vunpack.i.l.bf16 %v10716_v9  ;;  %v10450_v19 = vpack.c.bf16 %v5578_v6, %v5577_v10 }
 0x5d1   : > { %10347 = vmatprep.subr.bf16.mxu1 %v10346_v43  ;;  %v10358_v7 = vpack.c.bf16 %v5016_v3, %v5015_v18  ;;  %v10713_v18 = vunpack.i.h.bf16 %v14219_v39  ;;  %v5480_v3 = vld [vmem:[%s16377_s7 + $0x190] sm:$0xff]  ;;  %v5490_v39 = vld [vmem:[%s16377_s7 + $0x1e0] sm:$0xff] }
 0x5d4   : > { %10349 = vmatpush3.bf16.msra.mxu1 %v10346_v43  ;;  %v10398_v43 = vpack.c.bf16 %v5352_v25, %v5351_v1  ;;  %v8998_v25 = vld [vmem:[%s16378_s8] ss:$0 sm:$0xff] }
 0x5d5   : > { %10351 = vmatprep.subr.bf16.mxu1 %v10350_v54 }
 0x5d8   : > { %10353 = vmatpush3.bf16.msra.mxu1 %v10350_v54  ;;  %v5478_v54 = vld [vmem:[%s16377_s7 + $0x180] sm:$0xff] }
 0x5d9   : > { %10355 = vmatprep.subr.bf16.mxu1 %v10354_v40 }
 0x5dc   : > { %10357 = vmatpush3.bf16.msra.mxu1 %v10354_v40  ;;  %v10406_v40 = vpack.c.bf16 %v5479_v51, %v5478_v54 }
 0x5dd   : > { %10359 = vmatprep.subr.bf16.mxu1 %v10358_v7 }
 0x5e0   : > { %10361 = vmatpush3.bf16.msra.mxu1 %v10358_v7  ;;  %v5481_v7 = vld [vmem:[%s16377_s7 + $0x198] sm:$0xff] }
 0x5e1   : > { %10363 = vmatprep.subr.bf16.mxu1 %v10362_v13  ;;  %v10410_v28 = vpack.c.bf16 %v5481_v7, %v5480_v3 }
 0x5e4   : > { %10365 = vmatpush3.bf16.msra.mxu1 %v10362_v13  ;;  %v5338_v13 = vsel %vm784_vm3, %v14121_v21, %v10713_v18  ;;  %v5484_v21 = vld [vmem:[%s16377_s7 + $0x1b0] sm:$0xff] }
 0x5e5   : > { %10367 = vmatprep.subr.bf16.mxu1 %v10366_v12  ;;  %v10418_v2 = vpack.c.bf16 %v5485_v32, %v5484_v21 }
 0x5e8   : > { %10369 = vmatpush3.bf16.msra.mxu1 %v10366_v12  ;;  %v5476_v12 = vsel %vm784_vm3, %v5432_v46, %v10717_v33  ;;  %v10422_v46 = vpack.c.bf16 %v5487_v61, %v5486_v26 }
 0x5e9   : > { %10371 = vmatprep.subr.bf16.mxu1 %v10370_v55 }
 0x5ec   : > { %10373 = vmatpush3.bf16.msra.mxu1 %v10370_v55  ;;  %v5488_v55 = vld [vmem:[%s16377_s7 + $0x1d0] sm:$0xff] }
 0x5ed   : > { %10375 = vmatprep.subr.bf16.mxu1 %v10374_v57  ;;  %v10426_v50 = vpack.c.bf16 %v5489_v63, %v5488_v55 }
 0x5ef   : > { %9947 = vmatmul.mubr.f32.vlgmr.msra.gmra.mrb[48].mxu1 %v5006_v45  ;;  %v5572_v45 = vld [vmem:[%s16377_s7 + $0x208] sm:$0xff] }
 0x5f0   : > { %10377 = vmatpush3.bf16.msra.mxu1 %v10374_v57  ;;  %9981 = vmatprep.mubr.f32.mxu1 %v5337_v4  ;;  %v5491_v57 = vld [vmem:[%s16377_s7 + $0x1e8] sm:$0xff]  ;;  %v10718_v4 = vunpack.i.h.bf16 %v10716_v9 }
 0x5f1   : > { %10379 = vmatprep.subr.bf16.mxu1 %v10378_v49  ;;  %v10430_v23 = vpack.c.bf16 %v5491_v57, %v5490_v39 }
 0x5f4   : > { %10381 = vmatpush3.bf16.msra.mxu1 %v10378_v49  ;;  %v5571_v49 = vld [vmem:[%s16377_s7 + $0x200] sm:$0xff] }
 0x5f5   : > { %10383 = vmatprep.subr.bf16.mxu1 %v10382_v37  ;;  %v10438_v27 = vpack.c.bf16 %v5572_v45, %v5571_v49 }
 0x5f8   : > { %10385 = vmatpush3.bf16.msra.mxu1 %v10382_v37  ;;  %v5574_v37 = vld [vmem:[%s16377_s7 + $0x218] sm:$0xff] }
 0x5f9   : > { %10387 = vmatprep.subr.bf16.mxu1 %v10386_v59  ;;  %v10442_v24 = vpack.c.bf16 %v5574_v37, %v5573_v36 }
 0x5fc   : > { %10389 = vmatpush3.bf16.msra.mxu1 %v10386_v59  ;;  %v5477_v59 = vsel %vm784_vm3, %v5441_v15, %v10718_v4 }
 0x5fd   : > { %10391 = vmatprep.subr.bf16.mxu1 %v10390_v56 }
 0x600   : > { %10393 = vmatpush3.bf16.msra.mxu1 %v10390_v56  ;;  %v5576_v56 = vld [vmem:[%s16377_s7 + $0x228] sm:$0xff] }
 0x601   : > { %10395 = vmatprep.subr.bf16.mxu1 %v10394_v38  ;;  %v10446_v60 = vpack.c.bf16 %v5576_v56, %v5575_v5 }
 0x604   : > { %10397 = vmatpush3.bf16.msra.mxu1 %v10394_v38  ;;  %v5587_v38 = vrot.slane %v5580_v52, %v13891_v31 }
 0x605   : > { %10399 = vmatprep.subr.bf16.mxu1 %v10398_v43 }
 0x606   : > { %v5588_v1 = vcombine.low %v14151_v42, %v5587_v38 }
 0x608   : > { %10401 = vmatpush3.bf16.msra.mxu1 %v10398_v43  ;;  %v8999_v43 = vld [vmem:[%s16379_s9] ss:$0 sm:$0xff] }
 0x609   : > { %10403 = vmatprep.subr.bf16.mxu1 %v10402_v17 }
 0x60c   : > { %10405 = vmatpush3.bf16.msra.mxu1 %v10402_v17 }
 0x60d   : > { %10407 = vmatprep.subr.bf16.mxu1 %v10406_v40 }
 0x60f   : > { %9982 = vmatmul.mubr.f32.vlgmr.msra.gmra.mrb[48].mxu1 %v5338_v13 }
 0x610   : > { %10409 = vmatpush3.bf16.msra.mxu1 %v10406_v40  ;;  %10016 = vmatprep.mubr.f32.mxu1 %v5476_v12 }
 0x611   : > { %10411 = vmatprep.subr.bf16.mxu1 %v10410_v28 }
 0x614   : > { %10413 = vmatpush3.bf16.msra.mxu1 %v10410_v28 }
 0x615   : > { %10415 = vmatprep.subr.bf16.mxu1 %v10414_v20 }
 0x618   : > { %10417 = vmatpush3.bf16.msra.mxu1 %v10414_v20 }
 0x619   : > { %10419 = vmatprep.subr.bf16.mxu1 %v10418_v2 }
 0x61c   : > { %10421 = vmatpush3.bf16.msra.mxu1 %v10418_v2 }
 0x61d   : > { %10423 = vmatprep.subr.bf16.mxu1 %v10422_v46 }
 0x620   : > { %10425 = vmatpush3.bf16.msra.mxu1 %v10422_v46 }
 0x621   : > { %10427 = vmatprep.subr.bf16.mxu1 %v10426_v50 }
 0x624   : > { %10429 = vmatpush3.bf16.msra.mxu1 %v10426_v50 }
 0x625   : > { %10431 = vmatprep.subr.bf16.mxu1 %v10430_v23 }
 0x628   : > { %10433 = vmatpush3.bf16.msra.mxu1 %v10430_v23 }
 0x629   : > { %10435 = vmatprep.subr.bf16.mxu1 %v10434_v30 }
 0x62c   : > { %10437 = vmatpush3.bf16.msra.mxu1 %v10434_v30 }
 0x62d   : > { %10439 = vmatprep.subr.bf16.mxu1 %v10438_v27 }
 0x62f   : > { %10017 = vmatmul.mubr.f32.vlgmr.msra.gmra.mrb[48].mxu1 %v5477_v59 }
 0x630   : > { %10441 = vmatpush3.bf16.msra.mxu1 %v10438_v27  ;;  %10035 = vmatprep.mubr.msk.f32.mxu1 %vm784_vm3, %v5579_v47 }
 0x631   : > { %10443 = vmatprep.subr.bf16.mxu1 %v10442_v24 }
 0x634   : > { %10445 = vmatpush3.bf16.msra.mxu1 %v10442_v24 }
 0x635   : > { %10447 = vmatprep.subr.bf16.mxu1 %v10446_v60 }
 0x638   : > { %10449 = vmatpush3.bf16.msra.mxu1 %v10446_v60 }
 0x639   : > { %10451 = vmatprep.subr.bf16.mxu1 %v10450_v19 }
 0x63c   : > { %10453 = vmatpush3.bf16.msra.mxu1 %v10450_v19 }
 0x63f   : > { %10036 = vmatmul.mubr.msk.f32.vlgmr.msra.gmra.mrb[48].mxu1 %vm784_vm3, %v5588_v1 }
 0x712   : > { %v10037_v48 = vpop.f32.mrb[48].mxu1 }
 0x713   : > { %v5677_v22 = vmul.f32 %v10037_v48, %v8998_v25  ;;  %v5659_v44 = vpop.f32.mrb[49].mxu1 }
 0x714   : > { %v5676_v17 = vmul.f32 %v8998_v25, %v5659_v44 }
 0x715   : > { %v5685_v54 = vadd.f32 %v8999_v43, %v5677_v22 }
 0x716   : > { %v5684_v51 = vadd.f32 %v8999_v43, %v5676_v17 }
 0x717   : > { %v5687_v9 = vmax.f32 %v5685_v54, 0.0  ;;  %v14384_v54 = vpop.permute.xlu0 %7444 }
 0x718   : > { %v5686_v40 = vmax.f32 %v5684_v51, 0.0  ;;  %16972 = vst [vmem:[#allocation10_spill] sm:$0xff] %v14384_v54 }
 0x719   : > { %v5714_v42 = vrot.slane %v5687_v9, %v13891_v31  ;;  %v5707_v55 = vcombine.high %v5687_v9, %v5687_v9 }
 0x71a   : > { %v5690_v18 = vcombine.high %v5686_v40, %v5686_v40  ;;  %v5697_v3 = vrot.slane %v5686_v40, %v13891_v31 }
 0x71b   : > { %v5761_v7 = vsel %vm5732_vm13, %v5714_v42, -inf  ;;  %v5721_v23 = vrot.slane %v5707_v55, %v13891_v31  ;;  %v5722_v8 = vcombine.high %v5714_v42, %v5714_v42  ;;  %v14386_v42 = vpop.permute.xlu0 %7448 }
 0x71c   : > { %v5762_v33 = vrot.slane %v5761_v7, 4  ;;  %v5704_v28 = vrot.slane %v5690_v18, %v13891_v31  ;;  %v5733_v13 = vsel %vm5732_vm13, %v5697_v3, -inf  ;;  %v5705_v31 = vcombine.high %v5697_v3, %v5697_v3  ;;  %16973 = vst [vmem:[#allocation19_spill] sm:$0xff] %v14386_v42 }
 0x71d   : > { %v5734_v14 = vrot.slane %v5733_v13, 4  ;;  %v5775_v58 = vsel %vm5732_vm13, %v5721_v23, -inf  ;;  %v5768_v35 = vsel %vm5732_vm13, %v5722_v8, -inf  ;;  %v5723_v5 = vcombine.high %v5721_v23, %v5721_v23 }
 0x71e   : > { %v5763_v62 = vmax.f32 %v5761_v7, %v5762_v33  ;;  %v5706_v12 = vcombine.high %v5704_v28, %v5704_v28  ;;  %v5747_v21 = vsel %vm5732_vm13, %v5704_v28, -inf  ;;  %v5776_v30 = vrot.slane %v5775_v58, 4 }
 0x71f   : > { %v5735_v20 = vmax.f32 %v5733_v13, %v5734_v14  ;;  %v5769_v49 = vrot.slane %v5768_v35, 4  ;;  %v5740_v56 = vsel %vm5732_vm13, %v5705_v31, -inf  ;;  %v5782_v60 = vsel %vm5732_vm13, %v5723_v5, -inf  ;;  %v14388_v33 = vpop.permute.xlu0 %7452 }
 0x720   : > { %v5764_v32 = vrot.slane %v5763_v62, 2  ;;  %v5754_v26 = vsel %vm5732_vm13, %v5706_v12, -inf  ;;  %v5777_v45 = vmax.f32 %v5775_v58, %v5776_v30  ;;  %v5741_v10 = vrot.slane %v5740_v56, 4  ;;  %16974 = vst [vmem:[#allocation9_spill] sm:$0xff] %v14388_v33 }
 0x721   : > { %v5736_v2 = vrot.slane %v5735_v20, 2  ;;  %v5770_v16 = vmax.f32 %v5768_v35, %v5769_v49  ;;  %v5783_v6 = vrot.slane %v5782_v60, 4  ;;  %v5748_v51 = vrot.slane %v5747_v21, 4 }
 0x722   : > { %v5765_v61 = vmax.f32 %v5763_v62, %v5764_v32  ;;  %v5778_v27 = vrot.slane %v5777_v45, 2  ;;  %v5742_v19 = vmax.f32 %v5740_v56, %v5741_v10  ;;  %v5755_v9 = vrot.slane %v5754_v26, 4 }
 0x723   : > { %v5737_v46 = vmax.f32 %v5735_v20, %v5736_v2  ;;  %v5771_v4 = vrot.slane %v5770_v16, 2  ;;  %v5784_v52 = vmax.f32 %v5782_v60, %v5783_v6  ;;  %v5749_v40 = vmax.f32 %v5747_v21, %v5748_v51  ;;  %v14390_v62 = vpop.permute.xlu0 %7456 }
 0x724   : > { %v5766_v63 = vrot.slane %v5765_v61, 1  ;;  %v5779_v36 = vmax.f32 %v5777_v45, %v5778_v27  ;;  %v5743_v38 = vrot.slane %v5742_v19, 2  ;;  %v5756_v18 = vmax.f32 %v5754_v26, %v5755_v9  ;;  %16975 = vst [vmem:[#allocation12_spill] sm:$0xff] %v14390_v62 }
 0x725   : > { %v5738_v50 = vrot.slane %v5737_v46, 1  ;;  %v5772_v37 = vmax.f32 %v5770_v16, %v5771_v4  ;;  %v5785_v1 = vrot.slane %v5784_v52, 2  ;;  %v5750_v3 = vrot.slane %v5749_v40, 2 }
 0x726   : > { %v5767_v39 = vmax.f32 %v5765_v61, %v5766_v63  ;;  %v5780_v15 = vrot.slane %v5779_v36, 1  ;;  %v5744_v25 = vmax.f32 %v5742_v19, %v5743_v38  ;;  %v5757_v7 = vrot.slane %v5756_v18, 2 }
 0x727   : > { %v5739_v57 = vmax.f32 %v5737_v46, %v5738_v50  ;;  %v5773_v24 = vrot.slane %v5772_v37, 1  ;;  %v5786_v43 = vmax.f32 %v5784_v52, %v5785_v1  ;;  %v5751_v28 = vmax.f32 %v5749_v40, %v5750_v3  ;;  %v14392_v2 = vpop.permute.xlu0 %7460  ;;  %v14406_v50 = vpop.permute.xlu1 %7483 }
 0x728   : > { %5917 = vxpose.xlu0.b32.start.end [1/1] (short) (narrow) %v5767_v39, 64  ;;  %v5781_v59 = vmax.f32 %v5779_v36, %v5780_v15  ;;  %v5745_v48 = vrot.slane %v5744_v25, 1  ;;  %v5758_v13 = vmax.f32 %v5756_v18, %v5757_v7  ;;  %16976 = vst [vmem:[#allocation23_spill] sm:$0xff] %v14392_v2  ;;  %16983 = vst [vmem:[#allocation39_spill] sm:$0xff] %v14406_v50 }
 0x729   : > { %5789 = vxpose.xlu1.b32.start.end [1/1] (short) (narrow) %v5739_v57, 64  ;;  %v5774_v47 = vmax.f32 %v5772_v37, %v5773_v24  ;;  %v5787_v22 = vrot.slane %v5786_v43, 1  ;;  %v5752_v14 = vrot.slane %v5751_v28, 1 }
 0x72a   : > { %v5746_v44 = vmax.f32 %v5744_v25, %v5745_v48  ;;  %v5759_v12 = vrot.slane %v5758_v13, 1 }
 0x72b   : > { %v5788_v17 = vmax.f32 %v5786_v43, %v5787_v22  ;;  %v5753_v20 = vmax.f32 %v5751_v28, %v5752_v14  ;;  %v14394_v21 = vpop.permute.xlu0 %7464 }
 0x72c   : > { %v5760_v32 = vmax.f32 %v5758_v13, %v5759_v12  ;;  %16977 = vst [vmem:[#allocation11_spill] sm:$0xff] %v14394_v21 }
 0x72f   : > { %v14396_v61 = vpop.permute.xlu0 %7468 }
 0x730   : > { %16978 = vst [vmem:[#allocation17_spill] sm:$0xff] %v14396_v61 }
 0x733   : > { %v14398_v26 = vpop.permute.xlu0 %7472 }
 0x734   : > { %16979 = vst [vmem:[#allocation29_spill] sm:$0xff] %v14398_v26 }
 0x737   : > { %v14400_v46 = vpop.permute.xlu0 %7479 }
 0x738   : > { %16980 = vst [vmem:[#allocation28_spill] sm:$0xff] %v14400_v46 }
 0x73b   : > { %v14402_v55 = vpop.permute.xlu0 %7487 }
 0x73c   : > { %16981 = vst [vmem:[#allocation38_spill] sm:$0xff] %v14402_v55 }
 0x73f   : > { %v14404_v63 = vpop.permute.xlu0 %7491 }
 0x740   : > { %16982 = vst [vmem:[#allocation34_spill] sm:$0xff] %v14404_v63 }
 0x745   : > { %5981 = vxpose.xlu0.b32.start.end [1/1] (short) (narrow) %v5781_v59, 64 }
 0x746   : > { %5949 = vxpose.xlu1.b32.start.end [1/1] (short) (narrow) %v5774_v47, 64 }
 0x762   : > { %5821 = vxpose.xlu0.b32.start.end [1/1] (short) (narrow) %v5746_v44, 64 }
 0x763   : > { %6013 = vxpose.xlu1.b32.start.end [1/1] (short) (narrow) %v5788_v17, 64 }
 0x77f   : > { %5853 = vxpose.xlu0.b32.start.end [1/1] (short) (narrow) %v5753_v20, 64 }
 0x780   : > { %5885 = vxpose.xlu1.b32.start.end [1/1] (short) (narrow) %v5760_v32, 64 }
 0x7a8   : > { %v14408_v39 = vpop.trf.xlu0 }
 0x7a9   : > { %16984 = vst [vmem:[#allocation48_spill] sm:$0xff] %v14408_v39  ;;  %v14410_v57 = vpop.trf.xlu1 }
 0x7aa   : > { %16985 = vst [vmem:[#allocation30_spill] sm:$0xff] %v14410_v57 }
 0x7ac   : > { %v14412_v23 = vpop.trf.xlu0 }
 0x7ad   : > { %16986 = vst [vmem:[#allocation33_spill] sm:$0xff] %v14412_v23  ;;  %v14414_v8 = vpop.trf.xlu1 }
 0x7ae   : > { %16987 = vst [vmem:[#allocation41_spill] sm:$0xff] %v14414_v8 }
 0x7b0   : > { %v14416_v58 = vpop.trf.xlu0 }
 0x7b1   : > { %16988 = vst [vmem:[#allocation50_spill] sm:$0xff] %v14416_v58  ;;  %v14418_v35 = vpop.trf.xlu1 }
 0x7b2   : > { %16989 = vst [vmem:[#allocation35_spill] sm:$0xff] %v14418_v35 }
 0x7b4   : > { %v14420_v30 = vpop.trf.xlu0 }
 0x7b5   : > { %16990 = vst [vmem:[#allocation51_spill] sm:$0xff] %v14420_v30  ;;  %v14422_v49 = vpop.trf.xlu1 }
 0x7b6   : > { %16991 = vst [vmem:[#allocation36_spill] sm:$0xff] %v14422_v49 }
 0x7b8   : > { %v14424_v45 = vpop.trf.xlu0 }
 0x7b9   : > { %16992 = vst [vmem:[#allocation42_spill] sm:$0xff] %v14424_v45  ;;  %v14426_v16 = vpop.trf.xlu1 }
 0x7ba   : > { %16993 = vst [vmem:[#allocation45_spill] sm:$0xff] %v14426_v16  ;;  %6206 = vperm.xlu1 %10578, %v14408_v39  }
 0x7bc   : > { %v14429_v27 = vpop.trf.xlu0 }
 0x7bd   : > { %16994 = vst [vmem:[#allocation37_spill] sm:$0xff] %v14429_v27  ;;  %v14431_v4 = vpop.trf.xlu1 }
 0x7be   : > { %16995 = vst [vmem:[#allocation46_spill] sm:$0xff] %v14431_v4 }
 0x7c0   : > { %v14433_v36 = vpop.trf.xlu0 }
 0x7c1   : > { %16996 = vst [vmem:[#allocation47_spill] sm:$0xff] %v14433_v36  ;;  %v14435_v37 = vpop.trf.xlu1 }
 0x7c2   : > { %16997 = vst [vmem:[#allocation6_spill] sm:$0xff] %v14435_v37 }
 0x7c4   : > { %v14437_v15 = vpop.trf.xlu0  ;;  %6110 = vperm.xlu0 %10577, %v14410_v57  }
 0x7c5   : > { %16998 = vst [vmem:[#allocation7_spill] sm:$0xff] %v14437_v15  ;;  %v14440_v24 = vpop.trf.xlu1 }
 0x7c6   : > { %16999 = vst [vmem:[#allocation13_spill] sm:$0xff] %v14440_v24 }
 0x7c8   : > { %v14442_v59 = vpop.trf.xlu0  ;;  %6209 = vperm.xlu0 %10577, %v14412_v23  }
 0x7c9   : > { %17000 = vst [vmem:[#allocation22_spill] sm:$0xff] %v14442_v59  ;;  %v14445_v47 = vpop.trf.xlu1 }
 0x7ca   : > { %17001 = vst [vmem:[#allocation49_spill] sm:$0xff] %v14445_v47  ;;  %6230 = vperm.xlu1 %10578, %v14445_v47  }
 0x7cc   : > { %v14448_v31 = vpop.trf.xlu0 }
 0x7cd   : > { %17002 = vst [vmem:[#allocation25_spill] sm:$0xff] %v14448_v31  ;;  %v14450_v5 = vpop.trf.xlu1 }
 0x7ce   : > { %17003 = vst [vmem:[#allocation31_spill] sm:$0xff] %v14450_v5  ;;  %6233 = vperm.xlu0 %10577, %v14450_v5   ;;  %6254 = vperm.xlu1 %10578, %v14442_v59  }
 0x7d0   : > { %v14454_v56 = vpop.trf.xlu0 }
 0x7d1   : > { %17004 = vst [vmem:[#allocation58_spill] sm:$0xff] %v14454_v56  ;;  %v14456_v60 = vpop.trf.xlu1 }
 0x7d2   : > { %17005 = vst [vmem:[#allocation43_spill] sm:$0xff] %v14456_v60  ;;  %6257 = vperm.xlu0 %10577, %v14448_v31  }
 0x7d4   : > { %v14459_v10 = vpop.trf.xlu0 }
 0x7d5   : > { %17006 = vst [vmem:[#allocation60_spill] sm:$0xff] %v14459_v10  ;;  %v14461_v6 = vpop.trf.xlu1 }
 0x7d6   : > { %17007 = vst [vmem:[#allocation61_spill] sm:$0xff] %v14461_v6 }
 0x7d8   : > { %v14463_v19 = vpop.trf.xlu0 }
 0x7d9   : > { %17008 = vst [vmem:[#allocation52_spill] sm:$0xff] %v14463_v19  ;;  %v14465_v52 = vpop.trf.xlu1 }
 0x7da   : > { %17009 = vst [vmem:[#allocation8_spill] sm:$0xff] %v14465_v52 }
 0x7dc   : > { %v14467_v38 = vpop.trf.xlu0 }
 0x7dd   : > { %17010 = vst [vmem:[#allocation59_spill] sm:$0xff] %v14467_v38  ;;  %v14469_v1 = vpop.trf.xlu1 }
 0x7de   : > { %17011 = vst [vmem:[#allocation62_spill] sm:$0xff] %v14469_v1 }
 0x7e0   : > { %v14471_v25 = vpop.trf.xlu0 }
 0x7e1   : > { %17012 = vst [vmem:[#allocation66_spill] sm:$0xff] %v14471_v25  ;;  %v14473_v43 = vpop.trf.xlu1 }
 0x7e2   : > { %17013 = vst [vmem:[#allocation20_spill] sm:$0xff] %v14473_v43 }
 0x7e4   : > { %v14475_v48 = vpop.trf.xlu0 }
 0x7e5   : > { %17014 = vst [vmem:[#allocation63_spill] sm:$0xff] %v14475_v48  ;;  %v14477_v22 = vpop.trf.xlu1 }
 0x7e6   : > { %17015 = vst [vmem:[#allocation27_spill] sm:$0xff] %v14477_v22 }
 0x7e8   : > { %v14479_v44 = vpop.trf.xlu0 }
 0x7e9   : > { %17016 = vst [vmem:[#allocation67_spill] sm:$0xff] %v14479_v44  ;;  %6134 = vperm.xlu1 %10578, %v14479_v44   ;;  %v14482_v17 = vpop.trf.xlu1 }
 0x7ea   : > { %17017 = vst [vmem:[#allocation77_spill] sm:$0xff] %v14482_v17 }
 0x7ec   : > { %v14484_v51 = vpop.trf.xlu0 }
 0x7ed   : > { %17018 = vst [vmem:[#allocation76_spill] sm:$0xff] %v14484_v51  ;;  %6137 = vperm.xlu0 %10577, %v14484_v51   ;;  %v14487_v9 = vpop.trf.xlu1 }
 0x7ee   : > { %17019 = vst [vmem:[#allocation83_spill] sm:$0xff] %v14487_v9 }
 0x7f0   : > { %v14489_v40 = vpop.trf.xlu0 }
 0x7f1   : > { %17020 = vst [vmem:[#allocation5_spill] sm:$0xff] %v14489_v40  ;;  %v14491_v18 = vpop.trf.xlu1 }
 0x7f2   : > { %17021 = vst [vmem:[#allocation71_spill] sm:$0xff] %v14491_v18 }
 0x7f4   : > { %v14493_v3 = vpop.trf.xlu0 }
 0x7f5   : > { %17022 = vst [vmem:[#allocation78_spill] sm:$0xff] %v14493_v3  ;;  %v14495_v7 = vpop.trf.xlu1 }
 0x7f6   : > { %17023 = vst [vmem:[#allocation73_spill] sm:$0xff] %v14495_v7 }
 0x7f8   : > { %v14497_v28 = vpop.trf.xlu0 }
 0x7f9   : > { %17024 = vst [vmem:[#allocation15_spill] sm:$0xff] %v14497_v28  ;;  %v14499_v13 = vpop.trf.xlu1 }
 0x7fa   : > { %17025 = vst [vmem:[#allocation40_spill] sm:$0xff] %v14499_v13 }
 0x7fc   : > { %v14501_v14 = vpop.trf.xlu0 }
 0x7fd   : > { %17026 = vst [vmem:[#allocation53_spill] sm:$0xff] %v14501_v14  ;;  %v14503_v12 = vpop.trf.xlu1 }
 0x7fe   : > { %17027 = vst [vmem:[#allocation81_spill] sm:$0xff] %v14503_v12 }
 0x800   : > { %v14505_v20 = vpop.trf.xlu0 }
 0x801   : > { %17028 = vst [vmem:[#allocation82_spill] sm:$0xff] %v14505_v20  ;;  %v14507_v32 = vpop.trf.xlu1 }
 0x802   : > { %17029 = vst [vmem:[#allocation26_spill] sm:$0xff] %v14507_v32 }
 0x804   : > { %v14509_v41 = vpop.trf.xlu0 }
 0x805   : > { %17030 = vst [vmem:[#allocation54_spill] sm:$0xff] %v14509_v41  ;;  %v14511_v0 = vpop.trf.xlu1 }
 0x806   : > { %17031 = vst [vmem:[#allocation57_spill] sm:$0xff] %v14511_v0 }
 0x808   : > { %v14513_v29 = vpop.trf.xlu0 }
 0x809   : > { %17032 = vst [vmem:[#allocation75_spill] sm:$0xff] %v14513_v29  ;;  %6158 = vperm.xlu1 %10578, %v14513_v29   ;;  %v14518_v55 = vpop.trf.xlu1 }
 0x80a   : > { %17034 = vst [vmem:[#allocation70_spill] sm:$0xff] %v14518_v55 }
 0x80c   : > { %v14516_v63 = vpop.trf.xlu0 }
 0x80d   : > { %17033 = vst [vmem:[#allocation24_spill] sm:$0xff] %v14516_v63  ;;  %6161 = vperm.xlu0 %10577, %v14516_v63   ;;  %6278 = vperm.xlu1 %10578, %v14482_v17   ;;  %v14524_v50 = vpop.trf.xlu1 }
 0x80e   : > { %17035 = vst [vmem:[#allocation84_spill] sm:$0xff] %v14524_v50 }
 0x810   : > { %v14534_v46 = vpop.trf.xlu0 }
 0x811   : > { %6281 = vperm.xlu0 %10577, %v14487_v9   ;;  %6113 = vperm.xlu1 %10578, %v14414_v8   ;;  %17036 = vst [vmem:[#allocation72_spill] sm:$0xff] %v14534_v46  ;;  %v14544_v61 = vpop.trf.xlu1 }
 0x812   : > { %17038 = vst [vmem:[#allocation21_spill] sm:$0xff] %v14544_v61 }
 0x814   : > { %v14540_v26 = vpop.trf.xlu0 }
 0x815   : > { %6182 = vperm.xlu1 %10578, %v14518_v55   ;;  %6185 = vperm.xlu0 %10577, %v14524_v50   ;;  %17037 = vst [vmem:[#allocation74_spill] sm:$0xff] %v14540_v26  ;;  %v14548_v21 = vpop.trf.xlu1 }
 0x816   : > { %17039 = vst [vmem:[#allocation18_spill] sm:$0xff] %v14548_v21 }
 0x818   : > { %v14560_v2 = vpop.trf.xlu0 }
 0x819   : > { %6212 = vperm.xlu1 %10578, %v14416_v58   ;;  %6215 = vperm.xlu0 %10577, %v14420_v30   ;;  %17040 = vst [vmem:[#allocation56_spill] sm:$0xff] %v14560_v2  ;;  %v14568_v33 = vpop.trf.xlu1 }
 0x81a   : > { %17042 = vst [vmem:[#allocation44_spill] sm:$0xff] %v14568_v33 }
 0x81c   : > { %v14564_v62 = vpop.trf.xlu0 }
 0x81d   : > { %6116 = vperm.xlu1 %10578, %v14418_v35   ;;  %6119 = vperm.xlu0 %10577, %v14422_v49   ;;  %17041 = vst [vmem:[#allocation55_spill] sm:$0xff] %v14564_v62  ;;  %v14572_v42 = vpop.trf.xlu1 }
 0x81e   : > { %17043 = vst [vmem:[#allocation32_spill] sm:$0xff] %v14572_v42 }
 0x820   : > { %v14584_v54 = vpop.trf.xlu0 }
 0x821   : > { %6236 = vperm.xlu1 %10578, %v14456_v60   ;;  %6239 = vperm.xlu0 %10577, %v14461_v6   ;;  %17044 = vst [vmem:[#allocation16_spill] sm:$0xff] %v14584_v54 }
 0x825   : > { %6260 = vperm.xlu1 %10578, %v14454_v56   ;;  %6263 = vperm.xlu0 %10577, %v14459_v10  }
 0x829   : > { %6140 = vperm.xlu1 %10578, %v14489_v40   ;;  %6143 = vperm.xlu0 %10577, %v14493_v3  }
 0x82d   : > { %6164 = vperm.xlu1 %10578, %v14534_v46   ;;  %6167 = vperm.xlu0 %10577, %v14540_v26  }
 0x831   : > { %6284 = vperm.xlu1 %10578, %v14491_v18   ;;  %6287 = vperm.xlu0 %10577, %v14495_v7   ;;  %v14590_v7 = vpop.trf.xlu0 }
 0x832   : > { %17046 = vst [vmem:[#allocation69_spill] sm:$0xff] %v14590_v7 }
 0x835   : > { %6188 = vperm.xlu1 %10578, %v14544_v61   ;;  %6191 = vperm.xlu0 %10577, %v14548_v21  }
 0x839   : > { %6218 = vperm.xlu1 %10578, %v14424_v45   ;;  %6221 = vperm.xlu0 %10577, %v14429_v27  }
 0x83d   : > { %6122 = vperm.xlu1 %10578, %v14426_v16   ;;  %6125 = vperm.xlu0 %10577, %v14431_v4  }
 0x841   : > { %6242 = vperm.xlu1 %10578, %v14465_v52   ;;  %6245 = vperm.xlu0 %10577, %v14469_v1  }
 0x845   : > { %6266 = vperm.xlu1 %10578, %v14463_v19   ;;  %6269 = vperm.xlu0 %10577, %v14467_v38   ;;  %v16497_v38 = vsub.s32 2, %v13869_v34 }
 0x847   : > { %v7512_v31 = vrot.slane %v14126_v53, %v16497_v38  ;;  %v16506_v38 = vsub.s32 3, %v13869_v34 }
 0x849   : > { %6146 = vperm.xlu1 %10578, %v14497_v28   ;;  %6149 = vperm.xlu0 %10577, %v14501_v14   ;;  %v7547_v27 = vrot.slane %v14126_v53, %v16506_v38  ;;  %v16515_v38 = vsub.s32 4, %v13869_v34 }
 0x84d   : > { %6170 = vperm.xlu1 %10578, %v14560_v2   ;;  %6173 = vperm.xlu0 %10577, %v14564_v62  }
 0x851   : > { %6290 = vperm.xlu1 %10578, %v14499_v13   ;;  %6293 = vperm.xlu0 %10577, %v14503_v12   ;;  %v14588_v12 = vpop.trf.xlu1 }
 0x852   : > { %17045 = vst [vmem:[#allocation14_spill] sm:$0xff] %v14588_v12 }
 0x855   : > { %6194 = vperm.xlu1 %10578, %v14568_v33   ;;  %6197 = vperm.xlu0 %10577, %v14572_v42   ;;  %v14594_v9 = vpop.trf.xlu1  ;;  %v7582_v42 = vrot.slane %v14126_v53, %v16515_v38  ;;  %v16524_v38 = vsub.s32 5, %v13869_v34  ;;  %v17049_v33 = vlaneseq }
 0x856   : > { %17047 = vst [vmem:[#allocation68_spill] sm:$0xff] %v14594_v9 }
 0x857   : > { %v14672_v62 = vrot.slane %v14126_v53, %v16524_v38  ;;  %v6302_v44 = vand.u32 127, %v17049_v33 }
 0x859   : > { %6224 = vperm.xlu1 %10578, %v14433_v36   ;;  %6227 = vperm.xlu0 %10577, %v14437_v15   ;;  %v14603_v10 = vpop.permute.xlu1 %6206  ;;  %17048 = vst [vmem:[#allocation65_spill] sm:$0xff] %v14672_v62  ;;  %v6314_v4 = vadd.s32 4294967280, %v6302_v44  ;;  %v6321_v2 = vadd.s32 4294967272, %v6302_v44  ;;  %v14730_v16 = vsub.s32 %v6302_v44, %v13869_v34  ;;  %v6335_v46 = vadd.s32 4294967256, %v6302_v44 }
 0x85a   : > { %v6328_v49 = vadd.s32 4294967264, %v6302_v44  ;;  %v6349_v57 = vadd.s32 4294967240, %v6302_v44 }
 0x85b   : > { %17053 = vst [vmem:[#allocation85_spill] sm:$0xff] %v14730_v16  ;;  %v14746_v51 = vsub.s32 %v6321_v2, %v13869_v34 }
 0x85c   : > { %v14760_v2 = vsub.s32 %v6328_v49, %v13869_v34 }
 0x85d   : > { %6128 = vperm.xlu1 %10578, %v14435_v37   ;;  %6131 = vperm.xlu0 %10577, %v14440_v24   ;;  %v6307_v24 = vadd.s32 4294967288, %v6302_v44  ;;  %17057 = vst [vmem:[#allocation89_spill] sm:$0xff] %v14746_v51 }
 0x85e   : > { %17059 = vst [vmem:[#allocation91_spill] sm:$0xff] %v14760_v2 }
 0x861   : > { %6248 = vperm.xlu1 %10578, %v14473_v43   ;;  %6251 = vperm.xlu0 %10577, %v14477_v22  }
 0x865   : > { %6272 = vperm.xlu1 %10578, %v14471_v25   ;;  %6275 = vperm.xlu0 %10577, %v14475_v48   ;;  %v14598_v48 = vpop.permute.xlu0 %6110 }
 0x869   : > { %6152 = vperm.xlu1 %10578, %v14505_v20   ;;  %6155 = vperm.xlu0 %10577, %v14509_v41   ;;  %v14610_v22 = vpop.permute.xlu0 %6209 }
 0x86d   : > { %6176 = vperm.xlu1 %10578, %v14584_v54   ;;  %6179 = vperm.xlu0 %10577, %v14590_v7   ;;  %v14615_v1 = vpop.permute.xlu0 %6233  ;;  %v14727_v54 = vsub.s32 %v6307_v24, %v13869_v34  ;;  %v14741_v24 = vsub.s32 %v6314_v4, %v13869_v34 }
 0x86f   : > { %17052 = vst [vmem:[#allocation80_spill] sm:$0xff] %v14727_v54  ;;  %v6480_v35 = vrot.slane %v14610_v22, %v14727_v54  ;;  %v6519_v20 = vrot.slane %v14615_v1, %v14727_v54  ;;  %17056 = vst [vmem:[#allocation88_spill] sm:$0xff] %v14741_v24  ;;  %v6342_v1 = vadd.s32 4294967248, %v6302_v44 }
 0x871   : > { %6296 = vperm.xlu1 %10578, %v14507_v32   ;;  %6299 = vperm.xlu0 %10577, %v14511_v0   ;;  %v14612_v0 = vpop.permute.xlu1 %6230  ;;  %v14620_v5 = vpop.permute.xlu0 %6257 }
 0x872   : > { %v6558_v8 = vrot.slane %v14620_v5, %v14727_v54  ;;  %v6515_v22 = vrot.slane %v14612_v0, %v14730_v16  ;;  %v6306_v0 = vrot.slane %v14598_v48, %v14730_v16 }
 0x874   : > { %v6520_v44 = vsel %vm6312_vm14, %v6519_v20, %v6515_v22 }
 0x875   : > { %6200 = vperm.xlu1 %10578, %v14588_v12   ;;  %6203 = vperm.xlu0 %10577, %v14594_v9   ;;  %v14617_v6 = vpop.permute.xlu1 %6254  ;;  %v14625_v15 = vpop.permute.xlu0 %6137 }
 0x876   : > { %v6554_v4 = vrot.slane %v14617_v6, %v14730_v16  ;;  %v6363_v5 = vrot.slane %v14625_v15, %v14727_v54 }
 0x878   : > { %v6559_v15 = vsel %vm6312_vm14, %v6558_v8, %v6554_v4  ;;  %v14787_v8 = vsub.s32 %v6342_v1, %v13869_v34 }
 0x879   : > { %7503 = vbcast.lane.b32.xlu1 %v14136_v11, 304  ;;  %7495 = vbcast.lane.b32.xlu0 %v14136_v11, 288  ;;  %v14622_v32 = vpop.permute.xlu1 %6134 }
 0x87a   : > { %v6359_v49 = vrot.slane %v14622_v32, %v14730_v16  ;;  %17062 = vst [vmem:[#allocation94_spill] sm:$0xff] %v14787_v8 }
 0x87c   : > { %v6364_v20 = vsel %vm6312_vm14, %v6363_v5, %v6359_v49 }
 0x87d   : > { %7514 = vbcast.lane.b32.xlu1 %v7512_v31, 256  ;;  %7499 = vbcast.lane.b32.xlu0 %v14136_v11, 296 }
 0x881   : > { %7522 = vbcast.lane.b32.xlu1 %v7512_v31, 272  ;;  %7507 = vbcast.lane.b32.xlu0 %v14136_v11, 312 }
 0x885   : > { %7530 = vbcast.lane.b32.xlu1 %v7512_v31, 288  ;;  %7518 = vbcast.lane.b32.xlu0 %v7512_v31, 264 }
 0x888   : > { %v14627_v13 = vpop.permute.xlu1 %6158 }
 0x889   : > { %7538 = vbcast.lane.b32.xlu1 %v7512_v31, 304  ;;  %7526 = vbcast.lane.b32.xlu0 %v7512_v31, 280 }
 0x88c   : > { %v14632_v18 = vpop.permute.xlu0 %6161  ;;  %v14634_v11 = vpop.permute.xlu1 %6278 }
 0x88d   : > { %7549 = vbcast.lane.b32.xlu1 %v7547_v27, 256  ;;  %7534 = vbcast.lane.b32.xlu0 %v7512_v31, 296  ;;  %v6402_v48 = vrot.slane %v14632_v18, %v14727_v54 }
 0x890   : > { %v14636_v30 = vpop.permute.xlu0 %6281  ;;  %v14638_v17 = vpop.permute.xlu1 %6113 }
 0x891   : > { %7557 = vbcast.lane.b32.xlu1 %v7547_v27, 272  ;;  %7542 = vbcast.lane.b32.xlu0 %v7512_v31, 312 }
 0x894   : > { %v14640_v23 = vpop.permute.xlu0 %6185  ;;  %v14642_v25 = vpop.permute.xlu1 %6182 }
 0x895   : > { %7565 = vbcast.lane.b32.xlu1 %v7547_v27, 288  ;;  %7553 = vbcast.lane.b32.xlu0 %v7547_v27, 264 }
 0x898   : > { %v14645_v9 = vpop.permute.xlu0 %6215  ;;  %v14647_v19 = vpop.permute.xlu1 %6212 }
 0x899   : > { %7573 = vbcast.lane.b32.xlu1 %v7547_v27, 304  ;;  %7561 = vbcast.lane.b32.xlu0 %v7547_v27, 280  ;;  %v6485_v6 = vrot.slane %v14647_v19, %v14741_v24  ;;  %v6490_v18 = vrot.slane %v14645_v9, %v14746_v51 }
 0x89c   : > { %v14652_v56 = vpop.permute.xlu0 %6119  ;;  %v14654_v31 = vpop.permute.xlu1 %6116 }
 0x89d   : > { %7584 = vbcast.lane.b32.xlu1 %v7582_v42, 256  ;;  %7569 = vbcast.lane.b32.xlu0 %v7547_v27, 296  ;;  %v6318_v19 = vrot.slane %v14654_v31, %v14741_v24  ;;  %v6398_v31 = vrot.slane %v14627_v13, %v14730_v16  ;;  %v6325_v9 = vrot.slane %v14652_v56, %v14746_v51 }
 0x89f   : > { %v6403_v13 = vsel %vm6312_vm14, %v6402_v48, %v6398_v31 }
 0x8a0   : > { %v14656_v21 = vpop.permute.xlu0 %6239  ;;  %v14658_v59 = vpop.permute.xlu1 %6236 }
 0x8a1   : > { %7592 = vbcast.lane.b32.xlu1 %v7582_v42, 272  ;;  %7577 = vbcast.lane.b32.xlu0 %v7547_v27, 312  ;;  %v6529_v56 = vrot.slane %v14656_v21, %v14746_v51 }
 0x8a4   : > { %v14660_v50 = vpop.permute.xlu0 %6263  ;;  %v14662_v43 = vpop.permute.xlu1 %6260 }
 0x8a5   : > { %7600 = vbcast.lane.b32.xlu1 %v7582_v42, 288  ;;  %7588 = vbcast.lane.b32.xlu0 %v7582_v42, 264  ;;  %v6563_v1 = vrot.slane %v14662_v43, %v14741_v24 }
 0x8a7   : > { %v6564_v48 = vsel %vm6319_vm15, %v6563_v1, %v6559_v15 }
 0x8a8   : > { %v14665_v7 = vpop.permute.xlu0 %6143  ;;  %v14667_v52 = vpop.permute.xlu1 %6140 }
 0x8a9   : > { %7608 = vbcast.lane.b32.xlu1 %v7582_v42, 304  ;;  %7596 = vbcast.lane.b32.xlu0 %v7582_v42, 280  ;;  %v6368_v4 = vrot.slane %v14667_v52, %v14741_v24  ;;  %v6373_v49 = vrot.slane %v14665_v7, %v14746_v51 }
 0x8ac   : > { %v14674_v27 = vpop.permute.xlu0 %6167  ;;  %v14676_v60 = vpop.permute.xlu1 %6164 }
 0x8ad   : > { %7619 = vbcast.lane.b32.xlu1 %v14672_v62, 256  ;;  %7604 = vbcast.lane.b32.xlu0 %v7582_v42, 296 }
 0x8b0   : > { %v14679_v26 = vpop.permute.xlu0 %6287  ;;  %v14681_v47 = vpop.permute.xlu1 %6284 }
 0x8b1   : > { %7627 = vbcast.lane.b32.xlu1 %v14672_v62, 272  ;;  %7612 = vbcast.lane.b32.xlu0 %v7582_v42, 312  ;;  %v6602_v43 = vrot.slane %v14681_v47, %v14741_v24  ;;  %v6369_v47 = vsel %vm6319_vm15, %v6368_v4, %v6364_v20 }
 0x8b2   : > { %v6374_v31 = vsel %vm6326_vm0, %v6373_v49, %v6369_v47 }
 0x8b4   : > { %v14684_v63 = vpop.permute.xlu0 %6191  ;;  %v14686_v36 = vpop.permute.xlu1 %6188 }
 0x8b5   : > { %7635 = vbcast.lane.b32.xlu1 %v14672_v62, 288  ;;  %7623 = vbcast.lane.b32.xlu0 %v14672_v62, 264  ;;  %v6446_v21 = vrot.slane %v14686_v36, %v14741_v24  ;;  %v6451_v20 = vrot.slane %v14684_v63, %v14746_v51 }
 0x8b8   : > { %v14690_v53 = vpop.permute.xlu0 %6221  ;;  %v14692_v38 = vpop.permute.xlu1 %6218 }
 0x8b9   : > { %7643 = vbcast.lane.b32.xlu1 %v14672_v62, 304  ;;  %7631 = vbcast.lane.b32.xlu0 %v14672_v62, 280  ;;  %v6495_v7 = vrot.slane %v14692_v38, %v14760_v2 }
 0x8bc   : > { %v14696_v41 = vpop.permute.xlu0 %6125  ;;  %v14698_v45 = vpop.permute.xlu1 %6122 }
 0x8bd   : > { %7639 = vbcast.lane.b32.xlu0 %v14672_v62, 296  ;;  %v6332_v36 = vrot.slane %v14698_v45, %v14760_v2 }
 0x8c0   : > { %v14701_v42 = vpop.permute.xlu0 %6245  ;;  %v14703_v14 = vpop.permute.xlu1 %6242 }
 0x8c4   : > { %v14705_v58 = vpop.permute.xlu0 %6269  ;;  %v14707_v28 = vpop.permute.xlu1 %6266 }
 0x8c8   : > { %v14709_v39 = vpop.permute.xlu0 %6149  ;;  %v14711_v3 = vpop.permute.xlu1 %6146 }
 0x8c9   : > { %v6378_v45 = vrot.slane %v14711_v3, %v14760_v2 }
 0x8cc   : > { %v14713_v12 = vpop.permute.xlu0 %6173  ;;  %v14715_v40 = vpop.permute.xlu1 %6170 }
 0x8d0   : > { %v14718_v61 = vpop.permute.xlu0 %6293  ;;  %v14720_v62 = vpop.permute.xlu1 %6290 }
 0x8d1   : > { %17050 = vst [vmem:[#allocation64_spill] sm:$0xff] %v14718_v61  ;;  %v14778_v61 = vsub.s32 %v6349_v57, %v13869_v34  ;;  %v6437_v57 = vrot.slane %v14642_v25, %v14730_v16 }
 0x8d3   : > { %17061 = vst [vmem:[#allocation93_spill] sm:$0xff] %v14778_v61 }
 0x8d4   : > { %v14722_v55 = vpop.permute.xlu0 %6197  ;;  %v14724_v37 = vpop.permute.xlu1 %6194 }
 0x8d5   : > { %17051 = vst [vmem:[#allocation79_spill] sm:$0xff] %v14722_v55 }
 0x8d8   : > { %v14732_v33 = vpop.permute.xlu0 %6227  ;;  %v14734_v29 = vpop.permute.xlu1 %6224 }
 0x8d9   : > { %17054 = vst [vmem:[#allocation86_spill] sm:$0xff] %v14732_v33  ;;  %17055 = vst [vmem:[#allocation87_spill] sm:$0xff] %v14734_v29  ;;  %v6476_v33 = vrot.slane %v14603_v10, %v14730_v16  ;;  %v14753_v29 = vsub.s32 %v6335_v46, %v13869_v34 }
 0x8db   : > { %17058 = vst [vmem:[#allocation90_spill] sm:$0xff] %v14753_v29  ;;  %v6481_v46 = vsel %vm6312_vm14, %v6480_v35, %v6476_v33  ;;  %v6597_v35 = vrot.slane %v14636_v30, %v14727_v54  ;;  %v6593_v33 = vrot.slane %v14634_v11, %v14730_v16  ;;  %v6500_v63 = vrot.slane %v14690_v53, %v14753_v29 }
 0x8dc   : > { %v14762_v55 = vpop.permute.xlu0 %6131  ;;  %v14764_v10 = vpop.permute.xlu1 %6128  ;;  %v6486_v22 = vsel %vm6319_vm15, %v6485_v6, %v6481_v46  ;;  %v6383_v1 = vrot.slane %v14709_v39, %v14753_v29 }
 0x8dd   : > { %17060 = vst [vmem:[#allocation92_spill] sm:$0xff] %v14762_v55  ;;  %v6311_v55 = vrot.slane %v14638_v17, %v14727_v54  ;;  %v6441_v17 = vrot.slane %v14640_v23, %v14727_v54  ;;  %v6524_v23 = vrot.slane %v14658_v59, %v14741_v24  ;;  %v6598_v11 = vsel %vm6312_vm14, %v6597_v35, %v6593_v33 }
 0x8de   : > { %v6407_v59 = vrot.slane %v14676_v60, %v14741_v24  ;;  %v6491_v52 = vsel %vm6326_vm0, %v6490_v18, %v6486_v22  ;;  %v6568_v60 = vrot.slane %v14660_v50, %v14746_v51  ;;  %v6412_v35 = vrot.slane %v14674_v27, %v14746_v51 }
 0x8df   : > { %v6313_v25 = vsel %vm6312_vm14, %v6311_v55, %v6306_v0  ;;  %v6442_v55 = vsel %vm6312_vm14, %v6441_v17, %v6437_v57  ;;  %v6525_v6 = vsel %vm6319_vm15, %v6524_v23, %v6520_v44  ;;  %v6607_v50 = vrot.slane %v14679_v26, %v14746_v51 }
 0x8e0   : > { %v14796_v32 = vpop.permute.xlu0 %6251  ;;  %v14798_v30 = vpop.permute.xlu1 %6248  ;;  %v6320_v5 = vsel %vm6319_vm15, %v6318_v19, %v6313_v25  ;;  %v6408_v44 = vsel %vm6319_vm15, %v6407_v59, %v6403_v13  ;;  %v6603_v15 = vsel %vm6319_vm15, %v6602_v43, %v6598_v11  ;;  %v6530_v27 = vsel %vm6326_vm0, %v6529_v56, %v6525_v6 }
 0x8e1   : > { %v6327_v19 = vsel %vm6326_vm0, %v6325_v9, %v6320_v5  ;;  %v6534_v17 = vrot.slane %v14703_v14, %v14760_v2  ;;  %v6447_v26 = vsel %vm6319_vm15, %v6446_v21, %v6442_v55  ;;  %v6569_v38 = vsel %vm6326_vm0, %v6568_v60, %v6564_v48  ;;  %v17063_v60 = vld [vmem:[#allocation64_spill] sm:$0xff] }
 0x8e2   : > { %v6339_v33 = vrot.slane %v14696_v41, %v14753_v29  ;;  %v6413_v14 = vsel %vm6326_vm0, %v6412_v35, %v6408_v44  ;;  %v6417_v22 = vrot.slane %v14715_v40, %v14760_v2  ;;  %v6496_v23 = vsel %vm6333_vm1, %v6495_v7, %v6491_v52  ;;  %v17064_v44 = vld [vmem:[#allocation79_spill] sm:$0xff] }
 0x8e3   : > { %v6334_v25 = vsel %vm6333_vm1, %v6332_v36, %v6327_v19  ;;  %v6539_v9 = vrot.slane %v14701_v42, %v14753_v29  ;;  %v6608_v3 = vsel %vm6326_vm0, %v6607_v50, %v6603_v15  ;;  %v6535_v53 = vsel %vm6333_vm1, %v6534_v17, %v6530_v27  ;;  %v17065_v7 = vld [vmem:[#allocation87_spill] sm:$0xff] }
 0x8e4   : > { %v14825_v0 = vpop.permute.xlu0 %6275  ;;  %v14827_v46 = vpop.permute.xlu1 %6272  ;;  %v6573_v41 = vrot.slane %v14707_v28, %v14760_v2  ;;  %v6452_v40 = vsel %vm6326_vm0, %v6451_v20, %v6447_v26  ;;  %v6379_v11 = vsel %vm6333_vm1, %v6378_v45, %v6374_v31  ;;  %v6422_v42 = vrot.slane %v14713_v12, %v14753_v29  ;;  %v17066_v15 = vld [vmem:[#allocation92_spill] sm:$0xff] }
 0x8e5   : > { %v6612_v5 = vrot.slane %v14720_v62, %v14760_v2  ;;  %v6418_v55 = vsel %vm6333_vm1, %v6417_v22, %v6413_v14  ;;  %v6501_v28 = vsel %vm6340_vm2, %v6500_v63, %v6496_v23  ;;  %v6341_v39 = vsel %vm6340_vm2, %v6339_v33, %v6334_v25 }
 0x8e6   : > { %v6578_v43 = vrot.slane %v14705_v58, %v14753_v29  ;;  %v6456_v52 = vrot.slane %v14724_v37, %v14760_v2  ;;  %v6346_v12 = vrot.slane %v14764_v10, %v14787_v8  ;;  %v6540_v62 = vsel %vm6340_vm2, %v6539_v9, %v6535_v53 }
 0x8e7   : > { %v6574_v6 = vsel %vm6333_vm1, %v6573_v41, %v6569_v38  ;;  %v6617_v49 = vrot.slane %v17063_v60, %v14753_v29  ;;  %v6384_v48 = vsel %vm6340_vm2, %v6383_v1, %v6379_v11  ;;  %v6613_v58 = vsel %vm6333_vm1, %v6612_v5, %v6608_v3  ;;  %v17067_v38 = vld [vmem:[#allocation86_spill] sm:$0xff] }
 0x8e8   : > { %v6156_v57 = vpop.permute.xlu0 %6155  ;;  %v6153_v18 = vpop.permute.xlu1 %6152  ;;  %v6423_v10 = vsel %vm6340_vm2, %v6422_v42, %v6418_v55  ;;  %v6461_v50 = vrot.slane %v17064_v44, %v14753_v29  ;;  %v6505_v36 = vrot.slane %v17065_v7, %v14787_v8  ;;  %v6353_v20 = vrot.slane %v17066_v15, %v14778_v61 }
 0x8e9   : > { %v6388_v59 = vrot.slane %v6153_v18, %v14787_v8  ;;  %v6393_v21 = vrot.slane %v6156_v57, %v14778_v61  ;;  %v6457_v17 = vsel %vm6333_vm1, %v6456_v52, %v6452_v40  ;;  %v6348_v57 = vsel %vm6347_vm11, %v6346_v12, %v6341_v39 }
 0x8ea   : > { %v6544_v18 = vrot.slane %v14798_v30, %v14787_v8  ;;  %v6579_v26 = vsel %vm6340_vm2, %v6578_v43, %v6574_v6  ;;  %v6510_v31 = vrot.slane %v17067_v38, %v14778_v61  ;;  %v6583_v45 = vrot.slane %v14827_v46, %v14787_v8 }
 0x8eb   : > { %v6389_v37 = vsel %vm6347_vm11, %v6388_v59, %v6384_v48  ;;  %v6618_v33 = vsel %vm6340_vm2, %v6617_v49, %v6613_v58  ;;  %v6506_v3 = vsel %vm6347_vm11, %v6505_v36, %v6501_v28  ;;  %v6355_v53 = vsel %vm6354_vm12, %v6353_v20, %v6348_v57 }
 0x8ec   : > { %v6180_v4 = vpop.permute.xlu0 %6179  ;;  %v6177_v13 = vpop.permute.xlu1 %6176  ;;  %v6394_v63 = vsel %vm6354_vm12, %v6393_v21, %v6389_v37  ;;  %v6549_v46 = vrot.slane %v14796_v32, %v14778_v61  ;;  %v6462_v41 = vsel %vm6340_vm2, %v6461_v50, %v6457_v17  ;;  %v6545_v1 = vsel %vm6347_vm11, %v6544_v18, %v6540_v62 }
 0x8ed   : > { %v6427_v56 = vrot.slane %v6177_v13, %v14787_v8  ;;  %v6432_v19 = vrot.slane %v6180_v4, %v14778_v61  ;;  %v6588_v40 = vrot.slane %v14825_v0, %v14778_v61  ;;  %v6629_v4 = vsel %vm2950_vm5, %v6394_v63, %v6355_v53 }
 0x8ee   : > { %v6584_v11 = vsel %vm6347_vm11, %v6583_v45, %v6579_v26  ;;  %v6511_v32 = vsel %vm6354_vm12, %v6510_v31, %v6506_v3  ;;  %v6550_v0 = vsel %vm6354_vm12, %v6549_v46, %v6545_v1  ;;  %v17091_v3 = vld [vmem:[#allocation82_spill] sm:$0xff] }
 0x8ef   : > { %v6428_v27 = vsel %vm6347_vm11, %v6427_v56, %v6423_v10  ;;  %v6589_v56 = vsel %vm6354_vm12, %v6588_v40, %v6584_v11 }
 0x8f0   : > { %v6300_v47 = vpop.permute.xlu0 %6299  ;;  %v6297_v35 = vpop.permute.xlu1 %6296  ;;  %v6433_v23 = vsel %vm6354_vm12, %v6432_v19, %v6428_v27 }
 0x8f1   : > { %v6622_v25 = vrot.slane %v6297_v35, %v14787_v8  ;;  %v6630_v42 = vsel %vm2932_vm4, %v6433_v23, %v6629_v4  ;;  %v6627_v5 = vrot.slane %v6300_v47, %v14778_v61  ;;  %v17095_v4 = vld [vmem:[#allocation75_spill] sm:$0xff] }
 0x8f3   : > { %v6623_v55 = vsel %vm6347_vm11, %v6622_v25, %v6618_v33  ;;  %v17085_v33 = vld [vmem:[#allocation30_spill] sm:$0xff]  ;;  %v17089_v25 = vld [vmem:[#allocation41_spill] sm:$0xff] }
 0x8f4   : > { %v6204_v14 = vpop.permute.xlu0 %6203  ;;  %v6201_v22 = vpop.permute.xlu1 %6200  ;;  %v6628_v52 = vsel %vm6354_vm12, %v6627_v5, %v6623_v55 }
 0x8f5   : > { %v6471_v30 = vrot.slane %v6204_v14, %v14778_v61  ;;  %v6466_v9 = vrot.slane %v6201_v22, %v14787_v8  ;;  %v17087_v22 = vld [vmem:[#allocation76_spill] sm:$0xff] }
 0x8f7   : > { %v6467_v13 = vsel %vm6347_vm11, %v6466_v9, %v6462_v41  ;;  %v17093_v41 = vld [vmem:[#allocation35_spill] sm:$0xff] }
 0x8f8   : > { %v6472_v59 = vsel %vm6354_vm12, %v6471_v30, %v6467_v13  ;;  %v14950_v60 = vpop.permute.xlu1 %7503 }
 0x8f9   : > { %v6631_v28 = vsel %vm2935_vm6, %v6472_v59, %v6630_v42  ;;  %17068 = vst [vmem:[#allocation64_spill] sm:$0xff] %v14950_v60  ;;  %v17097_v42 = vld [vmem:[#allocation36_spill] sm:$0xff] }
 0x8fa   : > { %v6632_v39 = vsel %vm2938_vm7, %v6511_v32, %v6631_v28  ;;  %v17099_v32 = vld [vmem:[#allocation72_spill] sm:$0xff] }
 0x8fb   : > { %v6633_v43 = vsel %vm2941_vm8, %v6550_v0, %v6632_v39  ;;  %v17101_v0 = vld [vmem:[#allocation45_spill] sm:$0xff] }
 0x8fc   : > { %v6634_v12 = vsel %vm2944_vm9, %v6589_v56, %v6633_v43  ;;  %v14952_v49 = vpop.permute.xlu1 %7514  ;;  %v17103_v43 = vld [vmem:[#allocation56_spill] sm:$0xff] }
 0x8fd   : > { %v6635_v62 = vsel %vm2947_vm10, %v6628_v52, %v6634_v12  ;;  %17069 = vst [vmem:[#allocation79_spill] sm:$0xff] %v14952_v49 }
 0x8fe   : > { %v6637_v6 = vsel %vm784_vm3, %v6635_v62, 0.0  ;;  %v17105_v62 = vld [vmem:[#allocation46_spill] sm:$0xff] }
 0x8ff   : > { %6638 = vadd.xlane.f32.xlu1 %v6637_v6 }
 0x900   : > { %v14954_v21 = vpop.permute.xlu1 %7522 }
 0x901   : > { %17070 = vst [vmem:[#allocation87_spill] sm:$0xff] %v14954_v21 }
 0x904   : > { %v14956_v48 = vpop.permute.xlu1 %7530 }
 0x905   : > { %17071 = vst [vmem:[#allocation92_spill] sm:$0xff] %v14956_v48 }
 0x908   : > { %v14958_v47 = vpop.permute.xlu1 %7538 }
 0x909   : > { %17072 = vst [vmem:[#allocation86_spill] sm:$0xff] %v14958_v47 }
 0x90c   : > { %v14960_v35 = vpop.permute.xlu1 %7549 }
 0x90d   : > { %17073 = vst [vmem:[#allocation95_spill] sm:$0xff] %v14960_v35 }
 0x910   : > { %v14962_v58 = vpop.permute.xlu1 %7557 }
 0x911   : > { %17074 = vst [vmem:[#allocation96_spill] sm:$0xff] %v14962_v58 }
 0x914   : > { %v14964_v37 = vpop.permute.xlu1 %7565 }
 0x915   : > { %17075 = vst [vmem:[#allocation97_spill] sm:$0xff] %v14964_v37 }
 0x918   : > { %v14966_v19 = vpop.permute.xlu1 %7573 }
 0x919   : > { %17076 = vst [vmem:[#allocation98_spill] sm:$0xff] %v14966_v19 }
 0x91c   : > { %v14968_v10 = vpop.permute.xlu1 %7584 }
 0x91d   : > { %17077 = vst [vmem:[#allocation99_spill] sm:$0xff] %v14968_v10 }
 0x920   : > { %v14970_v44 = vpop.permute.xlu1 %7592 }
 0x921   : > { %17078 = vst [vmem:[#allocation100_spill] sm:$0xff] %v14970_v44 }
 0x924   : > { %v14972_v50 = vpop.permute.xlu1 %7600 }
 0x925   : > { %17079 = vst [vmem:[#allocation101_spill] sm:$0xff] %v14972_v50 }
 0x928   : > { %v14974_v7 = vpop.permute.xlu1 %7608 }
 0x929   : > { %17080 = vst [vmem:[#allocation102_spill] sm:$0xff] %v14974_v7 }
 0x92c   : > { %v14976_v36 = vpop.permute.xlu1 %7619 }
 0x92d   : > { %17081 = vst [vmem:[#allocation103_spill] sm:$0xff] %v14976_v36 }
 0x930   : > { %v14978_v15 = vpop.permute.xlu1 %7627 }
 0x931   : > { %17082 = vst [vmem:[#allocation104_spill] sm:$0xff] %v14978_v15 }
 0x934   : > { %v14980_v20 = vpop.permute.xlu1 %7635 }
 0x935   : > { %17083 = vst [vmem:[#allocation105_spill] sm:$0xff] %v14980_v20 }
 0x938   : > { %v14982_v27 = vpop.permute.xlu1 %7643 }
 0x939   : > { %17084 = vst [vmem:[#allocation106_spill] sm:$0xff] %v14982_v27 }
 0x98c   : > { %v6639_v17 = vpop.xlane.xlu1 %6638 }
 0x98d   : > { %v6640_v57 = vrot.slane %v6639_v17, 4 }
 0x98f   : > { %v6641_v18 = vadd.f32 %v6640_v57, %v6639_v17  ;;  %v17107_v57 = vld [vmem:[#allocation16_spill] sm:$0xff] }
 0x991   : > { %v6642_v26 = vrot.slane %v6641_v18, 2 }
 0x993   : > { %v6643_v38 = vadd.f32 %v6642_v26, %v6641_v18 }
 0x995   : > { %v6644_v31 = vrot.slane %v6643_v38, 1 }
 0x997   : > { %v6645_v45 = vadd.f32 %v6644_v31, %v6643_v38  ;;  %v17109_v38 = vld [vmem:[#allocation6_spill] sm:$0xff] }
 0x999   : > { %10526 = vpush %v6645_v45 }
 0x9ca   : > { %s10527_s0 = spop %10526 }
 0x9cb   : > { %s6649_s17 = smul.f32 0.001953125, %s10527_s0  ;;  %s404_s0 = sand.u32 1, %s10776_s22  }
 0x9cd   : > { %v14984_v63 = vstv %s6649_s17  ;;  %s16287_s17 = sshll.u32 %s404_s0, 3 }
 0x9ce   : > { %v14988_v14 = vsub.f32 %v17085_v33, %v14984_v63  ;;  %v14992_v23 = vsub.f32 %v17087_v22, %v14984_v63  ;;  %v14996_v30 = vsub.f32 %v17089_v25, %v14984_v63  ;;  %v15002_v53 = vsub.f32 %v17091_v3, %v14984_v63  ;;  %v17111_v33 = vld [vmem:[#allocation70_spill] sm:$0xff]  ;;  %v17114_v3 = vld [vmem:[#allocation13_spill] sm:$0xff]  ;;  %s406_s28 = scalar_lea.vmem [#allocation2], %s16287_s17 }
 0x9cf   : > { %v15008_v1 = vsub.f32 %v17093_v41, %v14984_v63  ;;  %v15014_v13 = vsub.f32 %v17095_v4, %v14984_v63  ;;  %v15020_v5 = vsub.f32 %v17097_v42, %v14984_v63  ;;  %v15026_v55 = vsub.f32 %v17099_v32, %v14984_v63  ;;  %v17118_v42 = vld [vmem:[#allocation67_spill] sm:$0xff]  ;;  %s8848_s29 = sshll.u32 %s406_s28, 4  ;;  %s16326_s29 = int_to_ptr.vmem [resolvable:$true] %s8848_s29 }
 0x9d0   : > { %17086 = vst [vmem:[#allocation30_spill] sm:$0xff] %v14988_v14  ;;  %17088 = vst [vmem:[#allocation76_spill] sm:$0xff] %v14992_v23  ;;  %v6715_v9 = vmul.f32 %v14988_v14, %v14988_v14  ;;  %v6724_v46 = vmul.f32 %v14992_v23, %v14992_v23  ;;  %v6716_v40 = vmul.f32 %v14996_v30, %v14996_v30 }
 0x9d1   : > { %17090 = vst [vmem:[#allocation41_spill] sm:$0xff] %v14996_v30  ;;  %17092 = vst [vmem:[#allocation82_spill] sm:$0xff] %v15002_v53  ;;  %v6729_v11 = vmul.f32 %v15002_v53, %v15002_v53  ;;  %v6717_v59 = vmul.f32 %v15008_v1, %v15008_v1  ;;  %v6731_v28 = vmul.f32 %v15014_v13, %v15014_v13 }
 0x9d2   : > { %6844 = vperm.xlu0 %10577, %v6715_v9   ;;  %17094 = vst [vmem:[#allocation35_spill] sm:$0xff] %v15008_v1  ;;  %6871 = vperm.xlu1 %10578, %v6724_v46   ;;  %17096 = vst [vmem:[#allocation75_spill] sm:$0xff] %v15014_v13  ;;  %v15032_v39 = vsub.f32 %v17101_v0, %v14984_v63  ;;  %v6718_v56 = vmul.f32 %v15020_v5, %v15020_v5  ;;  %v15066_v9 = vpop.permute.xlu0 %7495  ;;  %v17121_v0 = vld [vmem:[#allocation44_spill] sm:$0xff] }
 0x9d3   : > { %17098 = vst [vmem:[#allocation36_spill] sm:$0xff] %v15020_v5  ;;  %17100 = vst [vmem:[#allocation72_spill] sm:$0xff] %v15026_v55  ;;  %v15038_v52 = vsub.f32 %v17103_v43, %v14984_v63  ;;  %v6733_v12 = vmul.f32 %v15026_v55, %v15026_v55  ;;  %v15044_v6 = vsub.f32 %v17105_v62, %v14984_v63 }
 0x9d4   : > { %17102 = vst [vmem:[#allocation45_spill] sm:$0xff] %v15032_v39  ;;  %v6719_v17 = vmul.f32 %v15032_v39, %v15032_v39  ;;  %v15050_v18 = vsub.f32 %v17107_v57, %v14984_v63  ;;  %v15056_v31 = vsub.f32 %v17109_v38, %v14984_v63  ;;  %v15062_v22 = vsub.f32 %v17111_v33, %v14984_v63  ;;  %v17125_v57 = vld [vmem:[#allocation14_spill] sm:$0xff] }
 0x9d5   : > { %17104 = vst [vmem:[#allocation56_spill] sm:$0xff] %v15038_v52  ;;  %17106 = vst [vmem:[#allocation46_spill] sm:$0xff] %v15044_v6  ;;  %v6735_v26 = vmul.f32 %v15038_v52, %v15038_v52  ;;  %v6720_v45 = vmul.f32 %v15044_v6, %v15044_v6  ;;  %v15070_v46 = vsub.f32 %v17114_v3, %v14984_v63  ;;  %v17128_v33 = vld [vmem:[#allocation78_spill] sm:$0xff] }
 0x9d6   : > { %6847 = vperm.xlu0 %10577, %v6716_v40   ;;  %6886 = vperm.xlu1 %10578, %v6729_v11   ;;  %17108 = vst [vmem:[#allocation16_spill] sm:$0xff] %v15050_v18  ;;  %17110 = vst [vmem:[#allocation6_spill] sm:$0xff] %v15056_v31  ;;  %v6737_v25 = vmul.f32 %v15050_v18, %v15050_v18  ;;  %v6721_v41 = vmul.f32 %v15056_v31, %v15056_v31  ;;  %v17116_v40 = vld [vmem:[#allocation21_spill] sm:$0xff] }
 0x9d7   : > { %17112 = vst [vmem:[#allocation70_spill] sm:$0xff] %v15062_v22  ;;  %17113 = vst [vmem:[#allocation107_spill] sm:$0xff] %v15066_v9  ;;  %v15076_v4 = vsub.f32 %v17116_v40, %v14984_v63  ;;  %v6739_v11 = vmul.f32 %v15062_v22, %v15062_v22  ;;  %v6722_v32 = vmul.f32 %v15070_v46, %v15070_v46 }
 0x9d8   : > { %17115 = vst [vmem:[#allocation13_spill] sm:$0xff] %v15070_v46 }
 0x9d9   : > { %17117 = vst [vmem:[#allocation21_spill] sm:$0xff] %v15076_v4  ;;  %v6741_v43 = vmul.f32 %v15076_v4, %v15076_v4  ;;  %v17228_v4 = vld [vmem:[#allocation81_spill] sm:$0xff] }
 0x9da   : > { %6850 = vperm.xlu0 %10577, %v6717_v59   ;;  %6892 = vperm.xlu1 %10578, %v6731_v28   ;;  %v15082_v59 = vsub.f32 %v17118_v42, %v14984_v63  ;;  %v15086_v28 = vpop.permute.xlu0 %7499  ;;  %v17132_v42 = vld [vmem:[#allocation15_spill] sm:$0xff] }
 0x9db   : > { %17120 = vst [vmem:[#allocation108_spill] sm:$0xff] %v15086_v28  ;;  %v17236_v28 = vsub.s32 4, %v13869_v34 }
 0x9dc   : > { %17119 = vst [vmem:[#allocation67_spill] sm:$0xff] %v15082_v59 }
 0x9de   : > { %6853 = vperm.xlu0 %10577, %v6718_v56   ;;  %6898 = vperm.xlu1 %10578, %v6733_v12   ;;  %v15090_v56 = vsub.f32 %v17121_v0, %v14984_v63  ;;  %v17123_v12 = vld [vmem:[#allocation5_spill] sm:$0xff] }
 0x9df   : > { %v15096_v62 = vsub.f32 %v17123_v12, %v14984_v63  ;;  %v17135_v12 = vld [vmem:[#allocation50_spill] sm:$0xff] }
 0x9e0   : > { %17122 = vst [vmem:[#allocation44_spill] sm:$0xff] %v15090_v56  ;;  %v6743_v38 = vmul.f32 %v15090_v56, %v15090_v56 }
 0x9e1   : > { %17124 = vst [vmem:[#allocation5_spill] sm:$0xff] %v15096_v62  ;;  %v6725_v3 = vmul.f32 %v15096_v62, %v15096_v62 }
 0x9e2   : > { %6856 = vperm.xlu0 %10577, %v6719_v17   ;;  %6904 = vperm.xlu1 %10578, %v6735_v26   ;;  %v6723_v17 = vmul.f32 %v15082_v59, %v15082_v59  ;;  %v15102_v26 = vsub.f32 %v17125_v57, %v14984_v63 }
 0x9e4   : > { %17126 = vst [vmem:[#allocation14_spill] sm:$0xff] %v15102_v26 }
 0x9e6   : > { %6859 = vperm.xlu0 %10577, %v6720_v45   ;;  %6910 = vperm.xlu1 %10578, %v6737_v25   ;;  %v15106_v45 = vpop.permute.xlu0 %7507  ;;  %v15110_v25 = vsub.f32 %v17128_v33, %v14984_v63 }
 0x9e7   : > { %17127 = vst [vmem:[#allocation109_spill] sm:$0xff] %v15106_v45 }
 0x9e8   : > { %17129 = vst [vmem:[#allocation78_spill] sm:$0xff] %v15110_v25  ;;  %v6726_v0 = vmul.f32 %v15110_v25, %v15110_v25 }
 0x9ea   : > { %6862 = vperm.xlu0 %10577, %v6721_v41   ;;  %6916 = vperm.xlu1 %10578, %v6739_v11   ;;  %v17130_v41 = vld [vmem:[#allocation48_spill] sm:$0xff]  ;;  %v6745_v11 = vmul.f32 %v15102_v26, %v15102_v26 }
 0x9eb   : > { %v15116_v40 = vsub.f32 %v17130_v41, %v14984_v63  ;;  %v17139_v41 = vld [vmem:[#allocation42_spill] sm:$0xff] }
 0x9ed   : > { %17131 = vst [vmem:[#allocation48_spill] sm:$0xff] %v15116_v40  ;;  %v6747_v57 = vmul.f32 %v15116_v40, %v15116_v40 }
 0x9ee   : > { %6865 = vperm.xlu0 %10577, %v6722_v32   ;;  %6922 = vperm.xlu1 %10578, %v6741_v43   ;;  %v15122_v32 = vsub.f32 %v17132_v42, %v14984_v63  ;;  %v15126_v43 = vpop.permute.xlu0 %7518 }
 0x9ef   : > { %17134 = vst [vmem:[#allocation110_spill] sm:$0xff] %v15126_v43 }
 0x9f0   : > { %17133 = vst [vmem:[#allocation15_spill] sm:$0xff] %v15122_v32 }
 0x9f2   : > { %6868 = vperm.xlu0 %10577, %v6723_v17   ;;  %6928 = vperm.xlu1 %10578, %v6743_v38   ;;  %v15130_v17 = vsub.f32 %v17135_v12, %v14984_v63  ;;  %v17137_v38 = vld [vmem:[#allocation53_spill] sm:$0xff]  ;;  %v15146_v12 = vpop.permute.xlu0 %7526 }
 0x9f3   : > { %v15136_v33 = vsub.f32 %v17137_v38, %v14984_v63  ;;  %17141 = vst [vmem:[#allocation111_spill] sm:$0xff] %v15146_v12 }
 0x9f4   : > { %17136 = vst [vmem:[#allocation50_spill] sm:$0xff] %v15130_v17  ;;  %v6749_v42 = vmul.f32 %v15130_v17, %v15130_v17 }
 0x9f5   : > { %17138 = vst [vmem:[#allocation53_spill] sm:$0xff] %v15136_v33  ;;  %v6728_v38 = vmul.f32 %v15136_v33, %v15136_v33 }
 0x9f6   : > { %6874 = vperm.xlu0 %10577, %v6725_v3   ;;  %6934 = vperm.xlu1 %10578, %v6745_v11   ;;  %v6727_v3 = vmul.f32 %v15122_v32, %v15122_v32  ;;  %v15142_v11 = vsub.f32 %v17139_v41, %v14984_v63  ;;  %v15166_v36 = vpop.permute.xlu0 %7534 }
 0x9f7   : > { %17148 = vst [vmem:[#allocation112_spill] sm:$0xff] %v15166_v36 }
 0x9f8   : > { %17140 = vst [vmem:[#allocation42_spill] sm:$0xff] %v15142_v11  ;;  %v6751_v41 = vmul.f32 %v15142_v11, %v15142_v11 }
 0x9fa   : > { %6877 = vperm.xlu0 %10577, %v6726_v0   ;;  %6940 = vperm.xlu1 %10578, %v6747_v57   ;;  %v17142_v0 = vld [vmem:[#allocation54_spill] sm:$0xff]  ;;  %v17144_v57 = vld [vmem:[#allocation47_spill] sm:$0xff]  ;;  %v15186_v11 = vpop.permute.xlu0 %7542 }
 0x9fb   : > { %v15150_v27 = vsub.f32 %v17142_v0, %v14984_v63  ;;  %v15156_v20 = vsub.f32 %v17144_v57, %v14984_v63  ;;  %17155 = vst [vmem:[#allocation113_spill] sm:$0xff] %v15186_v11  ;;  %v15437_v11 = vsub.f32 %v17228_v4, %v14984_v63 }
 0x9fd   : > { %17143 = vst [vmem:[#allocation54_spill] sm:$0xff] %v15150_v27  ;;  %17145 = vst [vmem:[#allocation47_spill] sm:$0xff] %v15156_v20  ;;  %v6730_v0 = vmul.f32 %v15150_v27, %v15150_v27  ;;  %v6753_v57 = vmul.f32 %v15156_v20, %v15156_v20 }
 0x9fe   : > { %6880 = vperm.xlu0 %10577, %v6727_v3   ;;  %6946 = vperm.xlu1 %10578, %v6749_v42   ;;  %v17146_v3 = vld [vmem:[#allocation24_spill] sm:$0xff]  ;;  %v17149_v42 = vld [vmem:[#allocation49_spill] sm:$0xff]  ;;  %v15206_v17 = vpop.permute.xlu0 %7553  ;;  %17229 = vst [vmem:[#allocation81_spill] sm:$0xff] %v15437_v11 }
 0x9ff   : > { %v15162_v15 = vsub.f32 %v17146_v3, %v14984_v63  ;;  %v15170_v7 = vsub.f32 %v17149_v42, %v14984_v63  ;;  %17162 = vst [vmem:[#allocation114_spill] sm:$0xff] %v15206_v17 }
 0xa01   : > { %17147 = vst [vmem:[#allocation24_spill] sm:$0xff] %v15162_v15  ;;  %17150 = vst [vmem:[#allocation49_spill] sm:$0xff] %v15170_v7  ;;  %v6732_v3 = vmul.f32 %v15162_v15, %v15162_v15  ;;  %v6755_v42 = vmul.f32 %v15170_v7, %v15170_v7 }
 0xa02   : > { %6883 = vperm.xlu0 %10577, %v6728_v38   ;;  %6952 = vperm.xlu1 %10578, %v6751_v41   ;;  %v17151_v38 = vld [vmem:[#allocation74_spill] sm:$0xff]  ;;  %v17153_v41 = vld [vmem:[#allocation43_spill] sm:$0xff]  ;;  %v15226_v37 = vpop.permute.xlu0 %7561 }
 0xa03   : > { %v15176_v50 = vsub.f32 %v17151_v38, %v14984_v63  ;;  %v15182_v44 = vsub.f32 %v17153_v41, %v14984_v63  ;;  %17169 = vst [vmem:[#allocation115_spill] sm:$0xff] %v15226_v37 }
 0xa05   : > { %17152 = vst [vmem:[#allocation74_spill] sm:$0xff] %v15176_v50  ;;  %17154 = vst [vmem:[#allocation43_spill] sm:$0xff] %v15182_v44  ;;  %v6734_v38 = vmul.f32 %v15176_v50, %v15176_v50  ;;  %v6757_v41 = vmul.f32 %v15182_v44, %v15182_v44 }
 0xa06   : > { %6889 = vperm.xlu0 %10577, %v6730_v0   ;;  %6958 = vperm.xlu1 %10578, %v6753_v57   ;;  %v17156_v0 = vld [vmem:[#allocation55_spill] sm:$0xff]  ;;  %v17158_v57 = vld [vmem:[#allocation8_spill] sm:$0xff]  ;;  %v15246_v37 = vpop.permute.xlu0 %7569 }
 0xa07   : > { %v15190_v20 = vsub.f32 %v17156_v0, %v14984_v63  ;;  %v15196_v10 = vsub.f32 %v17158_v57, %v14984_v63  ;;  %17176 = vst [vmem:[#allocation116_spill] sm:$0xff] %v15246_v37 }
 0xa09   : > { %17157 = vst [vmem:[#allocation55_spill] sm:$0xff] %v15190_v20  ;;  %17159 = vst [vmem:[#allocation8_spill] sm:$0xff] %v15196_v10  ;;  %v6736_v0 = vmul.f32 %v15190_v20, %v15190_v20  ;;  %v6759_v57 = vmul.f32 %v15196_v10, %v15196_v10 }
 0xa0a   : > { %6895 = vperm.xlu0 %10577, %v6732_v3   ;;  %6964 = vperm.xlu1 %10578, %v6755_v42   ;;  %v17160_v3 = vld [vmem:[#allocation69_spill] sm:$0xff]  ;;  %v17163_v42 = vld [vmem:[#allocation20_spill] sm:$0xff]  ;;  %v15266_v37 = vpop.permute.xlu0 %7577 }
 0xa0b   : > { %v15202_v7 = vsub.f32 %v17160_v3, %v14984_v63  ;;  %v15210_v19 = vsub.f32 %v17163_v42, %v14984_v63  ;;  %17183 = vst [vmem:[#allocation117_spill] sm:$0xff] %v15266_v37 }
 0xa0d   : > { %17161 = vst [vmem:[#allocation69_spill] sm:$0xff] %v15202_v7  ;;  %17164 = vst [vmem:[#allocation20_spill] sm:$0xff] %v15210_v19  ;;  %v6738_v3 = vmul.f32 %v15202_v7, %v15202_v7  ;;  %v6761_v42 = vmul.f32 %v15210_v19, %v15210_v19 }
 0xa0e   : > { %6901 = vperm.xlu0 %10577, %v6734_v38   ;;  %6970 = vperm.xlu1 %10578, %v6757_v41   ;;  %v17165_v38 = vld [vmem:[#allocation84_spill] sm:$0xff]  ;;  %v17167_v41 = vld [vmem:[#allocation22_spill] sm:$0xff]  ;;  %v15286_v37 = vpop.permute.xlu0 %7588 }
 0xa0f   : > { %v15216_v44 = vsub.f32 %v17165_v38, %v14984_v63  ;;  %v15222_v40 = vsub.f32 %v17167_v41, %v14984_v63  ;;  %17190 = vst [vmem:[#allocation118_spill] sm:$0xff] %v15286_v37 }
 0xa11   : > { %17166 = vst [vmem:[#allocation84_spill] sm:$0xff] %v15216_v44  ;;  %17168 = vst [vmem:[#allocation22_spill] sm:$0xff] %v15222_v40  ;;  %v6740_v38 = vmul.f32 %v15216_v44, %v15216_v44  ;;  %v6763_v41 = vmul.f32 %v15222_v40, %v15222_v40 }
 0xa12   : > { %6907 = vperm.xlu0 %10577, %v6736_v0   ;;  %6976 = vperm.xlu1 %10578, %v6759_v57   ;;  %v17170_v0 = vld [vmem:[#allocation18_spill] sm:$0xff]  ;;  %v15306_v37 = vpop.permute.xlu0 %7596 }
 0xa13   : > { %v15230_v10 = vsub.f32 %v17170_v0, %v14984_v63  ;;  %v17172_v57 = vld [vmem:[#allocation58_spill] sm:$0xff]  ;;  %17197 = vst [vmem:[#allocation119_spill] sm:$0xff] %v15306_v37  ;;  %v16577_v37 = vsub.s32 6, %v13869_v34 }
 0xa14   : > { %v15236_v26 = vsub.f32 %v17172_v57, %v14984_v63 }
 0xa15   : > { %17171 = vst [vmem:[#allocation18_spill] sm:$0xff] %v15230_v10  ;;  %v6742_v0 = vmul.f32 %v15230_v10, %v15230_v10 }
 0xa16   : > { %6913 = vperm.xlu0 %10577, %v6738_v3   ;;  %6982 = vperm.xlu1 %10578, %v6761_v42   ;;  %17173 = vst [vmem:[#allocation58_spill] sm:$0xff] %v15236_v26  ;;  %v17174_v3 = vld [vmem:[#allocation32_spill] sm:$0xff]  ;;  %v6765_v57 = vmul.f32 %v15236_v26, %v15236_v26 }
 0xa17   : > { %v15242_v19 = vsub.f32 %v17174_v3, %v14984_v63  ;;  %v17177_v42 = vld [vmem:[#allocation52_spill] sm:$0xff] }
 0xa18   : > { %v15250_v58 = vsub.f32 %v17177_v42, %v14984_v63 }
 0xa19   : > { %17175 = vst [vmem:[#allocation32_spill] sm:$0xff] %v15242_v19  ;;  %v6744_v3 = vmul.f32 %v15242_v19, %v15242_v19 }
 0xa1a   : > { %6919 = vperm.xlu0 %10577, %v6740_v38   ;;  %6988 = vperm.xlu1 %10578, %v6763_v41   ;;  %17178 = vst [vmem:[#allocation52_spill] sm:$0xff] %v15250_v58  ;;  %v17179_v38 = vld [vmem:[#allocation68_spill] sm:$0xff]  ;;  %v17181_v41 = vld [vmem:[#allocation66_spill] sm:$0xff]  ;;  %v6767_v42 = vmul.f32 %v15250_v58, %v15250_v58 }
 0xa1b   : > { %v15256_v40 = vsub.f32 %v17179_v38, %v14984_v63  ;;  %v15262_v56 = vsub.f32 %v17181_v41, %v14984_v63 }
 0xa1d   : > { %17180 = vst [vmem:[#allocation68_spill] sm:$0xff] %v15256_v40  ;;  %17182 = vst [vmem:[#allocation66_spill] sm:$0xff] %v15262_v56  ;;  %v6746_v38 = vmul.f32 %v15256_v40, %v15256_v40  ;;  %v6769_v41 = vmul.f32 %v15262_v56, %v15262_v56 }
 0xa1e   : > { %6925 = vperm.xlu0 %10577, %v6742_v0   ;;  %6994 = vperm.xlu1 %10578, %v6765_v57   ;;  %v17184_v0 = vld [vmem:[#allocation33_spill] sm:$0xff] }
 0xa1f   : > { %v15270_v26 = vsub.f32 %v17184_v0, %v14984_v63  ;;  %v17186_v57 = vld [vmem:[#allocation77_spill] sm:$0xff] }
 0xa20   : > { %v15276_v19 = vsub.f32 %v17186_v57, %v14984_v63 }
 0xa21   : > { %17185 = vst [vmem:[#allocation33_spill] sm:$0xff] %v15270_v26  ;;  %v6748_v0 = vmul.f32 %v15270_v26, %v15270_v26 }
 0xa22   : > { %6931 = vperm.xlu0 %10577, %v6744_v3   ;;  %7000 = vperm.xlu1 %10578, %v6767_v42   ;;  %17187 = vst [vmem:[#allocation77_spill] sm:$0xff] %v15276_v19  ;;  %v17188_v3 = vld [vmem:[#allocation51_spill] sm:$0xff]  ;;  %v6771_v57 = vmul.f32 %v15276_v19, %v15276_v19 }
 0xa23   : > { %v15282_v58 = vsub.f32 %v17188_v3, %v14984_v63  ;;  %v17191_v42 = vld [vmem:[#allocation71_spill] sm:$0xff] }
 0xa24   : > { %v15290_v40 = vsub.f32 %v17191_v42, %v14984_v63 }
 0xa25   : > { %17189 = vst [vmem:[#allocation51_spill] sm:$0xff] %v15282_v58  ;;  %v6750_v3 = vmul.f32 %v15282_v58, %v15282_v58 }
 0xa26   : > { %6937 = vperm.xlu0 %10577, %v6746_v38   ;;  %7006 = vperm.xlu1 %10578, %v6769_v41   ;;  %17192 = vst [vmem:[#allocation71_spill] sm:$0xff] %v15290_v40  ;;  %v17193_v38 = vld [vmem:[#allocation37_spill] sm:$0xff]  ;;  %v17195_v41 = vld [vmem:[#allocation40_spill] sm:$0xff]  ;;  %v6773_v42 = vmul.f32 %v15290_v40, %v15290_v40 }
 0xa27   : > { %v15296_v56 = vsub.f32 %v17193_v38, %v14984_v63  ;;  %v15302_v26 = vsub.f32 %v17195_v41, %v14984_v63 }
 0xa29   : > { %17194 = vst [vmem:[#allocation37_spill] sm:$0xff] %v15296_v56  ;;  %17196 = vst [vmem:[#allocation40_spill] sm:$0xff] %v15302_v26  ;;  %v6752_v38 = vmul.f32 %v15296_v56, %v15296_v56  ;;  %v6775_v41 = vmul.f32 %v15302_v26, %v15302_v26  ;;  %v15327_v56 = vpop.permute.xlu0 %7604 }
 0xa2a   : > { %6943 = vperm.xlu0 %10577, %v6748_v0   ;;  %7012 = vperm.xlu1 %10578, %v6771_v57   ;;  %v17198_v0 = vld [vmem:[#allocation7_spill] sm:$0xff]  ;;  %v17200_v57 = vld [vmem:[#allocation26_spill] sm:$0xff]  ;;  %17204 = vst [vmem:[#allocation120_spill] sm:$0xff] %v15327_v56 }
 0xa2b   : > { %v15310_v19 = vsub.f32 %v17198_v0, %v14984_v63  ;;  %v15316_v58 = vsub.f32 %v17200_v57, %v14984_v63  ;;  %v17205_v57 = vld [vmem:[#allocation61_spill] sm:$0xff] }
 0xa2c   : > { %v15333_v26 = vsub.f32 %v17205_v57, %v14984_v63 }
 0xa2d   : > { %17199 = vst [vmem:[#allocation7_spill] sm:$0xff] %v15310_v19  ;;  %17201 = vst [vmem:[#allocation26_spill] sm:$0xff] %v15316_v58  ;;  %v6754_v0 = vmul.f32 %v15310_v19, %v15310_v19  ;;  %v15344_v56 = vpop.permute.xlu0 %7612 }
 0xa2e   : > { %6949 = vperm.xlu0 %10577, %v6750_v3   ;;  %7018 = vperm.xlu1 %10578, %v6773_v42   ;;  %v17202_v3 = vld [vmem:[#allocation31_spill] sm:$0xff]  ;;  %v6777_v42 = vmul.f32 %v15316_v58, %v15316_v58  ;;  %17206 = vst [vmem:[#allocation61_spill] sm:$0xff] %v15333_v26  ;;  %17207 = vst [vmem:[#allocation121_spill] sm:$0xff] %v15344_v56  ;;  %v6758_v57 = vmul.f32 %v15333_v26, %v15333_v26 }
 0xa2f   : > { %v15322_v40 = vsub.f32 %v17202_v3, %v14984_v63 }
 0xa31   : > { %17203 = vst [vmem:[#allocation31_spill] sm:$0xff] %v15322_v40 }
 0xa32   : > { %6955 = vperm.xlu0 %10577, %v6752_v38   ;;  %7024 = vperm.xlu1 %10578, %v6775_v41   ;;  %v6756_v38 = vmul.f32 %v15322_v40, %v15322_v40  ;;  %v10721_v41 = vld [vmem:[%s16380_s10] sm:$0xff] }
 0xa33   : > { %v15342_v3 = vrot.slane %v10721_v41, %v16577_v37 }
 0xa36   : > { %6961 = vperm.xlu0 %10577, %v6754_v0   ;;  %7030 = vperm.xlu1 %10578, %v6777_v42   ;;  %v17208_v0 = vld [vmem:[#allocation62_spill] sm:$0xff]  ;;  %v17210_v42 = vld [vmem:[#allocation27_spill] sm:$0xff] }
 0xa37   : > { %v15348_v58 = vsub.f32 %v17208_v0, %v14984_v63  ;;  %v15355_v40 = vsub.f32 %v17210_v42, %v14984_v63  ;;  %v17213_v0 = vld [vmem:[#allocation25_spill] sm:$0xff] }
 0xa38   : > { %v15364_v56 = vsub.f32 %v17213_v0, %v14984_v63 }
 0xa39   : > { %17209 = vst [vmem:[#allocation62_spill] sm:$0xff] %v15348_v58  ;;  %17211 = vst [vmem:[#allocation27_spill] sm:$0xff] %v15355_v40  ;;  %v6760_v37 = vmul.f32 %v15348_v58, %v15348_v58  ;;  %v6762_v26 = vmul.f32 %v15355_v40, %v15355_v40  ;;  %v17216_v58 = vld [vmem:[#allocation60_spill] sm:$0xff]  ;;  %v17218_v40 = vld [vmem:[#allocation59_spill] sm:$0xff] }
 0xa3a   : > { %6967 = vperm.xlu0 %10577, %v6756_v38   ;;  %7654 = vbcast.lane.b32.xlu1 %v15342_v3, 256  ;;  %v15360_v38 = vpop.permute.xlu0 %7623  ;;  %17214 = vst [vmem:[#allocation25_spill] sm:$0xff] %v15364_v56  ;;  %v15374_v19 = vsub.f32 %v17216_v58, %v14984_v63 }
 0xa3b   : > { %17212 = vst [vmem:[#allocation122_spill] sm:$0xff] %v15360_v38  ;;  %v15385_v38 = vsub.f32 %v17218_v40, %v14984_v63 }
 0xa3c   : > { %17217 = vst [vmem:[#allocation60_spill] sm:$0xff] %v15374_v19 }
 0xa3d   : > { %17219 = vst [vmem:[#allocation59_spill] sm:$0xff] %v15385_v38 }
 0xa3e   : > { %6973 = vperm.xlu0 %10577, %v6758_v57   ;;  %7662 = vbcast.lane.b32.xlu1 %v15342_v3, 272  ;;  %v16583_v57 = vsub.s32 7, %v13869_v34  ;;  %v15370_v42 = vpop.permute.xlu0 %7631 }
 0xa3f   : > { %17215 = vst [vmem:[#allocation123_spill] sm:$0xff] %v15370_v42 }
 0xa40   : > { %v15381_v0 = vrot.slane %v10721_v41, %v16583_v57  ;;  %v6768_v41 = vmul.f32 %v15385_v38, %v15385_v38  ;;  %v17223_v57 = vld [vmem:[#allocation83_spill] sm:$0xff] }
 0xa41   : > { %v15415_v38 = vld [vmem:[%s16381_s11] sm:$0xff] }
 0xa42   : > { %6979 = vperm.xlu0 %10577, %v6760_v37   ;;  %7670 = vbcast.lane.b32.xlu1 %v15342_v3, 288  ;;  %v6764_v37 = vmul.f32 %v15364_v56, %v15364_v56  ;;  %v15390_v58 = vpop.permute.xlu0 %7639  ;;  %v17221_v56 = vld [vmem:[#allocation63_spill] sm:$0xff]  ;;  %v15535_v27 = vrot.slane %v15415_v38, %v17236_v28 }
 0xa43   : > { %17220 = vst [vmem:[#allocation124_spill] sm:$0xff] %v15390_v58  ;;  %v15394_v42 = vsub.f32 %v17221_v56, %v14984_v63  ;;  %v17225_v58 = vld [vmem:[#allocation73_spill] sm:$0xff] }
 0xa44   : > { %v15421_v17 = vsub.f32 %v17225_v58, %v14984_v63 }
 0xa45   : > { %17222 = vst [vmem:[#allocation63_spill] sm:$0xff] %v15394_v42 }
 0xa46   : > { %6985 = vperm.xlu0 %10577, %v6762_v26   ;;  %7678 = vbcast.lane.b32.xlu1 %v15342_v3, 304  ;;  %v6766_v26 = vmul.f32 %v15374_v19, %v15374_v19  ;;  %v15405_v19 = vsub.f32 %v17223_v57, %v14984_v63  ;;  %17226 = vst [vmem:[#allocation73_spill] sm:$0xff] %v15421_v17 }
 0xa47   : > { %v6774_v58 = vmul.f32 %v15421_v17, %v15421_v17 }
 0xa48   : > { %17224 = vst [vmem:[#allocation83_spill] sm:$0xff] %v15405_v19  ;;  %v6772_v57 = vmul.f32 %v15405_v19, %v15405_v19 }
 0xa4a   : > { %6991 = vperm.xlu0 %10577, %v6764_v37   ;;  %7689 = vbcast.lane.b32.xlu1 %v15381_v0, 256 }
 0xa4e   : > { %6997 = vperm.xlu0 %10577, %v6766_v26   ;;  %7697 = vbcast.lane.b32.xlu1 %v15381_v0, 272  ;;  %v6770_v26 = vmul.f32 %v15394_v42, %v15394_v42  ;;  %v17227_v42 = vsub.s32 0, %v13869_v34 }
 0xa50   : > { %v15429_v10 = vrot.slane %v15415_v38, %v17227_v42  ;;  %v17230_v42 = vld [vmem:[#allocation57_spill] sm:$0xff] }
 0xa51   : > { %v15399_v37 = vpop.permute.xlu0 %6844  ;;  %v15401_v40 = vpop.permute.xlu1 %6871  ;;  %v15448_v47 = vsub.f32 %v17230_v42, %v14984_v63  ;;  %v17232_v42 = vsub.s32 1, %v13869_v34 }
 0xa52   : > { %7003 = vperm.xlu0 %10577, %v6768_v41   ;;  %7705 = vbcast.lane.b32.xlu1 %v15381_v0, 288 }
 0xa53   : > { %17231 = vst [vmem:[#allocation57_spill] sm:$0xff] %v15448_v47  ;;  %v6778_v22 = vmul.f32 %v15448_v47, %v15448_v47 }
 0xa55   : > { %v15410_v56 = vpop.permute.xlu0 %6847  ;;  %v15417_v41 = vpop.permute.xlu1 %6886 }
 0xa56   : > { %7009 = vperm.xlu0 %10577, %v6770_v26   ;;  %7713 = vbcast.lane.b32.xlu1 %v15381_v0, 304  ;;  %v7042_v14 = vrot.slane %v15410_v56, %v14727_v54 }
 0xa59   : > { %v15431_v35 = vpop.permute.xlu0 %6850  ;;  %v15433_v26 = vpop.permute.xlu1 %6892 }
 0xa5a   : > { %7015 = vperm.xlu0 %10577, %v6772_v57   ;;  %7854 = vbcast.lane.b32.xlu1 %v15429_v10, 256  ;;  %v6776_v57 = vmul.f32 %v15437_v11, %v15437_v11  ;;  %v7887_v11 = vrot.slane %v15415_v38, %v17232_v42 }
 0xa5d   : > { %v15442_v19 = vpop.permute.xlu0 %6853  ;;  %v15444_v44 = vpop.permute.xlu1 %6898 }
 0xa5e   : > { %7021 = vperm.xlu0 %10577, %v6774_v58   ;;  %7862 = vbcast.lane.b32.xlu1 %v15429_v10, 272 }
 0xa61   : > { %v15453_v4 = vpop.permute.xlu0 %6856  ;;  %v15455_v17 = vpop.permute.xlu1 %6904 }
 0xa62   : > { %7027 = vperm.xlu0 %10577, %v6776_v57   ;;  %7870 = vbcast.lane.b32.xlu1 %v15429_v10, 288  ;;  %v17233_v57 = vld [vmem:[#allocation65_spill] sm:$0xff] }
 0xa65   : > { %v15460_v58 = vpop.permute.xlu0 %6859  ;;  %v15462_v63 = vpop.permute.xlu1 %6910 }
 0xa66   : > { %7033 = vperm.xlu0 %10577, %v6778_v22   ;;  %7878 = vbcast.lane.b32.xlu1 %v15429_v10, 304 }
 0xa69   : > { %v15468_v36 = vpop.permute.xlu0 %6862  ;;  %v15473_v47 = vpop.permute.xlu1 %6916 }
 0xa6a   : > { %7647 = vbcast.lane.b32.xlu0 %v17233_v57, 312  ;;  %7889 = vbcast.lane.b32.xlu1 %v7887_v11, 256  ;;  %v17234_v57 = vsub.s32 2, %v13869_v34 }
 0xa6c   : > { %v7922_v18 = vrot.slane %v15415_v38, %v17234_v57 }
 0xa6d   : > { %v15471_v7 = vpop.permute.xlu0 %6865  ;;  %v15479_v48 = vpop.permute.xlu1 %6922 }
 0xa6e   : > { %7658 = vbcast.lane.b32.xlu0 %v15342_v3, 264  ;;  %7897 = vbcast.lane.b32.xlu1 %v7887_v11, 272 }
 0xa71   : > { %v15476_v22 = vpop.permute.xlu0 %6868  ;;  %v15489_v20 = vpop.permute.xlu1 %6928 }
 0xa72   : > { %7666 = vbcast.lane.b32.xlu0 %v15342_v3, 280  ;;  %7905 = vbcast.lane.b32.xlu1 %v7887_v11, 288 }
 0xa75   : > { %v15481_v42 = vpop.permute.xlu0 %6874  ;;  %v15495_v52 = vpop.permute.xlu1 %6934 }
 0xa76   : > { %7674 = vbcast.lane.b32.xlu0 %v15342_v3, 296  ;;  %7913 = vbcast.lane.b32.xlu1 %v7887_v11, 304 }
 0xa79   : > { %v15487_v12 = vpop.permute.xlu0 %6877  ;;  %v15502_v50 = vpop.permute.xlu1 %6940 }
 0xa7a   : > { %7682 = vbcast.lane.b32.xlu0 %v15342_v3, 312  ;;  %7924 = vbcast.lane.b32.xlu1 %v7922_v18, 256  ;;  %v17235_v3 = vsub.s32 3, %v13869_v34 }
 0xa7c   : > { %v15508_v49 = vrot.slane %v15415_v38, %v17235_v3 }
 0xa7d   : > { %v15492_v21 = vpop.permute.xlu0 %6880  ;;  %v15513_v45 = vpop.permute.xlu1 %6946 }
 0xa7e   : > { %7693 = vbcast.lane.b32.xlu0 %v15381_v0, 264  ;;  %7932 = vbcast.lane.b32.xlu1 %v7922_v18, 272 }
 0xa81   : > { %v15497_v43 = vpop.permute.xlu0 %6883  ;;  %v15522_v13 = vpop.permute.xlu1 %6952 }
 0xa82   : > { %7701 = vbcast.lane.b32.xlu0 %v15381_v0, 280  ;;  %7940 = vbcast.lane.b32.xlu1 %v7922_v18, 288 }
 0xa85   : > { %v15500_v57 = vpop.permute.xlu0 %6889 }
 0xa86   : > { %7709 = vbcast.lane.b32.xlu0 %v15381_v0, 296  ;;  %7948 = vbcast.lane.b32.xlu1 %v7922_v18, 304 }
 0xa89   : > { %v15510_v55 = vpop.permute.xlu0 %6895 }
 0xa8a   : > { %7717 = vbcast.lane.b32.xlu0 %v15381_v0, 312  ;;  %7959 = vbcast.lane.b32.xlu1 %v15508_v49, 256  ;;  %v15529_v0 = vpop.permute.xlu1 %6958 }
 0xa8d   : > { %v15516_v15 = vpop.permute.xlu0 %6901 }
 0xa8e   : > { %7858 = vbcast.lane.b32.xlu0 %v15429_v10, 264  ;;  %7967 = vbcast.lane.b32.xlu1 %v15508_v49, 272  ;;  %v15543_v33 = vpop.permute.xlu1 %6964 }
 0xa91   : > { %v15520_v60 = vpop.permute.xlu0 %6907 }
 0xa92   : > { %7866 = vbcast.lane.b32.xlu0 %v15429_v10, 280  ;;  %7975 = vbcast.lane.b32.xlu1 %v15508_v49, 288  ;;  %v15547_v25 = vpop.permute.xlu1 %6970 }
 0xa95   : > { %v15526_v3 = vpop.permute.xlu0 %6913 }
 0xa96   : > { %7874 = vbcast.lane.b32.xlu0 %v15429_v10, 296  ;;  %7983 = vbcast.lane.b32.xlu1 %v15508_v49, 304  ;;  %v15553_v23 = vpop.permute.xlu1 %6976 }
 0xa99   : > { %v15537_v9 = vpop.permute.xlu0 %6919 }
 0xa9a   : > { %7882 = vbcast.lane.b32.xlu0 %v15429_v10, 312  ;;  %7994 = vbcast.lane.b32.xlu1 %v15535_v27, 256  ;;  %v15557_v59 = vpop.permute.xlu1 %6982 }
 0xa9d   : > { %v15541_v53 = vpop.permute.xlu0 %6925 }
 0xa9e   : > { %7893 = vbcast.lane.b32.xlu0 %v7887_v11, 264  ;;  %v15563_v6 = vpop.permute.xlu1 %6988 }
 0xaa1   : > { %v15545_v32 = vpop.permute.xlu0 %6931 }
 0xaa2   : > { %17237 = vst [vmem:[#allocation65_spill] sm:$0xff] %v15545_v32  ;;  %7901 = vbcast.lane.b32.xlu0 %v7887_v11, 280  ;;  %v15567_v5 = vpop.permute.xlu1 %6994  ;;  %v7052_v32 = vrot.slane %v15442_v19, %v14746_v51  ;;  %v7062_v19 = vrot.slane %v15460_v58, %v14753_v29 }
 0xaa5   : > { %v15549_v62 = vpop.permute.xlu0 %6937 }
 0xaa6   : > { %17238 = vst [vmem:[#allocation125_spill] sm:$0xff] %v15549_v62  ;;  %7909 = vbcast.lane.b32.xlu0 %v7887_v11, 296  ;;  %v15574_v30 = vpop.permute.xlu1 %7000  ;;  %v7038_v62 = vrot.slane %v15399_v37, %v14730_v16  ;;  %v7086_v37 = vrot.slane %v15481_v42, %v14741_v24  ;;  %v7072_v42 = vrot.slane %v15471_v7, %v14778_v61 }
 0xaa7   : > { %17242 = vst [vmem:[#allocation129_spill] sm:$0xff] %v15574_v30  ;;  %v7081_v30 = vrot.slane %v15401_v40, %v14727_v54  ;;  %v7106_v40 = vrot.slane %v15417_v41, %v14787_v8  ;;  %v7130_v41 = vrot.slane %v15516_v15, %v14746_v51 }
 0xaa9   : > { %v15551_v28 = vpop.permute.xlu0 %6943 }
 0xaaa   : > { %7917 = vbcast.lane.b32.xlu0 %v7887_v11, 312  ;;  %v15592_v56 = vpop.permute.xlu1 %7006 }
 0xaab   : > { %17244 = vst [vmem:[#allocation131_spill] sm:$0xff] %v15592_v56  ;;  %v7057_v56 = vrot.slane %v15453_v4, %v14760_v2  ;;  %v7067_v4 = vrot.slane %v15468_v36, %v14787_v8  ;;  %v7145_v36 = vrot.slane %v15462_v63, %v14787_v8  ;;  %v7155_v63 = vrot.slane %v15473_v47, %v14730_v16 }
 0xaad   : > { %v15555_v10 = vpop.permute.xlu0 %6949 }
 0xaae   : > { %7928 = vbcast.lane.b32.xlu0 %v7922_v18, 264 }
 0xab1   : > { %v15559_v46 = vpop.permute.xlu0 %6955 }
 0xab2   : > { %17239 = vst [vmem:[#allocation126_spill] sm:$0xff] %v15559_v46  ;;  %7936 = vbcast.lane.b32.xlu0 %v7922_v18, 280  ;;  %v7077_v46 = vrot.slane %v15476_v22, %v14730_v16 }
 0xab5   : > { %v15561_v31 = vpop.permute.xlu0 %6961 }
 0xab6   : > { %17240 = vst [vmem:[#allocation127_spill] sm:$0xff] %v15561_v31  ;;  %7944 = vbcast.lane.b32.xlu0 %v7922_v18, 296 }
 0xab9   : > { %v15565_v39 = vpop.permute.xlu0 %6967 }
 0xaba   : > { %7952 = vbcast.lane.b32.xlu0 %v7922_v18, 312  ;;  %v7047_v18 = vrot.slane %v15431_v35, %v14741_v24  ;;  %v7116_v35 = vrot.slane %v15433_v26, %v14730_v16 }
 0xabd   : > { %v15569_v1 = vpop.permute.xlu0 %6973 }
 0xabe   : > { %7963 = vbcast.lane.b32.xlu0 %v15508_v49, 264 }
 0xac1   : > { %v15572_v11 = vpop.permute.xlu0 %6979 }
 0xac2   : > { %17241 = vst [vmem:[#allocation128_spill] sm:$0xff] %v15572_v11  ;;  %7971 = vbcast.lane.b32.xlu0 %v15508_v49, 280  ;;  %v7120_v11 = vrot.slane %v15510_v55, %v14727_v54 }
 0xac4   : > { %v7121_v26 = vsel %vm6312_vm14, %v7120_v11, %v7116_v35 }
 0xac5   : > { %v15579_v31 = vpop.permute.xlu0 %6985 }
 0xac6   : > { %17243 = vst [vmem:[#allocation130_spill] sm:$0xff] %v15579_v31  ;;  %7979 = vbcast.lane.b32.xlu0 %v15508_v49, 296  ;;  %v7043_v31 = vsel %vm6312_vm14, %v7042_v14, %v7038_v62  ;;  %v7091_v14 = vrot.slane %v15487_v12, %v14746_v51  ;;  %v7096_v62 = vrot.slane %v15492_v21, %v14760_v2 }
 0xac7   : > { %v7048_v22 = vsel %vm6319_vm15, %v7047_v18, %v7043_v31  ;;  %v7125_v31 = vrot.slane %v15444_v44, %v14741_v24  ;;  %v7082_v12 = vsel %vm6312_vm14, %v7081_v30, %v7077_v46  ;;  %v7135_v21 = vrot.slane %v15455_v17, %v14760_v2 }
 0xac8   : > { %v7053_v58 = vsel %vm6326_vm0, %v7052_v32, %v7048_v22  ;;  %v7087_v15 = vsel %vm6319_vm15, %v7086_v37, %v7082_v12  ;;  %v15638_v32 = vpop.permute.xlu1 %7012  ;;  %v7140_v18 = vrot.slane %v15520_v60, %v14753_v29  ;;  %v7159_v37 = vrot.slane %v15537_v9, %v14727_v54 }
 0xac9   : > { %v15601_v55 = vpop.permute.xlu0 %6991  ;;  %v7058_v44 = vsel %vm6333_vm1, %v7057_v56, %v7053_v58  ;;  %v7092_v30 = vsel %vm6326_vm0, %v7091_v14, %v7087_v15  ;;  %v7126_v46 = vsel %vm6319_vm15, %v7125_v31, %v7121_v26  ;;  %v7164_v22 = vrot.slane %v15479_v48, %v14741_v24 }
 0xaca   : > { %7987 = vbcast.lane.b32.xlu0 %v15508_v49, 312  ;;  %v7101_v49 = vrot.slane %v15497_v43, %v14753_v29  ;;  %v7063_v43 = vsel %vm6340_vm2, %v7062_v19, %v7058_v44  ;;  %v7097_v7 = vsel %vm6333_vm1, %v7096_v62, %v7092_v30  ;;  %v7131_v17 = vsel %vm6326_vm0, %v7130_v41, %v7126_v46 }
 0xacb   : > { %v7068_v56 = vsel %vm6347_vm11, %v7067_v4, %v7063_v43  ;;  %v7174_v19 = vrot.slane %v15489_v20, %v14760_v2  ;;  %v7111_v60 = vrot.slane %v15500_v57, %v14778_v61  ;;  %v7184_v62 = vrot.slane %v15495_v52, %v14787_v8 }
 0xacc   : > { %v7102_v35 = vsel %vm6340_vm2, %v7101_v49, %v7097_v7  ;;  %v15655_v14 = vsel %vm6354_vm12, %v7072_v42, %v7068_v56  ;;  %v7194_v9 = vrot.slane %v15502_v50, %v14730_v16  ;;  %v7203_v48 = vrot.slane %v15513_v45, %v14741_v24  ;;  %v7019_v12 = vpop.permute.xlu1 %7018 }
 0xacd   : > { %v15631_v11 = vpop.permute.xlu0 %6997  ;;  %v7136_v26 = vsel %vm6333_vm1, %v7135_v21, %v7131_v17  ;;  %v7213_v20 = vrot.slane %v15522_v13, %v14760_v2  ;;  %v7107_v57 = vsel %vm6347_vm11, %v7106_v40, %v7102_v35  ;;  %v7198_v31 = vrot.slane %v15551_v28, %v14727_v54  ;;  %v17246_v17 = vld [vmem:[#allocation65_spill] sm:$0xff] }
 0xace   : > { %7998 = vbcast.lane.b32.xlu0 %v15535_v27, 264  ;;  %v7141_v41 = vsel %vm6340_vm2, %v7140_v18, %v7136_v26  ;;  %v7150_v50 = vrot.slane %v15526_v3, %v14778_v61  ;;  %v7160_v4 = vsel %vm6312_vm14, %v7159_v37, %v7155_v63  ;;  %v7169_v45 = vrot.slane %v15541_v53, %v14746_v51  ;;  %v17247_v37 = vld [vmem:[#allocation126_spill] sm:$0xff] }
 0xacf   : > { %v7237_v49 = vrot.slane %v15565_v39, %v14727_v54  ;;  %v7223_v13 = vrot.slane %v15529_v0, %v14787_v8  ;;  %v15687_v40 = vsel %vm6354_vm12, %v7111_v60, %v7107_v57  ;;  %v7233_v28 = vrot.slane %v15543_v33, %v14730_v16 }
 0xad0   : > { %v7276_v3 = vrot.slane %v15601_v55, %v14727_v54  ;;  %v7242_v53 = vrot.slane %v15547_v25, %v14741_v24  ;;  %v7252_v39 = vrot.slane %v15553_v23, %v14760_v2  ;;  %v7262_v21 = vrot.slane %v15557_v59, %v14787_v8 }
 0xad1   : > { %v15661_v47 = vpop.permute.xlu0 %7003  ;;  %v7146_v42 = vsel %vm6347_vm11, %v7145_v36, %v7141_v41  ;;  %v7272_v33 = vrot.slane %v15563_v6, %v14730_v16  ;;  %v7165_v55 = vsel %vm6319_vm15, %v7164_v22, %v7160_v4  ;;  %v7199_v15 = vsel %vm6312_vm14, %v7198_v31, %v7194_v9  ;;  %v17249_v41 = vld [vmem:[#allocation129_spill] sm:$0xff] }
 0xad2   : > { %8006 = vbcast.lane.b32.xlu0 %v15535_v27, 280  ;;  %v7208_v25 = vrot.slane %v15555_v10, %v14746_v51  ;;  %v7151_v44 = vsel %vm6354_vm12, %v7150_v50, %v7146_v42  ;;  %v7170_v23 = vsel %vm6326_vm0, %v7169_v45, %v7165_v55  ;;  %v7238_v59 = vsel %vm6312_vm14, %v7237_v49, %v7233_v28  ;;  %v17250_v28 = vld [vmem:[#allocation125_spill] sm:$0xff] }
 0xad3   : > { %v7247_v36 = vrot.slane %v15569_v1, %v14746_v51  ;;  %v7281_v30 = vrot.slane %v15567_v5, %v14741_v24  ;;  %v7277_v6 = vsel %vm6312_vm14, %v7276_v3, %v7272_v33  ;;  %v7286_v46 = vrot.slane %v15631_v11, %v14746_v51  ;;  %v7025_v5 = vpop.permute.xlu1 %7024 }
 0xad4   : > { %v17245_v10 = vsub.s32 5, %v13869_v34  ;;  %v7179_v18 = vrot.slane %v17246_v17, %v14753_v29  ;;  %v7311_v1 = vrot.slane %v15638_v32, %v14730_v16  ;;  %v7204_v63 = vsel %vm6319_vm15, %v7203_v48, %v7199_v15  ;;  %v17248_v32 = vld [vmem:[#allocation128_spill] sm:$0xff]  ;;  %v17253_v17 = vld [vmem:[#allocation131_spill] sm:$0xff] }
 0xad5   : > { %v15693_v58 = vpop.permute.xlu0 %7009  ;;  %v7175_v11 = vsel %vm6333_vm1, %v7174_v19, %v7170_v23  ;;  %v7209_v35 = vsel %vm6326_vm0, %v7208_v25, %v7204_v63  ;;  %v7218_v22 = vrot.slane %v17247_v37, %v14753_v29  ;;  %v7243_v60 = vsel %vm6319_vm15, %v7242_v53, %v7238_v59  ;;  %v17252_v59 = vld [vmem:[#allocation130_spill] sm:$0xff] }
 0xad6   : > { %8014 = vbcast.lane.b32.xlu0 %v15535_v27, 296  ;;  %v15722_v7 = vrot.slane %v15415_v38, %v17245_v10  ;;  %v7248_v9 = vsel %vm6326_vm0, %v7247_v36, %v7243_v60  ;;  %v7257_v26 = vrot.slane %v17248_v32, %v14753_v29  ;;  %v7282_v48 = vsel %vm6319_vm15, %v7281_v30, %v7277_v6 }
 0xad7   : > { %v7291_v31 = vrot.slane %v17249_v41, %v14760_v2  ;;  %v7320_v19 = vrot.slane %v7019_v12, %v14741_v24  ;;  %v7287_v50 = vsel %vm6326_vm0, %v7286_v46, %v7282_v48  ;;  %v7296_v4 = vrot.slane %v15661_v47, %v14753_v29  ;;  %v17251_v12 = vld [vmem:[#allocation127_spill] sm:$0xff]  ;;  %v7031_v25 = vpop.permute.xlu1 %7030  ;;  %v17266_v24 = vld [vmem:[#allocation9_spill] sm:$0xff] }
 0xad8   : > { %v7180_v49 = vsel %vm6340_vm2, %v7179_v18, %v7175_v11  ;;  %v7189_v3 = vrot.slane %v17250_v28, %v14778_v61  ;;  %v7214_v53 = vsel %vm6333_vm1, %v7213_v20, %v7209_v35  ;;  %v7228_v55 = vrot.slane %v17251_v12, %v14778_v61 }
 0xad9   : > { %v7016_v43 = vpop.permute.xlu0 %7015  ;;  %v7219_v33 = vsel %vm6340_vm2, %v7218_v22, %v7214_v53  ;;  %v7253_v15 = vsel %vm6333_vm1, %v7252_v39, %v7248_v9  ;;  %v7267_v36 = vrot.slane %v17252_v59, %v14778_v61  ;;  %v7292_v20 = vsel %vm6333_vm1, %v7291_v31, %v7287_v50 }
 0xada   : > { %v7315_v56 = vrot.slane %v7016_v43, %v14727_v54  ;;  %8022 = vbcast.lane.b32.xlu0 %v15535_v27, 312  ;;  %v7258_v23 = vsel %vm6340_vm2, %v7257_v26, %v7253_v15  ;;  %v7185_v6 = vsel %vm6347_vm11, %v7184_v62, %v7180_v49  ;;  %v7330_v46 = vrot.slane %v7025_v5, %v14760_v2 }
 0xadb   : > { %v7297_v39 = vsel %vm6340_vm2, %v7296_v4, %v7292_v20  ;;  %v7306_v43 = vrot.slane %v15693_v58, %v14778_v61  ;;  %v7301_v18 = vrot.slane %v17253_v17, %v14787_v8  ;;  %v7224_v52 = vsel %vm6347_vm11, %v7223_v13, %v7219_v33  ;;  %v15789_v35 = vpop.permute.xlu1 %7654 }
 0xadc   : > { %v7316_v57 = vsel %vm6312_vm14, %v7315_v56, %v7311_v1  ;;  %v7190_v1 = vsel %vm6354_vm12, %v7189_v3, %v7185_v6  ;;  %v7347_v63 = vsel %vm2950_vm5, %v15687_v40, %v15655_v14  ;;  %v7229_v58 = vsel %vm6354_vm12, %v7228_v55, %v7224_v52 }
 0xadd   : > { %v7022_v45 = vpop.permute.xlu0 %7021  ;;  %v7321_v47 = vsel %vm6319_vm15, %v7320_v19, %v7316_v57  ;;  %v7263_v5 = vsel %vm6347_vm11, %v7262_v21, %v7258_v23  ;;  %v7348_v11 = vsel %vm2932_vm4, %v7151_v44, %v7347_v63  ;;  %v7302_v13 = vsel %vm6347_vm11, %v7301_v18, %v7297_v39 }
 0xade   : > { %v7325_v42 = vrot.slane %v7022_v45, %v14746_v51  ;;  %8033 = vbcast.lane.b32.xlu0 %v15722_v7, 264  ;;  %v7268_v0 = vsel %vm6354_vm12, %v7267_v36, %v7263_v5  ;;  %v7349_v22 = vsel %vm2935_vm6, %v7190_v1, %v7348_v11  ;;  %v7340_v14 = vrot.slane %v7031_v25, %v14787_v8  ;;  %v17264_v8 = vld [vmem:[#allocation36_spill] sm:$0xff]  ;;  %v17265_v51 = vld [vmem:[#allocation45_spill] sm:$0xff] }
 0xadf   : > { %v7307_v40 = vsel %vm6354_vm12, %v7306_v43, %v7302_v13  ;;  %v7350_v21 = vsel %vm2938_vm7, %v7229_v58, %v7349_v22  ;;  %v15803_v41 = vpop.permute.xlu1 %7662  ;;  %v17254_v19 = vsub.s32 6, %v13869_v34  ;;  %v17255_v28 = vsub.s32 7, %v13869_v34 }
 0xae0   : > { %v7326_v30 = vsel %vm6326_vm0, %v7325_v42, %v7321_v47  ;;  %v7351_v32 = vsel %vm2941_vm8, %v7268_v0, %v7350_v21 }
 0xae1   : > { %v7028_v10 = vpop.permute.xlu0 %7027  ;;  %v7331_v56 = vsel %vm6333_vm1, %v7330_v46, %v7326_v30  ;;  %v7352_v48 = vsel %vm2944_vm9, %v7307_v40, %v7351_v32  ;;  %v8062_v50 = vrot.slane %v15415_v38, %v17254_v19  ;;  %v8097_v3 = vrot.slane %v15415_v38, %v17255_v28 }
 0xae2   : > { %v7335_v62 = vrot.slane %v7028_v10, %v14753_v29  ;;  %8041 = vbcast.lane.b32.xlu0 %v15722_v7, 280 }
 0xae3   : > { %v15810_v4 = vpop.permute.xlu1 %7670 }
 0xae4   : > { %v7336_v37 = vsel %vm6340_vm2, %v7335_v62, %v7331_v56 }
 0xae5   : > { %v7034_v60 = vpop.permute.xlu0 %7033  ;;  %v7341_v44 = vsel %vm6347_vm11, %v7340_v14, %v7336_v37 }
 0xae6   : > { %v7345_v9 = vrot.slane %v7034_v60, %v14778_v61  ;;  %8049 = vbcast.lane.b32.xlu0 %v15722_v7, 296 }
 0xae7   : > { %v15812_v45 = vpop.permute.xlu1 %7678 }
 0xae8   : > { %v7346_v26 = vsel %vm6354_vm12, %v7345_v9, %v7341_v44 }
 0xae9   : > { %v7353_v57 = vsel %vm2947_vm10, %v7346_v26, %v7352_v48  ;;  %v15866_v63 = vpop.permute.xlu0 %7647 }
 0xaea   : > { %v7355_v31 = vsel %vm784_vm3, %v7353_v57, 0.0  ;;  %8057 = vbcast.lane.b32.xlu0 %v15722_v7, 312 }
 0xaeb   : > { %7356 = vadd.xlane.f32.xlu1 %v7355_v31  ;;  %v15814_v49 = vpop.permute.xlu1 %7689 }
 0xaed   : > { %v15868_v58 = vpop.permute.xlu0 %7658 }
 0xaee   : > { %8068 = vbcast.lane.b32.xlu0 %v8062_v50, 264 }
 0xaef   : > { %v15821_v53 = vpop.permute.xlu1 %7697 }
 0xaf1   : > { %v15870_v5 = vpop.permute.xlu0 %7666 }
 0xaf2   : > { %8076 = vbcast.lane.b32.xlu0 %v8062_v50, 280 }
 0xaf3   : > { %v15824_v42 = vpop.permute.xlu1 %7705 }
 0xaf5   : > { %v15872_v56 = vpop.permute.xlu0 %7674 }
 0xaf6   : > { %8084 = vbcast.lane.b32.xlu0 %v8062_v50, 296 }
 0xaf7   : > { %v15828_v33 = vpop.permute.xlu1 %7713 }
 0xaf8   : > { %17256 = vst [vmem:[#allocation65_spill] sm:$0xff] %v15828_v33  ;;  %v17268_v33 = vld [vmem:[#allocation12_spill] sm:$0xff] }
 0xaf9   : > { %v15874_v11 = vpop.permute.xlu0 %7682 }
 0xafa   : > { %8092 = vbcast.lane.b32.xlu0 %v8062_v50, 312  ;;  %17257 = vst [vmem:[#allocation126_spill] sm:$0xff] %v15874_v11 }
 0xafb   : > { %v15831_v34 = vpop.permute.xlu1 %7854 }
 0xafc   : > { %8002 = vbcast.lane.b32.xlu1 %v15535_v27, 272 }
 0xafd   : > { %v15876_v0 = vpop.permute.xlu0 %7693 }
 0xafe   : > { %8103 = vbcast.lane.b32.xlu0 %v8097_v3, 264 }
 0xaff   : > { %v15834_v38 = vpop.permute.xlu1 %7862 }
 0xb00   : > { %8010 = vbcast.lane.b32.xlu1 %v15535_v27, 288 }
 0xb01   : > { %v15878_v37 = vpop.permute.xlu0 %7701 }
 0xb02   : > { %8111 = vbcast.lane.b32.xlu0 %v8097_v3, 280 }
 0xb04   : > { %8018 = vbcast.lane.b32.xlu1 %v15535_v27, 304  ;;  %v15836_v27 = vpop.permute.xlu1 %7870 }
 0xb05   : > { %v15880_v14 = vpop.permute.xlu0 %7709 }
 0xb06   : > { %8119 = vbcast.lane.b32.xlu0 %v8097_v3, 296 }
 0xb08   : > { %8029 = vbcast.lane.b32.xlu1 %v15722_v7, 256  ;;  %v15838_v12 = vpop.permute.xlu1 %7878 }
 0xb09   : > { %v15882_v40 = vpop.permute.xlu0 %7717 }
 0xb0a   : > { %8127 = vbcast.lane.b32.xlu0 %v8097_v3, 312  ;;  %17258 = vst [vmem:[#allocation128_spill] sm:$0xff] %v15882_v40  ;;  %v17267_v40 = vld [vmem:[#allocation46_spill] sm:$0xff] }
 0xb0c   : > { %8037 = vbcast.lane.b32.xlu1 %v15722_v7, 272  ;;  %v15840_v55 = vpop.permute.xlu1 %7889 }
 0xb0d   : > { %v7859_v60 = vpop.permute.xlu0 %7858 }
 0xb10   : > { %8045 = vbcast.lane.b32.xlu1 %v15722_v7, 288  ;;  %v15842_v15 = vpop.permute.xlu1 %7897 }
 0xb11   : > { %v7867_v21 = vpop.permute.xlu0 %7866 }
 0xb14   : > { %8053 = vbcast.lane.b32.xlu1 %v15722_v7, 304  ;;  %v15844_v47 = vpop.permute.xlu1 %7905 }
 0xb15   : > { %v7875_v9 = vpop.permute.xlu0 %7874 }
 0xb18   : > { %8064 = vbcast.lane.b32.xlu1 %v8062_v50, 256  ;;  %v15846_v7 = vpop.permute.xlu1 %7913 }
 0xb19   : > { %v7883_v44 = vpop.permute.xlu0 %7882 }
 0xb1c   : > { %8072 = vbcast.lane.b32.xlu1 %v8062_v50, 272  ;;  %v15848_v25 = vpop.permute.xlu1 %7924 }
 0xb1d   : > { %v7894_v32 = vpop.permute.xlu0 %7893 }
 0xb20   : > { %8080 = vbcast.lane.b32.xlu1 %v8062_v50, 288  ;;  %v15850_v23 = vpop.permute.xlu1 %7932 }
 0xb21   : > { %v15884_v26 = vpop.permute.xlu0 %7901 }
 0xb24   : > { %8088 = vbcast.lane.b32.xlu1 %v8062_v50, 304  ;;  %v15852_v59 = vpop.permute.xlu1 %7940 }
 0xb25   : > { %v15886_v48 = vpop.permute.xlu0 %7909 }
 0xb28   : > { %8099 = vbcast.lane.b32.xlu1 %v8097_v3, 256  ;;  %v15854_v36 = vpop.permute.xlu1 %7948 }
 0xb29   : > { %v15888_v57 = vpop.permute.xlu0 %7917 }
 0xb2c   : > { %8107 = vbcast.lane.b32.xlu1 %v8097_v3, 272  ;;  %v15856_v20 = vpop.permute.xlu1 %7959 }
 0xb2d   : > { %v15890_v31 = vpop.permute.xlu0 %7928 }
 0xb30   : > { %8115 = vbcast.lane.b32.xlu1 %v8097_v3, 288  ;;  %v15858_v30 = vpop.permute.xlu1 %7967 }
 0xb31   : > { %v15892_v19 = vpop.permute.xlu0 %7936 }
 0xb34   : > { %8123 = vbcast.lane.b32.xlu1 %v8097_v3, 304  ;;  %v15860_v6 = vpop.permute.xlu1 %7975  ;;  %v17259_v3 = vld [vmem:[#allocation30_spill] sm:$0xff] }
 0xb35   : > { %v15894_v50 = vpop.permute.xlu0 %7944 }
 0xb38   : > { %v15862_v46 = vpop.permute.xlu1 %7983 }
 0xb3c   : > { %v15864_v39 = vpop.permute.xlu1 %7994 }
 0xb78   : > { %v7357_v43 = vpop.xlane.xlu1 %7356 }
 0xb79   : > { %v7358_v10 = vrot.slane %v7357_v43, 4 }
 0xb7b   : > { %v7359_v17 = vadd.f32 %v7358_v10, %v7357_v43  ;;  %v17260_v10 = vld [vmem:[#allocation41_spill] sm:$0xff] }
 0xb7d   : > { %v7360_v18 = vrot.slane %v7359_v17, 2 }
 0xb7f   : > { %v7361_v1 = vadd.f32 %v7360_v18, %v7359_v17  ;;  %v15902_v18 = vpop.permute.xlu0 %7952 }
 0xb81   : > { %v7362_v52 = vrot.slane %v7361_v1, 1 }
 0xb83   : > { %v7363_v62 = vadd.f32 %v7362_v52, %v7361_v1  ;;  %v17261_v1 = vld [vmem:[#allocation35_spill] sm:$0xff]  ;;  %v15910_v2 = vpop.permute.xlu0 %7963 }
 0xb85   : > { %10528 = vpush %v7363_v62  ;;  %v17262_v62 = vld [vmem:[#allocation10_spill] sm:$0xff] }
 0xbb6   : > { %s10529_s18 = spop %10528 }
 0xbb7   : > { %s7367_s20 = smul.f32 0.001953125, %s10529_s18  ;;  %s16324_s18 = scalar_lea.hbm %s16382_s12, %s9001_s16 }
 0xbb9   : > { %s7368_s26 = sadd.f32 1e-05, %s7367_s20  ;;  %s8835_s20 = scalar_lea.sflag [#allocation3], %s404_s0 }
 0xbbb   : > { %v7369_v13 = vstv %s7368_s26  ;;  %s10722_s26 = scalar_lea.vmem %s16326_s29, 128 }
 0xbbc   : > { %10719 = vrsqrt.f32 %v7369_v13  ;;  %p10723_p11 = scmp.ne.s32.totalorder %s16326_s29, %s10722_s26 }
 0xbbe   : > { %p10724_p12 = pnand %p10723_p11, %p10895_p5 }
 0xbc0   : > { %p10725_p13 = pneg %p10724_p12 }
 0xbc6   : > { %v10720_v22 = vpop.eup %10719 }
 0xbc7   : > { %10530 = vpush %v10720_v22  ;;  %v17263_v22 = vld [vmem:[#allocation19_spill] sm:$0xff] }
 0xbf8   : > { %s10531_s15 = spop %10530 }
 0xbf9   : > { %v15896_v28 = vstv %s10531_s15  ;;  %s10791_s15 = smov [#allocation2]  }
 0xbfa   : > { %v7373_v43 = vmul.f32 %v15896_v28, %v17259_v3  ;;  %v7374_v17 = vmul.f32 %v15896_v28, %v17260_v10  ;;  %v7375_v52 = vmul.f32 %v15896_v28, %v17261_v1  ;;  %v7376_v29 = vmul.f32 %v15896_v28, %v17264_v8  ;;  %s10726_s17 = sshll.u32 %s10791_s15, 4  ;;  %s10727_s17 = int_to_ptr.vmem [resolvable:$false] %s10726_s17 }
 0xbfb   : > { %v7377_v3 = vmul.f32 %v15896_v28, %v17265_v51  ;;  %v7378_v1 = vmul.f32 %v15896_v28, %v17267_v40  ;;  %v17271_v51 = vld [vmem:[#allocation13_spill] sm:$0xff]  ;;  %s10728_s16 = scalar_lea.vmem %s10727_s17, 256  ;;  %p10729_p0 = scmp.lt.s32.totalorder %s16326_s29, %s10727_s17 }
 0xbfc   : > { %v7783_v13 = vmul.f32 %v17262_v62, %v7373_v43  ;;  %v7784_v61 = vmul.f32 %v17263_v22, %v7374_v17  ;;  %v7785_v54 = vmul.f32 %v17266_v24, %v7375_v52  ;;  %v7786_v43 = vmul.f32 %v17268_v33, %v7376_v29  ;;  %v17269_v17 = vld [vmem:[#allocation6_spill] sm:$0xff]  ;;  %v17270_v62 = vld [vmem:[#allocation23_spill] sm:$0xff]  ;;  %v17274_v33 = vld [vmem:[#allocation17_spill] sm:$0xff]  ;;  %p10730_p1 = scmp.lt.s32.totalorder %s10728_s16, %s10722_s26 }
 0xbfd   : > { %v7379_v8 = vmul.f32 %v15896_v28, %v17269_v17  ;;  %v7787_v22 = vmul.f32 %v17270_v62, %v7377_v3  ;;  %v7380_v24 = vmul.f32 %v15896_v28, %v17271_v51  ;;  %v17272_v52 = vld [vmem:[#allocation11_spill] sm:$0xff]  ;;  %v17275_v3 = vld [vmem:[#allocation76_spill] sm:$0xff] }
 0xbfe   : > { %v8193_v10 = vadd.f32 %v15831_v34, %v7783_v13  ;;  %v8194_v16 = vadd.f32 %v7859_v60, %v7784_v61  ;;  %v8195_v11 = vadd.f32 %v15834_v38, %v7785_v54  ;;  %v7788_v34 = vmul.f32 %v17272_v52, %v7378_v1  ;;  %v15926_v60 = vpop.permute.xlu0 %7971  ;;  %v17273_v29 = vld [vmem:[#allocation67_spill] sm:$0xff]  ;;  %v17276_v38 = vld [vmem:[#allocation29_spill] sm:$0xff]  ;;  %p10731_p2 = por %p10730_p1, %p10729_p0 }
 0xbff   : > { %v8196_v61 = vadd.f32 %v7867_v21, %v7786_v43  ;;  %v7789_v40 = vmul.f32 %v17274_v33, %v7379_v8  ;;  %v8197_v13 = vadd.f32 %v15836_v27, %v7787_v22  ;;  %v7382_v54 = vmul.f32 %v15896_v28, %v17275_v3  ;;  %v17277_v1 = vld [vmem:[#allocation5_spill] sm:$0xff]  ;;  %v17278_v43 = vld [vmem:[#allocation28_spill] sm:$0xff]  ;;  %v17279_v8 = vld [vmem:[#allocation78_spill] sm:$0xff] }
 0xc00   : > { %8322 = vperm.xlu1 %10578, %v8193_v10   ;;  %8325 = vperm.xlu0 %10577, %v8194_v16   ;;  %v7381_v16 = vmul.f32 %v15896_v28, %v17273_v29  ;;  %v7790_v10 = vmul.f32 %v17276_v38, %v7380_v24  ;;  %v8198_v17 = vadd.f32 %v7875_v9, %v7788_v34  ;;  %v17280_v22 = vld [vmem:[#allocation39_spill] sm:$0xff]  ;;  %v17282_v34 = vld [vmem:[#allocation38_spill] sm:$0xff]  ;;  %p10732_p3 = pnand %p10731_p2, %p10725_p13 }
 0xc01   : > { %v8199_v51 = vadd.f32 %v15838_v12, %v7789_v40  ;;  %v7384_v27 = vmul.f32 %v15896_v28, %v17279_v8  ;;  %v7792_v52 = vmul.f32 %v17280_v22, %v7382_v54  ;;  %v17281_v9 = vld [vmem:[#allocation15_spill] sm:$0xff]  ;;  %v17284_v3 = vld [vmem:[#allocation34_spill] sm:$0xff]  ;;  %v17290_v22 = vld [vmem:[#allocation64_spill] sm:$0xff] }
 0xc02   : > { %v15935_v21 = vpop.permute.xlu0 %7979  ;;  %v7791_v62 = vmul.f32 %v17278_v43, %v7381_v16  ;;  %v7385_v24 = vmul.f32 %v15896_v28, %v17281_v9  ;;  %v17288_v43 = vld [vmem:[#allocation108_spill] sm:$0xff]  ;;  %v17289_v8 = vld [vmem:[#allocation75_spill] sm:$0xff] }
 0xc03   : > { %v7794_v12 = vmul.f32 %v17284_v3, %v7384_v27  ;;  %v8202_v40 = vadd.f32 %v7894_v32, %v7792_v52  ;;  %v7389_v27 = vmul.f32 %v15896_v28, %v17289_v8  ;;  %v17291_v9 = vld [vmem:[#allocation24_spill] sm:$0xff] }
 0xc04   : > { %8328 = vperm.xlu1 %10578, %v8195_v11   ;;  %8331 = vperm.xlu0 %10577, %v8196_v61   ;;  %v7383_v11 = vmul.f32 %v15896_v28, %v17277_v1  ;;  %v8200_v61 = vadd.f32 %v7883_v44, %v7790_v10  ;;  %v8201_v33 = vadd.f32 %v15840_v55, %v7791_v62  ;;  %v17285_v44 = vld [vmem:[#allocation82_spill] sm:$0xff]  ;;  %v17286_v10 = vld [vmem:[#allocation107_spill] sm:$0xff] }
 0xc05   : > { %v7387_v54 = vmul.f32 %v15896_v28, %v17285_v44  ;;  %v17296_v44 = vld [vmem:[#allocation110_spill] sm:$0xff] }
 0xc06   : > { %v7793_v29 = vmul.f32 %v17282_v34, %v7383_v11  ;;  %v15951_v38 = vpop.permute.xlu0 %7987  ;;  %v17287_v11 = vld [vmem:[#allocation54_spill] sm:$0xff] }
 0xc07   : > { %v7388_v55 = vmul.f32 %v15896_v28, %v17287_v11  ;;  %v7797_v52 = vmul.f32 %v17290_v22, %v7387_v54  ;;  %v17298_v11 = vld [vmem:[#allocation87_spill] sm:$0xff] }
 0xc08   : > { %8334 = vperm.xlu1 %10578, %v8197_v13   ;;  %8337 = vperm.xlu0 %10577, %v8198_v17   ;;  %v17283_v13 = vld [vmem:[#allocation53_spill] sm:$0xff]  ;;  %v7795_v17 = vmul.f32 %v17286_v10, %v7385_v24  ;;  %v8203_v1 = vadd.f32 %v15842_v15, %v7793_v29  ;;  %v7390_v15 = vmul.f32 %v15896_v28, %v17291_v9  ;;  %v17302_v9 = vld [vmem:[#allocation92_spill] sm:$0xff] }
 0xc09   : > { %v7386_v16 = vmul.f32 %v15896_v28, %v17283_v13  ;;  %v17292_v24 = vld [vmem:[#allocation109_spill] sm:$0xff] }
 0xc0a   : > { %v15961_v32 = vpop.permute.xlu0 %7998  ;;  %v7798_v34 = vmul.f32 %v17292_v24, %v7388_v55  ;;  %v7800_v54 = vmul.f32 %v17296_v44, %v7390_v15  ;;  %v17303_v24 = vld [vmem:[#allocation69_spill] sm:$0xff]  ;;  %v17307_v44 = vld [vmem:[#allocation84_spill] sm:$0xff] }
 0xc0b   : > { %v7796_v62 = vmul.f32 %v17288_v43, %v7386_v16  ;;  %v17294_v16 = vld [vmem:[#allocation79_spill] sm:$0xff] }
 0xc0c   : > { %8340 = vperm.xlu1 %10578, %v8199_v51   ;;  %8343 = vperm.xlu0 %10577, %v8200_v61   ;;  %v8204_v51 = vadd.f32 %v15884_v26, %v7794_v12  ;;  %v8205_v61 = vadd.f32 %v15844_v47, %v7795_v17  ;;  %v15971_v26 = vpop.permute.xlu1 %8002  ;;  %v7799_v3 = vmul.f32 %v17294_v16, %v7389_v27  ;;  %v17305_v16 = vld [vmem:[#allocation70_spill] sm:$0xff] }
 0xc0d   : > { %v8206_v29 = vadd.f32 %v15886_v48, %v7796_v62  ;;  %v8207_v12 = vadd.f32 %v15846_v7, %v7797_v52  ;;  %v8208_v10 = vadd.f32 %v15888_v57, %v7798_v34  ;;  %v17297_v48 = vld [vmem:[#allocation56_spill] sm:$0xff]  ;;  %v17299_v62 = vld [vmem:[#allocation55_spill] sm:$0xff]  ;;  %v8210_v27 = vadd.f32 %v15890_v31, %v7800_v54  ;;  %v17308_v54 = vld [vmem:[#allocation113_spill] sm:$0xff] }
 0xc0e   : > { %v15981_v17 = vpop.permute.xlu0 %8006  ;;  %v8209_v43 = vadd.f32 %v15848_v25, %v7799_v3  ;;  %v7394_v7 = vmul.f32 %v15896_v28, %v17299_v62  ;;  %v17301_v52 = vld [vmem:[#allocation16_spill] sm:$0xff]  ;;  %v7396_v34 = vmul.f32 %v15896_v28, %v17303_v24  ;;  %v7397_v3 = vmul.f32 %v15896_v28, %v17305_v16  ;;  %v17317_v16 = vld [vmem:[#allocation14_spill] sm:$0xff] }
 0xc0f   : > { %v17315_v24 = vld [vmem:[#allocation32_spill] sm:$0xff] }
 0xc10   : > { %8346 = vperm.xlu1 %10578, %v8201_v33   ;;  %8349 = vperm.xlu0 %10577, %v8202_v40   ;;  %v17293_v33 = vld [vmem:[#allocation72_spill] sm:$0xff]  ;;  %v17295_v40 = vld [vmem:[#allocation74_spill] sm:$0xff]  ;;  %v15991_v22 = vpop.permute.xlu1 %8010 }
 0xc11   : > { %v7391_v13 = vmul.f32 %v15896_v28, %v17293_v33  ;;  %v7392_v47 = vmul.f32 %v15896_v28, %v17295_v40 }
 0xc12   : > { %v15993_v57 = vpop.permute.xlu0 %8014 }
 0xc13   : > { %v7801_v55 = vmul.f32 %v17298_v11, %v7391_v13 }
 0xc14   : > { %8352 = vperm.xlu1 %10578, %v8203_v1   ;;  %8355 = vperm.xlu0 %10577, %v8204_v51   ;;  %v7393_v1 = vmul.f32 %v15896_v28, %v17297_v48  ;;  %v17300_v51 = vld [vmem:[#allocation111_spill] sm:$0xff]  ;;  %v16003_v13 = vpop.permute.xlu1 %8018 }
 0xc15   : > { %v7802_v8 = vmul.f32 %v17300_v51, %v7392_v47  ;;  %v8211_v25 = vadd.f32 %v15850_v23, %v7801_v55  ;;  %v7398_v23 = vmul.f32 %v15896_v28, %v17307_v44  ;;  %v17310_v55 = vld [vmem:[#allocation95_spill] sm:$0xff]  ;;  %v17312_v51 = vld [vmem:[#allocation114_spill] sm:$0xff]  ;;  %v17319_v44 = vld [vmem:[#allocation68_spill] sm:$0xff] }
 0xc16   : > { %v7803_v15 = vmul.f32 %v17302_v9, %v7393_v1  ;;  %v16013_v1 = vpop.permute.xlu0 %8022 }
 0xc17   : > { %v8212_v31 = vadd.f32 %v15892_v19, %v7802_v8  ;;  %v17309_v19 = vld [vmem:[#allocation21_spill] sm:$0xff]  ;;  %v7808_v8 = vmul.f32 %v17312_v51, %v7398_v23  ;;  %v17320_v23 = vld [vmem:[#allocation116_spill] sm:$0xff] }
 0xc18   : > { %8358 = vperm.xlu1 %10578, %v8205_v61   ;;  %8361 = vperm.xlu0 %10577, %v8206_v29   ;;  %v7395_v61 = vmul.f32 %v15896_v28, %v17301_v52  ;;  %v17304_v29 = vld [vmem:[#allocation112_spill] sm:$0xff]  ;;  %v8213_v47 = vadd.f32 %v15852_v59, %v7803_v15  ;;  %v7399_v11 = vmul.f32 %v15896_v28, %v17309_v19  ;;  %v16023_v52 = vpop.permute.xlu1 %8029 }
 0xc19   : > { %v7804_v33 = vmul.f32 %v17304_v29, %v7394_v7  ;;  %v17311_v7 = vld [vmem:[#allocation18_spill] sm:$0xff]  ;;  %v17314_v15 = vld [vmem:[#allocation96_spill] sm:$0xff]  ;;  %v17316_v29 = vld [vmem:[#allocation115_spill] sm:$0xff] }
 0xc1a   : > { %v7400_v59 = vmul.f32 %v15896_v28, %v17311_v7  ;;  %v17324_v7 = vld [vmem:[#allocation117_spill] sm:$0xff] }
 0xc1b   : > { %v8214_v48 = vadd.f32 %v15894_v50, %v7804_v33  ;;  %v16025_v50 = vpop.permute.xlu0 %8033 }
 0xc1c   : > { %8364 = vperm.xlu1 %10578, %v8207_v12   ;;  %8367 = vperm.xlu0 %10577, %v8208_v10   ;;  %v17306_v12 = vld [vmem:[#allocation86_spill] sm:$0xff]  ;;  %v7806_v10 = vmul.f32 %v17308_v54, %v7396_v34  ;;  %v7402_v34 = vmul.f32 %v15896_v28, %v17315_v24  ;;  %v7810_v33 = vmul.f32 %v17316_v29, %v7400_v59 }
 0xc1d   : > { %v7805_v40 = vmul.f32 %v17306_v12, %v7395_v61  ;;  %v17313_v61 = vld [vmem:[#allocation44_spill] sm:$0xff]  ;;  %v17318_v12 = vld [vmem:[#allocation97_spill] sm:$0xff]  ;;  %v17328_v24 = vld [vmem:[#allocation118_spill] sm:$0xff] }
 0xc1e   : > { %v7401_v9 = vmul.f32 %v15896_v28, %v17313_v61  ;;  %v7812_v54 = vmul.f32 %v17320_v23, %v7402_v34 }
 0xc1f   : > { %v8215_v62 = vadd.f32 %v15854_v36, %v7805_v40 }
 0xc20   : > { %8370 = vperm.xlu1 %10578, %v8209_v43   ;;  %8373 = vperm.xlu0 %10577, %v8210_v27   ;;  %v7807_v43 = vmul.f32 %v17310_v55, %v7397_v3  ;;  %v8216_v27 = vadd.f32 %v15902_v18, %v7806_v10  ;;  %v8218_v18 = vadd.f32 %v15910_v2, %v7808_v8  ;;  %v17321_v2 = vld [vmem:[#allocation48_spill] sm:$0xff] }
 0xc21   : > { %v7403_v3 = vmul.f32 %v15896_v28, %v17317_v16  ;;  %v7811_v40 = vmul.f32 %v17318_v12, %v7401_v9  ;;  %v8220_v10 = vadd.f32 %v15926_v60, %v7810_v33  ;;  %v7405_v19 = vmul.f32 %v15896_v28, %v17321_v2  ;;  %v17326_v9 = vld [vmem:[#allocation99_spill] sm:$0xff]  ;;  %v17329_v33 = vld [vmem:[#allocation42_spill] sm:$0xff]  ;;  %v17330_v16 = vld [vmem:[#allocation100_spill] sm:$0xff] }
 0xc22   : > { %v8217_v36 = vadd.f32 %v15856_v20, %v7807_v43  ;;  %v7404_v20 = vmul.f32 %v15896_v28, %v17319_v44  ;;  %v8222_v51 = vadd.f32 %v15935_v21, %v7812_v54 }
 0xc23   : > { %v8221_v43 = vadd.f32 %v15860_v6, %v7811_v40  ;;  %v17331_v40 = vld [vmem:[#allocation37_spill] sm:$0xff] }
 0xc24   : > { %8376 = vperm.xlu1 %10578, %v8211_v25   ;;  %8379 = vperm.xlu0 %10577, %v8212_v31   ;;  %v7809_v25 = vmul.f32 %v17314_v15, %v7399_v11  ;;  %v16035_v31 = vpop.permute.xlu1 %8037  ;;  %v17322_v11 = vld [vmem:[#allocation98_spill] sm:$0xff]  ;;  %v7814_v59 = vmul.f32 %v17324_v7, %v7404_v20  ;;  %v7815_v15 = vmul.f32 %v17326_v9, %v7405_v19  ;;  %v17337_v7 = vld [vmem:[#allocation49_spill] sm:$0xff]  ;;  %v17339_v9 = vld [vmem:[#allocation31_spill] sm:$0xff] }
 0xc25   : > { %v7813_v55 = vmul.f32 %v17322_v11, %v7403_v3  ;;  %v17335_v11 = vld [vmem:[#allocation7_spill] sm:$0xff] }
 0xc26   : > { %v8224_v21 = vadd.f32 %v15951_v38, %v7814_v59  ;;  %v8225_v12 = vadd.f32 %v15864_v39, %v7815_v15  ;;  %v17333_v38 = vld [vmem:[#allocation47_spill] sm:$0xff]  ;;  %v7412_v39 = vmul.f32 %v15896_v28, %v17335_v11  ;;  %v7413_v59 = vmul.f32 %v15896_v28, %v17337_v7  ;;  %v17340_v15 = vld [vmem:[#allocation121_spill] sm:$0xff] }
 0xc27   : > { %v8223_v6 = vadd.f32 %v15862_v46, %v7813_v55  ;;  %v7410_v46 = vmul.f32 %v15896_v28, %v17331_v40  ;;  %v7411_v54 = vmul.f32 %v15896_v28, %v17333_v38  ;;  %v17336_v55 = vld [vmem:[#allocation120_spill] sm:$0xff]  ;;  %v17347_v38 = vld [vmem:[#allocation22_spill] sm:$0xff]  ;;  %v17349_v11 = vld [vmem:[#allocation25_spill] sm:$0xff] }
 0xc28   : > { %8382 = vperm.xlu1 %10578, %v8213_v47   ;;  %8385 = vperm.xlu0 %10577, %v8214_v48   ;;  %v8219_v47 = vadd.f32 %v15858_v30, %v7809_v25  ;;  %v16045_v48 = vpop.permute.xlu0 %8041  ;;  %v16055_v8 = vpop.permute.xlu1 %8045  ;;  %v17327_v25 = vld [vmem:[#allocation51_spill] sm:$0xff] }
 0xc2c   : > { %8388 = vperm.xlu1 %10578, %v8215_v62   ;;  %8391 = vperm.xlu0 %10577, %v8216_v27   ;;  %v17323_v62 = vld [vmem:[#allocation33_spill] sm:$0xff]  ;;  %v16057_v60 = vpop.permute.xlu0 %8049  ;;  %v17325_v27 = vld [vmem:[#allocation50_spill] sm:$0xff]  ;;  %v16067_v29 = vpop.permute.xlu1 %8053 }
 0xc2d   : > { %v7406_v30 = vmul.f32 %v15896_v28, %v17323_v62  ;;  %v7407_v61 = vmul.f32 %v15896_v28, %v17325_v27 }
 0xc2f   : > { %v7816_v34 = vmul.f32 %v17328_v24, %v7406_v30  ;;  %v7817_v3 = vmul.f32 %v17330_v16, %v7407_v61  ;;  %v17344_v16 = vld [vmem:[#allocation122_spill] sm:$0xff] }
 0xc30   : > { %8394 = vperm.xlu1 %10578, %v8217_v36   ;;  %8397 = vperm.xlu0 %10577, %v8218_v18   ;;  %v7408_v36 = vmul.f32 %v15896_v28, %v17327_v25  ;;  %v7409_v18 = vmul.f32 %v15896_v28, %v17329_v33  ;;  %v16077_v23 = vpop.permute.xlu0 %8057  ;;  %v8065_v30 = vpop.permute.xlu1 %8064 }
 0xc31   : > { %v8226_v20 = vadd.f32 %v15961_v32, %v7816_v34  ;;  %v8227_v19 = vadd.f32 %v15971_v26, %v7817_v3  ;;  %v7414_v26 = vmul.f32 %v15896_v28, %v17339_v9  ;;  %v17342_v34 = vld [vmem:[#allocation103_spill] sm:$0xff] }
 0xc33   : > { %v7824_v3 = vmul.f32 %v17344_v16, %v7414_v26 }
 0xc34   : > { %8400 = vperm.xlu1 %10578, %v8219_v47   ;;  %8403 = vperm.xlu0 %10577, %v8220_v10   ;;  %v17332_v47 = vld [vmem:[#allocation119_spill] sm:$0xff]  ;;  %v17334_v10 = vld [vmem:[#allocation101_spill] sm:$0xff]  ;;  %v8069_v32 = vpop.permute.xlu0 %8068 }
 0xc35   : > { %v7818_v44 = vmul.f32 %v17332_v47, %v7408_v36  ;;  %v7819_v2 = vmul.f32 %v17334_v10, %v7409_v18  ;;  %v17341_v36 = vld [vmem:[#allocation43_spill] sm:$0xff]  ;;  %v17343_v18 = vld [vmem:[#allocation61_spill] sm:$0xff]  ;;  %v17346_v47 = vld [vmem:[#allocation104_spill] sm:$0xff] }
 0xc36   : > { %v7415_v24 = vmul.f32 %v15896_v28, %v17341_v36 }
 0xc37   : > { %v8228_v62 = vadd.f32 %v15981_v17, %v7818_v44  ;;  %v8229_v61 = vadd.f32 %v15991_v22, %v7819_v2  ;;  %v8073_v17 = vpop.permute.xlu1 %8072  ;;  %v7416_v22 = vmul.f32 %v15896_v28, %v17343_v18  ;;  %v8234_v2 = vadd.f32 %v16025_v50, %v7824_v3 }
 0xc38   : > { %8406 = vperm.xlu1 %10578, %v8221_v43   ;;  %8409 = vperm.xlu0 %10577, %v8222_v51   ;;  %v7820_v43 = vmul.f32 %v17336_v55, %v7410_v46  ;;  %v17338_v51 = vld [vmem:[#allocation102_spill] sm:$0xff]  ;;  %v8077_v40 = vpop.permute.xlu0 %8076  ;;  %v7825_v44 = vmul.f32 %v17346_v47, %v7415_v24  ;;  %v17350_v55 = vld [vmem:[#allocation105_spill] sm:$0xff]  ;;  %v17359_v47 = vld [vmem:[#allocation124_spill] sm:$0xff] }
 0xc39   : > { %v7821_v27 = vmul.f32 %v17338_v51, %v7411_v54  ;;  %v17348_v54 = vld [vmem:[#allocation123_spill] sm:$0xff] }
 0xc3a   : > { %v8230_v25 = vadd.f32 %v15993_v57, %v7820_v43  ;;  %v17345_v57 = vld [vmem:[#allocation8_spill] sm:$0xff]  ;;  %v7826_v10 = vmul.f32 %v17348_v54, %v7416_v22 }
 0xc3b   : > { %v8231_v33 = vadd.f32 %v16003_v13, %v7821_v27  ;;  %v7417_v46 = vmul.f32 %v15896_v28, %v17345_v57  ;;  %v7421_v13 = vmul.f32 %v15896_v28, %v17347_v38  ;;  %v17352_v27 = vld [vmem:[#allocation77_spill] sm:$0xff]  ;;  %v17360_v38 = vld [vmem:[#allocation20_spill] sm:$0xff] }
 0xc3c   : > { %8412 = vperm.xlu1 %10578, %v8223_v6   ;;  %8415 = vperm.xlu0 %10577, %v8224_v21   ;;  %v7822_v6 = vmul.f32 %v17340_v15, %v7412_v39  ;;  %v7823_v21 = vmul.f32 %v17342_v34, %v7413_v59  ;;  %v7422_v39 = vmul.f32 %v15896_v28, %v17349_v11  ;;  %v17353_v15 = vld [vmem:[#allocation83_spill] sm:$0xff] }
 0xc3d   : > { %v7827_v43 = vmul.f32 %v17350_v55, %v7417_v46  ;;  %v7831_v59 = vmul.f32 %v15789_v35, %v7421_v13  ;;  %v8236_v51 = vadd.f32 %v16045_v48, %v7826_v10  ;;  %v17354_v48 = vld [vmem:[#allocation60_spill] sm:$0xff]  ;;  %v7419_v13 = vmul.f32 %v15896_v28, %v17360_v38  ;;  %v17361_v10 = vld [vmem:[#allocation59_spill] sm:$0xff] }
 0xc3e   : > { %v7832_v9 = vmul.f32 %v15868_v58, %v7422_v39  ;;  %v7424_v36 = vmul.f32 %v15896_v28, %v17354_v48  ;;  %v17362_v39 = vld [vmem:[#allocation40_spill] sm:$0xff] }
 0xc3f   : > { %v8237_v26 = vadd.f32 %v16055_v8, %v7827_v43  ;;  %v7433_v55 = vmul.f32 %v15896_v28, %v17362_v39  ;;  %v17363_v43 = vld [vmem:[#allocation106_spill] sm:$0xff] }
 0xc40   : > { %8418 = vperm.xlu1 %10578, %v8225_v12   ;;  %8421 = vperm.xlu0 %10577, %v8226_v20   ;;  %v8232_v12 = vadd.f32 %v16013_v1, %v7822_v6  ;;  %v8233_v20 = vadd.f32 %v16023_v52, %v7823_v21  ;;  %v16111_v1 = vpop.permute.xlu0 %8084  ;;  %v17351_v52 = vld [vmem:[#allocation58_spill] sm:$0xff]  ;;  %v8242_v34 = vadd.f32 %v8069_v32, %v7832_v9  ;;  %v17355_v21 = vld [vmem:[#allocation71_spill] sm:$0xff]  ;;  %v17366_v9 = vld [vmem:[#allocation81_spill] sm:$0xff] }
 0xc41   : > { %v7423_v7 = vmul.f32 %v15896_v28, %v17351_v52  ;;  %v7431_v58 = vmul.f32 %v15896_v28, %v17355_v21  ;;  %v7834_v16 = vmul.f32 %v15870_v5, %v7424_v36  ;;  %v17369_v21 = vld [vmem:[#allocation57_spill] sm:$0xff] }
 0xc43   : > { %v7833_v6 = vmul.f32 %v15803_v41, %v7423_v7  ;;  %v7841_v32 = vmul.f32 %v15821_v53, %v7431_v58  ;;  %v7426_v53 = vmul.f32 %v15896_v28, %v17361_v10 }
 0xc44   : > { %8424 = vperm.xlu1 %10578, %v8227_v19   ;;  %8427 = vperm.xlu0 %10577, %v8228_v62   ;;  %v8081_v19 = vpop.permute.xlu1 %8080  ;;  %v8235_v62 = vadd.f32 %v16035_v31, %v7825_v44  ;;  %v7430_v31 = vmul.f32 %v15896_v28, %v17353_v15  ;;  %v16130_v35 = vpop.permute.xlu0 %8092 }
 0xc46   : > { %v7840_v8 = vmul.f32 %v15876_v0, %v7430_v31 }
 0xc48   : > { %8430 = vperm.xlu1 %10578, %v8229_v61   ;;  %8433 = vperm.xlu0 %10577, %v8230_v25   ;;  %v16121_v50 = vpop.permute.xlu1 %8088  ;;  %v7429_v61 = vmul.f32 %v15896_v28, %v17352_v27  ;;  %v8241_v25 = vadd.f32 %v8065_v30, %v7831_v59  ;;  %v8104_v41 = vpop.permute.xlu0 %8103  ;;  %v17356_v30 = vld [vmem:[#allocation62_spill] sm:$0xff]  ;;  %v7836_v59 = vmul.f32 %v15872_v56, %v7426_v53 }
 0xc49   : > { %v7418_v22 = vmul.f32 %v15896_v28, %v17356_v30  ;;  %v8250_v57 = vadd.f32 %v8104_v41, %v7840_v8  ;;  %v17365_v27 = vld [vmem:[#allocation66_spill] sm:$0xff]  ;;  %v17372_v41 = vld [vmem:[#allocation128_spill] sm:$0xff] }
 0xc4a   : > { %v7839_v24 = vmul.f32 %v15814_v49, %v7429_v61  ;;  %v8246_v31 = vadd.f32 %v16111_v1, %v7836_v59  ;;  %v17370_v1 = vld [vmem:[#allocation126_spill] sm:$0xff] }
 0xc4b   : > { %v7828_v44 = vmul.f32 %v17359_v47, %v7418_v22 }
 0xc4c   : > { %8436 = vperm.xlu1 %10578, %v8231_v33   ;;  %8439 = vperm.xlu0 %10577, %v8232_v12   ;;  %v8243_v33 = vadd.f32 %v8073_v17, %v7833_v6  ;;  %v8100_v18 = vpop.permute.xlu1 %8099  ;;  %v17357_v12 = vld [vmem:[#allocation52_spill] sm:$0xff]  ;;  %v17358_v17 = vld [vmem:[#allocation73_spill] sm:$0xff]  ;;  %v8112_v52 = vpop.permute.xlu0 %8111  ;;  %v17367_v6 = vld [vmem:[#allocation63_spill] sm:$0xff] }
 0xc4d   : > { %v8249_v3 = vadd.f32 %v8100_v18, %v7839_v24  ;;  %v7425_v49 = vmul.f32 %v15896_v28, %v17357_v12  ;;  %v7432_v46 = vmul.f32 %v15896_v28, %v17358_v17  ;;  %v8238_v11 = vadd.f32 %v16057_v60, %v7828_v44  ;;  %v17373_v12 = vld [vmem:[#allocation85_spill] sm:$0xff] }
 0xc4e   : > { %v7843_v60 = vmul.f32 %v15824_v42, %v7433_v55  ;;  %v7428_v56 = vmul.f32 %v15896_v28, %v17367_v6  ;;  %v17368_v42 = vld [vmem:[#allocation26_spill] sm:$0xff]  ;;  %v17376_v44 = vld [vmem:[#allocation89_spill] sm:$0xff] }
 0xc4f   : > { %v7835_v5 = vmul.f32 %v15810_v4, %v7425_v49  ;;  %v17364_v4 = vld [vmem:[#allocation27_spill] sm:$0xff] }
 0xc50   : > { %8442 = vperm.xlu1 %10578, %v8233_v20   ;;  %8445 = vperm.xlu0 %10577, %v8234_v2   ;;  %v8108_v0 = vpop.permute.xlu1 %8107  ;;  %v8244_v20 = vadd.f32 %v8077_v40, %v7834_v16  ;;  %v7842_v2 = vmul.f32 %v15878_v37, %v7432_v46  ;;  %v7829_v40 = vmul.f32 %v17363_v43, %v7419_v13  ;;  %v8120_v24 = vpop.permute.xlu0 %8119  ;;  %v17375_v46 = vld [vmem:[#allocation88_spill] sm:$0xff] }
 0xc51   : > { %v8251_v54 = vadd.f32 %v8108_v0, %v7841_v32  ;;  %v7420_v7 = vmul.f32 %v15896_v28, %v17364_v4  ;;  %v7427_v37 = vmul.f32 %v15896_v28, %v17365_v27  ;;  %v7838_v58 = vmul.f32 %v17370_v1, %v7428_v56  ;;  %v17374_v32 = vld [vmem:[#allocation80_spill] sm:$0xff]  ;;  %v17380_v4 = vld [vmem:[#allocation93_spill] sm:$0xff] }
 0xc52   : > { %v8239_v61 = vadd.f32 %v16067_v29, %v7829_v40  ;;  %v7435_v29 = vmul.f32 %v15896_v28, %v17368_v42  ;;  %v17379_v40 = vld [vmem:[#allocation94_spill] sm:$0xff] }
 0xc53   : > { %v7830_v15 = vmul.f32 %v15866_v63, %v7420_v7  ;;  %v7837_v48 = vmul.f32 %v15812_v45, %v7427_v37  ;;  %v7436_v63 = vmul.f32 %v15896_v28, %v17369_v21  ;;  %v17371_v45 = vld [vmem:[#allocation65_spill] sm:$0xff]  ;;  %v8248_v22 = vadd.f32 %v16130_v35, %v7838_v58 }
 0xc54   : > { %8448 = vperm.xlu1 %10578, %v8235_v62   ;;  %8451 = vperm.xlu0 %10577, %v8236_v51   ;;  %v8245_v62 = vadd.f32 %v8081_v19, %v7835_v5  ;;  %v8252_v51 = vadd.f32 %v8112_v52, %v7842_v2  ;;  %v7434_v19 = vmul.f32 %v15896_v28, %v17366_v9  ;;  %v8128_v16 = vpop.permute.xlu0 %8127  ;;  %v17378_v2 = vld [vmem:[#allocation90_spill] sm:$0xff] }
 0xc55   : > { %v8247_v8 = vadd.f32 %v16121_v50, %v7837_v48  ;;  %v7846_v30 = vmul.f32 %v17372_v41, %v7436_v63 }
 0xc56   : > { %v7844_v36 = vmul.f32 %v15880_v14, %v7434_v19 }
 0xc58   : > { %8454 = vperm.xlu1 %10578, %v8237_v26   ;;  %8466 = vperm.xlu0 %10577, %v8241_v25   ;;  %v8116_v26 = vpop.permute.xlu1 %8115  ;;  %v8254_v18 = vadd.f32 %v8120_v24, %v7844_v36 }
 0xc59   : > { %v8253_v25 = vadd.f32 %v8116_v26, %v7843_v60 }
 0xc5c   : > { %8469 = vperm.xlu1 %10578, %v8242_v34   ;;  %8472 = vperm.xlu0 %10577, %v8243_v33   ;;  %v8240_v34 = vadd.f32 %v16077_v23, %v7830_v15  ;;  %v7845_v33 = vmul.f32 %v17371_v45, %v7435_v29  ;;  %v8124_v14 = vpop.permute.xlu1 %8123 }
 0xc5e   : > { %v8255_v23 = vadd.f32 %v8124_v14, %v7845_v33 }
 0xc60   : > { %8490 = vperm.xlu1 %10578, %v8249_v3   ;;  %8493 = vperm.xlu0 %10577, %v8250_v57   ;;  %v8256_v3 = vadd.f32 %v8128_v16, %v7846_v30 }
 0xc64   : > { %8475 = vperm.xlu1 %10578, %v8244_v20   ;;  %8496 = vperm.xlu0 %10577, %v8251_v54   ;;  %v17377_v54 = vld [vmem:[#allocation91_spill] sm:$0xff] }
 0xc68   : > { %8457 = vperm.xlu1 %10578, %v8238_v11   ;;  %8478 = vperm.xlu0 %10577, %v8245_v62  }
 0xc6c   : > { %8499 = vperm.xlu1 %10578, %v8252_v51   ;;  %8460 = vperm.xlu0 %10577, %v8239_v61  }
 0xc70   : > { %8481 = vperm.xlu1 %10578, %v8246_v31   ;;  %8502 = vperm.xlu0 %10577, %v8253_v25  }
 0xc74   : > { %8463 = vperm.xlu1 %10578, %v8240_v34   ;;  %8484 = vperm.xlu0 %10577, %v8247_v8  }
 0xc78   : > { %8505 = vperm.xlu1 %10578, %v8254_v18   ;;  %8487 = vperm.xlu0 %10577, %v8248_v22  }
 0xc7c   : > { %8508 = vperm.xlu1 %10578, %v8255_v23   ;;  %8511 = vperm.xlu0 %10577, %v8256_v3  }
 0xc7f   : > { %v8323_v28 = vpop.permute.xlu1 %8322  ;;  %v8326_v49 = vpop.permute.xlu0 %8325 }
 0xc80   : > { %v8516_v50 = vrot.slane %v8323_v28, %v17373_v12  ;;  %v8520_v57 = vrot.slane %v8326_v49, %v17374_v32 }
 0xc82   : > { %v8521_v0 = vsel %vm6312_vm14, %v8520_v57, %v8516_v50 }
 0xc83   : > { %v8329_v17 = vpop.permute.xlu1 %8328  ;;  %v8332_v35 = vpop.permute.xlu0 %8331 }
 0xc84   : > { %v8525_v47 = vrot.slane %v8329_v17, %v17375_v46  ;;  %v8530_v20 = vrot.slane %v8332_v35, %v17376_v44 }
 0xc86   : > { %v8526_v38 = vsel %vm6319_vm15, %v8525_v47, %v8521_v0 }
 0xc87   : > { %v8531_v13 = vsel %vm6326_vm0, %v8530_v20, %v8526_v38  ;;  %v8335_v5 = vpop.permute.xlu1 %8334  ;;  %v8338_v53 = vpop.permute.xlu0 %8337 }
 0xc88   : > { %v8535_v10 = vrot.slane %v8335_v5, %v17377_v54  ;;  %v8540_v11 = vrot.slane %v8338_v53, %v17378_v2 }
 0xc8a   : > { %v8536_v39 = vsel %vm6333_vm1, %v8535_v10, %v8531_v13 }
 0xc8b   : > { %v8541_v55 = vsel %vm6340_vm2, %v8540_v11, %v8536_v39  ;;  %v8341_v43 = vpop.permute.xlu1 %8340  ;;  %v8344_v52 = vpop.permute.xlu0 %8343 }
 0xc8c   : > { %v8545_v62 = vrot.slane %v8341_v43, %v17379_v40  ;;  %v8550_v7 = vrot.slane %v8344_v52, %v17380_v4 }
 0xc8e   : > { %v8546_v59 = vsel %vm6347_vm11, %v8545_v62, %v8541_v55 }
 0xc8f   : > { %v8551_v51 = vsel %vm6354_vm12, %v8550_v7, %v8546_v59  ;;  %v8347_v27 = vpop.permute.xlu1 %8346  ;;  %v8350_v60 = vpop.permute.xlu0 %8349 }
 0xc90   : > { %v8555_v37 = vrot.slane %v8347_v27, %v17373_v12  ;;  %v8559_v61 = vrot.slane %v8350_v60, %v17374_v32 }
 0xc92   : > { %v8560_v9 = vsel %vm6312_vm14, %v8559_v61, %v8555_v37 }
 0xc93   : > { %v8353_v19 = vpop.permute.xlu1 %8352  ;;  %v8356_v15 = vpop.permute.xlu0 %8355 }
 0xc94   : > { %v8564_v26 = vrot.slane %v8353_v19, %v17375_v46  ;;  %v8569_v31 = vrot.slane %v8356_v15, %v17376_v44 }
 0xc96   : > { %v8565_v6 = vsel %vm6319_vm15, %v8564_v26, %v8560_v9 }
 0xc97   : > { %v8570_v56 = vsel %vm6326_vm0, %v8569_v31, %v8565_v6  ;;  %v8359_v25 = vpop.permute.xlu1 %8358  ;;  %v8362_v42 = vpop.permute.xlu0 %8361 }
 0xc98   : > { %v8574_v48 = vrot.slane %v8359_v25, %v17377_v54  ;;  %v8579_v29 = vrot.slane %v8362_v42, %v17378_v2 }
 0xc9a   : > { %v8575_v36 = vsel %vm6333_vm1, %v8574_v48, %v8570_v56 }
 0xc9b   : > { %v8580_v24 = vsel %vm6340_vm2, %v8579_v29, %v8575_v36  ;;  %v8365_v34 = vpop.permute.xlu1 %8364  ;;  %v8368_v63 = vpop.permute.xlu0 %8367 }
 0xc9c   : > { %v8584_v21 = vrot.slane %v8365_v34, %v17379_v40  ;;  %v8589_v1 = vrot.slane %v8368_v63, %v17380_v4 }
 0xc9e   : > { %v8585_v58 = vsel %vm6347_vm11, %v8584_v21, %v8580_v24 }
 0xc9f   : > { %v8590_v8 = vsel %vm6354_vm12, %v8589_v1, %v8585_v58  ;;  %v8371_v45 = vpop.permute.xlu1 %8370  ;;  %v8374_v41 = vpop.permute.xlu0 %8373 }
 0xca0   : > { %v8825_v33 = vsel %vm2950_vm5, %v8590_v8, %v8551_v51  ;;  %v8594_v18 = vrot.slane %v8371_v45, %v17373_v12  ;;  %v8598_v30 = vrot.slane %v8374_v41, %v17374_v32 }
 0xca2   : > { %v8599_v22 = vsel %vm6312_vm14, %v8598_v30, %v8594_v18 }
 0xca3   : > { %v8377_v14 = vpop.permute.xlu1 %8376  ;;  %v8380_v23 = vpop.permute.xlu0 %8379 }
 0xca4   : > { %v8603_v16 = vrot.slane %v8377_v14, %v17375_v46  ;;  %v8608_v3 = vrot.slane %v8380_v23, %v17376_v44 }
 0xca6   : > { %v8604_v28 = vsel %vm6319_vm15, %v8603_v16, %v8599_v22 }
 0xca7   : > { %v8609_v50 = vsel %vm6326_vm0, %v8608_v3, %v8604_v28  ;;  %v8383_v49 = vpop.permute.xlu1 %8382  ;;  %v8386_v0 = vpop.permute.xlu0 %8385 }
 0xca8   : > { %v8613_v57 = vrot.slane %v8383_v49, %v17377_v54  ;;  %v8618_v17 = vrot.slane %v8386_v0, %v17378_v2 }
 0xcaa   : > { %v8614_v47 = vsel %vm6333_vm1, %v8613_v57, %v8609_v50 }
 0xcab   : > { %v8619_v35 = vsel %vm6340_vm2, %v8618_v17, %v8614_v47  ;;  %v8389_v20 = vpop.permute.xlu1 %8388  ;;  %v8392_v13 = vpop.permute.xlu0 %8391 }
 0xcac   : > { %v8623_v38 = vrot.slane %v8389_v20, %v17379_v40  ;;  %v8628_v5 = vrot.slane %v8392_v13, %v17380_v4 }
 0xcae   : > { %v8624_v10 = vsel %vm6347_vm11, %v8623_v38, %v8619_v35 }
 0xcaf   : > { %v8629_v53 = vsel %vm6354_vm12, %v8628_v5, %v8624_v10  ;;  %v8395_v11 = vpop.permute.xlu1 %8394  ;;  %v8398_v43 = vpop.permute.xlu0 %8397 }
 0xcb0   : > { %v8826_v39 = vsel %vm2932_vm4, %v8629_v53, %v8825_v33  ;;  %v8633_v55 = vrot.slane %v8395_v11, %v17373_v12  ;;  %v8637_v62 = vrot.slane %v8398_v43, %v17374_v32 }
 0xcb2   : > { %v8638_v52 = vsel %vm6312_vm14, %v8637_v62, %v8633_v55 }
 0xcb3   : > { %v8401_v7 = vpop.permute.xlu1 %8400  ;;  %v8404_v51 = vpop.permute.xlu0 %8403 }
 0xcb4   : > { %v8642_v59 = vrot.slane %v8401_v7, %v17375_v46  ;;  %v8647_v27 = vrot.slane %v8404_v51, %v17376_v44 }
 0xcb6   : > { %v8643_v37 = vsel %vm6319_vm15, %v8642_v59, %v8638_v52 }
 0xcb7   : > { %v8648_v60 = vsel %vm6326_vm0, %v8647_v27, %v8643_v37  ;;  %v8407_v61 = vpop.permute.xlu1 %8406  ;;  %v8410_v19 = vpop.permute.xlu0 %8409 }
 0xcb8   : > { %v8652_v9 = vrot.slane %v8407_v61, %v17377_v54  ;;  %v8657_v26 = vrot.slane %v8410_v19, %v17378_v2 }
 0xcba   : > { %v8653_v15 = vsel %vm6333_vm1, %v8652_v9, %v8648_v60 }
 0xcbb   : > { %v8413_v31 = vpop.permute.xlu1 %8412  ;;  %v8416_v56 = vpop.permute.xlu0 %8415  ;;  %v8658_v25 = vsel %vm6340_vm2, %v8657_v26, %v8653_v15 }
 0xcbc   : > { %v8662_v6 = vrot.slane %v8413_v31, %v17379_v40  ;;  %v8667_v48 = vrot.slane %v8416_v56, %v17380_v4 }
 0xcbe   : > { %v8663_v42 = vsel %vm6347_vm11, %v8662_v6, %v8658_v25 }
 0xcbf   : > { %v8668_v29 = vsel %vm6354_vm12, %v8667_v48, %v8663_v42  ;;  %v8419_v36 = vpop.permute.xlu1 %8418  ;;  %v8422_v34 = vpop.permute.xlu0 %8421 }
 0xcc0   : > { %v16245_v24 = vsel %vm2935_vm6, %v8668_v29, %v8826_v39  ;;  %v8672_v57 = vrot.slane %v8419_v36, %v17373_v12  ;;  %v8676_v0 = vrot.slane %v8422_v34, %v17374_v32 }
 0xcc2   : > { %v8677_v20 = vsel %vm6312_vm14, %v8676_v0, %v8672_v57 }
 0xcc3   : > { %v8425_v21 = vpop.permute.xlu1 %8424  ;;  %v8428_v63 = vpop.permute.xlu0 %8427 }
 0xcc4   : > { %v8681_v47 = vrot.slane %v8425_v21, %v17375_v46  ;;  %v8686_v38 = vrot.slane %v8428_v63, %v17376_v44 }
 0xcc6   : > { %v8682_v5 = vsel %vm6319_vm15, %v8681_v47, %v8677_v20 }
 0xcc7   : > { %v8431_v1 = vpop.permute.xlu1 %8430  ;;  %v8434_v58 = vpop.permute.xlu0 %8433  ;;  %v8687_v55 = vsel %vm6326_vm0, %v8686_v38, %v8682_v5 }
 0xcc8   : > { %v8691_v10 = vrot.slane %v8431_v1, %v17377_v54  ;;  %v8696_v43 = vrot.slane %v8434_v58, %v17378_v2 }
 0xcca   : > { %v8692_v7 = vsel %vm6333_vm1, %v8691_v10, %v8687_v55 }
 0xccb   : > { %v8437_v8 = vpop.permute.xlu1 %8436  ;;  %v16247_v45 = vpop.permute.xlu0 %8439  ;;  %v8697_v9 = vsel %vm6340_vm2, %v8696_v43, %v8692_v7 }
 0xccc   : > { %v8701_v27 = vrot.slane %v8437_v8, %v17379_v40  ;;  %v8706_v36 = vrot.slane %v16247_v45, %v17380_v4 }
 0xcce   : > { %v8702_v29 = vsel %vm6347_vm11, %v8701_v27, %v8697_v9 }
 0xccf   : > { %v8443_v33 = vpop.permute.xlu1 %8442  ;;  %v8446_v18 = vpop.permute.xlu0 %8445 }
 0xcd0   : > { %v8711_v11 = vrot.slane %v8443_v33, %v17373_v12  ;;  %v8715_v39 = vrot.slane %v8446_v18, %v17374_v32 }
 0xcd2   : > { %v8716_v37 = vsel %vm6312_vm14, %v8715_v39, %v8711_v11 }
 0xcd3   : > { %v8449_v41 = vpop.permute.xlu1 %8448  ;;  %v8452_v30 = vpop.permute.xlu0 %8451 }
 0xcd4   : > { %v8720_v62 = vrot.slane %v8449_v41, %v17375_v46  ;;  %v8725_v60 = vrot.slane %v8452_v30, %v17376_v44 }
 0xcd6   : > { %v8721_v19 = vsel %vm6319_vm15, %v8720_v62, %v8716_v37 }
 0xcd7   : > { %v8455_v22 = vpop.permute.xlu1 %8454  ;;  %v8467_v14 = vpop.permute.xlu0 %8466  ;;  %v8726_v63 = vsel %vm6326_vm0, %v8725_v60, %v8721_v19 }
 0xcd8   : > { %v8750_v61 = vrot.slane %v8467_v14, %v17373_v12  ;;  %v8730_v26 = vrot.slane %v8455_v22, %v17377_v54 }
 0xcda   : > { %v8731_v41 = vsel %vm6333_vm1, %v8730_v26, %v8726_v63 }
 0xcdb   : > { %v8470_v16 = vpop.permute.xlu1 %8469  ;;  %v8473_v23 = vpop.permute.xlu0 %8472 }
 0xcdc   : > { %v8754_v59 = vrot.slane %v8470_v16, %v17374_v32  ;;  %v8759_v15 = vrot.slane %v8473_v23, %v17375_v46 }
 0xcde   : > { %v8755_v6 = vsel %vm6312_vm14, %v8754_v59, %v8750_v61 }
 0xcdf   : > { %v8491_v3 = vpop.permute.xlu1 %8490  ;;  %v8494_v28 = vpop.permute.xlu0 %8493  ;;  %v8760_v58 = vsel %vm6319_vm15, %v8759_v15, %v8755_v6 }
 0xce0   : > { %v8789_v56 = vrot.slane %v8491_v3, %v17373_v12  ;;  %v8793_v25 = vrot.slane %v8494_v28, %v17374_v32  ;;  %v8707_v28 = vsel %vm6354_vm12, %v8706_v36, %v8702_v29 }
 0xce3   : > { %v8476_v50 = vpop.permute.xlu1 %8475  ;;  %v8497_v49 = vpop.permute.xlu0 %8496 }
 0xce4   : > { %v8764_v48 = vrot.slane %v8476_v50, %v17376_v44  ;;  %v8798_v1 = vrot.slane %v8497_v49, %v17375_v46  ;;  %v8794_v46 = vsel %vm6312_vm14, %v8793_v25, %v8789_v56 }
 0xce6   : > { %v8765_v30 = vsel %vm6326_vm0, %v8764_v48, %v8760_v58  ;;  %v8799_v50 = vsel %vm6319_vm15, %v8798_v1, %v8794_v46 }
 0xce7   : > { %v8458_v17 = vpop.permute.xlu1 %8457  ;;  %v8479_v35 = vpop.permute.xlu0 %8478 }
 0xce8   : > { %v8735_v34 = vrot.slane %v8458_v17, %v17378_v2  ;;  %v8769_v21 = vrot.slane %v8479_v35, %v17377_v54 }
 0xcea   : > { %v8736_v16 = vsel %vm6340_vm2, %v8735_v34, %v8731_v41  ;;  %v8770_v23 = vsel %vm6333_vm1, %v8769_v21, %v8765_v30 }
 0xceb   : > { %v8500_v13 = vpop.permute.xlu1 %8499  ;;  %v8461_v53 = vpop.permute.xlu0 %8460 }
 0xcec   : > { %v8740_v12 = vrot.slane %v8461_v53, %v17379_v40  ;;  %v8803_v8 = vrot.slane %v8500_v13, %v17376_v44  ;;  %v8828_v13 = vsel %vm2938_vm7, %v8707_v28, %v16245_v24 }
 0xcee   : > { %v8741_v49 = vsel %vm6347_vm11, %v8740_v12, %v8736_v16 }
 0xcef   : > { %v8482_v52 = vpop.permute.xlu1 %8481  ;;  %v8503_v51 = vpop.permute.xlu0 %8502 }
 0xcf0   : > { %v8774_v32 = vrot.slane %v8482_v52, %v17378_v2  ;;  %v8808_v22 = vrot.slane %v8503_v51, %v17377_v54  ;;  %v8804_v54 = vsel %vm6326_vm0, %v8803_v8, %v8799_v50 }
 0xcf2   : > { %v8775_v57 = vsel %vm6340_vm2, %v8774_v32, %v8770_v23  ;;  %v8809_v35 = vsel %vm6333_vm1, %v8808_v22, %v8804_v54 }
 0xcf3   : > { %v8464_v31 = vpop.permute.xlu1 %8463  ;;  %v8485_v42 = vpop.permute.xlu0 %8484 }
 0xcf4   : > { %v8745_v45 = vrot.slane %v8464_v31, %v17380_v4  ;;  %v8779_v33 = vrot.slane %v8485_v42, %v17379_v40 }
 0xcf6   : > { %v8746_v0 = vsel %vm6354_vm12, %v8745_v45, %v8741_v49  ;;  %v8780_v17 = vsel %vm6347_vm11, %v8779_v33, %v8775_v57 }
 0xcf7   : > { %v8506_v18 = vpop.permute.xlu1 %8505  ;;  %v8488_v14 = vpop.permute.xlu0 %8487  ;;  %v8829_v53 = vsel %vm2941_vm8, %v8746_v0, %v8828_v13 }
 0xcf8   : > { %v8813_v44 = vrot.slane %v8506_v18, %v17378_v2  ;;  %v8784_v3 = vrot.slane %v8488_v14, %v17380_v4 }
 0xcfa   : > { %v8785_v2 = vsel %vm6354_vm12, %v8784_v3, %v8780_v17  ;;  %v8814_v5 = vsel %vm6340_vm2, %v8813_v44, %v8809_v35 }
 0xcfb   : > { %v8509_v47 = vpop.permute.xlu1 %8508  ;;  %v8512_v38 = vpop.permute.xlu0 %8511  ;;  %v8830_v39 = vsel %vm2944_vm9, %v8785_v2, %v8829_v53 }
 0xcfc   : > { %v8818_v20 = vrot.slane %v8509_v47, %v17379_v40  ;;  %v8823_v10 = vrot.slane %v8512_v38, %v17380_v4 }
 0xcfe   : > { %v8819_v11 = vsel %vm6347_vm11, %v8818_v20, %v8814_v5 }
 0xcff   : > { %v8824_v40 = vsel %vm6354_vm12, %v8823_v10, %v8819_v11 }
 0xd00   : > { %v8831_v4 = vsel %vm2947_vm10, %v8824_v40, %v8830_v39 }
 0xd01   : > { %8833 = vst.msk [vmem:[%s406_s28] sm:$0xff] %vm784_vm3, %v8831_v4 }
 0xd02   : > { %10735 = shalt.err (!%p10732_p3)
}
 0xd03   : > { %s10736_s0 = scalar_lea.hbm %s16324_s18, 128  ;;  %s10740_s25 = scalar_lea.hbm %s16382_s12, 256 }
 0xd04   : > { %p10737_p4 = scmp.ne.s32.totalorder %s16324_s18, %s10736_s0  ;;  %p10741_p9 = scmp.lt.u32.totalorder %s16324_s18, %s16382_s12 }
 0xd05   : > { %p10742_p10 = scmp.lt.u32.totalorder %s10740_s25, %s10736_s0  ;;  %p10744_p12 = scmp.lt.u32.totalorder %s10736_s0, %s16324_s18 }
 0xd06   : > { %p10738_p7 = pnand %p10737_p4, %p10895_p5 }
 0xd07   : > { %p10743_p11 = por %p10742_p10, %p10741_p9 }
 0xd08   : > { %p10739_p8 = pneg %p10738_p7 }
 0xd09   : > { %p10745_p13 = por %p10744_p12, %p10743_p11 }
 0xd0b   : > { %p10746_p0 = pnand %p10745_p13, %p10739_p8 }
 0xd0d   : > { %10749 = shalt.err (!%p10746_p0)
}
 0xd0e   : > { %10532 = dma.vmem_to_hbm [thread:$0]  (%p10895_p5), %s16326_s29, 128, %s16324_s18, %s8835_s20  }
 0xd0f PF: > { %p10538_p1 = scmp.ge.s32.totalorder %s10784_s24, 2  ;;  %s8860_s26 = sand.u32 1, %s10772_s21  }
 0xd10   : > { %s8861_s16 = scalar_lea.sflag [#allocation3], %s8860_s26 }
 0xd11   : > { %p10535_p2 = pnand %p10538_p1, %p10899_p6 }
 0xd13   : > { %10767 = dma.done.wait (!%p10535_p2), %s8861_s16, 128  }
 0xd14   : > { %10769 = vsyncadd (!%p10535_p2), %s8861_s16, 4294967168  ;;  %p22_p3 = scmp.ge.s32.totalorder %s10882_s27, 4   ;;  %s17381_s21 = smov %s10776_s22 }
 0xd15   : > { %s17382_s22 = smov %s10780_s23  ;;  %s17383_s23 = smov %s10893_s30 }
 0xd16   : > { %s17384_s24 = smov %s10882_s27  ;;  %24 = sbr.rel (!%p22_p3) target bundleno = 5 (0x5), region = 103 }
 0xd1d   :  { %8866 = vsyncpa [#allocation3], 1 }
 0xd1e   :  { %8868 = vsyncpa [#allocation3 + $0x1], 1 }

</bundles_post_ra>
